<compile_context>
chip_gen: v5e
topology: v5e:2x2
jax: 0.10.0
libtpu: 0.0.40
codegen_flags: <defaults>
</compile_context>

<pallas_src>
import math
import functools

import numpy as np
import jax
import jax.numpy as jnp
from jax.experimental import pallas as pl
from jax.experimental.pallas import tpu as pltpu

F32 = jnp.float32
BF16 = jnp.bfloat16
LN_EPS = 1e-5


def _smem_spec():
    return pl.BlockSpec(memory_space=pltpu.MemorySpace.SMEM)


def _const_spec(shape):
    nd = len(shape)
    return pl.BlockSpec(shape, lambda b: (0,) * nd)


# ---------------------------------------------------------------------------
# Kernel A: stage1 conv+LN+PReLU, LKA+gamma1 gate, stage2 conv+LN+PReLU, qkv.
# Layouts (lane-dense):
#   input x      : [H, W*C]          lane = w*C + c
#   joint slabs  : [H, W*2C]         lane = w*2C + branch*C + c
#   qkv output   : [H, W*6C]         lane = w*6C + qkv*2C + branch*C + c
# ---------------------------------------------------------------------------
def _make_kernel_a(H):
    def ln_prelu(y, avg, g, beta, alpha):
        mean = jnp.dot(y, avg, preferred_element_type=F32)
        yc = y - mean
        var = jnp.dot(yc * yc, avg, preferred_element_type=F32)
        yn = yc * jax.lax.rsqrt(var + LN_EPS)
        yn = yn * g + beta
        return jnp.where(yn > 0, yn, alpha * yn)

    def banded_conv(x, rpad, w_ref, ntaps):
        # x [H, N] f32 ; rpad [H+ntaps-1, H] bf16 ; w_ref [ntaps, N, M] bf16
        xr = jnp.dot(rpad, x.astype(BF16), preferred_element_type=F32)
        acc = None
        for i in range(ntaps):
            d = jnp.dot(xr[i:i + H, :].astype(BF16), w_ref[i],
                        preferred_element_type=F32)
            acc = d if acc is None else acc + d
        return acc

    def kernel(x_ref, rpad1_ref, rpad3_ref,
               w1_ref, b1_ref, g1_ref, be1_ref,
               wlka_ref, blka_ref,
               w2_ref, b2_ref, g2_ref, be2_ref,
               wqkv_ref, bqkv_ref, avg_ref, scal_ref,
               qkv_ref, y2_ref):
        alpha = scal_ref[0]
        gamma1 = scal_ref[1]
        avg = avg_ref[...]
        rpad1 = rpad1_ref[...]
        rpad3 = rpad3_ref[...]

        x = x_ref[0]                                        # [H, W*C] f32

        # stage 1: fused dual-branch 3x3 conv + LN + PReLU -> joint [H, W*2C]
        y1 = banded_conv(x, rpad1, w1_ref, 3) + b1_ref[...]
        y1 = ln_prelu(y1, avg, g1_ref[...], be1_ref[...], alpha)

        # LKA 7x7 (shared weights, branch-SWAPPED outputs) + gamma1 gate
        lka = banded_conv(y1, rpad3, wlka_ref, 7) + blka_ref[...]
        xhat = y1 + gamma1 * (lka * y1)

        # stage 2: per-branch 3x3 conv + LN + PReLU
        y2 = banded_conv(xhat, rpad1, w2_ref, 3) + b2_ref[...]
        y2 = ln_prelu(y2, avg, g2_ref[...], be2_ref[...], alpha)
        y2_ref[0] = y2

        # q/k/v projection (lane-dense, 1/sqrt(C) folded into Wq/bq)
        qkv_ref[0] = (jnp.dot(y2.astype(BF16), wqkv_ref[...],
                              preferred_element_type=F32) + bqkv_ref[...])

    return kernel


def _call_kernel_a(x_lane, prep, B, H, W, C):
    WC, WC2, WC6 = W * C, W * 2 * C, W * 6 * C
    return pl.pallas_call(
        _make_kernel_a(H),
        grid=(B,),
        in_specs=[
            pl.BlockSpec((1, H, WC), lambda b: (b, 0, 0)),   # x
            _const_spec((H + 2, H)),                         # rpad1
            _const_spec((H + 6, H)),                         # rpad3
            _const_spec((3, WC, WC2)),                       # band1
            _const_spec((1, WC2)), _const_spec((1, WC2)), _const_spec((1, WC2)),
            _const_spec((7, WC2, WC2)),                      # band7 (LKA)
            _const_spec((1, WC2)),                           # b_lka
            _const_spec((3, WC2, WC2)),                      # band2
            _const_spec((1, WC2)), _const_spec((1, WC2)), _const_spec((1, WC2)),
            _const_spec((WC2, WC6)),                         # w_qkv
            _const_spec((1, WC6)),                           # b_qkv
            _const_spec((WC2, WC2)),                         # avg256
            _smem_spec(),                                    # [alpha, gamma1]
        ],
        out_specs=[
            pl.BlockSpec((1, H, WC6), lambda b: (b, 0, 0)),
            pl.BlockSpec((1, H, WC2), lambda b: (b, 0, 0)),
        ],
        out_shape=[
            jax.ShapeDtypeStruct((B, H, WC6), F32),
            jax.ShapeDtypeStruct((B, H, WC2), F32),
        ],
        compiler_params=pltpu.CompilerParams(dimension_semantics=("parallel",)),
    )(x_lane,
      prep["rpad1"], prep["rpad3"],
      prep["band1"], prep["b1"], prep["g1"], prep["be1"],
      prep["band7"], prep["b_lka"],
      prep["band2"], prep["b2"], prep["g2"], prep["be2"],
      prep["w_qkv"], prep["b_qkv"], prep["avg256"], prep["smem_a"])


# ---------------------------------------------------------------------------
# Kernel B: batched local-window attention (scale already folded into q).
# ---------------------------------------------------------------------------
def _make_kernel_b(t_real):
    def kernel(q_ref, k_ref, v_ref, o_ref):
        q = q_ref[...]                                      # [wb, Tp, C]
        k = k_ref[...]
        v = v_ref[...]
        s = jnp.einsum('btc,bsc->bts', q, k, preferred_element_type=F32)
        kidx = jax.lax.broadcasted_iota(jnp.int32, s.shape, 2)
        s = jnp.where(kidx < t_real, s, -1e30)              # mask padded keys
        m = jnp.max(s, axis=-1, keepdims=True)
        p = jnp.exp(s - m)
        l = jnp.sum(p, axis=-1, keepdims=True)
        o = jnp.einsum('bts,bsc->btc', p, v, preferred_element_type=F32)
        o_ref[...] = o * pl.reciprocal(l, approx=True)
    return kernel


def _pick_wb(nwin, cap=18):
    wb = 1
    for d in range(1, min(nwin, cap) + 1):
        if nwin % d == 0:
            wb = d
    return wb


def _call_kernel_b(qw, kw_, vw, t_real):
    NW, Tp, C = qw.shape
    wb = _pick_wb(NW)
    spec = pl.BlockSpec((wb, Tp, C), lambda i: (i, 0, 0))
    return pl.pallas_call(
        _make_kernel_b(t_real),
        grid=(NW // wb,),
        in_specs=[spec, spec, spec],
        out_specs=spec,
        out_shape=jax.ShapeDtypeStruct((NW, Tp, C), F32),
        compiler_params=pltpu.CompilerParams(dimension_semantics=("parallel",)),
    )(qw, kw_, vw)


# ---------------------------------------------------------------------------
# Kernel C: out-proj (branch swap folded) + gamma2 gate + fusion 1x1 conv
#           + LN + PReLU + residual.
# ---------------------------------------------------------------------------
def _kernel_c(att_ref, y2_ref, x_ref, wo_ref, bo_ref, wf_ref, bfu_ref,
              gf_ref, bef_ref, avg_ref, scal_ref, out_ref):
    alpha = scal_ref[0]
    gamma2 = scal_ref[1]
    att = att_ref[0]                                        # [H, W*2C]
    y2 = y2_ref[0]
    gate = (jnp.dot(att.astype(BF16), wo_ref[...],
                    preferred_element_type=F32) + bo_ref[...])
    hat = y2 + gamma2 * (gate * y2)                          # (x1_2_hat|x2_2_hat)
    y = (jnp.dot(hat.astype(BF16), wf_ref[...],
                 preferred_element_type=F32) + bfu_ref[...])
    avg = avg_ref[...]
    mean = jnp.dot(y, avg, preferred_element_type=F32)
    yc = y - mean
    var = jnp.dot(yc * yc, avg, preferred_element_type=F32)
    yn = yc * jax.lax.rsqrt(var + LN_EPS) * gf_ref[...] + bef_ref[...]
    yn = jnp.where(yn > 0, yn, alpha * yn)
    out_ref[0] = yn + x_ref[0]


def _call_kernel_c(att_joint, y2_joint, x_lane, prep, B, H, W, C):
    WC, WC2 = W * C, W * 2 * C
    return pl.pallas_call(
        _kernel_c,
        grid=(B,),
        in_specs=[
            pl.BlockSpec((1, H, WC2), lambda b: (b, 0, 0)),  # attention (merged)
            pl.BlockSpec((1, H, WC2), lambda b: (b, 0, 0)),  # y2 (x1_2 | x2_2)
            pl.BlockSpec((1, H, WC), lambda b: (b, 0, 0)),   # residual x
            _const_spec((WC2, WC2)),                         # w_o (swapped)
            _const_spec((1, WC2)),                           # b_o
            _const_spec((WC2, WC)),                          # w_fuse
            _const_spec((1, WC)),                            # b_fuse
            _const_spec((1, WC)), _const_spec((1, WC)),      # lnf g / beta
            _const_spec((WC, WC)),                           # avg128
            _smem_spec(),                                    # [alpha, gamma2]
        ],
        out_specs=pl.BlockSpec((1, H, WC), lambda b: (b, 0, 0)),
        out_shape=jax.ShapeDtypeStruct((B, H, WC), F32),
        compiler_params=pltpu.CompilerParams(dimension_semantics=("parallel",)),
    )(att_joint, y2_joint, x_lane,
      prep["w_o_sw"], prep["b_o"], prep["w_fuse"], prep["b_fuse"],
      prep["g_f"], prep["be_f"], prep["avg128"], prep["smem_c"])


# ---------------------------------------------------------------------------
# One-time parameter preparation: banded / block-diagonal lane-dense weights.
# Conv weights use the [kh, kw, cin, cout] convention.
# ---------------------------------------------------------------------------
def _reflect(i, n):
    if i < 0:
        i = -i
    if i >= n:
        i = 2 * (n - 1) - i
    return i


def prepare_params(params, H, W, C):
    f32 = np.float32
    C2 = 2 * C
    p = {k: np.asarray(v, f32) for k, v in params.items()}

    def col_sel(k, pad):       # S[j, w_out, w_in] = 1 iff reflect(w_out+j-pad)==w_in
        S = np.zeros((k, W, W), f32)
        for j in range(k):
            for o in range(W):
                S[j, o, _reflect(o + j - pad, W)] = 1.0
        return S

    def row_pad(k, pad):       # R[a, reflect(a-pad)] = 1
        R = np.zeros((H + k - 1, H), f32)
        for a in range(H + k - 1):
            R[a, _reflect(a - pad, H)] = 1.0
        return R

    S3, S7 = col_sel(3, 1), col_sel(7, 3)
    rpad1, rpad3 = row_pad(3, 1), row_pad(7, 3)

    # stage-1: both branches fused on output lanes -> [3, W*C, W*2C]
    wcat = np.concatenate([p["w_c1b1"], p["w_c1b2"]], axis=-1)        # [3,3,C,2C]
    band1 = np.einsum("jow,ijck->iwcok", S3, wcat).reshape(3, W * C, W * C2)

    # LKA 7x7, shared weights, branch-SWAPPED output slots -> [7, W*2C, W*2C]
    t7 = np.einsum("jow,ijck->iwcok", S7, p["w_lka"])                 # [7,W,C,W,C]
    band7 = np.zeros((7, W, 2, C, W, 2, C), f32)
    band7[:, :, 0, :, :, 1, :] = t7      # branch-0 input -> gates branch-1 slot
    band7[:, :, 1, :, :, 0, :] = t7
    band7 = band7.reshape(7, W * C2, W * C2)

    # stage-2: per-branch block-diagonal -> [3, W*2C, W*2C]
    band2 = np.zeros((3, W, 2, C, W, 2, C), f32)
    band2[:, :, 0, :, :, 0, :] = np.einsum("jow,ijck->iwcok", S3, p["w_c2b1"])
    band2[:, :, 1, :, :, 1, :] = np.einsum("jow,ijck->iwcok", S3, p["w_c2b2"])
    band2 = band2.reshape(3, W * C2, W * C2)

    # per-pixel LayerNorm averaging matrices (8-lane channel groups)
    avg256 = np.kron(np.eye(2 * W, dtype=f32), np.ones((C, C), f32) / C)
    avg128 = np.kron(np.eye(W, dtype=f32), np.ones((C, C), f32) / C)

    # q/k/v 1x1 projection (shared across branches); 1/sqrt(C) folded into q
    sc = 1.0 / math.sqrt(C)

    def blk2(w):
        z = np.zeros((C2, C2), f32)
        z[:C, :C] = w
        z[C:, C:] = w
        return z

    pqkv = np.concatenate([blk2(p["w_q"] * sc), blk2(p["w_k"]), blk2(p["w_v"])],
                          axis=1)                                     # [2C, 6C]
    w_qkv = np.kron(np.eye(W, dtype=f32), pqkv)                       # [W*2C, W*6C]
    b_qkv = np.tile(np.concatenate([np.tile(p["b_q"] * sc, 2),
                                    np.tile(p["b_k"], 2),
                                    np.tile(p["b_v"], 2)]), W)

    # attention out-projection with built-in branch swap (for the gamma2 gate)
    po = np.zeros((C2, C2), f32)
    po[:C, C:] = p["w_o"]
    po[C:, :C] = p["w_o"]
    w_o_sw = np.kron(np.eye(W, dtype=f32), po)
    b_o = np.tile(np.tile(p["b_o"], 2), W)

    # fusion 1x1 over concatenated branch channels
    w_fuse = np.kron(np.eye(W, dtype=f32), p["w_fuse"])               # [W*2C, W*C]
    b_fuse = np.tile(p["b_fuse"], W)

    def tile2(a, b):
        return np.tile(np.concatenate([a, b]), W)

    def row(v):
        return jnp.asarray(np.asarray(v, f32).reshape(1, -1), F32)

    return {
        "rpad1": jnp.asarray(rpad1, BF16),
        "rpad3": jnp.asarray(rpad3, BF16),
        "band1": jnp.asarray(band1, BF16),
        "band7": jnp.asarray(band7, BF16),
        "band2": jnp.asarray(band2, BF16),
        "w_qkv": jnp.asarray(w_qkv, BF16),
        "w_o_sw": jnp.asarray(w_o_sw, BF16),
        "w_fuse": jnp.asarray(w_fuse, BF16),
        "avg256": jnp.asarray(avg256, F32),
        "avg128": jnp.asarray(avg128, F32),
        "b1": row(tile2(p["b_c1b1"], p["b_c1b2"])),
        "g1": row(tile2(p["ln1b1_g"], p["ln1b2_g"])),
        "be1": row(tile2(p["ln1b1_b"], p["ln1b2_b"])),
        "b_lka": row(np.tile(np.tile(p["b_lka"], 2), W)),
        "b2": row(tile2(p["b_c2b1"], p["b_c2b2"])),
        "g2": row(tile2(p["ln2b1_g"], p["ln2b2_g"])),
        "be2": row(tile2(p["ln2b1_b"], p["ln2b2_b"])),
        "b_qkv": row(b_qkv),
        "b_o": row(b_o),
        "b_fuse": row(b_fuse),
        "g_f": row(np.tile(p["lnf_g"], W)),
        "be_f": row(np.tile(p["lnf_b"], W)),
        "smem_a": jnp.asarray([float(p["prelu_alpha"].reshape(-1)[0]),
                               float(p["gamma1"].reshape(-1)[0])], F32),
        "smem_c": jnp.asarray([float(p["prelu_alpha"].reshape(-1)[0]),
                               float(p["gamma2"].reshape(-1)[0])], F32),
    }


# ---------------------------------------------------------------------------
# SRBlock forward
# ---------------------------------------------------------------------------
@functools.partial(jax.jit, static_argnames=("window_size",))
def sr_block_forward(x_nchw, prep, window_size=7):
    B, C, H, W = x_nchw.shape
    ws = window_size
    x_lane = jnp.transpose(x_nchw, (0, 2, 3, 1)).reshape(B, H, W * C).astype(F32)

    # ---- kernel A: stage1 + LKA gate + stage2 + qkv (per-image, parallel) ----
    qkv_joint, y2_joint = _call_kernel_a(x_lane, prep, B, H, W, C)

    # ---- XLA glue: LWA spatial reflect pad + window partition (tiny) --------
    pad_h = (ws - H % ws) % ws
    pad_w = (ws - W % ws) % ws
    Hp, Wp = H + pad_h, W + pad_w
    nh, nw = Hp // ws, Wp // ws
    T = ws * ws
    Tp = ((T + 7) // 8) * 8

    qkv = qkv_joint.reshape(B, H, W, 3, 2, C)
    qkv = jnp.pad(qkv, ((0, 0), (0, pad_h), (0, pad_w), (0, 0), (0, 0), (0, 0)),
                  mode="reflect")
    qkv = qkv.reshape(B, nh, ws, nw, ws, 3, 2, C)
    qkv = jnp.transpose(qkv, (5, 6, 0, 1, 3, 2, 4, 7))   # [3, 2, B, nh, nw, ws, ws, C]
    qkv = qkv.reshape(3, 2 * B * nh * nw, T, C)
    qkv = jnp.pad(qkv, ((0, 0), (0, 0), (0, Tp - T), (0, 0)))

    # ---- kernel B: batched window attention ---------------------------------
    o_win = _call_kernel_b(qkv[0], qkv[1], qkv[2], T)

    # ---- XLA glue: inverse window partition + crop ---------------------------
    ow = o_win[:, :T, :].reshape(2, B, nh, nw, ws, ws, C)
    ow = jnp.transpose(ow, (1, 2, 4, 3, 5, 0, 6))         # [B, nh, ws, nw, ws, 2, C]
    ow = ow.reshape(B, Hp, Wp, 2, C)[:, :H, :W]
    att_joint = ow.reshape(B, H, W * 2 * C)

    # ---- kernel C: out-proj + gamma2 gate + fusion + LN + PReLU + residual ---
    out_lane = _call_kernel_c(att_joint, y2_joint, x_lane, prep, B, H, W, C)
    out = out_lane.reshape(B, H, W, C)
    return jnp.transpose(out, (0, 3, 1, 2))               # back to NCHW


# ---------------------------------------------------------------------------
# deterministic synthetic parameters (shapes follow the PyTorch module;
# conv weights in [kh, kw, cin, cout] / 1x1 weights in [cin, cout] convention)
# ---------------------------------------------------------------------------
def init_params(key, C):
    keys = jax.random.split(key, 24)
    it = iter(range(24))

    def w(shape, scale=0.1):
        return jax.random.normal(keys[next(it)], shape, F32) * scale

    ones_c = jnp.ones((C,), F32)
    zeros_c = jnp.zeros((C,), F32)
    return {
        "w_c1b1": w((3, 3, C, C)), "b_c1b1": w((C,), 0.02),
        "w_c1b2": w((3, 3, C, C)), "b_c1b2": w((C,), 0.02),
        "ln1b1_g": ones_c, "ln1b1_b": zeros_c,
        "ln1b2_g": ones_c, "ln1b2_b": zeros_c,
        "prelu_alpha": jnp.full((1, 1), 0.25, F32),
        "w_lka": w((7, 7, C, C), 0.05), "b_lka": w((C,), 0.02),
        "gamma1": jnp.ones((1, 1), F32),
        "w_c2b1": w((3, 3, C, C)), "b_c2b1": w((C,), 0.02),
        "w_c2b2": w((3, 3, C, C)), "b_c2b2": w((C,), 0.02),
        "ln2b1_g": ones_c, "ln2b1_b": zeros_c,
        "ln2b2_g": ones_c, "ln2b2_b": zeros_c,
        "w_q": w((C, C)), "b_q": w((C,), 0.02),
        "w_k": w((C, C)), "b_k": w((C,), 0.02),
        "w_v": w((C, C)), "b_v": w((C,), 0.02),
        "w_o": w((C, C)), "b_o": w((C,), 0.02),
        "gamma2": jnp.ones((1, 1), F32),
        "w_fuse": w((2 * C, C)), "b_fuse": w((C,), 0.02),
        "lnf_g": ones_c, "lnf_b": zeros_c,
    }


if __name__ == "__main__":
    B, C, H, W = 2, 8, 16, 16
    window_size = 7

    key = jax.random.PRNGKey(0)
    kx, kp = jax.random.split(key)
    x = jax.random.normal(kx, (B, C, H, W), F32)
    params = init_params(kp, C)
    prep = prepare_params(params, H, W, C)

    out = sr_block_forward(x, prep, window_size=window_size)
    out = jax.block_until_ready(out)

    assert out.shape == (B, C, H, W), out.shape
    assert bool(jnp.all(jnp.isfinite(out)))
    print("KERNEL_OK")
</pallas_src>

<mosaic_0001>
module attributes {stable_mosaic.version = 11 : i64} {
  func.func @kernel(%arg0: i32, %arg1: memref<1x16x128xf32, #tpu.memory_space<vmem>>, %arg2: memref<18x16xbf16, #tpu.memory_space<vmem>>, %arg3: memref<22x16xbf16, #tpu.memory_space<vmem>>, %arg4: memref<3x128x256xbf16, #tpu.memory_space<vmem>>, %arg5: memref<1x256xf32, #tpu.memory_space<vmem>>, %arg6: memref<1x256xf32, #tpu.memory_space<vmem>>, %arg7: memref<1x256xf32, #tpu.memory_space<vmem>>, %arg8: memref<7x256x256xbf16, #tpu.memory_space<vmem>>, %arg9: memref<1x256xf32, #tpu.memory_space<vmem>>, %arg10: memref<3x256x256xbf16, #tpu.memory_space<vmem>>, %arg11: memref<1x256xf32, #tpu.memory_space<vmem>>, %arg12: memref<1x256xf32, #tpu.memory_space<vmem>>, %arg13: memref<1x256xf32, #tpu.memory_space<vmem>>, %arg14: memref<256x768xbf16, #tpu.memory_space<vmem>>, %arg15: memref<1x768xf32, #tpu.memory_space<vmem>>, %arg16: memref<256x256xf32, #tpu.memory_space<vmem>>, %arg17: memref<2xf32, #tpu.memory_space<smem>>, %arg18: memref<1x16x768xf32, #tpu.memory_space<vmem>>, %arg19: memref<1x16x256xf32, #tpu.memory_space<vmem>>) attributes {dimension_semantics = [#tpu.dimension_semantics<parallel>], iteration_bounds = array<i64: 2>, scalar_prefetch = 0 : i64, scratch_operands = 0 : i64, tpu.core_type = #tpu.core_type<tc>, window_params = [{transform_indices = @transform_0, window_bounds = array<i64: 1, 16, 128>}, {pipeline_mode = #tpu.pipeline_mode<synchronous>, transform_indices = @transform_1, window_bounds = array<i64: 18, 16>}, {pipeline_mode = #tpu.pipeline_mode<synchronous>, transform_indices = @transform_2, window_bounds = array<i64: 22, 16>}, {pipeline_mode = #tpu.pipeline_mode<synchronous>, transform_indices = @transform_3, window_bounds = array<i64: 3, 128, 256>}, {pipeline_mode = #tpu.pipeline_mode<synchronous>, transform_indices = @transform_4, window_bounds = array<i64: 1, 256>}, {pipeline_mode = #tpu.pipeline_mode<synchronous>, transform_indices = @transform_5, window_bounds = array<i64: 1, 256>}, {pipeline_mode = #tpu.pipeline_mode<synchronous>, transform_indices = @transform_6, window_bounds = array<i64: 1, 256>}, {pipeline_mode = #tpu.pipeline_mode<synchronous>, transform_indices = @transform_7, window_bounds = array<i64: 7, 256, 256>}, {pipeline_mode = #tpu.pipeline_mode<synchronous>, transform_indices = @transform_8, window_bounds = array<i64: 1, 256>}, {pipeline_mode = #tpu.pipeline_mode<synchronous>, transform_indices = @transform_9, window_bounds = array<i64: 3, 256, 256>}, {pipeline_mode = #tpu.pipeline_mode<synchronous>, transform_indices = @transform_10, window_bounds = array<i64: 1, 256>}, {pipeline_mode = #tpu.pipeline_mode<synchronous>, transform_indices = @transform_11, window_bounds = array<i64: 1, 256>}, {pipeline_mode = #tpu.pipeline_mode<synchronous>, transform_indices = @transform_12, window_bounds = array<i64: 1, 256>}, {pipeline_mode = #tpu.pipeline_mode<synchronous>, transform_indices = @transform_13, window_bounds = array<i64: 256, 768>}, {pipeline_mode = #tpu.pipeline_mode<synchronous>, transform_indices = @transform_14, window_bounds = array<i64: 1, 768>}, {pipeline_mode = #tpu.pipeline_mode<synchronous>, transform_indices = @transform_15, window_bounds = array<i64: 256, 256>}, {transform_indices = @transform_16, window_bounds = array<i64: 2>}, {transform_indices = @transform_17, window_bounds = array<i64: 1, 16, 768>}, {transform_indices = @transform_18, window_bounds = array<i64: 1, 16, 256>}]} {
    %c0 = arith.constant 0 : index
    %0 = memref.load %arg17[%c0] : memref<2xf32, #tpu.memory_space<smem>>
    %c1 = arith.constant 1 : index
    %1 = memref.load %arg17[%c1] : memref<2xf32, #tpu.memory_space<smem>>
    %c0_0 = arith.constant 0 : index
    %c0_1 = arith.constant 0 : index
    %2 = vector.load %arg16[%c0_0, %c0_1] : memref<256x256xf32, #tpu.memory_space<vmem>>, vector<256x256xf32>
    %c0_2 = arith.constant 0 : index
    %c0_3 = arith.constant 0 : index
    %3 = vector.load %arg2[%c0_2, %c0_3] : memref<18x16xbf16, #tpu.memory_space<vmem>>, vector<18x16xbf16>
    %c0_4 = arith.constant 0 : index
    %c0_5 = arith.constant 0 : index
    %4 = vector.load %arg3[%c0_4, %c0_5] : memref<22x16xbf16, #tpu.memory_space<vmem>>, vector<22x16xbf16>
    %c0_6 = arith.constant 0 : index
    %c0_7 = arith.constant 0 : index
    %c0_8 = arith.constant 0 : index
    %5 = vector.load %arg1[%c0_6, %c0_7, %c0_8] : memref<1x16x128xf32, #tpu.memory_space<vmem>>, vector<1x16x128xf32>
    %6 = vector.shape_cast %5 : vector<1x16x128xf32> to vector<16x128xf32>
    %7 = arith.truncf %6 : vector<16x128xf32> to vector<16x128xbf16>
    %cst = arith.constant dense<0.000000e+00> : vector<18x128xf32>
    %8 = tpu.matmul %3, %7, %cst {dimension_numbers = #tpu.dot_dimension_numbers<[1], [0], [0], [1], [0, 0, 1, 1], [], []>} : vector<18x16xbf16>, vector<16x128xbf16>, vector<18x128xf32> -> vector<18x128xf32>
    %9 = vector.extract_strided_slice %8 {offsets = [0, 0], sizes = [16, 128], strides = [1, 1]} : vector<18x128xf32> to vector<16x128xf32>
    %10 = arith.truncf %9 : vector<16x128xf32> to vector<16x128xbf16>
    %c0_9 = arith.constant 0 : index
    %c0_10 = arith.constant 0 : index
    %c0_11 = arith.constant 0 : index
    %11 = vector.load %arg4[%c0_9, %c0_10, %c0_11] : memref<3x128x256xbf16, #tpu.memory_space<vmem>>, vector<1x128x256xbf16>
    %12 = vector.shape_cast %11 : vector<1x128x256xbf16> to vector<128x256xbf16>
    %cst_12 = arith.constant dense<0.000000e+00> : vector<16x256xf32>
    %13 = tpu.matmul %10, %12, %cst_12 {dimension_numbers = #tpu.dot_dimension_numbers<[1], [0], [0], [1], [0, 0, 1, 1], [], []>} : vector<16x128xbf16>, vector<128x256xbf16>, vector<16x256xf32> -> vector<16x256xf32>
    %14 = vector.extract_strided_slice %8 {offsets = [1, 0], sizes = [16, 128], strides = [1, 1]} : vector<18x128xf32> to vector<16x128xf32>
    %15 = arith.truncf %14 : vector<16x128xf32> to vector<16x128xbf16>
    %c1_13 = arith.constant 1 : index
    %c0_14 = arith.constant 0 : index
    %c0_15 = arith.constant 0 : index
    %16 = vector.load %arg4[%c1_13, %c0_14, %c0_15] : memref<3x128x256xbf16, #tpu.memory_space<vmem>>, vector<1x128x256xbf16>
    %17 = vector.shape_cast %16 : vector<1x128x256xbf16> to vector<128x256xbf16>
    %cst_16 = arith.constant dense<0.000000e+00> : vector<16x256xf32>
    %18 = tpu.matmul %15, %17, %cst_16 {dimension_numbers = #tpu.dot_dimension_numbers<[1], [0], [0], [1], [0, 0, 1, 1], [], []>} : vector<16x128xbf16>, vector<128x256xbf16>, vector<16x256xf32> -> vector<16x256xf32>
    %19 = arith.addf %13, %18 : vector<16x256xf32>
    %20 = vector.extract_strided_slice %8 {offsets = [2, 0], sizes = [16, 128], strides = [1, 1]} : vector<18x128xf32> to vector<16x128xf32>
    %21 = arith.truncf %20 : vector<16x128xf32> to vector<16x128xbf16>
    %c2 = arith.constant 2 : index
    %c0_17 = arith.constant 0 : index
    %c0_18 = arith.constant 0 : index
    %22 = vector.load %arg4[%c2, %c0_17, %c0_18] : memref<3x128x256xbf16, #tpu.memory_space<vmem>>, vector<1x128x256xbf16>
    %23 = vector.shape_cast %22 : vector<1x128x256xbf16> to vector<128x256xbf16>
    %cst_19 = arith.constant dense<0.000000e+00> : vector<16x256xf32>
    %24 = tpu.matmul %21, %23, %cst_19 {dimension_numbers = #tpu.dot_dimension_numbers<[1], [0], [0], [1], [0, 0, 1, 1], [], []>} : vector<16x128xbf16>, vector<128x256xbf16>, vector<16x256xf32> -> vector<16x256xf32>
    %25 = arith.addf %19, %24 : vector<16x256xf32>
    %c0_20 = arith.constant 0 : index
    %c0_21 = arith.constant 0 : index
    %26 = vector.load %arg5[%c0_20, %c0_21] : memref<1x256xf32, #tpu.memory_space<vmem>>, vector<1x256xf32>
    %27 = vector.broadcast %26 : vector<1x256xf32> to vector<16x256xf32>
    %28 = arith.addf %25, %27 : vector<16x256xf32>
    %c0_22 = arith.constant 0 : index
    %c0_23 = arith.constant 0 : index
    %29 = vector.load %arg6[%c0_22, %c0_23] : memref<1x256xf32, #tpu.memory_space<vmem>>, vector<1x256xf32>
    %c0_24 = arith.constant 0 : index
    %c0_25 = arith.constant 0 : index
    %30 = vector.load %arg7[%c0_24, %c0_25] : memref<1x256xf32, #tpu.memory_space<vmem>>, vector<1x256xf32>
    %cst_26 = arith.constant dense<0.000000e+00> : vector<16x256xf32>
    %31 = tpu.matmul %28, %2, %cst_26 {dimension_numbers = #tpu.dot_dimension_numbers<[1], [0], [0], [1], [0, 0, 1, 1], [], []>} : vector<16x256xf32>, vector<256x256xf32>, vector<16x256xf32> -> vector<16x256xf32>
    %32 = arith.subf %28, %31 : vector<16x256xf32>
    %33 = arith.mulf %32, %32 : vector<16x256xf32>
    %cst_27 = arith.constant dense<0.000000e+00> : vector<16x256xf32>
    %34 = tpu.matmul %33, %2, %cst_27 {dimension_numbers = #tpu.dot_dimension_numbers<[1], [0], [0], [1], [0, 0, 1, 1], [], []>} : vector<16x256xf32>, vector<256x256xf32>, vector<16x256xf32> -> vector<16x256xf32>
    %cst_28 = arith.constant 9.99999974E-6 : f32
    %35 = vector.broadcast %cst_28 : f32 to vector<16x256xf32>
    %36 = arith.addf %34, %35 : vector<16x256xf32>
    %37 = math.rsqrt %36 : vector<16x256xf32>
    %38 = arith.mulf %32, %37 : vector<16x256xf32>
    %39 = vector.broadcast %29 : vector<1x256xf32> to vector<16x256xf32>
    %40 = arith.mulf %38, %39 : vector<16x256xf32>
    %41 = vector.broadcast %30 : vector<1x256xf32> to vector<16x256xf32>
    %42 = arith.addf %40, %41 : vector<16x256xf32>
    %cst_29 = arith.constant 0.000000e+00 : f32
    %43 = vector.broadcast %cst_29 : f32 to vector<16x256xf32>
    %44 = arith.cmpf ogt, %42, %43 : vector<16x256xf32>
    %45 = vector.broadcast %0 : f32 to vector<16x256xf32>
    %46 = arith.mulf %45, %42 : vector<16x256xf32>
    %47 = arith.select %44, %42, %46 : vector<16x256xi1>, vector<16x256xf32>
    %48 = arith.truncf %47 : vector<16x256xf32> to vector<16x256xbf16>
    %cst_30 = arith.constant dense<0.000000e+00> : vector<22x256xf32>
    %49 = tpu.matmul %4, %48, %cst_30 {dimension_numbers = #tpu.dot_dimension_numbers<[1], [0], [0], [1], [0, 0, 1, 1], [], []>} : vector<22x16xbf16>, vector<16x256xbf16>, vector<22x256xf32> -> vector<22x256xf32>
    %50 = vector.extract_strided_slice %49 {offsets = [0, 0], sizes = [16, 256], strides = [1, 1]} : vector<22x256xf32> to vector<16x256xf32>
    %51 = arith.truncf %50 : vector<16x256xf32> to vector<16x256xbf16>
    %c0_31 = arith.constant 0 : index
    %c0_32 = arith.constant 0 : index
    %c0_33 = arith.constant 0 : index
    %52 = vector.load %arg8[%c0_31, %c0_32, %c0_33] : memref<7x256x256xbf16, #tpu.memory_space<vmem>>, vector<1x256x256xbf16>
    %53 = vector.shape_cast %52 : vector<1x256x256xbf16> to vector<256x256xbf16>
    %cst_34 = arith.constant dense<0.000000e+00> : vector<16x256xf32>
    %54 = tpu.matmul %51, %53, %cst_34 {dimension_numbers = #tpu.dot_dimension_numbers<[1], [0], [0], [1], [0, 0, 1, 1], [], []>} : vector<16x256xbf16>, vector<256x256xbf16>, vector<16x256xf32> -> vector<16x256xf32>
    %55 = vector.extract_strided_slice %49 {offsets = [1, 0], sizes = [16, 256], strides = [1, 1]} : vector<22x256xf32> to vector<16x256xf32>
    %56 = arith.truncf %55 : vector<16x256xf32> to vector<16x256xbf16>
    %c1_35 = arith.constant 1 : index
    %c0_36 = arith.constant 0 : index
    %c0_37 = arith.constant 0 : index
    %57 = vector.load %arg8[%c1_35, %c0_36, %c0_37] : memref<7x256x256xbf16, #tpu.memory_space<vmem>>, vector<1x256x256xbf16>
    %58 = vector.shape_cast %57 : vector<1x256x256xbf16> to vector<256x256xbf16>
    %cst_38 = arith.constant dense<0.000000e+00> : vector<16x256xf32>
    %59 = tpu.matmul %56, %58, %cst_38 {dimension_numbers = #tpu.dot_dimension_numbers<[1], [0], [0], [1], [0, 0, 1, 1], [], []>} : vector<16x256xbf16>, vector<256x256xbf16>, vector<16x256xf32> -> vector<16x256xf32>
    %60 = arith.addf %54, %59 : vector<16x256xf32>
    %61 = vector.extract_strided_slice %49 {offsets = [2, 0], sizes = [16, 256], strides = [1, 1]} : vector<22x256xf32> to vector<16x256xf32>
    %62 = arith.truncf %61 : vector<16x256xf32> to vector<16x256xbf16>
    %c2_39 = arith.constant 2 : index
    %c0_40 = arith.constant 0 : index
    %c0_41 = arith.constant 0 : index
    %63 = vector.load %arg8[%c2_39, %c0_40, %c0_41] : memref<7x256x256xbf16, #tpu.memory_space<vmem>>, vector<1x256x256xbf16>
    %64 = vector.shape_cast %63 : vector<1x256x256xbf16> to vector<256x256xbf16>
    %cst_42 = arith.constant dense<0.000000e+00> : vector<16x256xf32>
    %65 = tpu.matmul %62, %64, %cst_42 {dimension_numbers = #tpu.dot_dimension_numbers<[1], [0], [0], [1], [0, 0, 1, 1], [], []>} : vector<16x256xbf16>, vector<256x256xbf16>, vector<16x256xf32> -> vector<16x256xf32>
    %66 = arith.addf %60, %65 : vector<16x256xf32>
    %67 = vector.extract_strided_slice %49 {offsets = [3, 0], sizes = [16, 256], strides = [1, 1]} : vector<22x256xf32> to vector<16x256xf32>
    %68 = arith.truncf %67 : vector<16x256xf32> to vector<16x256xbf16>
    %c3 = arith.constant 3 : index
    %c0_43 = arith.constant 0 : index
    %c0_44 = arith.constant 0 : index
    %69 = vector.load %arg8[%c3, %c0_43, %c0_44] : memref<7x256x256xbf16, #tpu.memory_space<vmem>>, vector<1x256x256xbf16>
    %70 = vector.shape_cast %69 : vector<1x256x256xbf16> to vector<256x256xbf16>
    %cst_45 = arith.constant dense<0.000000e+00> : vector<16x256xf32>
    %71 = tpu.matmul %68, %70, %cst_45 {dimension_numbers = #tpu.dot_dimension_numbers<[1], [0], [0], [1], [0, 0, 1, 1], [], []>} : vector<16x256xbf16>, vector<256x256xbf16>, vector<16x256xf32> -> vector<16x256xf32>
    %72 = arith.addf %66, %71 : vector<16x256xf32>
    %73 = vector.extract_strided_slice %49 {offsets = [4, 0], sizes = [16, 256], strides = [1, 1]} : vector<22x256xf32> to vector<16x256xf32>
    %74 = arith.truncf %73 : vector<16x256xf32> to vector<16x256xbf16>
    %c4 = arith.constant 4 : index
    %c0_46 = arith.constant 0 : index
    %c0_47 = arith.constant 0 : index
    %75 = vector.load %arg8[%c4, %c0_46, %c0_47] : memref<7x256x256xbf16, #tpu.memory_space<vmem>>, vector<1x256x256xbf16>
    %76 = vector.shape_cast %75 : vector<1x256x256xbf16> to vector<256x256xbf16>
    %cst_48 = arith.constant dense<0.000000e+00> : vector<16x256xf32>
    %77 = tpu.matmul %74, %76, %cst_48 {dimension_numbers = #tpu.dot_dimension_numbers<[1], [0], [0], [1], [0, 0, 1, 1], [], []>} : vector<16x256xbf16>, vector<256x256xbf16>, vector<16x256xf32> -> vector<16x256xf32>
    %78 = arith.addf %72, %77 : vector<16x256xf32>
    %79 = vector.extract_strided_slice %49 {offsets = [5, 0], sizes = [16, 256], strides = [1, 1]} : vector<22x256xf32> to vector<16x256xf32>
    %80 = arith.truncf %79 : vector<16x256xf32> to vector<16x256xbf16>
    %c5 = arith.constant 5 : index
    %c0_49 = arith.constant 0 : index
    %c0_50 = arith.constant 0 : index
    %81 = vector.load %arg8[%c5, %c0_49, %c0_50] : memref<7x256x256xbf16, #tpu.memory_space<vmem>>, vector<1x256x256xbf16>
    %82 = vector.shape_cast %81 : vector<1x256x256xbf16> to vector<256x256xbf16>
    %cst_51 = arith.constant dense<0.000000e+00> : vector<16x256xf32>
    %83 = tpu.matmul %80, %82, %cst_51 {dimension_numbers = #tpu.dot_dimension_numbers<[1], [0], [0], [1], [0, 0, 1, 1], [], []>} : vector<16x256xbf16>, vector<256x256xbf16>, vector<16x256xf32> -> vector<16x256xf32>
    %84 = arith.addf %78, %83 : vector<16x256xf32>
    %85 = vector.extract_strided_slice %49 {offsets = [6, 0], sizes = [16, 256], strides = [1, 1]} : vector<22x256xf32> to vector<16x256xf32>
    %86 = arith.truncf %85 : vector<16x256xf32> to vector<16x256xbf16>
    %c6 = arith.constant 6 : index
    %c0_52 = arith.constant 0 : index
    %c0_53 = arith.constant 0 : index
    %87 = vector.load %arg8[%c6, %c0_52, %c0_53] : memref<7x256x256xbf16, #tpu.memory_space<vmem>>, vector<1x256x256xbf16>
    %88 = vector.shape_cast %87 : vector<1x256x256xbf16> to vector<256x256xbf16>
    %cst_54 = arith.constant dense<0.000000e+00> : vector<16x256xf32>
    %89 = tpu.matmul %86, %88, %cst_54 {dimension_numbers = #tpu.dot_dimension_numbers<[1], [0], [0], [1], [0, 0, 1, 1], [], []>} : vector<16x256xbf16>, vector<256x256xbf16>, vector<16x256xf32> -> vector<16x256xf32>
    %90 = arith.addf %84, %89 : vector<16x256xf32>
    %c0_55 = arith.constant 0 : index
    %c0_56 = arith.constant 0 : index
    %91 = vector.load %arg9[%c0_55, %c0_56] : memref<1x256xf32, #tpu.memory_space<vmem>>, vector<1x256xf32>
    %92 = vector.broadcast %91 : vector<1x256xf32> to vector<16x256xf32>
    %93 = arith.addf %90, %92 : vector<16x256xf32>
    %94 = arith.mulf %93, %47 : vector<16x256xf32>
    %95 = vector.broadcast %1 : f32 to vector<16x256xf32>
    %96 = arith.mulf %95, %94 : vector<16x256xf32>
    %97 = arith.addf %47, %96 : vector<16x256xf32>
    %98 = arith.truncf %97 : vector<16x256xf32> to vector<16x256xbf16>
    %cst_57 = arith.constant dense<0.000000e+00> : vector<18x256xf32>
    %99 = tpu.matmul %3, %98, %cst_57 {dimension_numbers = #tpu.dot_dimension_numbers<[1], [0], [0], [1], [0, 0, 1, 1], [], []>} : vector<18x16xbf16>, vector<16x256xbf16>, vector<18x256xf32> -> vector<18x256xf32>
    %100 = vector.extract_strided_slice %99 {offsets = [0, 0], sizes = [16, 256], strides = [1, 1]} : vector<18x256xf32> to vector<16x256xf32>
    %101 = arith.truncf %100 : vector<16x256xf32> to vector<16x256xbf16>
    %c0_58 = arith.constant 0 : index
    %c0_59 = arith.constant 0 : index
    %c0_60 = arith.constant 0 : index
    %102 = vector.load %arg10[%c0_58, %c0_59, %c0_60] : memref<3x256x256xbf16, #tpu.memory_space<vmem>>, vector<1x256x256xbf16>
    %103 = vector.shape_cast %102 : vector<1x256x256xbf16> to vector<256x256xbf16>
    %cst_61 = arith.constant dense<0.000000e+00> : vector<16x256xf32>
    %104 = tpu.matmul %101, %103, %cst_61 {dimension_numbers = #tpu.dot_dimension_numbers<[1], [0], [0], [1], [0, 0, 1, 1], [], []>} : vector<16x256xbf16>, vector<256x256xbf16>, vector<16x256xf32> -> vector<16x256xf32>
    %105 = vector.extract_strided_slice %99 {offsets = [1, 0], sizes = [16, 256], strides = [1, 1]} : vector<18x256xf32> to vector<16x256xf32>
    %106 = arith.truncf %105 : vector<16x256xf32> to vector<16x256xbf16>
    %c1_62 = arith.constant 1 : index
    %c0_63 = arith.constant 0 : index
    %c0_64 = arith.constant 0 : index
    %107 = vector.load %arg10[%c1_62, %c0_63, %c0_64] : memref<3x256x256xbf16, #tpu.memory_space<vmem>>, vector<1x256x256xbf16>
    %108 = vector.shape_cast %107 : vector<1x256x256xbf16> to vector<256x256xbf16>
    %cst_65 = arith.constant dense<0.000000e+00> : vector<16x256xf32>
    %109 = tpu.matmul %106, %108, %cst_65 {dimension_numbers = #tpu.dot_dimension_numbers<[1], [0], [0], [1], [0, 0, 1, 1], [], []>} : vector<16x256xbf16>, vector<256x256xbf16>, vector<16x256xf32> -> vector<16x256xf32>
    %110 = arith.addf %104, %109 : vector<16x256xf32>
    %111 = vector.extract_strided_slice %99 {offsets = [2, 0], sizes = [16, 256], strides = [1, 1]} : vector<18x256xf32> to vector<16x256xf32>
    %112 = arith.truncf %111 : vector<16x256xf32> to vector<16x256xbf16>
    %c2_66 = arith.constant 2 : index
    %c0_67 = arith.constant 0 : index
    %c0_68 = arith.constant 0 : index
    %113 = vector.load %arg10[%c2_66, %c0_67, %c0_68] : memref<3x256x256xbf16, #tpu.memory_space<vmem>>, vector<1x256x256xbf16>
    %114 = vector.shape_cast %113 : vector<1x256x256xbf16> to vector<256x256xbf16>
    %cst_69 = arith.constant dense<0.000000e+00> : vector<16x256xf32>
    %115 = tpu.matmul %112, %114, %cst_69 {dimension_numbers = #tpu.dot_dimension_numbers<[1], [0], [0], [1], [0, 0, 1, 1], [], []>} : vector<16x256xbf16>, vector<256x256xbf16>, vector<16x256xf32> -> vector<16x256xf32>
    %116 = arith.addf %110, %115 : vector<16x256xf32>
    %c0_70 = arith.constant 0 : index
    %c0_71 = arith.constant 0 : index
    %117 = vector.load %arg11[%c0_70, %c0_71] : memref<1x256xf32, #tpu.memory_space<vmem>>, vector<1x256xf32>
    %118 = vector.broadcast %117 : vector<1x256xf32> to vector<16x256xf32>
    %119 = arith.addf %116, %118 : vector<16x256xf32>
    %c0_72 = arith.constant 0 : index
    %c0_73 = arith.constant 0 : index
    %120 = vector.load %arg12[%c0_72, %c0_73] : memref<1x256xf32, #tpu.memory_space<vmem>>, vector<1x256xf32>
    %c0_74 = arith.constant 0 : index
    %c0_75 = arith.constant 0 : index
    %121 = vector.load %arg13[%c0_74, %c0_75] : memref<1x256xf32, #tpu.memory_space<vmem>>, vector<1x256xf32>
    %cst_76 = arith.constant dense<0.000000e+00> : vector<16x256xf32>
    %122 = tpu.matmul %119, %2, %cst_76 {dimension_numbers = #tpu.dot_dimension_numbers<[1], [0], [0], [1], [0, 0, 1, 1], [], []>} : vector<16x256xf32>, vector<256x256xf32>, vector<16x256xf32> -> vector<16x256xf32>
    %123 = arith.subf %119, %122 : vector<16x256xf32>
    %124 = arith.mulf %123, %123 : vector<16x256xf32>
    %cst_77 = arith.constant dense<0.000000e+00> : vector<16x256xf32>
    %125 = tpu.matmul %124, %2, %cst_77 {dimension_numbers = #tpu.dot_dimension_numbers<[1], [0], [0], [1], [0, 0, 1, 1], [], []>} : vector<16x256xf32>, vector<256x256xf32>, vector<16x256xf32> -> vector<16x256xf32>
    %cst_78 = arith.constant 9.99999974E-6 : f32
    %126 = vector.broadcast %cst_78 : f32 to vector<16x256xf32>
    %127 = arith.addf %125, %126 : vector<16x256xf32>
    %128 = math.rsqrt %127 : vector<16x256xf32>
    %129 = arith.mulf %123, %128 : vector<16x256xf32>
    %130 = vector.broadcast %120 : vector<1x256xf32> to vector<16x256xf32>
    %131 = arith.mulf %129, %130 : vector<16x256xf32>
    %132 = vector.broadcast %121 : vector<1x256xf32> to vector<16x256xf32>
    %133 = arith.addf %131, %132 : vector<16x256xf32>
    %cst_79 = arith.constant 0.000000e+00 : f32
    %134 = vector.broadcast %cst_79 : f32 to vector<16x256xf32>
    %135 = arith.cmpf ogt, %133, %134 : vector<16x256xf32>
    %136 = vector.broadcast %0 : f32 to vector<16x256xf32>
    %137 = arith.mulf %136, %133 : vector<16x256xf32>
    %138 = arith.select %135, %133, %137 : vector<16x256xi1>, vector<16x256xf32>
    %c0_80 = arith.constant 0 : index
    %c0_81 = arith.constant 0 : index
    %c0_82 = arith.constant 0 : index
    %139 = vector.load %arg19[%c0_80, %c0_81, %c0_82] : memref<1x16x256xf32, #tpu.memory_space<vmem>>, vector<1x16x256xf32>
    %140 = vector.shape_cast %139 : vector<1x16x256xf32> to vector<16x256xf32>
    %141 = vector.shape_cast %138 : vector<16x256xf32> to vector<1x16x256xf32>
    tpu.vector_store %arg19[%c0_80, %c0_81, %c0_82], %141 {strides = array<i32>} : memref<1x16x256xf32, #tpu.memory_space<vmem>>, vector<1x16x256xf32>,
    %142 = arith.truncf %138 : vector<16x256xf32> to vector<16x256xbf16>
    %c0_83 = arith.constant 0 : index
    %c0_84 = arith.constant 0 : index
    %143 = vector.load %arg14[%c0_83, %c0_84] : memref<256x768xbf16, #tpu.memory_space<vmem>>, vector<256x768xbf16>
    %cst_85 = arith.constant dense<0.000000e+00> : vector<16x768xf32>
    %144 = tpu.matmul %142, %143, %cst_85 {dimension_numbers = #tpu.dot_dimension_numbers<[1], [0], [0], [1], [0, 0, 1, 1], [], []>} : vector<16x256xbf16>, vector<256x768xbf16>, vector<16x768xf32> -> vector<16x768xf32>
    %c0_86 = arith.constant 0 : index
    %c0_87 = arith.constant 0 : index
    %145 = vector.load %arg15[%c0_86, %c0_87] : memref<1x768xf32, #tpu.memory_space<vmem>>, vector<1x768xf32>
    %146 = vector.broadcast %145 : vector<1x768xf32> to vector<16x768xf32>
    %147 = arith.addf %144, %146 : vector<16x768xf32>
    %c0_88 = arith.constant 0 : index
    %c0_89 = arith.constant 0 : index
    %c0_90 = arith.constant 0 : index
    %148 = vector.load %arg18[%c0_88, %c0_89, %c0_90] : memref<1x16x768xf32, #tpu.memory_space<vmem>>, vector<1x16x768xf32>
    %149 = vector.shape_cast %148 : vector<1x16x768xf32> to vector<16x768xf32>
    %150 = vector.shape_cast %147 : vector<16x768xf32> to vector<1x16x768xf32>
    tpu.vector_store %arg18[%c0_88, %c0_89, %c0_90], %150 {strides = array<i32>} : memref<1x16x768xf32, #tpu.memory_space<vmem>>, vector<1x16x768xf32>,
    return
  }
  func.func @transform_0(%arg0: i32) -> (i32, i32, i32) {
    %c0_i32 = arith.constant 0 : i32
    %c0_i32_0 = arith.constant 0 : i32
    %c0_i32_1 = arith.constant 0 : i32
    return %arg0, %c0_i32, %c0_i32_0 : i32, i32, i32
  }
  func.func @transform_1(%arg0: i32) -> (i32, i32) {
    %c0_i32 = arith.constant 0 : i32
    %c0_i32_0 = arith.constant 0 : i32
    %c0_i32_1 = arith.constant 0 : i32
    return %c0_i32, %c0_i32_0 : i32, i32
  }
  func.func @transform_2(%arg0: i32) -> (i32, i32) {
    %c0_i32 = arith.constant 0 : i32
    %c0_i32_0 = arith.constant 0 : i32
    %c0_i32_1 = arith.constant 0 : i32
    return %c0_i32, %c0_i32_0 : i32, i32
  }
  func.func @transform_3(%arg0: i32) -> (i32, i32, i32) {
    %c0_i32 = arith.constant 0 : i32
    %c0_i32_0 = arith.constant 0 : i32
    %c0_i32_1 = arith.constant 0 : i32
    %c0_i32_2 = arith.constant 0 : i32
    return %c0_i32, %c0_i32_0, %c0_i32_1 : i32, i32, i32
  }
  func.func @transform_4(%arg0: i32) -> (i32, i32) {
    %c0_i32 = arith.constant 0 : i32
    %c0_i32_0 = arith.constant 0 : i32
    %c0_i32_1 = arith.constant 0 : i32
    return %c0_i32, %c0_i32_0 : i32, i32
  }
  func.func @transform_5(%arg0: i32) -> (i32, i32) {
    %c0_i32 = arith.constant 0 : i32
    %c0_i32_0 = arith.constant 0 : i32
    %c0_i32_1 = arith.constant 0 : i32
    return %c0_i32, %c0_i32_0 : i32, i32
  }
  func.func @transform_6(%arg0: i32) -> (i32, i32) {
    %c0_i32 = arith.constant 0 : i32
    %c0_i32_0 = arith.constant 0 : i32
    %c0_i32_1 = arith.constant 0 : i32
    return %c0_i32, %c0_i32_0 : i32, i32
  }
  func.func @transform_7(%arg0: i32) -> (i32, i32, i32) {
    %c0_i32 = arith.constant 0 : i32
    %c0_i32_0 = arith.constant 0 : i32
    %c0_i32_1 = arith.constant 0 : i32
    %c0_i32_2 = arith.constant 0 : i32
    return %c0_i32, %c0_i32_0, %c0_i32_1 : i32, i32, i32
  }
  func.func @transform_8(%arg0: i32) -> (i32, i32) {
    %c0_i32 = arith.constant 0 : i32
    %c0_i32_0 = arith.constant 0 : i32
    %c0_i32_1 = arith.constant 0 : i32
    return %c0_i32, %c0_i32_0 : i32, i32
  }
  func.func @transform_9(%arg0: i32) -> (i32, i32, i32) {
    %c0_i32 = arith.constant 0 : i32
    %c0_i32_0 = arith.constant 0 : i32
    %c0_i32_1 = arith.constant 0 : i32
    %c0_i32_2 = arith.constant 0 : i32
    return %c0_i32, %c0_i32_0, %c0_i32_1 : i32, i32, i32
  }
  func.func @transform_10(%arg0: i32) -> (i32, i32) {
    %c0_i32 = arith.constant 0 : i32
    %c0_i32_0 = arith.constant 0 : i32
    %c0_i32_1 = arith.constant 0 : i32
    return %c0_i32, %c0_i32_0 : i32, i32
  }
  func.func @transform_11(%arg0: i32) -> (i32, i32) {
    %c0_i32 = arith.constant 0 : i32
    %c0_i32_0 = arith.constant 0 : i32
    %c0_i32_1 = arith.constant 0 : i32
    return %c0_i32, %c0_i32_0 : i32, i32
  }
  func.func @transform_12(%arg0: i32) -> (i32, i32) {
    %c0_i32 = arith.constant 0 : i32
    %c0_i32_0 = arith.constant 0 : i32
    %c0_i32_1 = arith.constant 0 : i32
    return %c0_i32, %c0_i32_0 : i32, i32
  }
  func.func @transform_13(%arg0: i32) -> (i32, i32) {
    %c0_i32 = arith.constant 0 : i32
    %c0_i32_0 = arith.constant 0 : i32
    %c0_i32_1 = arith.constant 0 : i32
    return %c0_i32, %c0_i32_0 : i32, i32
  }
  func.func @transform_14(%arg0: i32) -> (i32, i32) {
    %c0_i32 = arith.constant 0 : i32
    %c0_i32_0 = arith.constant 0 : i32
    %c0_i32_1 = arith.constant 0 : i32
    return %c0_i32, %c0_i32_0 : i32, i32
  }
  func.func @transform_15(%arg0: i32) -> (i32, i32) {
    %c0_i32 = arith.constant 0 : i32
    %c0_i32_0 = arith.constant 0 : i32
    %c0_i32_1 = arith.constant 0 : i32
    return %c0_i32, %c0_i32_0 : i32, i32
  }
  func.func @transform_16(%arg0: i32) -> i32 {
    %c0_i32 = arith.constant 0 : i32
    %c0_i32_0 = arith.constant 0 : i32
    return %c0_i32 : i32
  }
  func.func @transform_17(%arg0: i32) -> (i32, i32, i32) {
    %c0_i32 = arith.constant 0 : i32
    %c0_i32_0 = arith.constant 0 : i32
    %c0_i32_1 = arith.constant 0 : i32
    return %arg0, %c0_i32, %c0_i32_0 : i32, i32, i32
  }
  func.func @transform_18(%arg0: i32) -> (i32, i32, i32) {
    %c0_i32 = arith.constant 0 : i32
    %c0_i32_0 = arith.constant 0 : i32
    %c0_i32_1 = arith.constant 0 : i32
    return %arg0, %c0_i32, %c0_i32_0 : i32, i32, i32
  }
}

module attributes {stable_mosaic.version = 11 : i64} {
  func.func @kernel(%arg0: i32, %arg1: memref<18x56x8xf32, #tpu.memory_space<vmem>>, %arg2: memref<18x56x8xf32, #tpu.memory_space<vmem>>, %arg3: memref<18x56x8xf32, #tpu.memory_space<vmem>>, %arg4: memref<18x56x8xf32, #tpu.memory_space<vmem>>) attributes {dimension_semantics = [#tpu.dimension_semantics<parallel>], iteration_bounds = array<i64: 2>, scalar_prefetch = 0 : i64, scratch_operands = 0 : i64, tpu.core_type = #tpu.core_type<tc>, window_params = [{transform_indices = @transform_0, window_bounds = array<i64: 18, 56, 8>}, {transform_indices = @transform_1, window_bounds = array<i64: 18, 56, 8>}, {transform_indices = @transform_2, window_bounds = array<i64: 18, 56, 8>}, {transform_indices = @transform_3, window_bounds = array<i64: 18, 56, 8>}]} {
    %c0 = arith.constant 0 : index
    %c0_0 = arith.constant 0 : index
    %c0_1 = arith.constant 0 : index
    %0 = vector.load %arg1[%c0, %c0_0, %c0_1] : memref<18x56x8xf32, #tpu.memory_space<vmem>>, vector<18x56x8xf32>
    %c0_2 = arith.constant 0 : index
    %c0_3 = arith.constant 0 : index
    %c0_4 = arith.constant 0 : index
    %1 = vector.load %arg2[%c0_2, %c0_3, %c0_4] : memref<18x56x8xf32, #tpu.memory_space<vmem>>, vector<18x56x8xf32>
    %c0_5 = arith.constant 0 : index
    %c0_6 = arith.constant 0 : index
    %c0_7 = arith.constant 0 : index
    %2 = vector.load %arg3[%c0_5, %c0_6, %c0_7] : memref<18x56x8xf32, #tpu.memory_space<vmem>>, vector<18x56x8xf32>
    "tpu.trace_start"() <{level = 10 : i32, message = "btc,bsc->bts"}> : () -> ()
    %cst = arith.constant dense<0.000000e+00> : vector<18x56x56xf32>
    %3 = tpu.matmul %0, %1, %cst {dimension_numbers = #tpu.dot_dimension_numbers<[2], [2], [1], [1], [0, 0, 0, 1, 1, 1], [0], [0]>} : vector<18x56x8xf32>, vector<18x56x8xf32>, vector<18x56x56xf32> -> vector<18x56x56xf32>
    "tpu.trace_stop"() : () -> ()
    %4 = tpu.iota {dimensions = array<i32: 2>} : vector<18x56x56xi32>
    %c49_i32 = arith.constant 49 : i32
    %5 = vector.broadcast %c49_i32 : i32 to vector<18x56x56xi32>
    %6 = arith.cmpi slt, %4, %5 : vector<18x56x56xi32>
    %cst_8 = arith.constant -1.000000e+30 : f32
    %7 = vector.broadcast %cst_8 : f32 to vector<18x56x56xf32>
    %8 = arith.select %6, %3, %7 : vector<18x56x56xi1>, vector<18x56x56xf32>
    %cst_9 = arith.constant dense<0xFF800000> : vector<18x56xf32>
    %9 = vector.multi_reduction <maximumf>, %8, %cst_9 [2] : vector<18x56x56xf32> to vector<18x56xf32>
    %10 = vector.shape_cast %9 : vector<18x56xf32> to vector<18x56x1xf32>
    %11 = vector.broadcast %10 : vector<18x56x1xf32> to vector<18x56x56xf32>
    %12 = arith.subf %8, %11 : vector<18x56x56xf32>
    %13 = math.exp %12 : vector<18x56x56xf32>
    %cst_10 = arith.constant dense<0.000000e+00> : vector<18x56xf32>
    %14 = vector.multi_reduction <add>, %13, %cst_10 [2] : vector<18x56x56xf32> to vector<18x56xf32>
    %15 = vector.shape_cast %14 : vector<18x56xf32> to vector<18x56x1xf32>
    "tpu.trace_start"() <{level = 10 : i32, message = "bts,bsc->btc"}> : () -> ()
    %cst_11 = arith.constant dense<0.000000e+00> : vector<18x56x8xf32>
    %16 = tpu.matmul %13, %2, %cst_11 {dimension_numbers = #tpu.dot_dimension_numbers<[2], [1], [1], [2], [0, 0, 0, 1, 1, 2], [0], [0]>} : vector<18x56x56xf32>, vector<18x56x8xf32>, vector<18x56x8xf32> -> vector<18x56x8xf32>
    "tpu.trace_stop"() : () -> ()
    %17 = tpu.reciprocal %15 {approx = true} : vector<18x56x1xf32> -> vector<18x56x1xf32>
    %18 = vector.broadcast %17 : vector<18x56x1xf32> to vector<18x56x8xf32>
    %19 = arith.mulf %16, %18 : vector<18x56x8xf32>
    %c0_12 = arith.constant 0 : index
    %c0_13 = arith.constant 0 : index
    %c0_14 = arith.constant 0 : index
    %20 = vector.load %arg4[%c0_12, %c0_13, %c0_14] : memref<18x56x8xf32, #tpu.memory_space<vmem>>, vector<18x56x8xf32>
    tpu.vector_store %arg4[%c0_12, %c0_13, %c0_14], %19 {strides = array<i32>} : memref<18x56x8xf32, #tpu.memory_space<vmem>>, vector<18x56x8xf32>,
    return
  }
  func.func @transform_0(%arg0: i32) -> (i32, i32, i32) {
    %c0_i32 = arith.constant 0 : i32
    %c0_i32_0 = arith.constant 0 : i32
    %c0_i32_1 = arith.constant 0 : i32
    return %arg0, %c0_i32, %c0_i32_0 : i32, i32, i32
  }
  func.func @transform_1(%arg0: i32) -> (i32, i32, i32) {
    %c0_i32 = arith.constant 0 : i32
    %c0_i32_0 = arith.constant 0 : i32
    %c0_i32_1 = arith.constant 0 : i32
    return %arg0, %c0_i32, %c0_i32_0 : i32, i32, i32
  }
  func.func @transform_2(%arg0: i32) -> (i32, i32, i32) {
    %c0_i32 = arith.constant 0 : i32
    %c0_i32_0 = arith.constant 0 : i32
    %c0_i32_1 = arith.constant 0 : i32
    return %arg0, %c0_i32, %c0_i32_0 : i32, i32, i32
  }
  func.func @transform_3(%arg0: i32) -> (i32, i32, i32) {
    %c0_i32 = arith.constant 0 : i32
    %c0_i32_0 = arith.constant 0 : i32
    %c0_i32_1 = arith.constant 0 : i32
    return %arg0, %c0_i32, %c0_i32_0 : i32, i32, i32
  }
}

module attributes {stable_mosaic.version = 11 : i64} {
  func.func @_kernel_c(%arg0: i32, %arg1: memref<1x16x256xf32, #tpu.memory_space<vmem>>, %arg2: memref<1x16x256xf32, #tpu.memory_space<vmem>>, %arg3: memref<1x16x128xf32, #tpu.memory_space<vmem>>, %arg4: memref<256x256xbf16, #tpu.memory_space<vmem>>, %arg5: memref<1x256xf32, #tpu.memory_space<vmem>>, %arg6: memref<256x128xbf16, #tpu.memory_space<vmem>>, %arg7: memref<1x128xf32, #tpu.memory_space<vmem>>, %arg8: memref<1x128xf32, #tpu.memory_space<vmem>>, %arg9: memref<1x128xf32, #tpu.memory_space<vmem>>, %arg10: memref<128x128xf32, #tpu.memory_space<vmem>>, %arg11: memref<2xf32, #tpu.memory_space<smem>>, %arg12: memref<1x16x128xf32, #tpu.memory_space<vmem>>) attributes {dimension_semantics = [#tpu.dimension_semantics<parallel>], iteration_bounds = array<i64: 2>, scalar_prefetch = 0 : i64, scratch_operands = 0 : i64, tpu.core_type = #tpu.core_type<tc>, window_params = [{transform_indices = @transform_0, window_bounds = array<i64: 1, 16, 256>}, {transform_indices = @transform_1, window_bounds = array<i64: 1, 16, 256>}, {transform_indices = @transform_2, window_bounds = array<i64: 1, 16, 128>}, {pipeline_mode = #tpu.pipeline_mode<synchronous>, transform_indices = @transform_3, window_bounds = array<i64: 256, 256>}, {pipeline_mode = #tpu.pipeline_mode<synchronous>, transform_indices = @transform_4, window_bounds = array<i64: 1, 256>}, {pipeline_mode = #tpu.pipeline_mode<synchronous>, transform_indices = @transform_5, window_bounds = array<i64: 256, 128>}, {pipeline_mode = #tpu.pipeline_mode<synchronous>, transform_indices = @transform_6, window_bounds = array<i64: 1, 128>}, {pipeline_mode = #tpu.pipeline_mode<synchronous>, transform_indices = @transform_7, window_bounds = array<i64: 1, 128>}, {pipeline_mode = #tpu.pipeline_mode<synchronous>, transform_indices = @transform_8, window_bounds = array<i64: 1, 128>}, {pipeline_mode = #tpu.pipeline_mode<synchronous>, transform_indices = @transform_9, window_bounds = array<i64: 128, 128>}, {transform_indices = @transform_10, window_bounds = array<i64: 2>}, {transform_indices = @transform_11, window_bounds = array<i64: 1, 16, 128>}]} {
    %c0 = arith.constant 0 : index
    %0 = memref.load %arg11[%c0] : memref<2xf32, #tpu.memory_space<smem>>
    %c1 = arith.constant 1 : index
    %1 = memref.load %arg11[%c1] : memref<2xf32, #tpu.memory_space<smem>>
    %c0_0 = arith.constant 0 : index
    %c0_1 = arith.constant 0 : index
    %c0_2 = arith.constant 0 : index
    %2 = vector.load %arg1[%c0_0, %c0_1, %c0_2] : memref<1x16x256xf32, #tpu.memory_space<vmem>>, vector<1x16x256xf32>
    %3 = vector.shape_cast %2 : vector<1x16x256xf32> to vector<16x256xf32>
    %c0_3 = arith.constant 0 : index
    %c0_4 = arith.constant 0 : index
    %c0_5 = arith.constant 0 : index
    %4 = vector.load %arg2[%c0_3, %c0_4, %c0_5] : memref<1x16x256xf32, #tpu.memory_space<vmem>>, vector<1x16x256xf32>
    %5 = vector.shape_cast %4 : vector<1x16x256xf32> to vector<16x256xf32>
    %6 = arith.truncf %3 : vector<16x256xf32> to vector<16x256xbf16>
    %c0_6 = arith.constant 0 : index
    %c0_7 = arith.constant 0 : index
    %7 = vector.load %arg4[%c0_6, %c0_7] : memref<256x256xbf16, #tpu.memory_space<vmem>>, vector<256x256xbf16>
    %cst = arith.constant dense<0.000000e+00> : vector<16x256xf32>
    %8 = tpu.matmul %6, %7, %cst {dimension_numbers = #tpu.dot_dimension_numbers<[1], [0], [0], [1], [0, 0, 1, 1], [], []>} : vector<16x256xbf16>, vector<256x256xbf16>, vector<16x256xf32> -> vector<16x256xf32>
    %c0_8 = arith.constant 0 : index
    %c0_9 = arith.constant 0 : index
    %9 = vector.load %arg5[%c0_8, %c0_9] : memref<1x256xf32, #tpu.memory_space<vmem>>, vector<1x256xf32>
    %10 = vector.broadcast %9 : vector<1x256xf32> to vector<16x256xf32>
    %11 = arith.addf %8, %10 : vector<16x256xf32>
    %12 = arith.mulf %11, %5 : vector<16x256xf32>
    %13 = vector.broadcast %1 : f32 to vector<16x256xf32>
    %14 = arith.mulf %13, %12 : vector<16x256xf32>
    %15 = arith.addf %5, %14 : vector<16x256xf32>
    %16 = arith.truncf %15 : vector<16x256xf32> to vector<16x256xbf16>
    %c0_10 = arith.constant 0 : index
    %c0_11 = arith.constant 0 : index
    %17 = vector.load %arg6[%c0_10, %c0_11] : memref<256x128xbf16, #tpu.memory_space<vmem>>, vector<256x128xbf16>
    %cst_12 = arith.constant dense<0.000000e+00> : vector<16x128xf32>
    %18 = tpu.matmul %16, %17, %cst_12 {dimension_numbers = #tpu.dot_dimension_numbers<[1], [0], [0], [1], [0, 0, 1, 1], [], []>} : vector<16x256xbf16>, vector<256x128xbf16>, vector<16x128xf32> -> vector<16x128xf32>
    %c0_13 = arith.constant 0 : index
    %c0_14 = arith.constant 0 : index
    %19 = vector.load %arg7[%c0_13, %c0_14] : memref<1x128xf32, #tpu.memory_space<vmem>>, vector<1x128xf32>
    %20 = vector.broadcast %19 : vector<1x128xf32> to vector<16x128xf32>
    %21 = arith.addf %18, %20 : vector<16x128xf32>
    %c0_15 = arith.constant 0 : index
    %c0_16 = arith.constant 0 : index
    %22 = vector.load %arg10[%c0_15, %c0_16] : memref<128x128xf32, #tpu.memory_space<vmem>>, vector<128x128xf32>
    %cst_17 = arith.constant dense<0.000000e+00> : vector<16x128xf32>
    %23 = tpu.matmul %21, %22, %cst_17 {dimension_numbers = #tpu.dot_dimension_numbers<[1], [0], [0], [1], [0, 0, 1, 1], [], []>} : vector<16x128xf32>, vector<128x128xf32>, vector<16x128xf32> -> vector<16x128xf32>
    %24 = arith.subf %21, %23 : vector<16x128xf32>
    %25 = arith.mulf %24, %24 : vector<16x128xf32>
    %cst_18 = arith.constant dense<0.000000e+00> : vector<16x128xf32>
    %26 = tpu.matmul %25, %22, %cst_18 {dimension_numbers = #tpu.dot_dimension_numbers<[1], [0], [0], [1], [0, 0, 1, 1], [], []>} : vector<16x128xf32>, vector<128x128xf32>, vector<16x128xf32> -> vector<16x128xf32>
    %cst_19 = arith.constant 9.99999974E-6 : f32
    %27 = vector.broadcast %cst_19 : f32 to vector<16x128xf32>
    %28 = arith.addf %26, %27 : vector<16x128xf32>
    %29 = math.rsqrt %28 : vector<16x128xf32>
    %30 = arith.mulf %24, %29 : vector<16x128xf32>
    %c0_20 = arith.constant 0 : index
    %c0_21 = arith.constant 0 : index
    %31 = vector.load %arg8[%c0_20, %c0_21] : memref<1x128xf32, #tpu.memory_space<vmem>>, vector<1x128xf32>
    %32 = vector.broadcast %31 : vector<1x128xf32> to vector<16x128xf32>
    %33 = arith.mulf %30, %32 : vector<16x128xf32>
    %c0_22 = arith.constant 0 : index
    %c0_23 = arith.constant 0 : index
    %34 = vector.load %arg9[%c0_22, %c0_23] : memref<1x128xf32, #tpu.memory_space<vmem>>, vector<1x128xf32>
    %35 = vector.broadcast %34 : vector<1x128xf32> to vector<16x128xf32>
    %36 = arith.addf %33, %35 : vector<16x128xf32>
    %cst_24 = arith.constant 0.000000e+00 : f32
    %37 = vector.broadcast %cst_24 : f32 to vector<16x128xf32>
    %38 = arith.cmpf ogt, %36, %37 : vector<16x128xf32>
    %39 = vector.broadcast %0 : f32 to vector<16x128xf32>
    %40 = arith.mulf %39, %36 : vector<16x128xf32>
    %41 = arith.select %38, %36, %40 : vector<16x128xi1>, vector<16x128xf32>
    %c0_25 = arith.constant 0 : index
    %c0_26 = arith.constant 0 : index
    %c0_27 = arith.constant 0 : index
    %42 = vector.load %arg3[%c0_25, %c0_26, %c0_27] : memref<1x16x128xf32, #tpu.memory_space<vmem>>, vector<1x16x128xf32>
    %43 = vector.shape_cast %42 : vector<1x16x128xf32> to vector<16x128xf32>
    %44 = arith.addf %41, %43 : vector<16x128xf32>
    %c0_28 = arith.constant 0 : index
    %c0_29 = arith.constant 0 : index
    %c0_30 = arith.constant 0 : index
    %45 = vector.load %arg12[%c0_28, %c0_29, %c0_30] : memref<1x16x128xf32, #tpu.memory_space<vmem>>, vector<1x16x128xf32>
    %46 = vector.shape_cast %45 : vector<1x16x128xf32> to vector<16x128xf32>
    %47 = vector.shape_cast %44 : vector<16x128xf32> to vector<1x16x128xf32>
    tpu.vector_store %arg12[%c0_28, %c0_29, %c0_30], %47 {strides = array<i32>} : memref<1x16x128xf32, #tpu.memory_space<vmem>>, vector<1x16x128xf32>,
    return
  }
  func.func @transform_0(%arg0: i32) -> (i32, i32, i32) {
    %c0_i32 = arith.constant 0 : i32
    %c0_i32_0 = arith.constant 0 : i32
    %c0_i32_1 = arith.constant 0 : i32
    return %arg0, %c0_i32, %c0_i32_0 : i32, i32, i32
  }
  func.func @transform_1(%arg0: i32) -> (i32, i32, i32) {
    %c0_i32 = arith.constant 0 : i32
    %c0_i32_0 = arith.constant 0 : i32
    %c0_i32_1 = arith.constant 0 : i32
    return %arg0, %c0_i32, %c0_i32_0 : i32, i32, i32
  }
  func.func @transform_2(%arg0: i32) -> (i32, i32, i32) {
    %c0_i32 = arith.constant 0 : i32
    %c0_i32_0 = arith.constant 0 : i32
    %c0_i32_1 = arith.constant 0 : i32
    return %arg0, %c0_i32, %c0_i32_0 : i32, i32, i32
  }
  func.func @transform_3(%arg0: i32) -> (i32, i32) {
    %c0_i32 = arith.constant 0 : i32
    %c0_i32_0 = arith.constant 0 : i32
    %c0_i32_1 = arith.constant 0 : i32
    return %c0_i32, %c0_i32_0 : i32, i32
  }
  func.func @transform_4(%arg0: i32) -> (i32, i32) {
    %c0_i32 = arith.constant 0 : i32
    %c0_i32_0 = arith.constant 0 : i32
    %c0_i32_1 = arith.constant 0 : i32
    return %c0_i32, %c0_i32_0 : i32, i32
  }
  func.func @transform_5(%arg0: i32) -> (i32, i32) {
    %c0_i32 = arith.constant 0 : i32
    %c0_i32_0 = arith.constant 0 : i32
    %c0_i32_1 = arith.constant 0 : i32
    return %c0_i32, %c0_i32_0 : i32, i32
  }
  func.func @transform_6(%arg0: i32) -> (i32, i32) {
    %c0_i32 = arith.constant 0 : i32
    %c0_i32_0 = arith.constant 0 : i32
    %c0_i32_1 = arith.constant 0 : i32
    return %c0_i32, %c0_i32_0 : i32, i32
  }
  func.func @transform_7(%arg0: i32) -> (i32, i32) {
    %c0_i32 = arith.constant 0 : i32
    %c0_i32_0 = arith.constant 0 : i32
    %c0_i32_1 = arith.constant 0 : i32
    return %c0_i32, %c0_i32_0 : i32, i32
  }
  func.func @transform_8(%arg0: i32) -> (i32, i32) {
    %c0_i32 = arith.constant 0 : i32
    %c0_i32_0 = arith.constant 0 : i32
    %c0_i32_1 = arith.constant 0 : i32
    return %c0_i32, %c0_i32_0 : i32, i32
  }
  func.func @transform_9(%arg0: i32) -> (i32, i32) {
    %c0_i32 = arith.constant 0 : i32
    %c0_i32_0 = arith.constant 0 : i32
    %c0_i32_1 = arith.constant 0 : i32
    return %c0_i32, %c0_i32_0 : i32, i32
  }
  func.func @transform_10(%arg0: i32) -> i32 {
    %c0_i32 = arith.constant 0 : i32
    %c0_i32_0 = arith.constant 0 : i32
    return %c0_i32 : i32
  }
  func.func @transform_11(%arg0: i32) -> (i32, i32, i32) {
    %c0_i32 = arith.constant 0 : i32
    %c0_i32_0 = arith.constant 0 : i32
    %c0_i32_1 = arith.constant 0 : i32
    return %arg0, %c0_i32, %c0_i32_0 : i32, i32, i32
  }
}

</mosaic_0001>

<bundles_post_ra>
// kernel: sr_block_forward.3
= control target key start
LH: loop header
LB: loop body
LE: loop exit
PB: predicated region body
PF: predicated region fallthrough
CT: control target
= control target key end

     0   :  { %s9877_s0 = inlined_call_operand.vmem [shape: f32[2,16,128], index: 0, kind: input, shape index: {}]   ;;  %s9878_s1 = inlined_call_operand.vmem [shape: bf16[18,16], index: 1, kind: input, shape index: {}]   ;;  %s9879_s2 = inlined_call_operand.vmem [shape: bf16[22,16], index: 2, kind: input, shape index: {}]   ;;  %s9880_s3 = inlined_call_operand.hbm [shape: bf16[3,128,256], index: 3, kind: input, shape index: {}]   ;;  %s9881_s4 = inlined_call_operand.hbm [shape: f32[1,256], index: 4, kind: input, shape index: {}]   ;;  %s9882_s5 = inlined_call_operand.hbm [shape: f32[1,256], index: 5, kind: input, shape index: {}]   ;;  %s9883_s6 = inlined_call_operand.hbm [shape: f32[1,256], index: 6, kind: input, shape index: {}]   ;;  %s9884_s7 = inlined_call_operand.hbm [shape: bf16[7,256,256], index: 7, kind: input, shape index: {}]   ;;  %s9885_s8 = inlined_call_operand.hbm [shape: f32[1,256], index: 8, kind: input, shape index: {}]   ;;  %s9886_s9 = inlined_call_operand.hbm [shape: bf16[3,256,256], index: 9, kind: input, shape index: {}]   ;;  %s9887_s10 = inlined_call_operand.hbm [shape: f32[1,256], index: 10, kind: input, shape index: {}]   ;;  %s9888_s11 = inlined_call_operand.hbm [shape: f32[1,256], index: 11, kind: input, shape index: {}]   ;;  %s9889_s12 = inlined_call_operand.hbm [shape: f32[1,256], index: 12, kind: input, shape index: {}]   ;;  %s9890_s13 = inlined_call_operand.hbm [shape: bf16[256,768], index: 13, kind: input, shape index: {}]   ;;  %s9891_s14 = inlined_call_operand.hbm [shape: f32[1,768], index: 14, kind: input, shape index: {}]   ;;  %s9892_s15 = inlined_call_operand.hbm [shape: f32[256,256], index: 15, kind: input, shape index: {}]   ;;  %s9893_s16 = inlined_call_operand.hbm [shape: f32[2], index: 16, kind: input, shape index: {}]   ;;  %s9894_s17 = inlined_call_operand.vmem [shape: f32[2,16,768], index: 17, kind: output, shape index: {0}]   ;;  %s9895_s18 = inlined_call_operand.vmem [shape: f32[2,16,256], index: 18, kind: output, shape index: {1}]  }
   0x1   :  { %9902 = sst [smem:[#allocation34_spill]] %s9877_s0 }
   0x2   :  { %9903 = sst [smem:[#allocation35_spill]] %s9878_s1 }
   0x3   :  { %9904 = sst [smem:[#allocation36_spill]] %s9879_s2 }
   0x4   :  { %9905 = sst [smem:[#allocation37_spill]] %s9880_s3 }
   0x5   :  { %9906 = sst [smem:[#allocation38_spill]] %s9881_s4 }
   0x6   :  { %9907 = sst [smem:[#allocation39_spill]] %s9883_s6 }
   0x7   :  { %9908 = sst [smem:[#allocation40_spill]] %s9885_s8 }
   0x8   :  { %24 = vsyncpa [#allocation3], 0 }
   0x9   :  { %25 = vsyncpa [#allocation6], 0 }
   0xa   :  { %26 = vsyncpa [#allocation9], 0 }
   0xb   :  { %27 = vsyncpa [#allocation12], 0 }
   0xc   :  { %28 = vsyncpa [#allocation15], 0 }
   0xd   :  { %29 = vsyncpa [#allocation18], 0 }
   0xe   :  { %30 = vsyncpa [#allocation21], 0 }
   0xf   :  { %31 = vsyncpa [#allocation4], 0  ;;  %s8816_s27 = smov 0  }
  0x10 LB: > { %s9909_s4 = sld [smem:[#allocation38_spill]]  ;;  %s8825_s0 = sadd.s32 4294967295, %s8699_s27   ;;  %s8699_s27 = sphi %s8816_s27, %s37_s27  }
  0x11   : > { %p5638_p0 = scmp.ge.s32.totalorder %s8699_s27, 1  ;;  %p456_p1 = scmp.lt.s32.totalorder %s8699_s27, 3 }
  0x12   : > { %p8119_p2 = scmp.eq.s32.totalorder %s8825_s0, 0  ;;  %s8701_s1 = smov [#allocation5]  }
  0x13   : > { %p8830_p3 = pnand %p5638_p0, %p456_p1  ;;  %s490_s20 = sshll.u32 %s8701_s1, 4  ;;  %s491_s20 = int_to_ptr.vmem [resolvable:$true] %s490_s20 }
  0x14   : > { %s9911_s6 = sld [smem:[#allocation39_spill]]  ;;  %s8702_s28 = smov [#allocation8]  }
  0x15   : > { %p8076_p4 = pneg %p8830_p3  ;;  %s9912_s8 = sld [smem:[#allocation40_spill]] }
  0x16   : > { %s488_s30 = sshll.u32 %s9909_s4, 4  ;;  %s514_s29 = sshll.u32 %s8702_s28, 4  ;;  %s489_s30 = int_to_ptr.hbm [resolvable:$true] %s488_s30  ;;  %s515_s29 = int_to_ptr.vmem [resolvable:$true] %s514_s29 }
  0x17   : > { %p8844_p5 = pnand %p8119_p2, %p8076_p4  ;;  %s8703_s1 = smov [#allocation11]  }
  0x18   : > { %s540_s21 = sshll.u32 %s8703_s1, 4  ;;  %s564_s24 = sshll.u32 %s9887_s10, 4  ;;  %s541_s21 = int_to_ptr.vmem [resolvable:$true] %s540_s21  ;;  %s565_s24 = int_to_ptr.hbm [resolvable:$true] %s564_s24 }
  0x19   : > { %8082 = dma.hbm_to_vmem [thread:$0]  (!%p8844_p5), %s489_s30, 32, %s491_s20, [#allocation6]  }
  0x1a   : > { %s512_s2 = sshll.u32 %s9911_s6, 4  ;;  %s588_s6 = sshll.u32 %s9889_s12, 4  ;;  %s513_s2 = int_to_ptr.hbm [resolvable:$true] %s512_s2  ;;  %s589_s6 = int_to_ptr.hbm [resolvable:$true] %s588_s6 }
  0x1b   : > { %s538_s25 = sshll.u32 %s9912_s8, 4  ;;  %s8704_s8 = smov [#allocation14]   ;;  %s539_s25 = int_to_ptr.hbm [resolvable:$true] %s538_s25 }
  0x1c   : > { %8088 = dma.hbm_to_vmem [thread:$0]  (!%p8844_p5), %s513_s2, 32, %s515_s29, [#allocation9]  }
  0x1d   : > { %8094 = dma.hbm_to_vmem [thread:$0]  (!%p8844_p5), %s539_s25, 32, %s541_s21, [#allocation12]  }
  0x1e   : > { %s566_s30 = sshll.u32 %s8704_s8, 4  ;;  %s8705_s20 = smov [#allocation17]   ;;  %s567_s30 = int_to_ptr.vmem [resolvable:$true] %s566_s30 }
  0x1f   : > { %8100 = dma.hbm_to_vmem [thread:$0]  (!%p8844_p5), %s565_s24, 32, %s567_s30, [#allocation15]  }
  0x20   : > { %s590_s2 = sshll.u32 %s8705_s20, 4  ;;  %s614_s22 = sshll.u32 %s9891_s14, 4  ;;  %s591_s2 = int_to_ptr.vmem [resolvable:$true] %s590_s2  ;;  %s615_s22 = int_to_ptr.hbm [resolvable:$true] %s614_s22 }
  0x21   : > { %8106 = dma.hbm_to_vmem [thread:$0]  (!%p8844_p5), %s589_s6, 32, %s591_s2, [#allocation18]  }
  0x22   : > { %s9914_s3 = sld [smem:[#allocation37_spill]]  ;;  %s8706_s8 = smov [#allocation20]  }
  0x23   : > { %s616_s23 = sshll.u32 %s8706_s8, 4  ;;  %s8707_s24 = smov [#allocation2]   ;;  %s617_s23 = int_to_ptr.vmem [resolvable:$true] %s616_s23 }
  0x24   : > { %8112 = dma.hbm_to_vmem [thread:$0]  (!%p8844_p5), %s615_s22, 96, %s617_s23, [#allocation21]  }
  0x25   : > { %s475_s28 = sshll.u32 %s8707_s24, 4  ;;  %s8708_s30 = smov 128   ;;  %s476_s28 = int_to_ptr.vmem [resolvable:$true] %s475_s28 }
  0x26   : > { %s8709_s20 = smov 8   ;;  %s500_s29 = sshll.u32 %s9882_s5, 4  ;;  %s501_s29 = int_to_ptr.hbm [resolvable:$true] %s500_s29 }
  0x27   : > { %s8710_s1 = smov [#allocation7]   ;;  %s523_s22 = sshll.u32 %s9884_s7, 4  ;;  %s524_s22 = int_to_ptr.hbm [resolvable:$true] %s523_s22 }
  0x28   : > { %s473_s21 = sshll.u32 %s9914_s3, 4  ;;  %s502_s4 = sshll.u32 %s8710_s1, 4  ;;  %s474_s21 = int_to_ptr.hbm [resolvable:$true] %s473_s21  ;;  %s503_s4 = int_to_ptr.vmem [resolvable:$true] %s502_s4 }
  0x29   : > { %8079 = dma.hbm_to_vmem [thread:$0]  (!%p8844_p5), %s474_s21, 6144, %s476_s28, [#allocation3], %s8708_s30, %s8708_s30, %s8709_s20  }
  0x2a   : > { %8085 = dma.hbm_to_vmem [thread:$0]  (!%p8844_p5), %s501_s29, 32, %s503_s4, [#allocation6]  }
  0x2b   : > { %s8711_s23 = smov [#allocation10]   ;;  %s549_s28 = sshll.u32 %s9886_s9, 4  ;;  %s550_s28 = int_to_ptr.hbm [resolvable:$true] %s549_s28 }
  0x2c   : > { %s525_s24 = sshll.u32 %s8711_s23, 4  ;;  %s576_s1 = sshll.u32 %s9888_s11, 4  ;;  %s526_s24 = int_to_ptr.vmem [resolvable:$true] %s525_s24  ;;  %s577_s1 = int_to_ptr.hbm [resolvable:$true] %s576_s1 }
  0x2d   : > { %8091 = dma.hbm_to_vmem [thread:$0]  (!%p8844_p5), %s524_s22, 28672, %s526_s24, [#allocation9], %s8708_s30, %s8708_s30, %s8709_s20  }
  0x2e   : > { %s8712_s25 = smov [#allocation13]   ;;  %s8713_s29 = smov [#allocation16]  }
  0x2f   : > { %s551_s8 = sshll.u32 %s8712_s25, 4  ;;  %s578_s4 = sshll.u32 %s8713_s29, 4  ;;  %s552_s8 = int_to_ptr.vmem [resolvable:$true] %s551_s8  ;;  %s579_s4 = int_to_ptr.vmem [resolvable:$true] %s578_s4 }
  0x30   : > { %8097 = dma.hbm_to_vmem [thread:$0]  (!%p8844_p5), %s550_s28, 12288, %s552_s8, [#allocation12], %s8708_s30, %s8708_s30, %s8709_s20  }
  0x31   : > { %s599_s21 = sshll.u32 %s9890_s13, 4  ;;  %s8714_s22 = smov [#allocation19]   ;;  %s600_s21 = int_to_ptr.hbm [resolvable:$true] %s599_s21 }
  0x32   : > { %8103 = dma.hbm_to_vmem [thread:$0]  (!%p8844_p5), %s577_s1, 32, %s579_s4, [#allocation15]  }
  0x33   : > { %s601_s24 = sshll.u32 %s8714_s22, 4  ;;  %s625_s25 = sshll.u32 %s9892_s15, 4  ;;  %s602_s24 = int_to_ptr.vmem [resolvable:$true] %s601_s24  ;;  %s626_s25 = int_to_ptr.hbm [resolvable:$true] %s625_s25 }
  0x34   : > { %s8715_s30 = smov 384   ;;  %s8716_s20 = smov 24  }
  0x35   : > { %8109 = dma.hbm_to_vmem [thread:$0]  (!%p8844_p5), %s600_s21, 12288, %s602_s24, [#allocation18], %s8715_s30, %s8715_s30, %s8716_s20  }
  0x36   : > { %s8717_s28 = smov [#allocation22]   ;;  %s8718_s29 = smov 256  }
  0x37   : > { %s627_s8 = sshll.u32 %s8717_s28, 4  ;;  %s8719_s3 = smov 16   ;;  %s628_s8 = int_to_ptr.vmem [resolvable:$true] %s627_s8 }
  0x38   : > { %8115 = dma.hbm_to_vmem [thread:$0]  (!%p8844_p5), %s626_s25, 8192, %s628_s8, [#allocation21], %s8718_s29, %s8718_s29, %s8719_s3  }
  0x39   : > { %s640_s23 = sshll.u32 %s9893_s16, 4  ;;  %s8720_s22 = smov [#allocation23]   ;;  %s641_s23 = int_to_ptr.hbm [resolvable:$true] %s640_s23 }
  0x3a   : > { %8118 = dma.hbm_to_smem (!%p8844_p5), %s641_s23, 16, %s8720_s22, [#allocation4]  }
  0x3b   : > { %661 = sbr.rel (%p8830_p3) target bundleno = 1988 (0x7c4), region = 88 }
  0x40   : > { %8666 = dma.done.wait (%p8119_p2), [#allocation3], 6144  }
  0x41   : > { %8668 = vsyncadd (%p8119_p2), [#allocation3], 4294961152 }
  0x42   : > { %8670 = dma.done.wait (%p8119_p2), [#allocation6], 64  }
  0x43   : > { %8672 = vsyncadd (%p8119_p2), [#allocation6], 4294967232 }
  0x44   : > { %8674 = dma.done.wait (%p8119_p2), [#allocation9], 28704  }
  0x45   : > { %8676 = vsyncadd (%p8119_p2), [#allocation9], 4294938592 }
  0x46   : > { %8678 = dma.done.wait (%p8119_p2), [#allocation12], 12320  }
  0x47   : > { %8680 = vsyncadd (%p8119_p2), [#allocation12], 4294954976 }
  0x48   : > { %8682 = dma.done.wait (%p8119_p2), [#allocation15], 64  }
  0x49   : > { %8684 = vsyncadd (%p8119_p2), [#allocation15], 4294967232 }
  0x4a   : > { %8686 = dma.done.wait (%p8119_p2), [#allocation18], 12320  }
  0x4b   : > { %8688 = vsyncadd (%p8119_p2), [#allocation18], 4294954976 }
  0x4c   : > { %8690 = dma.done.wait (%p8119_p2), [#allocation21], 8288  }
  0x4d   : > { %8692 = vsyncadd (%p8119_p2), [#allocation21], 4294959008 }
  0x4e   : > { %8694 = dma.done.wait (%p8119_p2), [#allocation4], 16  }
  0x4f   : > { %8696 = vsyncadd (%p8119_p2), [#allocation4], 4294967280 }
  0x50   : > { %733 = sfence }
  0x51   : > { %p787_p6 = scmp.lt.s32.totalorder %s8825_s0, 1  ;;  %v5739_v0 = vld [vmem:[#allocation2 + $0xf0] sm:$0xf]  ;;  %v7586_v1 = vld [vmem:[#allocation2 + $0xf4] sm:$0xf0]  ;;  %s9915_s24 = sld [smem:[#allocation34_spill]] }
  0x52   : > { %v7585_v2 = vld [vmem:[#allocation2 + $0xf4] sm:$0xf]  ;;  %v5740_v3 = vor.u32 %v7586_v1, %v5739_v0  ;;  %v5741_v4 = vld [vmem:[#allocation2 + $0xf8] sm:$0xf0]  ;;  %v5803_v5 = vld [vmem:[#allocation2 + $0x70] sm:$0xf] }
  0x53   : > { %s9925_s0 = smov (!%p787_p6, %s8825_s0), 1  ;;  %v5744_v6 = vor.u32 %v7585_v2, %v5741_v4  ;;  %v7570_v7 = vld [vmem:[#allocation2 + $0x74] sm:$0xf0]  ;;  %v7569_v8 = vld [vmem:[#allocation2 + $0x74] sm:$0xf]  ;;  %s9916_s30 = sld [smem:[#allocation35_spill]] }
  0x54   : > { %v5805_v9 = vld [vmem:[#allocation2 + $0x78] sm:$0xf0]  ;;  %s7551_s19 = sshll.u32 %s9925_s0, 4  ;;  %1040 = vmatpush.bf16.msra.mxu1 %v5740_v3  ;;  %v5804_v10 = vor.u32 %v7570_v7, %v5803_v5  ;;  %v5731_v11 = vld [vmem:[#allocation2 + $0xe0] sm:$0xf]  ;;  %vm886_vm0 = vcmask 130048  }
  0x55   : > { %v7584_v12 = vld [vmem:[#allocation2 + $0xe4] sm:$0xf0]  ;;  %1054 = vmatpush.bf16.msra.mxu2 %v5744_v6  ;;  %v7583_v14 = vld [vmem:[#allocation2 + $0xe4] sm:$0xf]  ;;  %v5733_v15 = vld [vmem:[#allocation2 + $0xe8] sm:$0xf0]  ;;  %v5808_v19 = vor.u32 %v7569_v8, %v5805_v9 }
  0x56   : > { %v5732_v13 = vor.u32 %v7584_v12, %v5731_v11  ;;  %1148 = vmatpush.bf16.msra.mxu3 %v5804_v10  ;;  %v5736_v20 = vor.u32 %v7583_v14, %v5733_v15  ;;  %v5795_v21 = vld [vmem:[#allocation2 + $0x60] sm:$0xf]  ;;  %v7568_v23 = vld [vmem:[#allocation2 + $0x64] sm:$0xf0]  ;;  %v7567_v24 = vld [vmem:[#allocation2 + $0x64] sm:$0xf] }
  0x57   : > { %s791_s6 = scalar_lea.vmem %s9915_s24, %s7551_s19  ;;  %v5797_v25 = vld [vmem:[#allocation2 + $0x68] sm:$0xf0]  ;;  %v5796_v26 = vor.u32 %v7568_v23, %v5795_v21  ;;  %v5723_v27 = vld [vmem:[#allocation2 + $0xd0] sm:$0xf]  ;;  %v7582_v28 = vld [vmem:[#allocation2 + $0xd4] sm:$0xf0] }
  0x58   : > { %v875_v16 = vld [vmem:[%s791_s6] sm:$0xff]  ;;  %v876_v17 = vld [vmem:[%s791_s6 + $0x8] sm:$0xff]  ;;  %1041 = vmatpush.bf16.msra.mxu1 %v5732_v13  ;;  %v7581_v29 = vld [vmem:[#allocation2 + $0xd4] sm:$0xf]  ;;  %v5724_v30 = vor.u32 %v7582_v28, %v5723_v27  ;;  %v5800_v34 = vor.u32 %v7567_v24, %v5797_v25  ;;  %vm946_vm1 = vsmask.f32 7424 }
  0x59   : > { %v7553_v18 = vld [vmem:[%s9916_s30] sm:$0xff]  ;;  %v877_v22 = vpack.c.bf16 %v876_v17, %v875_v16  ;;  %1055 = vmatpush.bf16.msra.mxu2 %v5736_v20  ;;  %v5725_v31 = vld [vmem:[#allocation2 + $0xd8] sm:$0xf0]  ;;  %v5787_v32 = vld [vmem:[#allocation2 + $0x50] sm:$0xf]  ;;  %vm1195_vm2 = vcmask 1046528  }
  0x5a   : > { %v7566_v33 = vld [vmem:[#allocation2 + $0x54] sm:$0xf0]  ;;  %1149 = vmatpush.bf16.msra.mxu3 %v5796_v26  ;;  %v5728_v35 = vor.u32 %v7581_v29, %v5725_v31  ;;  %v7565_v37 = vld [vmem:[#allocation2 + $0x54] sm:$0xf]  ;;  %v5789_v38 = vld [vmem:[#allocation2 + $0x58] sm:$0xf0] }
  0x5b   : > { %900 = vmatpush.bf16.msra.mxu0 %v877_v22  ;;  %v5788_v36 = vor.u32 %v7566_v33, %v5787_v32  ;;  %v5715_v39 = vld [vmem:[#allocation2 + $0xc0] sm:$0xf]  ;;  %v7580_v40 = vld [vmem:[#allocation2 + $0xc4] sm:$0xf0]  ;;  %v7579_v41 = vld [vmem:[#allocation2 + $0xc4] sm:$0xf]  ;;  %v5792_v49 = vor.u32 %v7565_v37, %v5789_v38 }
  0x5c   : > { %v5717_v42 = vld [vmem:[#allocation2 + $0xc8] sm:$0xf0]  ;;  %1042 = vmatpush.bf16.msra.mxu1 %v5724_v30  ;;  %v5716_v43 = vor.u32 %v7580_v40, %v5715_v39  ;;  %v5779_v44 = vld [vmem:[#allocation2 + $0x40] sm:$0xf]  ;;  %v7564_v45 = vld [vmem:[#allocation2 + $0x44] sm:$0xf0] }
  0x5d   : > { %1056 = vmatpush.bf16.msra.mxu2 %v5728_v35  ;;  %v5720_v46 = vor.u32 %v7579_v41, %v5717_v42  ;;  %v5707_v47 = vld [vmem:[#allocation2 + $0xb0] sm:$0xf]  ;;  %v7578_v48 = vld [vmem:[#allocation2 + $0xb4] sm:$0xf0]  ;;  %v5780_v50 = vor.u32 %v7564_v45, %v5779_v44  ;;  %v7563_v51 = vld [vmem:[#allocation2 + $0x44] sm:$0xf] }
  0x5e   : > { %5679 = vmatmul.msk.bf16.vlgmr.msra.gmra.mxu0 %vm886_vm0, %v7553_v18  ;;  %1150 = vmatpush.bf16.msra.mxu3 %v5788_v36  ;;  %v7577_v52 = vld [vmem:[#allocation2 + $0xb4] sm:$0xf]  ;;  %v5709_v53 = vld [vmem:[#allocation2 + $0xb8] sm:$0xf0]  ;;  %v5781_v54 = vld [vmem:[#allocation2 + $0x48] sm:$0xf0]  ;;  %v5708_v57 = vor.u32 %v7578_v48, %v5707_v47 }
  0x5f   : > { %1162 = vmatpush.bf16.msrb.mxu0 %v5808_v19  ;;  %v5771_v55 = vld [vmem:[#allocation2 + $0x30] sm:$0xf]  ;;  %v7562_v56 = vld [vmem:[#allocation2 + $0x34] sm:$0xf0]  ;;  %v871_v58 = vld [vmem:[%s9916_s30 + $0x8] sm:$0x1]  ;;  %v5712_v59 = vor.u32 %v7577_v52, %v5709_v53  ;;  %v5784_v60 = vor.u32 %v7563_v51, %v5781_v54 }
  0x60   : > { %1043 = vmatpush.bf16.msra.mxu1 %v5716_v43  ;;  %v5772_v61 = vor.u32 %v7562_v56, %v5771_v55  ;;  %v7561_v62 = vld [vmem:[#allocation2 + $0x34] sm:$0xf]  ;;  %v5773_v63 = vld [vmem:[#allocation2 + $0x38] sm:$0xf0]  ;;  %v883_v0 = vunpack.c.l.b16 %v871_v58  ;;  %v5699_v3 = vld [vmem:[#allocation2 + $0xa0] sm:$0xf] }
  0x61   : > { %1057 = vmatpush.bf16.msra.mxu2 %v5720_v46  ;;  %v5776_v1 = vor.u32 %v7561_v62, %v5773_v63  ;;  %v7576_v4 = vld [vmem:[#allocation2 + $0xa4] sm:$0xf0]  ;;  %v7575_v5 = vld [vmem:[#allocation2 + $0xa4] sm:$0xf]  ;;  %v5701_v7 = vld [vmem:[#allocation2 + $0xa8] sm:$0xf0] }
  0x62   : > { %1151 = vmatpush.bf16.msra.mxu3 %v5780_v50  ;;  %v8958_v2 = vpack.c.b16 %v883_v0, %v883_v0  ;;  %v5700_v6 = vor.u32 %v7576_v4, %v5699_v3  ;;  %v5763_v8 = vld [vmem:[#allocation2 + $0x20] sm:$0xf]  ;;  %v7560_v9 = vld [vmem:[#allocation2 + $0x24] sm:$0xf0]  ;;  %v5704_v10 = vor.u32 %v7575_v5, %v5701_v7  ;;  %v7559_v12 = vld [vmem:[#allocation2 + $0x24] sm:$0xf] }
  0x63   : > { %1163 = vmatpush.bf16.msrb.mxu0 %v5800_v34  ;;  %v5764_v11 = vor.u32 %v7560_v9, %v5763_v8  ;;  %v5765_v13 = vld [vmem:[#allocation2 + $0x28] sm:$0xf0]  ;;  %v5691_v15 = vld [vmem:[#allocation2 + $0x90] sm:$0xf]  ;;  %v7574_v16 = vld [vmem:[#allocation2 + $0x94] sm:$0xf0] }
  0x64   : > { %1044 = vmatpush.bf16.msra.mxu1 %v5708_v57  ;;  %9917 = vst [vmem:[#allocation32_spill] sm:$0xff] %v8958_v2  ;;  %v5768_v14 = vor.u32 %v7559_v12, %v5765_v13  ;;  %v7573_v17 = vld [vmem:[#allocation2 + $0x94] sm:$0xf]  ;;  %v5692_v18 = vor.u32 %v7574_v16, %v5691_v15  ;;  %v5693_v19 = vld [vmem:[#allocation2 + $0x98] sm:$0xf0]  ;;  %s803_s8 = sld [smem:[#allocation23]] }
  0x65   : > { %1058 = vmatpush.bf16.msra.mxu2 %v5712_v59  ;;  %v5755_v20 = vld [vmem:[#allocation2 + $0x10] sm:$0xf]  ;;  %v7558_v21 = vld [vmem:[#allocation2 + $0x14] sm:$0xf0]  ;;  %v5696_v22 = vor.u32 %v7573_v17, %v5693_v19  ;;  %v7557_v24 = vld [vmem:[#allocation2 + $0x14] sm:$0xf] }
  0x66   : > { %1152 = vmatpush.bf16.msra.mxu3 %v5772_v61  ;;  %v5756_v23 = vor.u32 %v7558_v21, %v5755_v20  ;;  %v5757_v25 = vld [vmem:[#allocation2 + $0x18] sm:$0xf0]  ;;  %v5683_v27 = vld [vmem:[#allocation2 + $0x80] sm:$0xf]  ;;  %v7572_v28 = vld [vmem:[#allocation2 + $0x84] sm:$0xf0] }
  0x67   : > { %1164 = vmatpush.bf16.msrb.mxu0 %v5792_v49  ;;  %v5760_v26 = vor.u32 %v7557_v24, %v5757_v25  ;;  %v7571_v29 = vld [vmem:[#allocation2 + $0x84] sm:$0xf]  ;;  %v5684_v30 = vor.u32 %v7572_v28, %v5683_v27  ;;  %v5685_v31 = vld [vmem:[#allocation2 + $0x88] sm:$0xf0]  ;;  %v5747_v32 = vld [vmem:[#allocation2] sm:$0xf] }
  0x68   : > { %1045 = vmatpush.bf16.msra.mxu1 %v5700_v6  ;;  %v7556_v33 = vld [vmem:[#allocation2 + $0x4] sm:$0xf0]  ;;  %v5688_v34 = vor.u32 %v7571_v29, %v5685_v31  ;;  %v7555_v36 = vld [vmem:[#allocation2 + $0x4] sm:$0xf]  ;;  %v5749_v37 = vld [vmem:[#allocation2 + $0x8] sm:$0xf0] }
  0x69   : > { %1059 = vmatpush.bf16.msra.mxu2 %v5704_v10  ;;  %v5748_v35 = vor.u32 %v7556_v33, %v5747_v32  ;;  %v5867_v38 = vld [vmem:[#allocation2 + $0x170] sm:$0xf]  ;;  %v5752_v39 = vor.u32 %v7555_v36, %v5749_v37  ;;  %v7602_v40 = vld [vmem:[#allocation2 + $0x174] sm:$0xf0]  ;;  %v7601_v41 = vld [vmem:[#allocation2 + $0x174] sm:$0xf] }
  0x6a   : > { %1153 = vmatpush.bf16.msra.mxu3 %v5764_v11  ;;  %v5869_v42 = vld [vmem:[#allocation2 + $0x178] sm:$0xf0]  ;;  %v5868_v43 = vor.u32 %v7602_v40, %v5867_v38  ;;  %v5859_v45 = vld [vmem:[#allocation2 + $0x160] sm:$0xf]  ;;  %v7600_v46 = vld [vmem:[#allocation2 + $0x164] sm:$0xf0] }
  0x6b   : > { %1165 = vmatpush.bf16.msrb.mxu0 %v5784_v60  ;;  %v5872_v44 = vor.u32 %v7601_v41, %v5869_v42  ;;  %v7599_v47 = vld [vmem:[#allocation2 + $0x164] sm:$0xf]  ;;  %v5860_v48 = vor.u32 %v7600_v46, %v5859_v45  ;;  %v5861_v49 = vld [vmem:[#allocation2 + $0x168] sm:$0xf0]  ;;  %v5851_v51 = vld [vmem:[#allocation2 + $0x150] sm:$0xf] }
  0x6c   : > { %1046 = vmatpush.bf16.msra.mxu1 %v5692_v18  ;;  %v5864_v50 = vor.u32 %v7599_v47, %v5861_v49  ;;  %v7598_v52 = vld [vmem:[#allocation2 + $0x154] sm:$0xf0]  ;;  %v7597_v53 = vld [vmem:[#allocation2 + $0x154] sm:$0xf]  ;;  %v5853_v55 = vld [vmem:[#allocation2 + $0x158] sm:$0xf0] }
  0x6d   : > { %1060 = vmatpush.bf16.msra.mxu2 %v5696_v22  ;;  %v5852_v54 = vor.u32 %v7598_v52, %v5851_v51  ;;  %v5856_v56 = vor.u32 %v7597_v53, %v5853_v55  ;;  %v5843_v57 = vld [vmem:[#allocation2 + $0x140] sm:$0xf]  ;;  %v7596_v58 = vld [vmem:[#allocation2 + $0x144] sm:$0xf0]  ;;  %v7595_v59 = vld [vmem:[#allocation2 + $0x144] sm:$0xf] }
  0x6e   : > { %5680 = vmatmul.msk.bf16.gmra.mxu0 %vm886_vm0, %v8958_v2  ;;  %1154 = vmatpush.bf16.msra.mxu3 %v5756_v23  ;;  %v5844_v60 = vor.u32 %v7596_v58, %v5843_v57  ;;  %v5845_v61 = vld [vmem:[#allocation2 + $0x148] sm:$0xf0]  ;;  %v5835_v63 = vld [vmem:[#allocation2 + $0x130] sm:$0xf]  ;;  %v7594_v0 = vld [vmem:[#allocation2 + $0x134] sm:$0xf0] }
  0x6f   : > { %1166 = vmatpush.bf16.msrb.mxu0 %v5776_v1  ;;  %v5848_v62 = vor.u32 %v7595_v59, %v5845_v61  ;;  %v5836_v1 = vor.u32 %v7594_v0, %v5835_v63  ;;  %v7593_v3 = vld [vmem:[#allocation2 + $0x134] sm:$0xf]  ;;  %v5837_v4 = vld [vmem:[#allocation2 + $0x138] sm:$0xf0]  ;;  %v5827_v6 = vld [vmem:[#allocation2 + $0x120] sm:$0xf] }
  0x70   : > { %1047 = vmatpush.bf16.msra.mxu1 %v5684_v30  ;;  %v5840_v5 = vor.u32 %v7593_v3, %v5837_v4  ;;  %v7592_v7 = vld [vmem:[#allocation2 + $0x124] sm:$0xf0]  ;;  %v7591_v8 = vld [vmem:[#allocation2 + $0x124] sm:$0xf]  ;;  %v5829_v9 = vld [vmem:[#allocation2 + $0x128] sm:$0xf0] }
  0x71   : > { %1061 = vmatpush.bf16.msra.mxu2 %v5688_v34  ;;  %v5828_v10 = vor.u32 %v7592_v7, %v5827_v6  ;;  %v5832_v11 = vor.u32 %v7591_v8, %v5829_v9  ;;  %v5819_v12 = vld [vmem:[#allocation2 + $0x110] sm:$0xf]  ;;  %v7590_v13 = vld [vmem:[#allocation2 + $0x114] sm:$0xf0]  ;;  %v5821_v15 = vld [vmem:[#allocation2 + $0x118] sm:$0xf0] }
  0x72   : > { %1155 = vmatpush.bf16.msra.mxu3 %v5748_v35  ;;  %v5820_v16 = vor.u32 %v7590_v13, %v5819_v12  ;;  %v5811_v18 = vld [vmem:[#allocation2 + $0x100] sm:$0xf]  ;;  %v7588_v20 = vld [vmem:[#allocation2 + $0x104] sm:$0xf0]  ;;  %v7587_v21 = vld [vmem:[#allocation2 + $0x104] sm:$0xf] }
  0x73   : > { %1167 = vmatpush.bf16.msrb.mxu0 %v5768_v14  ;;  %v7589_v14 = vld [vmem:[#allocation2 + $0x114] sm:$0xf]  ;;  %v5813_v22 = vld [vmem:[#allocation2 + $0x108] sm:$0xf0]  ;;  %v5812_v23 = vor.u32 %v7588_v20, %v5811_v18  ;;  %v8964_v40 = vld [vmem:[#allocation22 + $0xf0] sm:$0xff]  ;;  %s9919_s1 = sld [smem:[#allocation36_spill]] }
  0x74   : > { %1280 = vmatpush.bf16.msrb.mxu1 %v5868_v43  ;;  %v5824_v17 = vor.u32 %v7589_v14, %v5821_v15  ;;  %v5816_v24 = vor.u32 %v7587_v21, %v5813_v22  ;;  %v8966_v41 = vld [vmem:[#allocation22 + $0xf8] sm:$0xff]  ;;  %v8968_v42 = vld [vmem:[#allocation22 + $0xe0] sm:$0xff]  ;;  %v8972_v43 = vld [vmem:[#allocation22 + $0xe8] sm:$0xff]  ;;  %s5674_s22 = sld [smem:[#allocation23 + $0x1]]  ;;  %s7552_s21 = sshll.u32 %s9925_s0, 5 }
  0x75   : > { %1294 = vmatpush.bf16.msrb.mxu2 %v5872_v44  ;;  %v8976_v44 = vld [vmem:[#allocation22 + $0xd0] sm:$0xff]  ;;  %v8978_v45 = vld [vmem:[#allocation22 + $0xd8] sm:$0xff]  ;;  %v8982_v46 = vld [vmem:[#allocation22 + $0xc0] sm:$0xff]  ;;  %s9795_s2 = scalar_lea.vmem %s9895_s18, %s7552_s21  ;;  %s8019_s25 = smul.u32 96, %s9925_s0 }
  0x76   : > { %1324 = vmatpush.msrb.mxu3 %v8964_v40  ;;  %v8984_v47 = vld [vmem:[#allocation22 + $0x1f0] sm:$0xff]  ;;  %v8990_v49 = vld [vmem:[#allocation22 + $0x1f8] sm:$0xff]  ;;  %v8994_v51 = vld [vmem:[#allocation22 + $0x1e0] sm:$0xff] }
  0x77   : > { %1168 = vmatpush.bf16.msrb.mxu0 %v5760_v26  ;;  %v8998_v52 = vld [vmem:[#allocation22 + $0xb8] sm:$0xff]  ;;  %v9000_v53 = vld [vmem:[#allocation22 + $0x1e8] sm:$0xff]  ;;  %v9008_v55 = vld [vmem:[#allocation22 + $0x1d0] sm:$0xff] }
  0x78   : > { %1281 = vmatpush.bf16.msrb.mxu1 %v5860_v48  ;;  %1325 = vmatpush.msrb.mxu3 %v8968_v42  ;;  %v8986_v48 = vld [vmem:[#allocation22 + $0xc8] sm:$0xff]  ;;  %v9014_v57 = vld [vmem:[#allocation22 + $0x1d8] sm:$0xff]  ;;  %v9018_v58 = vld [vmem:[#allocation22 + $0x90] sm:$0xff] }
  0x79   : > { %1295 = vmatpush.bf16.msrb.mxu2 %v5864_v50  ;;  %v8992_v50 = vld [vmem:[#allocation22 + $0xb0] sm:$0xff]  ;;  %v9020_v59 = vld [vmem:[#allocation22 + $0x1c0] sm:$0xff]  ;;  %v9026_v61 = vld [vmem:[#allocation22 + $0x1c8] sm:$0xff] }
  0x7a   : > { %1326 = vmatpush.msrb.mxu3 %v8976_v44  ;;  %v9030_v63 = vld [vmem:[#allocation22 + $0x1b0] sm:$0xff]  ;;  %v9034_v0 = vld [vmem:[#allocation22 + $0x88] sm:$0xff]  ;;  %v9044_v4 = vld [vmem:[#allocation22 + $0x1a0] sm:$0xff] }
  0x7b   : > { %1169 = vmatpush.bf16.msrb.mxu0 %v5752_v39  ;;  %v9042_v3 = vld [vmem:[#allocation22 + $0x70] sm:$0xff]  ;;  %v9050_v6 = vld [vmem:[#allocation22 + $0x1a8] sm:$0xff]  ;;  %v9054_v7 = vld [vmem:[#allocation22 + $0x60] sm:$0xff] }
  0x7c   : > { %1282 = vmatpush.bf16.msrb.mxu1 %v5852_v54  ;;  %1327 = vmatpush.msrb.mxu3 %v8982_v46  ;;  %v9006_v54 = vld [vmem:[#allocation22 + $0xa0] sm:$0xff]  ;;  %v9056_v8 = vld [vmem:[#allocation22 + $0x190] sm:$0xff]  ;;  %v9058_v9 = vld [vmem:[#allocation22 + $0x68] sm:$0xff] }
  0x7d   : > { %1296 = vmatpush.bf16.msrb.mxu2 %v5856_v56  ;;  %v9010_v56 = vld [vmem:[#allocation22 + $0xa8] sm:$0xff]  ;;  %v9068_v12 = vld [vmem:[#allocation22 + $0x180] sm:$0xff]  ;;  %v9070_v13 = vld [vmem:[#allocation22 + $0x58] sm:$0xff] }
  0x7e   : > { %1328 = vmatpush.msrb.mxu3 %v8992_v50  ;;  %v9074_v14 = vld [vmem:[#allocation22 + $0x188] sm:$0xff]  ;;  %v9076_v15 = vld [vmem:[#allocation22 + $0x40] sm:$0xff]  ;;  %v9084_v18 = vld [vmem:[#allocation22 + $0x178] sm:$0xff] }
  0x7f   : > { %1347 = vmatpush.msra.mxu0 %v8984_v47  ;;  %v9092_v20 = vld [vmem:[#allocation22 + $0x160] sm:$0xff]  ;;  %v9094_v21 = vld [vmem:[#allocation22 + $0x38] sm:$0xff]  ;;  %v9098_v22 = vld [vmem:[#allocation22 + $0x168] sm:$0xff] }
  0x80   : > { %1283 = vmatpush.bf16.msrb.mxu1 %v5844_v60  ;;  %1329 = vmatpush.msrb.mxu3 %v9006_v54  ;;  %v9022_v60 = vld [vmem:[#allocation22 + $0x98] sm:$0xff]  ;;  %v9155_v2 = vld [vmem:[#allocation22 + $0x108] sm:$0xff] }
  0x81   : > { %1297 = vmatpush.bf16.msrb.mxu2 %v5848_v62  ;;  %1348 = vmatpush.msra.mxu0 %v8994_v51  ;;  %v9028_v62 = vld [vmem:[#allocation22 + $0x80] sm:$0xff] }
  0x82   : > { %1330 = vmatpush.msrb.mxu3 %v9018_v58 }
  0x83   : > { %1349 = vmatpush.msra.mxu0 %v9008_v55 }
  0x84   : > { %1284 = vmatpush.bf16.msrb.mxu1 %v5836_v1  ;;  %v9036_v1 = vld [vmem:[#allocation22 + $0x1b8] sm:$0xff]  ;;  %1331 = vmatpush.msrb.mxu3 %v9028_v62 }
  0x85   : > { %1298 = vmatpush.bf16.msrb.mxu2 %v5840_v5  ;;  %1350 = vmatpush.msra.mxu0 %v9020_v59  ;;  %v9046_v5 = vld [vmem:[#allocation22 + $0x78] sm:$0xff] }
  0x86   : > { %1332 = vmatpush.msrb.mxu3 %v9042_v3 }
  0x87   : > { %1351 = vmatpush.msra.mxu0 %v9030_v63 }
  0x88   : > { %1285 = vmatpush.bf16.msrb.mxu1 %v5828_v10  ;;  %1333 = vmatpush.msrb.mxu3 %v9054_v7  ;;  %v9062_v10 = vld [vmem:[#allocation22 + $0x198] sm:$0xff] }
  0x89   : > { %1299 = vmatpush.bf16.msrb.mxu2 %v5832_v11  ;;  %1352 = vmatpush.msra.mxu0 %v9044_v4  ;;  %v9066_v11 = vld [vmem:[#allocation22 + $0x50] sm:$0xff] }
  0x8a   : > { %1334 = vmatpush.msrb.mxu3 %v9066_v11 }
  0x8b   : > { %1353 = vmatpush.msra.mxu0 %v9056_v8 }
  0x8c   : > { %1286 = vmatpush.bf16.msrb.mxu1 %v5820_v16  ;;  %v9078_v16 = vld [vmem:[#allocation22 + $0x170] sm:$0xff]  ;;  %1335 = vmatpush.msrb.mxu3 %v9076_v15 }
  0x8d   : > { %1300 = vmatpush.bf16.msrb.mxu2 %v5824_v17  ;;  %1354 = vmatpush.msra.mxu0 %v9068_v12  ;;  %v9082_v17 = vld [vmem:[#allocation22 + $0x48] sm:$0xff] }
  0x8f   : > { %1355 = vmatpush.msra.mxu0 %v9078_v16 }
  0x90   : > { %1287 = vmatpush.bf16.msrb.mxu1 %v5812_v23  ;;  %v9102_v23 = vld [vmem:[#allocation22 + $0x20] sm:$0xff] }
  0x91   : > { %1301 = vmatpush.bf16.msrb.mxu2 %v5816_v24  ;;  %1356 = vmatpush.msra.mxu0 %v9092_v20  ;;  %v9104_v24 = vld [vmem:[#allocation22 + $0x150] sm:$0xff] }
  0x93   : > { %1357 = vmatpush.msra.mxu0 %v9104_v24 }
  0xdb   : > { %v902_v19 = vpop.f32.mrf.mxu0 }
  0xe3   : > { %v904_v25 = vpop.f32.mrf.mxu0 }
  0xe4   : > { %v911_v26 = vpack.c.bf16 %v904_v25, %v902_v19  ;;  %v9090_v19 = vld [vmem:[#allocation22 + $0x30] sm:$0xff]  ;;  %v9106_v25 = vld [vmem:[#allocation22 + $0x28] sm:$0xff] }
  0xe5   : > { %1336 = vmatpush.msrb.mxu3 %v9090_v19 }
  0xe6   : > { %1156 = vmatmul.bf16.vlgmr.msra.gmra.mxu3 %v911_v26  ;;  %1170 = vmatmul.bf16.vlgmr.msrb.gmra.mxu0 %v911_v26  ;;  %v950_v27 = vshll.u32 %v911_v26, 16  ;;  %v948_v32 = vshrl.u32 %v911_v26, 16  ;;  %v1196_v38 = vrot.slane %v911_v26, 1  ;;  %v9110_v26 = vld [vmem:[#allocation22 + $0x158] sm:$0xff] }
  0xe7   : > { %1337 = vmatpush.msrb.mxu3 %v9102_v23 }
  0xe8   : > { %v952_v30 = vrot.slane %v950_v27, 1  ;;  %v9114_v27 = vld [vmem:[#allocation22 + $0x10] sm:$0xff] }
  0xe9   : > { %1338 = vmatpush.msrb.mxu3 %v9114_v27 }
  0xea   : > { %v953_v34 = vor.u32 %v952_v30, %v948_v32  ;;  %v9122_v30 = vld [vmem:[#allocation22 + $0x148] sm:$0xff]  ;;  %v9128_v32 = vld [vmem:[#allocation22 + $0x130] sm:$0xff] }
  0xeb   : > { %v907_v28 = vpop.f32.mrf.mxu0 }
  0xec   : > { %v928_v29 = vpack.c.bf16 %v907_v28, %v907_v28  ;;  %v9116_v28 = vld [vmem:[#allocation22 + $0x140] sm:$0xff] }
  0xed   : > { %1358 = vmatpush.msra.mxu0 %v9116_v28 }
  0xee   : > { %v955_v31 = vshll.u32 %v928_v29, 16  ;;  %v1197_v37 = vrot.slane %v928_v29, 1  ;;  %v9118_v29 = vld [vmem:[#allocation22 + $0x18] sm:$0xff] }
  0xef   : > { %1359 = vmatpush.msra.mxu0 %v9128_v32 }
  0xf0   : > { %v957_v33 = vrot.slane %v955_v31, 1  ;;  %v1198_v39 = vsel %vm1195_vm2, %v1196_v38, %v1197_v37  ;;  %v9126_v31 = vld [vmem:[#allocation22] sm:$0xff]  ;;  %v9145_v37 = vld [vmem:[#allocation22 + $0x110] sm:$0xff]  ;;  %v9147_v38 = vld [vmem:[#allocation22 + $0x118] sm:$0xff] }
  0xf1   : > { %1339 = vmatpush.msrb.mxu3 %v9126_v31 }
  0xf2   : > { %v958_v35 = vsel %vm946_vm1, %v953_v34, %v957_v33  ;;  %v9130_v33 = vld [vmem:[#allocation22 + $0x8] sm:$0xff]  ;;  %v9134_v34 = vld [vmem:[#allocation22 + $0x138] sm:$0xff] }
  0xf3   : > { %v909_v36 = vpop.f32.mrf.mxu0  ;;  %1048 = vmatmul.bf16.vlgmr.msra.gmra.mxu1 %v958_v35  ;;  %1062 = vmatmul.bf16.vlgmr.msra.gmra.mxu2 %v958_v35  ;;  %v9138_v35 = vld [vmem:[#allocation22 + $0x120] sm:$0xff] }
  0xf4   : > { %1370 = vmatpush.msra.mxu1 %v8966_v41  ;;  %1393 = vmatpush.msra.mxu2 %v8990_v49  ;;  %v9140_v36 = vld [vmem:[#allocation22 + $0x128] sm:$0xff] }
  0xf5   : > { %1360 = vmatpush.msra.mxu0 %v9138_v35  ;;  %1424 = vmatpush.msra.mxu3 %v8964_v40 }
  0xf6   : > { %1371 = vmatpush.msra.mxu1 %v8972_v43  ;;  %1394 = vmatpush.msra.mxu2 %v9000_v53 }
  0xf7   : > { %1361 = vmatpush.msra.mxu0 %v9145_v37  ;;  %1425 = vmatpush.msra.mxu3 %v8968_v42 }
  0xf8   : > { %1372 = vmatpush.msra.mxu1 %v8978_v45  ;;  %1395 = vmatpush.msra.mxu2 %v9014_v57 }
  0xf9   : > { %1426 = vmatpush.msra.mxu3 %v8976_v44  ;;  %v1312_v44 = vld [vmem:[#allocation5] sm:$0x3] }
  0xfa   : > { %1373 = vmatpush.msra.mxu1 %v8986_v48  ;;  %1396 = vmatpush.msra.mxu2 %v9026_v61 }
  0xfb   : > { %1427 = vmatpush.msra.mxu3 %v8982_v46 }
  0xfc   : > { %1374 = vmatpush.msra.mxu1 %v8998_v52  ;;  %1397 = vmatpush.msra.mxu2 %v9036_v1 }
  0xfd   : > { %1428 = vmatpush.msra.mxu3 %v8992_v50 }
  0xfe   : > { %1375 = vmatpush.msra.mxu1 %v9010_v56  ;;  %1398 = vmatpush.msra.mxu2 %v9050_v6 }
  0xff   : > { %1429 = vmatpush.msra.mxu3 %v9006_v54 }
 0x100   : > { %1376 = vmatpush.msra.mxu1 %v9022_v60  ;;  %1399 = vmatpush.msra.mxu2 %v9062_v10 }
 0x101   : > { %1430 = vmatpush.msra.mxu3 %v9018_v58 }
 0x102   : > { %1377 = vmatpush.msra.mxu1 %v9034_v0  ;;  %1400 = vmatpush.msra.mxu2 %v9074_v14 }
 0x103   : > { %1288 = vmatmul.bf16.vlgmr.msrb.gmra.mxu1 %v1198_v39  ;;  %1302 = vmatmul.bf16.vlgmr.msrb.gmra.mxu2 %v1198_v39  ;;  %v9153_v39 = vld [vmem:[#allocation22 + $0x100] sm:$0xff] }
 0x104   : > { %1378 = vmatpush.msra.mxu1 %v9046_v5  ;;  %1401 = vmatpush.msra.mxu2 %v9084_v18 }
 0x105   : > { %1362 = vmatpush.msra.mxu0 %v9153_v39  ;;  %1431 = vmatpush.msra.mxu3 %v9028_v62 }
 0x106   : > { %1379 = vmatpush.msra.mxu1 %v9058_v9  ;;  %1402 = vmatpush.msra.mxu2 %v9098_v22 }
 0x107   : > { %1447 = vmatpush.msrb.mxu0 %v8984_v47  ;;  %1432 = vmatpush.msra.mxu3 %v9042_v3  ;;  %v1314_v47 = vperm.slane %v1312_v44, 0 }
 0x108   : > { %1380 = vmatpush.msra.mxu1 %v9070_v13  ;;  %1403 = vmatpush.msra.mxu2 %v9110_v26 }
 0x109   : > { %1448 = vmatpush.msrb.mxu0 %v8994_v51  ;;  %1433 = vmatpush.msra.mxu3 %v9054_v7 }
 0x10a   : > { %1381 = vmatpush.msra.mxu1 %v9082_v17  ;;  %1404 = vmatpush.msra.mxu2 %v9122_v30 }
 0x10b   : > { %1449 = vmatpush.msrb.mxu0 %v9008_v55  ;;  %1434 = vmatpush.msra.mxu3 %v9066_v11 }
 0x10c   : > { %1382 = vmatpush.msra.mxu1 %v9094_v21  ;;  %1405 = vmatpush.msra.mxu2 %v9134_v34 }
 0x10d   : > { %1450 = vmatpush.msrb.mxu0 %v9020_v59  ;;  %1435 = vmatpush.msra.mxu3 %v9076_v15 }
 0x10e   : > { %1383 = vmatpush.msra.mxu1 %v9106_v25  ;;  %1406 = vmatpush.msra.mxu2 %v9140_v36 }
 0x10f   : > { %1451 = vmatpush.msrb.mxu0 %v9030_v63  ;;  %1436 = vmatpush.msra.mxu3 %v9090_v19 }
 0x110   : > { %1384 = vmatpush.msra.mxu1 %v9118_v29  ;;  %1407 = vmatpush.msra.mxu2 %v9147_v38 }
 0x111   : > { %1452 = vmatpush.msrb.mxu0 %v9044_v4  ;;  %1437 = vmatpush.msra.mxu3 %v9102_v23 }
 0x112   : > { %1385 = vmatpush.msra.mxu1 %v9130_v33  ;;  %1408 = vmatpush.msra.mxu2 %v9155_v2 }
 0x113   : > { %1453 = vmatpush.msrb.mxu0 %v9056_v8  ;;  %1438 = vmatpush.msra.mxu3 %v9114_v27 }
 0x114   : > { %1470 = vmatpush.msrb.mxu1 %v8966_v41  ;;  %1493 = vmatpush.msrb.mxu2 %v8990_v49 }
 0x115   : > { %1454 = vmatpush.msrb.mxu0 %v9068_v12  ;;  %1439 = vmatpush.msra.mxu3 %v9126_v31 }
 0x116   : > { %1471 = vmatpush.msrb.mxu1 %v8972_v43  ;;  %1494 = vmatpush.msrb.mxu2 %v9000_v53  ;;  %v1315_v53 = vperm.slane %v1312_v44, 1 }
 0x117   : > { %1455 = vmatpush.msrb.mxu0 %v9078_v16 }
 0x118   : > { %1472 = vmatpush.msrb.mxu1 %v8978_v45  ;;  %1495 = vmatpush.msrb.mxu2 %v9014_v57 }
 0x119   : > { %1456 = vmatpush.msrb.mxu0 %v9092_v20 }
 0x11a   : > { %1473 = vmatpush.msrb.mxu1 %v8986_v48  ;;  %1496 = vmatpush.msrb.mxu2 %v9026_v61 }
 0x11b   : > { %1457 = vmatpush.msrb.mxu0 %v9104_v24 }
 0x11c   : > { %1474 = vmatpush.msrb.mxu1 %v8998_v52  ;;  %1497 = vmatpush.msrb.mxu2 %v9036_v1 }
 0x11d   : > { %1458 = vmatpush.msrb.mxu0 %v9116_v28 }
 0x11e   : > { %1475 = vmatpush.msrb.mxu1 %v9010_v56  ;;  %1498 = vmatpush.msrb.mxu2 %v9050_v6 }
 0x11f   : > { %1459 = vmatpush.msrb.mxu0 %v9128_v32 }
 0x120   : > { %1476 = vmatpush.msrb.mxu1 %v9022_v60  ;;  %1499 = vmatpush.msrb.mxu2 %v9062_v10 }
 0x121   : > { %1460 = vmatpush.msrb.mxu0 %v9138_v35 }
 0x122   : > { %1477 = vmatpush.msrb.mxu1 %v9034_v0  ;;  %1500 = vmatpush.msrb.mxu2 %v9074_v14 }
 0x123   : > { %1461 = vmatpush.msrb.mxu0 %v9145_v37 }
 0x124   : > { %1478 = vmatpush.msrb.mxu1 %v9046_v5  ;;  %1501 = vmatpush.msrb.mxu2 %v9084_v18 }
 0x125   : > { %1462 = vmatpush.msrb.mxu0 %v9153_v39 }
 0x126   : > { %1479 = vmatpush.msrb.mxu1 %v9058_v9  ;;  %1502 = vmatpush.msrb.mxu2 %v9098_v22 }
 0x128   : > { %1480 = vmatpush.msrb.mxu1 %v9070_v13  ;;  %1503 = vmatpush.msrb.mxu2 %v9110_v26 }
 0x12a   : > { %1481 = vmatpush.msrb.mxu1 %v9082_v17  ;;  %1504 = vmatpush.msrb.mxu2 %v9122_v30 }
 0x12c   : > { %1482 = vmatpush.msrb.mxu1 %v9094_v21  ;;  %1505 = vmatpush.msrb.mxu2 %v9134_v34 }
 0x12e   : > { %1483 = vmatpush.msrb.mxu1 %v9106_v25  ;;  %1506 = vmatpush.msrb.mxu2 %v9140_v36 }
 0x130   : > { %1484 = vmatpush.msrb.mxu1 %v9118_v29  ;;  %1507 = vmatpush.msrb.mxu2 %v9147_v38 }
 0x132   : > { %1485 = vmatpush.msrb.mxu1 %v9130_v33  ;;  %1508 = vmatpush.msrb.mxu2 %v9155_v2 }
 0x163   : > { %v1171_v50 = vpop.f32.mrf.mxu0 }
 0x169   : > { %v1157_v43 = vpop.f32.mrf.mxu3 }
 0x16b   : > { %v1173_v62 = vpop.f32.mrf.mxu0 }
 0x170   : > { %v1049_v40 = vpop.f32.mrf.mxu1 }
 0x171   : > { %v1158_v46 = vadd.f32 %v1157_v43, %v1049_v40  ;;  %v1159_v54 = vpop.f32.mrf.mxu3 }
 0x176   : > { %v1063_v41 = vpop.f32.mrf.mxu2 }
 0x177   : > { %v1172_v52 = vadd.f32 %v1171_v50, %v1063_v41 }
 0x178   : > { %v1051_v42 = vpop.f32.mrf.mxu1 }
 0x179   : > { %v1160_v56 = vadd.f32 %v1159_v54, %v1051_v42 }
 0x17e   : > { %v1065_v45 = vpop.f32.mrf.mxu2 }
 0x17f   : > { %v1174_v63 = vadd.f32 %v1173_v62, %v1065_v45  ;;  %v9236_v45 = vld [vmem:[#allocation7] sm:$0x3] }
 0x180   : > { %v1289_v48 = vpop.f32.mrf.mxu1 }
 0x181   : > { %v1308_v49 = vadd.f32 %v1289_v48, %v1158_v46 }
 0x183   : > { %v1318_v51 = vadd.f32 %v1314_v47, %v1308_v49 }
 0x185   : > { %1340 = vmatmul.f32.vlgmr.msrb.gmra.mxu3 %v1318_v51  ;;  %1386 = vmatmul.f32.vlgmr.msra.gmra.mxu1 %v1318_v51 }
 0x186   : > { %v1303_v55 = vpop.f32.mrf.mxu2 }
 0x187   : > { %v1309_v57 = vadd.f32 %v1303_v55, %v1172_v52  ;;  %v1561_v52 = vperm.slane %v9236_v45, 0 }
 0x188   : > { %v1291_v58 = vpop.f32.mrf.mxu1 }
 0x189   : > { %v1319_v59 = vadd.f32 %v1315_v53, %v1309_v57  ;;  %v1310_v60 = vadd.f32 %v1291_v58, %v1160_v56 }
 0x18b   : > { %v1320_v61 = vadd.f32 %v1314_v47, %v1310_v60  ;;  %1363 = vmatmul.f32.vlgmr.msra.gmra.mxu0 %v1319_v59  ;;  %1409 = vmatmul.f32.vlgmr.msra.gmra.mxu2 %v1319_v59 }
 0x18d   : > { %1343 = vmatmul.f32.gmra.mxu3 %v1320_v61  ;;  %1389 = vmatmul.f32.gmra.mxu1 %v1320_v61 }
 0x18e   : > { %v1305_v0 = vpop.f32.mrf.mxu2 }
 0x18f   : > { %v1311_v1 = vadd.f32 %v1305_v0, %v1174_v63  ;;  %v1562_v63 = vperm.slane %v9236_v45, 1 }
 0x191   : > { %v1321_v3 = vadd.f32 %v1315_v53, %v1311_v1  ;;  %v9239_v53 = vld [vmem:[#allocation8] sm:$0x3] }
 0x192   : > { %v1570_v62 = vperm.slane %v9239_v53, 0 }
 0x193   : > { %1366 = vmatmul.f32.gmra.mxu0 %v1321_v3  ;;  %1412 = vmatmul.f32.gmra.mxu2 %v1321_v3 }
 0x202   : > { %v1387_v8 = vpop.f32.mrf.mxu1 }
 0x208   : > { %v1341_v4 = vpop.f32.mrf.mxu3  ;;  %v1364_v5 = vpop.f32.mrf.mxu0 }
 0x209   : > { %v1365_v6 = vadd.f32 %v1364_v5, %v1341_v4 }
 0x20a   : > { %v1390_v18 = vpop.f32.mrf.mxu1 }
 0x20b   : > { %v9220_v7 = vsub.f32 %v1318_v51, %v1365_v6 }
 0x20d   : > { %v1420_v9 = vmul.f32 %v9220_v7, %v9220_v7 }
 0x20e   : > { %v1410_v10 = vpop.f32.mrf.mxu2 }
 0x20f   : > { %v1411_v11 = vadd.f32 %v1410_v10, %v1387_v8  ;;  %1440 = vmatmul.f32.vlgmr.msra.gmra.mxu3 %v1420_v9  ;;  %1486 = vmatmul.f32.vlgmr.msrb.gmra.mxu1 %v1420_v9  ;;  %v1571_v8 = vperm.slane %v9239_v53, 1  ;;  %v5925_v53 = vld [vmem:[#allocation10 + $0x158] sm:$0xf0] }
 0x210   : > { %v1344_v2 = vpop.f32.mrf.mxu3  ;;  %v1367_v12 = vpop.f32.mrf.mxu0 }
 0x211   : > { %v9224_v13 = vsub.f32 %v1319_v59, %v1411_v11  ;;  %v1368_v14 = vadd.f32 %v1367_v12, %v1344_v2 }
 0x213   : > { %v1421_v15 = vmul.f32 %v9224_v13, %v9224_v13  ;;  %v9228_v16 = vsub.f32 %v1320_v61, %v1368_v14  ;;  %v9247_v14 = vstv %s803_s8  ;;  %s9856_s8 = scalar_lea.vmem %s9894_s17, %s8019_s25 }
 0x214   : > { %9918 = vst [vmem:[#allocation33_spill] sm:$0xff] %v9247_v14 }
 0x215   : > { %1463 = vmatmul.f32.vlgmr.msrb.gmra.mxu0 %v1421_v15  ;;  %1509 = vmatmul.f32.vlgmr.msrb.gmra.mxu2 %v1421_v15  ;;  %v1422_v17 = vmul.f32 %v9228_v16, %v9228_v16 }
 0x216   : > { %v1413_v19 = vpop.f32.mrf.mxu2 }
 0x217   : > { %v1414_v20 = vadd.f32 %v1413_v19, %v1390_v18  ;;  %1443 = vmatmul.f32.gmra.mxu3 %v1422_v17  ;;  %1489 = vmatmul.f32.gmra.mxu1 %v1422_v17 }
 0x219   : > { %v9232_v21 = vsub.f32 %v1321_v3, %v1414_v20  ;;  %v7665_v20 = vld [vmem:[#allocation10 + $0x1f4] sm:$0xf] }
 0x21b   : > { %v1423_v22 = vmul.f32 %v9232_v21, %v9232_v21 }
 0x21d   : > { %1466 = vmatmul.f32.gmra.mxu0 %v1423_v22  ;;  %1512 = vmatmul.f32.gmra.mxu2 %v1423_v22  ;;  %v6005_v22 = vld [vmem:[#allocation10 + $0x1f8] sm:$0xf0] }
 0x28c   : > { %v1487_v23 = vpop.f32.mrf.mxu1 }
 0x28d   : > { %v1488_v28 = vadd.f32 1e-05, %v1487_v23 }
 0x292   : > { %v1441_v24 = vpop.f32.mrf.mxu3  ;;  %v1464_v25 = vpop.f32.mrf.mxu0 }
 0x293   : > { %v1442_v26 = vadd.f32 1e-05, %v1441_v24 }
 0x294   : > { %v1490_v33 = vpop.f32.mrf.mxu1 }
 0x295   : > { %v1465_v27 = vadd.f32 %v1464_v25, %v1442_v26  ;;  %v1491_v38 = vadd.f32 1e-05, %v1490_v33  ;;  %v6008_v25 = vor.u32 %v7665_v20, %v6005_v22  ;;  %v7649_v26 = vld [vmem:[#allocation10 + $0x174] sm:$0xf]  ;;  %v5997_v33 = vld [vmem:[#allocation10 + $0x1e8] sm:$0xf0] }
 0x296   : > { %v7655_v22 = vld [vmem:[#allocation10 + $0x1a4] sm:$0xf] }
 0x297   : > { %8175 = vrsqrt.f32 %v1465_v27  ;;  %vm1522_vm4 = vweird.f32 %v1465_v27  ;;  %1940 = vmatpush.bf16.msra.mxu2 %v6008_v25  ;;  %v5979_v25 = vld [vmem:[#allocation10 + $0x1c0] sm:$0xf] }
 0x298   : > { %v1510_v29 = vpop.f32.mrf.mxu2 }
 0x299   : > { %v1511_v30 = vadd.f32 %v1510_v29, %v1488_v28  ;;  %v7650_v28 = vld [vmem:[#allocation10 + $0x174] sm:$0xf0] }
 0x29a   : > { %v1444_v31 = vpop.f32.mrf.mxu3  ;;  %v1467_v34 = vpop.f32.mrf.mxu0 }
 0x29b   : > { %8177 = vrsqrt.f32 %v1511_v30  ;;  %v1445_v32 = vadd.f32 1e-05, %v1444_v31  ;;  %vm1532_vm7 = vweird.f32 %v1511_v30 }
 0x29d   : > { %v8176_v35 = vpop.eup %8175  ;;  %v1468_v36 = vadd.f32 %v1467_v34, %v1445_v32 }
 0x29e   : > { %v1517_v37 = vmul.f32 %v8176_v35, %v1465_v27  ;;  %vm1523_vm3 = vweird.f32 %v8176_v35  ;;  %v5941_v27 = vld [vmem:[#allocation10 + $0x178] sm:$0xf0] }
 0x29f   : > { %8179 = vrsqrt.f32 %v1468_v36  ;;  %vm1524_vm5 = vmor %vm1522_vm4, %vm1523_vm3  ;;  %vm1542_vm10 = vweird.f32 %v1468_v36  ;;  %v5944_v29 = vor.u32 %v7649_v26, %v5941_v27  ;;  %v7639_v27 = vld [vmem:[#allocation10 + $0x124] sm:$0xf] }
 0x2a0   : > { %v1518_v39 = vmul.f32 %v8176_v35, %v1517_v37  ;;  %v1513_v40 = vpop.f32.mrf.mxu2  ;;  %v5933_v37 = vld [vmem:[#allocation10 + $0x168] sm:$0xf0] }
 0x2a1   : > { %v8178_v41 = vpop.eup %8177  ;;  %v1514_v42 = vadd.f32 %v1513_v40, %v1491_v38  ;;  %1926 = vmatpush.bf16.msra.mxu1 %v5944_v29  ;;  %v6003_v40 = vld [vmem:[#allocation10 + $0x1f0] sm:$0xf] }
 0x2a2   : > { %v1519_v43 = vmul.f32 0.5, %v1518_v39  ;;  %v1527_v44 = vmul.f32 %v8178_v41, %v1511_v30  ;;  %vm1533_vm6 = vweird.f32 %v8178_v41  ;;  %v7663_v30 = vld [vmem:[#allocation10 + $0x1e4] sm:$0xf]  ;;  %v5907_v29 = vld [vmem:[#allocation10 + $0x130] sm:$0xf] }
 0x2a3   : > { %8181 = vrsqrt.f32 %v1514_v42  ;;  %vm1534_vm8 = vmor %vm1532_vm7, %vm1533_vm6  ;;  %vm1552_vm13 = vweird.f32 %v1514_v42  ;;  %vm2742_vm6 = vcmask 1045504   ;;  %vm3004_vm7 = vsmask.f32 5376 }
 0x2a4   : > { %v1520_v46 = vsub.f32 1.5, %v1519_v43  ;;  %v1528_v47 = vmul.f32 %v8178_v41, %v1527_v44  ;;  %v7661_v44 = vld [vmem:[#allocation10 + $0x1d4] sm:$0xf] }
 0x2a5   : > { %v8180_v48 = vpop.eup %8179 }
 0x2a6   : > { %v1521_v49 = vmul.f32 %v8176_v35, %v1520_v46  ;;  %v1529_v50 = vmul.f32 0.5, %v1528_v47  ;;  %v1537_v51 = vmul.f32 %v8180_v48, %v1468_v36  ;;  %vm1543_vm9 = vweird.f32 %v8180_v48  ;;  %v7647_v36 = vld [vmem:[#allocation10 + $0x164] sm:$0xf]  ;;  %v5931_v46 = vld [vmem:[#allocation10 + $0x160] sm:$0xf] }
 0x2a7   : > { %vm1544_vm11 = vmor %vm1542_vm10, %vm1543_vm9  ;;  %v5936_v43 = vor.u32 %v7647_v36, %v5933_v37  ;;  %v7648_v47 = vld [vmem:[#allocation10 + $0x164] sm:$0xf0]  ;;  %v5971_v37 = vld [vmem:[#allocation10 + $0x1b0] sm:$0xf]  ;;  %vm2468_vm9 = vsmask.f32 6400 }
 0x2a8   : > { %v1525_v54 = vsel %vm1524_vm5, %v8176_v35, %v1521_v49  ;;  %v1530_v55 = vsub.f32 1.5, %v1529_v50  ;;  %v1538_v56 = vmul.f32 %v8180_v48, %v1537_v51  ;;  %v6000_v35 = vor.u32 %v7663_v30, %v5997_v33  ;;  %v7554_v49 = vld [vmem:[%s9919_s1] sm:$0xff] }
 0x2a9   : > { %v8182_v57 = vpop.eup %8181  ;;  %v1556_v58 = vmul.f32 %v1525_v54, %v9220_v7  ;;  %v5995_v54 = vld [vmem:[#allocation10 + $0x1e0] sm:$0xf]  ;;  %1927 = vmatpush.bf16.msra.mxu1 %v5936_v43  ;;  %v7642_v30 = vld [vmem:[#allocation10 + $0x134] sm:$0xf0] }
 0x2aa   : > { %v1531_v59 = vmul.f32 %v8178_v41, %v1530_v55  ;;  %v1539_v60 = vmul.f32 0.5, %v1538_v56  ;;  %v1547_v61 = vmul.f32 %v8182_v57, %v1514_v42  ;;  %vm1553_vm12 = vweird.f32 %v8182_v57  ;;  %1941 = vmatpush.bf16.msra.mxu2 %v6000_v35  ;;  %v7659_v56 = vld [vmem:[#allocation10 + $0x1c4] sm:$0xf]  ;;  %v5957_v35 = vld [vmem:[#allocation10 + $0x198] sm:$0xf0] }
 0x2ab   : > { %v1565_v0 = vmul.f32 %v1561_v52, %v1556_v58  ;;  %vm1554_vm14 = vmor %vm1552_vm13, %vm1553_vm12  ;;  %v5899_v43 = vld [vmem:[#allocation10 + $0x120] sm:$0xf] }
 0x2ac   : > { %v1535_v1 = vsel %vm1534_vm8, %v8178_v41, %v1531_v59  ;;  %v1540_v3 = vsub.f32 1.5, %v1539_v60  ;;  %v1548_v4 = vmul.f32 %v8182_v57, %v1547_v61  ;;  %v7666_v41 = vld [vmem:[#allocation10 + $0x1f4] sm:$0xf0]  ;;  %v7664_v60 = vld [vmem:[#allocation10 + $0x1e4] sm:$0xf0]  ;;  %v5932_v61 = vor.u32 %v7648_v47, %v5931_v46 }
 0x2ad   : > { %v1557_v5 = vmul.f32 %v1535_v1, %v9224_v13  ;;  %v1574_v9 = vadd.f32 %v1570_v62, %v1565_v0  ;;  %v6004_v59 = vor.u32 %v7666_v41, %v6003_v40  ;;  %v7646_v1 = vld [vmem:[#allocation10 + $0x154] sm:$0xf0]  ;;  %v7637_v40 = vld [vmem:[#allocation10 + $0x114] sm:$0xf]  ;;  %v5893_v41 = vld [vmem:[#allocation10 + $0x118] sm:$0xf0] }
 0x2ae   : > { %v1541_v6 = vmul.f32 %v8180_v48, %v1540_v3  ;;  %v1549_v7 = vmul.f32 0.5, %v1548_v4  ;;  %v7643_v3 = vld [vmem:[#allocation10 + $0x144] sm:$0xf]  ;;  %v5917_v4 = vld [vmem:[#allocation10 + $0x148] sm:$0xf0]  ;;  %vm3274_vm8 = vcmask 1044480  }
 0x2af   : > { %v1566_v10 = vmul.f32 %v1562_v63, %v1557_v5  ;;  %v1583_v18 = vmul.f32 %v9247_v14, %v1574_v9  ;;  %vm1578_vm15 = vcmp.gt.f32.partialorder %v1574_v9, 0.0  ;;  %v5963_v47 = vld [vmem:[#allocation10 + $0x1a0] sm:$0xf] }
 0x2b0   : > { %v1545_v11 = vsel %vm1544_vm11, %v8180_v48, %v1541_v6  ;;  %v1550_v2 = vsub.f32 1.5, %v1549_v7  ;;  %v5989_v48 = vld [vmem:[#allocation10 + $0x1d8] sm:$0xf0]  ;;  %v5920_v6 = vor.u32 %v7643_v3, %v5917_v4  ;;  %v7657_v7 = vld [vmem:[#allocation10 + $0x1b4] sm:$0xf] }
 0x2b1   : > { %v1558_v12 = vmul.f32 %v1545_v11, %v9228_v16  ;;  %v1575_v19 = vadd.f32 %v1571_v8, %v1566_v10  ;;  %v5939_v16 = vld [vmem:[#allocation10 + $0x170] sm:$0xf]  ;;  %v9252_v34 = vsel %vm1578_vm15, %v1574_v9, %v1583_v18  ;;  %v5992_v51 = vor.u32 %v7661_v44, %v5989_v48  ;;  %v7640_v44 = vld [vmem:[#allocation10 + $0x124] sm:$0xf0] }
 0x2b2   : > { %v1551_v15 = vmul.f32 %v8182_v57, %v1550_v2  ;;  %v5940_v42 = vor.u32 %v7650_v28, %v5939_v16  ;;  %v5996_v9 = vor.u32 %v7664_v60, %v5995_v54  ;;  %v5987_v10 = vld [vmem:[#allocation10 + $0x1d0] sm:$0xf]  ;;  %v7641_v2 = vld [vmem:[#allocation10 + $0x134] sm:$0xf]  ;;  %v5901_v16 = vld [vmem:[#allocation10 + $0x128] sm:$0xf0]  ;;  %v5896_v48 = vor.u32 %v7637_v40, %v5893_v41 }
 0x2b3   : > { %v1567_v17 = vmul.f32 %v1561_v52, %v1558_v12  ;;  %vm1579_vm4 = vcmp.gt.f32.partialorder %v1575_v19, 0.0  ;;  %v7645_v52 = vld [vmem:[#allocation10 + $0x154] sm:$0xf]  ;;  %1942 = vmatpush.bf16.msra.mxu2 %v5992_v51  ;;  %v5909_v12 = vld [vmem:[#allocation10 + $0x138] sm:$0xf0]  ;;  %v5904_v33 = vor.u32 %v7639_v27, %v5901_v16 }
 0x2b4   : > { %v1555_v13 = vsel %vm1554_vm14, %v8182_v57, %v1551_v15  ;;  %v5928_v55 = vor.u32 %v7645_v52, %v5925_v53  ;;  %v7662_v15 = vld [vmem:[#allocation10 + $0x1d4] sm:$0xf0]  ;;  %v5912_v20 = vor.u32 %v7641_v2, %v5909_v12  ;;  %v7660_v28 = vld [vmem:[#allocation10 + $0x1c4] sm:$0xf0]  ;;  %v7633_v51 = vld [vmem:[#allocation10 + $0xf4] sm:$0xf]  ;;  %v5900_v53 = vor.u32 %v7640_v44, %v5899_v43 }
 0x2b5   : > { %v1559_v23 = vmul.f32 %v1555_v13, %v9232_v21  ;;  %v1576_v24 = vadd.f32 %v1570_v62, %v1567_v17  ;;  %v1584_v21 = vmul.f32 %v9247_v14, %v1575_v19  ;;  %v5923_v62 = vld [vmem:[#allocation10 + $0x150] sm:$0xf]  ;;  %v5915_v17 = vld [vmem:[#allocation10 + $0x140] sm:$0xf]  ;;  %v7644_v13 = vld [vmem:[#allocation10 + $0x144] sm:$0xf0]  ;;  %v5980_v36 = vor.u32 %v7660_v28, %v5979_v25 }
 0x2b6   : > { %1928 = vmatpush.bf16.msra.mxu1 %v5928_v55  ;;  %v5924_v11 = vor.u32 %v7646_v1, %v5923_v62  ;;  %v5916_v26 = vor.u32 %v7644_v13, %v5915_v17  ;;  %v6133_v54 = vld [vmem:[#allocation10 + $0xf8] sm:$0xf0]  ;;  %v7635_v55 = vld [vmem:[#allocation10 + $0x104] sm:$0xf]  ;;  %v5891_v60 = vld [vmem:[#allocation10 + $0x110] sm:$0xf] }
 0x2b7   : > { %v1568_v31 = vmul.f32 %v1562_v63, %v1559_v23  ;;  %vm1580_vm3 = vcmp.gt.f32.partialorder %v1576_v24, 0.0  ;;  %v1585_v32 = vmul.f32 %v9247_v14, %v1576_v24  ;;  %v9264_v57 = vsel %vm1579_vm4, %v1575_v19, %v1584_v21  ;;  %v5981_v63 = vld [vmem:[#allocation10 + $0x1c8] sm:$0xf0]  ;;  %v874_v19 = vld [vmem:[%s9919_s1 + $0x8] sm:$0x7] }
 0x2b8   : > { %v5984_v5 = vor.u32 %v7659_v56, %v5981_v63  ;;  %v5965_v23 = vld [vmem:[#allocation10 + $0x1a8] sm:$0xf0]  ;;  %v7653_v21 = vld [vmem:[#allocation10 + $0x194] sm:$0xf]  ;;  %v6136_v1 = vor.u32 %v7633_v51, %v6133_v54  ;;  %v6067_v12 = vld [vmem:[#allocation10 + $0x70] sm:$0xf] }
 0x2b9   : > { %v9255_v38 = vsel %vm1580_vm3, %v1576_v24, %v1585_v32  ;;  %v1577_v39 = vadd.f32 %v1571_v8, %v1568_v31  ;;  %v5973_v8 = vld [vmem:[#allocation10 + $0x1b8] sm:$0xf0]  ;;  %v5988_v24 = vor.u32 %v7662_v15, %v5987_v10  ;;  %v1598_v31 = vunpack.c.l.b16 %v874_v19  ;;  %v5885_v56 = vld [vmem:[#allocation10 + $0x108] sm:$0xf0]  ;;  %v7617_v63 = vld [vmem:[#allocation10 + $0x74] sm:$0xf] }
 0x2ba   : > { %v1591_v45 = vpack.c.bf16 %v9255_v38, %v9252_v34  ;;  %1943 = vmatpush.bf16.msra.mxu2 %v5984_v5  ;;  %v5976_v18 = vor.u32 %v7657_v7, %v5973_v8  ;;  %1929 = vmatpush.bf16.msra.mxu1 %v5920_v6  ;;  %v5968_v32 = vor.u32 %v7655_v22, %v5965_v23  ;;  %v5955_v5 = vld [vmem:[#allocation10 + $0x190] sm:$0xf]  ;;  %v7631_v7 = vld [vmem:[#allocation10 + $0xe4] sm:$0xf]  ;;  %v6125_v8 = vld [vmem:[#allocation10 + $0xe8] sm:$0xf0] }
 0x2bb   : > { %vm1581_vm5 = vcmp.gt.f32.partialorder %v1577_v39, 0.0  ;;  %v1586_v50 = vmul.f32 %v9247_v14, %v1577_v39  ;;  %v5960_v46 = vor.u32 %v7653_v21, %v5957_v35  ;;  %v5888_v3 = vor.u32 %v7635_v55, %v5885_v56  ;;  %v5883_v10 = vld [vmem:[#allocation10 + $0x100] sm:$0xf]  ;;  %v7618_v15 = vld [vmem:[#allocation10 + $0x74] sm:$0xf0] }
 0x2bc   : > { %1614 = vmatpush.bf16.msrb.mxu3 %v1591_v45  ;;  %v1600_v45 = vpack.c.b16 %v1598_v31, %v1598_v31  ;;  %v6128_v17 = vor.u32 %v7631_v7, %v6125_v8  ;;  %v5947_v19 = vld [vmem:[#allocation10 + $0x180] sm:$0xf]  ;;  %v6068_v22 = vor.u32 %v7618_v15, %v6067_v12  ;;  %v6131_v23 = vld [vmem:[#allocation10 + $0xf0] sm:$0xf]  ;;  %v7632_v16 = vld [vmem:[#allocation10 + $0xe4] sm:$0xf0] }
 0x2bd   : > { %v9266_v58 = vsel %vm1581_vm5, %v1577_v39, %v1586_v50  ;;  %v5908_v39 = vor.u32 %v7642_v30, %v5907_v29  ;;  %v5949_v50 = vld [vmem:[#allocation10 + $0x188] sm:$0xf0]  ;;  %v6123_v27 = vld [vmem:[#allocation10 + $0xe0] sm:$0xf]  ;;  %v7616_v30 = vld [vmem:[#allocation10 + $0x64] sm:$0xf0] }
 0x2be   : > { %v1592_v0 = vpack.c.bf16 %v9266_v58, %v9264_v57  ;;  %1944 = vmatpush.bf16.msra.mxu2 %v5976_v18  ;;  %1930 = vmatpush.bf16.msra.mxu1 %v5912_v20  ;;  %v7652_v20 = vld [vmem:[#allocation10 + $0x184] sm:$0xf0]  ;;  %v6124_v28 = vor.u32 %v7632_v16, %v6123_v27  ;;  %v6059_v29 = vld [vmem:[#allocation10 + $0x60] sm:$0xf]  ;;  %v7615_v31 = vld [vmem:[#allocation10 + $0x64] sm:$0xf] }
 0x2bf   : > { %5877 = vmatmul.msk.bf16.vlgmr.msrb.gmra.mxu3 %vm886_vm0, %v7554_v49  ;;  %v5948_v25 = vor.u32 %v7652_v20, %v5947_v19  ;;  %v6115_v35 = vld [vmem:[#allocation10 + $0xd0] sm:$0xf]  ;;  %v6117_v40 = vld [vmem:[#allocation10 + $0xd8] sm:$0xf0]  ;;  %v7614_v43 = vld [vmem:[#allocation10 + $0x54] sm:$0xf0] }
 0x2c0   : > { %1898 = vmatpush.bf16.msra.mxu3 %v5940_v42  ;;  %1632 = vmatpush.bf16.msra.mxu0 %v1592_v0  ;;  %v7658_v42 = vld [vmem:[#allocation10 + $0x1b4] sm:$0xf0]  ;;  %v6069_v0 = vld [vmem:[#allocation10 + $0x78] sm:$0xf0]  ;;  %v7613_v44 = vld [vmem:[#allocation10 + $0x54] sm:$0xf] }
 0x2c1   : > { %v5972_v52 = vor.u32 %v7658_v42, %v5971_v37  ;;  %v6072_v2 = vor.u32 %v7617_v63, %v6069_v0  ;;  %v7629_v37 = vld [vmem:[#allocation10 + $0xd4] sm:$0xf]  ;;  %v6051_v42 = vld [vmem:[#allocation10 + $0x50] sm:$0xf]  ;;  %v7627_v51 = vld [vmem:[#allocation10 + $0xc4] sm:$0xf] }
 0x2c2   : > { %1945 = vmatpush.bf16.msra.mxu2 %v5968_v32  ;;  %1931 = vmatpush.bf16.msra.mxu1 %v5904_v33  ;;  %v6060_v32 = vor.u32 %v7616_v30, %v6059_v29  ;;  %v6061_v33 = vld [vmem:[#allocation10 + $0x68] sm:$0xf0]  ;;  %v6120_v41 = vor.u32 %v7629_v37, %v6117_v40  ;;  %v6043_v54 = vld [vmem:[#allocation10 + $0x40] sm:$0xf]  ;;  %v7612_v55 = vld [vmem:[#allocation10 + $0x44] sm:$0xf0] }
 0x2c3   : > { %5879 = vmatmul.msk.bf16.vlgmr.msra.gmra.mxu0 %vm886_vm0, %v7554_v49  ;;  %v7651_v49 = vld [vmem:[#allocation10 + $0x184] sm:$0xf]  ;;  %v6064_v21 = vor.u32 %v7615_v31, %v6061_v33  ;;  %v7626_v63 = vld [vmem:[#allocation10 + $0xb4] sm:$0xf0]  ;;  %v7625_v0 = vld [vmem:[#allocation10 + $0xb4] sm:$0xf] }
 0x2c4   : > { %1912 = vmatpush.bf16.msrb.mxu0 %v6004_v59  ;;  %1899 = vmatpush.bf16.msra.mxu3 %v5932_v61  ;;  %v7656_v59 = vld [vmem:[#allocation10 + $0x1a4] sm:$0xf0]  ;;  %v7638_v61 = vld [vmem:[#allocation10 + $0x114] sm:$0xf0]  ;;  %v5952_v62 = vor.u32 %v7651_v49, %v5949_v50  ;;  %v7611_v56 = vld [vmem:[#allocation10 + $0x44] sm:$0xf] }
 0x2c5   : > { %v5964_v4 = vor.u32 %v7656_v59, %v5963_v47  ;;  %v5892_v6 = vor.u32 %v7638_v61, %v5891_v60  ;;  %v6107_v47 = vld [vmem:[#allocation10 + $0xc0] sm:$0xf]  ;;  %v6044_v59 = vor.u32 %v7612_v55, %v6043_v54  ;;  %v6045_v60 = vld [vmem:[#allocation10 + $0x48] sm:$0xf0]  ;;  %v7609_v7 = vld [vmem:[#allocation10 + $0x34] sm:$0xf] }
 0x2c6   : > { %1946 = vmatpush.bf16.msra.mxu2 %v5960_v46  ;;  %1932 = vmatpush.bf16.msra.mxu1 %v5896_v48  ;;  %v6053_v46 = vld [vmem:[#allocation10 + $0x58] sm:$0xf0]  ;;  %v7628_v48 = vld [vmem:[#allocation10 + $0xc4] sm:$0xf0]  ;;  %v6048_v61 = vor.u32 %v7611_v56, %v6045_v60  ;;  %v7623_v15 = vld [vmem:[#allocation10 + $0xa4] sm:$0xf] }
 0x2c7   : > { %v6056_v49 = vor.u32 %v7613_v44, %v6053_v46  ;;  %v6108_v50 = vor.u32 %v7628_v48, %v6107_v47  ;;  %v7608_v19 = vld [vmem:[#allocation10 + $0x24] sm:$0xf0]  ;;  %v7607_v20 = vld [vmem:[#allocation10 + $0x24] sm:$0xf]  ;;  %v7621_v27 = vld [vmem:[#allocation10 + $0x94] sm:$0xf] }
 0x2c8   : > { %1913 = vmatpush.bf16.msrb.mxu0 %v5996_v9  ;;  %1900 = vmatpush.bf16.msra.mxu3 %v5924_v11  ;;  %v7654_v9 = vld [vmem:[#allocation10 + $0x194] sm:$0xf0]  ;;  %v7636_v11 = vld [vmem:[#allocation10 + $0x104] sm:$0xf0]  ;;  %v6019_v30 = vld [vmem:[#allocation10 + $0x10] sm:$0xf] }
 0x2c9   : > { %v5956_v13 = vor.u32 %v7654_v9, %v5955_v5  ;;  %v5884_v18 = vor.u32 %v7636_v11, %v5883_v10  ;;  %v6035_v5 = vld [vmem:[#allocation10 + $0x30] sm:$0xf]  ;;  %v6037_v9 = vld [vmem:[#allocation10 + $0x38] sm:$0xf0]  ;;  %v6091_v10 = vld [vmem:[#allocation10 + $0xa0] sm:$0xf] }
 0x2ca   : > { %1947 = vmatpush.bf16.msra.mxu2 %v5952_v62  ;;  %1933 = vmatpush.bf16.msra.mxu1 %v5888_v3  ;;  %v6099_v62 = vld [vmem:[#allocation10 + $0xb0] sm:$0xf]  ;;  %v6101_v3 = vld [vmem:[#allocation10 + $0xb8] sm:$0xf0]  ;;  %v7624_v11 = vld [vmem:[#allocation10 + $0xa4] sm:$0xf0] }
 0x2cb   : > { %v6092_v12 = vor.u32 %v7624_v11, %v6091_v10  ;;  %v7606_v31 = vld [vmem:[#allocation10 + $0x14] sm:$0xf0]  ;;  %v7619_v40 = vld [vmem:[#allocation10 + $0x84] sm:$0xf]  ;;  %v7604_v44 = vld [vmem:[#allocation10 + $0x4] sm:$0xf0] }
 0x2cc   : > { %1914 = vmatpush.bf16.msrb.mxu0 %v5988_v24  ;;  %1901 = vmatpush.bf16.msra.mxu3 %v5916_v26  ;;  %v7634_v24 = vld [vmem:[#allocation10 + $0xf4] sm:$0xf0]  ;;  %v6020_v33 = vor.u32 %v7606_v31, %v6019_v30  ;;  %v6013_v47 = vld [vmem:[#allocation10 + $0x8] sm:$0xf0]  ;;  %v6259_v60 = vld [vmem:[#allocation10 + $0x2f0] sm:$0xf] }
 0x2cd   : > { %v6132_v26 = vor.u32 %v7634_v24, %v6131_v23  ;;  %v6029_v23 = vld [vmem:[#allocation10 + $0x28] sm:$0xf0]  ;;  %v7680_v30 = vld [vmem:[#allocation10 + $0x264] sm:$0xf0]  ;;  %v7679_v31 = vld [vmem:[#allocation10 + $0x264] sm:$0xf] }
 0x2ce   : > { %2156 = vmatpush.bf16.msrb.mxu2 %v6136_v1  ;;  %2142 = vmatpush.bf16.msrb.mxu1 %v6072_v2  ;;  %v6100_v1 = vor.u32 %v7626_v63, %v6099_v62  ;;  %v6040_v2 = vor.u32 %v7609_v7, %v6037_v9  ;;  %v6032_v24 = vor.u32 %v7607_v20, %v6029_v23  ;;  %v7682_v9 = vld [vmem:[#allocation10 + $0x274] sm:$0xf0]  ;;  %v7695_v23 = vld [vmem:[#allocation10 + $0x2e4] sm:$0xf] }
 0x2cf   : > { %5878 = vmatmul.msk.bf16.gmra.mxu3 %vm886_vm0, %v1600_v45  ;;  %v8255_v14 = vld [vmem:[#allocation22 + $0x8] sm:$0xff] }
 0x2d0   : > { %1915 = vmatpush.bf16.msrb.mxu0 %v5980_v36  ;;  %1902 = vmatpush.bf16.msra.mxu3 %v5908_v39  ;;  %v7630_v36 = vld [vmem:[#allocation10 + $0xd4] sm:$0xf0] }
 0x2d1   : > { %v6116_v39 = vor.u32 %v7630_v36, %v6115_v35  ;;  %v6075_v35 = vld [vmem:[#allocation10 + $0x80] sm:$0xf]  ;;  %v7620_v36 = vld [vmem:[#allocation10 + $0x84] sm:$0xf0] }
 0x2d2   : > { %2157 = vmatpush.bf16.msrb.mxu2 %v6128_v17  ;;  %2143 = vmatpush.bf16.msrb.mxu1 %v6064_v21  ;;  %v6093_v17 = vld [vmem:[#allocation10 + $0xa8] sm:$0xf0]  ;;  %v6021_v21 = vld [vmem:[#allocation10 + $0x18] sm:$0xf0] }
 0x2d3   : > { %5880 = vmatmul.msk.bf16.gmra.mxu0 %vm886_vm0, %v1600_v45  ;;  %v6052_v45 = vor.u32 %v7614_v43, %v6051_v42  ;;  %v6011_v43 = vld [vmem:[#allocation10] sm:$0xf] }
 0x2d4   : > { %1916 = vmatpush.bf16.msrb.mxu0 %v5972_v52  ;;  %1903 = vmatpush.bf16.msra.mxu3 %v5900_v53  ;;  %v6109_v52 = vld [vmem:[#allocation10 + $0xc8] sm:$0xf0]  ;;  %v6012_v46 = vor.u32 %v7604_v44, %v6011_v43  ;;  %v6179_v44 = vld [vmem:[#allocation10 + $0x250] sm:$0xf] }
 0x2d5   : > { %v6112_v53 = vor.u32 %v7627_v51, %v6109_v52 }
 0x2d6   : > { %2158 = vmatpush.bf16.msrb.mxu2 %v6120_v41  ;;  %2144 = vmatpush.bf16.msrb.mxu1 %v6056_v49  ;;  %v6077_v41 = vld [vmem:[#allocation10 + $0x88] sm:$0xf0] }
 0x2d7   : > { %v6080_v42 = vor.u32 %v7619_v40, %v6077_v41  ;;  %v7693_v40 = vld [vmem:[#allocation10 + $0x2d4] sm:$0xf]  ;;  %v6245_v41 = vld [vmem:[#allocation10 + $0x2d8] sm:$0xf0] }
 0x2d8   : > { %1917 = vmatpush.bf16.msrb.mxu0 %v5964_v4  ;;  %1904 = vmatpush.bf16.msra.mxu3 %v5892_v6  ;;  %v6104_v4 = vor.u32 %v7625_v0, %v6101_v3  ;;  %v7610_v6 = vld [vmem:[#allocation10 + $0x34] sm:$0xf0]  ;;  %v7697_v0 = vld [vmem:[#allocation10 + $0x2f4] sm:$0xf] }
 0x2d9   : > { %v6036_v8 = vor.u32 %v7610_v6, %v6035_v5 }
 0x2da   : > { %2159 = vmatpush.bf16.msrb.mxu2 %v6112_v53  ;;  %2145 = vmatpush.bf16.msrb.mxu1 %v6048_v61  ;;  %v7698_v61 = vld [vmem:[#allocation10 + $0x2f4] sm:$0xf0] }
 0x2db   : > { %v6260_v10 = vor.u32 %v7698_v61, %v6259_v60  ;;  %v6171_v60 = vld [vmem:[#allocation10 + $0x240] sm:$0xf] }
 0x2dc   : > { %1918 = vmatpush.bf16.msrb.mxu0 %v5956_v13  ;;  %1905 = vmatpush.bf16.msra.mxu3 %v5884_v18  ;;  %v6096_v13 = vor.u32 %v7623_v15, %v6093_v17  ;;  %v6027_v18 = vld [vmem:[#allocation10 + $0x20] sm:$0xf] }
 0x2de   : > { %2160 = vmatpush.bf16.msrb.mxu2 %v6104_v4  ;;  %2146 = vmatpush.bf16.msrb.mxu1 %v6040_v2  ;;  %v6195_v4 = vld [vmem:[#allocation10 + $0x270] sm:$0xf]  ;;  %v7681_v2 = vld [vmem:[#allocation10 + $0x274] sm:$0xf] }
 0x2df   : > { %v6196_v20 = vor.u32 %v7682_v9, %v6195_v4  ;;  %v6227_v9 = vld [vmem:[#allocation10 + $0x2b0] sm:$0xf] }
 0x2e0   : > { %2114 = vmatpush.bf16.msrb.mxu3 %v6068_v22  ;;  %1919 = vmatpush.bf16.msrb.mxu0 %v5948_v25  ;;  %v6028_v22 = vor.u32 %v7608_v19, %v6027_v18  ;;  %v6083_v25 = vld [vmem:[#allocation10 + $0x90] sm:$0xf]  ;;  %v6251_v19 = vld [vmem:[#allocation10 + $0x2e0] sm:$0xf] }
 0x2e2   : > { %2161 = vmatpush.bf16.msrb.mxu2 %v6096_v13  ;;  %2147 = vmatpush.bf16.msrb.mxu1 %v6032_v24  ;;  %v6253_v24 = vld [vmem:[#allocation10 + $0x2e8] sm:$0xf0] }
 0x2e4   : > { %2128 = vmatpush.bf16.msra.mxu0 %v6132_v26  ;;  %2115 = vmatpush.bf16.msrb.mxu3 %v6060_v32  ;;  %v7622_v26 = vld [vmem:[#allocation10 + $0x94] sm:$0xf0]  ;;  %v7605_v32 = vld [vmem:[#allocation10 + $0x14] sm:$0xf] }
 0x2e5   : > { %v6084_v16 = vor.u32 %v7622_v26, %v6083_v25  ;;  %v6024_v37 = vor.u32 %v7605_v32, %v6021_v21  ;;  %v6189_v32 = vld [vmem:[#allocation10 + $0x268] sm:$0xf0] }
 0x2e6   : > { %v6192_v43 = vor.u32 %v7679_v31, %v6189_v32  ;;  %v6219_v31 = vld [vmem:[#allocation10 + $0x2a0] sm:$0xf]  ;;  %v7688_v32 = vld [vmem:[#allocation10 + $0x2a4] sm:$0xf0] }
 0x2e7   : > { %2148 = vmatpush.bf16.msrb.mxu1 %v6024_v37 }
 0x2e8   : > { %2129 = vmatpush.bf16.msra.mxu0 %v6124_v28  ;;  %2116 = vmatpush.bf16.msrb.mxu3 %v6052_v45  ;;  %v6085_v28 = vld [vmem:[#allocation10 + $0x98] sm:$0xf0]  ;;  %v7603_v45 = vld [vmem:[#allocation10 + $0x4] sm:$0xf] }
 0x2e9   : > { %v6088_v29 = vor.u32 %v7621_v27, %v6085_v28  ;;  %v6016_v48 = vor.u32 %v7603_v45, %v6013_v47  ;;  %v6187_v28 = vld [vmem:[#allocation10 + $0x260] sm:$0xf]  ;;  %v7678_v45 = vld [vmem:[#allocation10 + $0x254] sm:$0xf0]  ;;  %v6181_v47 = vld [vmem:[#allocation10 + $0x258] sm:$0xf0] }
 0x2ea   : > { %v6180_v61 = vor.u32 %v7678_v45, %v6179_v44  ;;  %v7671_v44 = vld [vmem:[#allocation10 + $0x224] sm:$0xf]  ;;  %v6157_v45 = vld [vmem:[#allocation10 + $0x228] sm:$0xf0] }
 0x2eb   : > { %2162 = vmatpush.bf16.msrb.mxu2 %v6088_v29  ;;  %2149 = vmatpush.bf16.msrb.mxu1 %v6016_v48 }
 0x2ec   : > { %2130 = vmatpush.bf16.msra.mxu0 %v6116_v39  ;;  %2117 = vmatpush.bf16.msrb.mxu3 %v6044_v59  ;;  %v6076_v39 = vor.u32 %v7620_v36, %v6075_v35  ;;  %v6256_v35 = vor.u32 %v7695_v23, %v6253_v24  ;;  %v6243_v36 = vld [vmem:[#allocation10 + $0x2d0] sm:$0xf]  ;;  %v7674_v23 = vld [vmem:[#allocation10 + $0x234] sm:$0xf0] }
 0x2ef   : > { %2163 = vmatpush.bf16.msrb.mxu2 %v6080_v42  ;;  %v6188_v42 = vor.u32 %v7680_v30, %v6187_v28  ;;  %v6165_v30 = vld [vmem:[#allocation10 + $0x238] sm:$0xf0] }
 0x2f0   : > { %2131 = vmatpush.bf16.msra.mxu0 %v6108_v50  ;;  %2118 = vmatpush.bf16.msrb.mxu3 %v6036_v8 }
 0x2f4   : > { %2132 = vmatpush.bf16.msra.mxu0 %v6100_v1  ;;  %2119 = vmatpush.bf16.msrb.mxu3 %v6028_v22  ;;  %v6261_v1 = vld [vmem:[#allocation10 + $0x2f8] sm:$0xf0]  ;;  %v7696_v22 = vld [vmem:[#allocation10 + $0x2e4] sm:$0xf0] }
 0x2f5   : > { %v6264_v11 = vor.u32 %v7697_v0, %v6261_v1  ;;  %v6252_v21 = vor.u32 %v7696_v22, %v6251_v19  ;;  %v7676_v0 = vld [vmem:[#allocation10 + $0x244] sm:$0xf0]  ;;  %v7675_v1 = vld [vmem:[#allocation10 + $0x244] sm:$0xf]  ;;  %v6163_v22 = vld [vmem:[#allocation10 + $0x230] sm:$0xf] }
 0x2f8   : > { %2133 = vmatpush.bf16.msra.mxu0 %v6092_v12  ;;  %2120 = vmatpush.bf16.msrb.mxu3 %v6020_v33  ;;  %v6197_v12 = vld [vmem:[#allocation10 + $0x278] sm:$0xf0] }
 0x2fc   : > { %2134 = vmatpush.bf16.msra.mxu0 %v6084_v16  ;;  %2121 = vmatpush.bf16.msrb.mxu3 %v6012_v46  ;;  %v6200_v16 = vor.u32 %v7681_v2, %v6197_v12  ;;  %v7677_v46 = vld [vmem:[#allocation10 + $0x254] sm:$0xf] }
 0x2fd   : > { %v7689_v12 = vld [vmem:[#allocation10 + $0x2b4] sm:$0xf] }
 0x300   : > { %2135 = vmatpush.bf16.msra.mxu0 %v6076_v39  ;;  %v7694_v39 = vld [vmem:[#allocation10 + $0x2d4] sm:$0xf0] }
 0x301   : > { %v6244_v48 = vor.u32 %v7694_v39, %v6243_v36  ;;  %v6164_v39 = vor.u32 %v7674_v23, %v6163_v22  ;;  %v7683_v22 = vld [vmem:[#allocation10 + $0x284] sm:$0xf]  ;;  %v6205_v23 = vld [vmem:[#allocation10 + $0x288] sm:$0xf0] }
 0x340   : > { %v1634_v49 = vpop.f32.mrf.mxu0 }
 0x342   : > { %v1616_v50 = vpop.f32.mrf.mxu3 }
 0x348   : > { %v1636_v51 = vpop.f32.mrf.mxu0 }
 0x349   : > { %v9277_v52 = vpack.c.bf16 %v1636_v51, %v1634_v49  ;;  %v6248_v49 = vor.u32 %v7693_v40, %v6245_v41  ;;  %v7692_v51 = vld [vmem:[#allocation10 + $0x2c4] sm:$0xf0]  ;;  %v6221_v40 = vld [vmem:[#allocation10 + $0x2a8] sm:$0xf0]  ;;  %v6155_v41 = vld [vmem:[#allocation10 + $0x220] sm:$0xf] }
 0x34a   : > { %v1618_v53 = vpop.f32.mrf.mxu3 }
 0x34b   : > { %v9279_v54 = vpack.c.bf16 %v1618_v53, %v1616_v50  ;;  %v9282_v55 = vshll.u32 %v9277_v52, 16  ;;  %v9293_v6 = vshrl.u32 %v9277_v52, 16  ;;  %v6235_v50 = vld [vmem:[#allocation10 + $0x2c0] sm:$0xf]  ;;  %v7691_v53 = vld [vmem:[#allocation10 + $0x2c4] sm:$0xf] }
 0x34d   : > { %v9285_v56 = vshll.u32 %v9279_v54, 16  ;;  %v1729_v63 = vrot.slane %v9282_v55, 1  ;;  %v9302_v13 = vshrl.u32 %v9279_v54, 16  ;;  %v3013_v36 = vrot.slane %v9282_v55, 3 }
 0x34f   : > { %v1717_v8 = vrot.slane %v9285_v56, 1  ;;  %v1730_v15 = vor.u32 %v1729_v63, %v9293_v6  ;;  %v6184_v63 = vor.u32 %v7677_v46, %v6181_v47 }
 0x350   : > { %v1639_v59 = vpop.f32.mrf.mxu0 }
 0x351   : > { %v9287_v62 = vpack.c.bf16 %v1639_v59, %v1639_v59  ;;  %v1718_v26 = vor.u32 %v1717_v8, %v9302_v13  ;;  %v6237_v59 = vld [vmem:[#allocation10 + $0x2c8] sm:$0xf0] }
 0x352   : > { %v1621_v3 = vpop.f32.mrf.mxu3  ;;  %v6173_v8 = vld [vmem:[#allocation10 + $0x248] sm:$0xf0]  ;;  %v6240_v2 = vor.u32 %v7691_v53, %v6237_v59  ;;  %v7685_v59 = vld [vmem:[#allocation10 + $0x294] sm:$0xf] }
 0x353   : > { %v9290_v5 = vpack.c.bf16 %v1621_v3, %v1621_v3  ;;  %v9296_v7 = vshll.u32 %v9287_v62, 16  ;;  %v2746_v3 = vrot.slane %v9277_v52, 2  ;;  %v2747_v4 = vrot.slane %v9287_v62, 2 }
 0x354   : > { %v6176_v24 = vor.u32 %v7675_v1, %v6173_v8  ;;  %v7669_v8 = vld [vmem:[#allocation10 + $0x214] sm:$0xf] }
 0x355   : > { %v1734_v17 = vrot.slane %v9296_v7, 1  ;;  %v9305_v18 = vshll.u32 %v9290_v5, 16  ;;  %v9315_v19 = vsel %vm2742_vm6, %v2746_v3, %v2747_v4  ;;  %v3016_v47 = vrot.slane %v9296_v7, 3  ;;  %v6147_v3 = vld [vmem:[#allocation10 + $0x210] sm:$0xf] }
 0x356   : > { %v7670_v4 = vld [vmem:[#allocation10 + $0x214] sm:$0xf0] }
 0x357   : > { %v1735_v25 = vsel %vm946_vm1, %v1730_v15, %v1734_v17  ;;  %v1722_v27 = vrot.slane %v9305_v18, 1  ;;  %v6229_v15 = vld [vmem:[#allocation10 + $0x2b8] sm:$0xf0]  ;;  %v2481_v17 = vshrl.u32 %v9287_v62, 16 }
 0x358   : > { %v1641_v29 = vpop.f32.mrf.mxu0  ;;  %1920 = vmatmul.bf16.vlgmr.msrb.gmra.mxu0 %v1735_v25  ;;  %1948 = vmatmul.bf16.vlgmr.msra.gmra.mxu2 %v1735_v25  ;;  %v7673_v25 = vld [vmem:[#allocation10 + $0x234] sm:$0xf] }
 0x359   : > { %2389 = vmatpush.bf16.msrb.mxu0 %v6260_v10  ;;  %2417 = vmatpush.bf16.msra.mxu2 %v6264_v11  ;;  %v1723_v33 = vsel %vm946_vm1, %v1718_v26, %v1722_v27  ;;  %v7690_v10 = vld [vmem:[#allocation10 + $0x2b4] sm:$0xf0]  ;;  %v6236_v11 = vor.u32 %v7692_v51, %v6235_v50  ;;  %v2743_v26 = vrot.slane %v9279_v54, 2  ;;  %v2744_v27 = vrot.slane %v9290_v5, 2  ;;  %v6211_v50 = vld [vmem:[#allocation10 + $0x290] sm:$0xf] }
 0x35a   : > { %v1623_v37 = vpop.f32.mrf.mxu3  ;;  %1906 = vmatmul.bf16.vlgmr.msra.gmra.mxu3 %v1723_v33  ;;  %1934 = vmatmul.bf16.vlgmr.msra.gmra.mxu1 %v1723_v33  ;;  %v6228_v28 = vor.u32 %v7690_v10, %v6227_v9  ;;  %v6232_v29 = vor.u32 %v7689_v12, %v6229_v15  ;;  %v7687_v33 = vld [vmem:[#allocation10 + $0x2a4] sm:$0xf]  ;;  %v7686_v51 = vld [vmem:[#allocation10 + $0x294] sm:$0xf0]  ;;  %v6160_v9 = vor.u32 %v7671_v44, %v6157_v45  ;;  %v6149_v10 = vld [vmem:[#allocation10 + $0x218] sm:$0xf0] }
 0x35b   : > { %2375 = vmatpush.bf16.msra.mxu3 %v6196_v20  ;;  %2403 = vmatpush.bf16.msra.mxu1 %v6200_v16  ;;  %v6172_v20 = vor.u32 %v7676_v0, %v6171_v60  ;;  %v3012_v16 = vrot.slane %v9293_v6, 2  ;;  %v3015_v37 = vrot.slane %v2481_v17, 2  ;;  %v6224_v53 = vor.u32 %v7687_v33, %v6221_v40  ;;  %v6213_v60 = vld [vmem:[#allocation10 + $0x298] sm:$0xf0]  ;;  %v7668_v33 = vld [vmem:[#allocation10 + $0x204] sm:$0xf0] }
 0x35c   : > { %v3009_v15 = vrot.slane %v9305_v18, 3  ;;  %v3279_v40 = vrot.slane %v9287_v62, 3  ;;  %v7714_v44 = vld [vmem:[#allocation10 + $0x374] sm:$0xf0]  ;;  %v6208_v45 = vor.u32 %v7683_v22, %v6205_v23 }
 0x35d   : > { %2390 = vmatpush.bf16.msrb.mxu0 %v6252_v21  ;;  %2418 = vmatpush.bf16.msra.mxu2 %v6256_v35  ;;  %v2472_v21 = vshrl.u32 %v9290_v5, 16  ;;  %v9322_v35 = vsel %vm2742_vm6, %v2743_v26, %v2744_v27  ;;  %v3014_v46 = vor.u32 %v3013_v36, %v3012_v16  ;;  %v6387_v26 = vld [vmem:[#allocation10 + $0x3f0] sm:$0xf]  ;;  %v7730_v27 = vld [vmem:[#allocation10 + $0x3f4] sm:$0xf0] }
 0x35e   : > { %v7729_v16 = vld [vmem:[#allocation10 + $0x3f4] sm:$0xf]  ;;  %v7667_v36 = vld [vmem:[#allocation10 + $0x204] sm:$0xf] }
 0x35f   : > { %2376 = vmatpush.bf16.msra.mxu3 %v6188_v42  ;;  %2404 = vmatpush.bf16.msra.mxu1 %v6192_v43  ;;  %v7672_v42 = vld [vmem:[#allocation10 + $0x224] sm:$0xf0]  ;;  %v6168_v43 = vor.u32 %v7673_v25, %v6165_v30  ;;  %v3008_v0 = vrot.slane %v2472_v21, 2  ;;  %v6216_v25 = vor.u32 %v7685_v59, %v6213_v60  ;;  %v6389_v30 = vld [vmem:[#allocation10 + $0x3f8] sm:$0xf0] }
 0x360   : > { %v6156_v1 = vor.u32 %v7672_v42, %v6155_v41  ;;  %v6141_v42 = vld [vmem:[#allocation10 + $0x208] sm:$0xf0]  ;;  %v6379_v59 = vld [vmem:[#allocation10 + $0x3e0] sm:$0xf] }
 0x361   : > { %2391 = vmatpush.bf16.msrb.mxu0 %v6244_v48  ;;  %2419 = vmatpush.bf16.msra.mxu2 %v6248_v49  ;;  %v3005_v48 = vrot.slane %v9302_v13, 2  ;;  %v6220_v49 = vor.u32 %v7688_v32, %v6219_v31  ;;  %v6139_v31 = vld [vmem:[#allocation10 + $0x200] sm:$0xf]  ;;  %v6152_v32 = vor.u32 %v7669_v8, %v6149_v10 }
 0x362   : > { %v6140_v60 = vor.u32 %v7668_v33, %v6139_v31  ;;  %v6315_v10 = vld [vmem:[#allocation10 + $0x360] sm:$0xf]  ;;  %v7709_v33 = vld [vmem:[#allocation10 + $0x354] sm:$0xf] }
 0x363   : > { %2377 = vmatpush.bf16.msra.mxu3 %v6180_v61  ;;  %2405 = vmatpush.bf16.msra.mxu1 %v6184_v63  ;;  %v3017_v61 = vor.u32 %v3016_v47, %v3015_v37  ;;  %v3006_v63 = vrot.slane %v9285_v56, 3  ;;  %v6325_v47 = vld [vmem:[#allocation10 + $0x378] sm:$0xf0] }
 0x365   : > { %2392 = vmatpush.bf16.msrb.mxu0 %v6236_v11  ;;  %2420 = vmatpush.bf16.msra.mxu2 %v6240_v2  ;;  %v6203_v11 = vld [vmem:[#allocation10 + $0x280] sm:$0xf]  ;;  %v9337_v2 = vsel %vm3004_vm7, %v3014_v46, %v3017_v61  ;;  %v3007_v12 = vor.u32 %v3006_v63, %v3005_v48  ;;  %v7713_v46 = vld [vmem:[#allocation10 + $0x374] sm:$0xf]  ;;  %v6144_v61 = vor.u32 %v7667_v36, %v6141_v42  ;;  %v7728_v63 = vld [vmem:[#allocation10 + $0x3e4] sm:$0xf0] }
 0x366   : > { %v6328_v8 = vor.u32 %v7713_v46, %v6325_v47  ;;  %v6380_v22 = vor.u32 %v7728_v63, %v6379_v59  ;;  %v6309_v36 = vld [vmem:[#allocation10 + $0x358] sm:$0xf0]  ;;  %v6363_v42 = vld [vmem:[#allocation10 + $0x3c0] sm:$0xf]  ;;  %v7721_v63 = vld [vmem:[#allocation10 + $0x3b4] sm:$0xf] }
 0x367   : > { %2378 = vmatpush.bf16.msra.mxu3 %v6172_v20  ;;  %2406 = vmatpush.bf16.msra.mxu1 %v6176_v24  ;;  %v7684_v20 = vld [vmem:[#allocation10 + $0x284] sm:$0xf0]  ;;  %v6212_v24 = vor.u32 %v7686_v51, %v6211_v50  ;;  %v3276_v50 = vrot.slane %v9290_v5, 3  ;;  %v6388_v51 = vor.u32 %v7730_v27, %v6387_v26  ;;  %v7726_v26 = vld [vmem:[#allocation10 + $0x3d4] sm:$0xf0]  ;;  %v6312_v46 = vor.u32 %v7709_v33, %v6309_v36 }
 0x368   : > { %2136 = vmatmul.bf16.vlgmr.msra.gmra.mxu0 %v9277_v52  ;;  %2164 = vmatmul.bf16.vlgmr.msrb.gmra.mxu2 %v9277_v52  ;;  %v6204_v41 = vor.u32 %v7684_v20, %v6203_v11  ;;  %v7712_v11 = vld [vmem:[#allocation10 + $0x364] sm:$0xf0]  ;;  %v2210_v20 = vrot.slane %v9277_v52, 1  ;;  %v7725_v27 = vld [vmem:[#allocation10 + $0x3d4] sm:$0xf]  ;;  %v2483_v36 = vrot.slane %v2481_v17, 1 }
 0x369   : > { %2393 = vmatpush.bf16.msrb.mxu0 %v6228_v28  ;;  %2421 = vmatpush.bf16.msra.mxu2 %v6232_v29  ;;  %v3010_v28 = vor.u32 %v3009_v15, %v3008_v0  ;;  %v6148_v29 = vor.u32 %v7670_v4, %v6147_v3  ;;  %v7727_v0 = vld [vmem:[#allocation10 + $0x3e4] sm:$0xf]  ;;  %v6317_v15 = vld [vmem:[#allocation10 + $0x368] sm:$0xf0]  ;;  %v6299_v47 = vld [vmem:[#allocation10 + $0x340] sm:$0xf] }
 0x36a   : > { %2122 = vmatmul.bf16.vlgmr.msrb.gmra.mxu3 %v9279_v54  ;;  %2150 = vmatmul.bf16.vlgmr.msrb.gmra.mxu1 %v9279_v54  ;;  %v6339_v33 = vld [vmem:[#allocation10 + $0x390] sm:$0xf] }
 0x36b   : > { %2379 = vmatpush.bf16.msra.mxu3 %v6164_v39  ;;  %2407 = vmatpush.bf16.msra.mxu1 %v6168_v43  ;;  %v9341_v37 = vsel %vm3004_vm7, %v3007_v12, %v3010_v28  ;;  %v3278_v39 = vrot.slane %v9277_v52, 3  ;;  %v6323_v43 = vld [vmem:[#allocation10 + $0x370] sm:$0xf]  ;;  %v7711_v12 = vld [vmem:[#allocation10 + $0x364] sm:$0xf] }
 0x36c   : > { %v6324_v4 = vor.u32 %v7714_v44, %v6323_v43  ;;  %v6320_v31 = vor.u32 %v7711_v12, %v6317_v15  ;;  %v7710_v52 = vld [vmem:[#allocation10 + $0x354] sm:$0xf0]  ;;  %v7724_v43 = vld [vmem:[#allocation10 + $0x3c4] sm:$0xf0]  ;;  %v7723_v44 = vld [vmem:[#allocation10 + $0x3c4] sm:$0xf] }
 0x36d   : > { %2394 = vmatpush.bf16.msrb.mxu0 %v6220_v49  ;;  %2422 = vmatpush.bf16.msra.mxu2 %v6224_v53  ;;  %v9346_v48 = vsel %vm3274_vm8, %v3278_v39, %v3279_v40  ;;  %v3275_v49 = vrot.slane %v9279_v54, 3  ;;  %v6392_v53 = vor.u32 %v7729_v16, %v6389_v30  ;;  %v6373_v16 = vld [vmem:[#allocation10 + $0x3d8] sm:$0xf0]  ;;  %v6316_v30 = vor.u32 %v7712_v11, %v6315_v10  ;;  %v7705_v10 = vld [vmem:[#allocation10 + $0x334] sm:$0xf] }
 0x36e   : > { %v6293_v11 = vld [vmem:[#allocation10 + $0x338] sm:$0xf0] }
 0x36f   : > { %2380 = vmatpush.bf16.msra.mxu3 %v6156_v1  ;;  %2408 = vmatpush.bf16.msra.mxu1 %v6160_v9  ;;  %v6381_v1 = vld [vmem:[#allocation10 + $0x3e8] sm:$0xf0]  ;;  %v9351_v3 = vsel %vm3274_vm8, %v3275_v49, %v3276_v50  ;;  %v2211_v9 = vrot.slane %v9287_v62, 1  ;;  %v7708_v49 = vld [vmem:[#allocation10 + $0x344] sm:$0xf0] }
 0x370   : > { %v6384_v23 = vor.u32 %v7727_v0, %v6381_v1  ;;  %v7707_v50 = vld [vmem:[#allocation10 + $0x344] sm:$0xf]  ;;  %v6357_v0 = vld [vmem:[#allocation10 + $0x3b8] sm:$0xf0]  ;;  %v6300_v1 = vor.u32 %v7708_v49, %v6299_v47  ;;  %v7702_v47 = vld [vmem:[#allocation10 + $0x314] sm:$0xf0] }
 0x371   : > { %2395 = vmatpush.bf16.msrb.mxu0 %v6212_v24  ;;  %2423 = vmatpush.bf16.msra.mxu2 %v6216_v25  ;;  %v2208_v24 = vrot.slane %v9290_v5, 1  ;;  %v6371_v25 = vld [vmem:[#allocation10 + $0x3d0] sm:$0xf]  ;;  %v2212_v28 = vsel %vm1195_vm2, %v2210_v20, %v2211_v9  ;;  %v7706_v9 = vld [vmem:[#allocation10 + $0x334] sm:$0xf0]  ;;  %v6360_v15 = vor.u32 %v7721_v63, %v6357_v0 }
 0x372   : > { %v6372_v40 = vor.u32 %v7726_v26, %v6371_v25  ;;  %v6347_v20 = vld [vmem:[#allocation10 + $0x3a0] sm:$0xf]  ;;  %v6296_v26 = vor.u32 %v7705_v10, %v6293_v11  ;;  %v7701_v49 = vld [vmem:[#allocation10 + $0x314] sm:$0xf] }
 0x373   : > { %2381 = vmatpush.bf16.msra.mxu3 %v6148_v29  ;;  %2409 = vmatpush.bf16.msra.mxu1 %v6152_v32  ;;  %v2207_v29 = vrot.slane %v9279_v54, 1  ;;  %v6307_v32 = vld [vmem:[#allocation10 + $0x350] sm:$0xf]  ;;  %v6365_v54 = vld [vmem:[#allocation10 + $0x3c8] sm:$0xf0] }
 0x374   : > { %v6368_v59 = vor.u32 %v7723_v44, %v6365_v54  ;;  %v6275_v54 = vld [vmem:[#allocation10 + $0x310] sm:$0xf] }
 0x375   : > { %2396 = vmatpush.bf16.msrb.mxu0 %v6204_v41  ;;  %2424 = vmatpush.bf16.msra.mxu2 %v6208_v45  ;;  %v2209_v39 = vsel %vm1195_vm2, %v2207_v29, %v2208_v24  ;;  %v6376_v41 = vor.u32 %v7725_v27, %v6373_v16  ;;  %v6308_v45 = vor.u32 %v7710_v52, %v6307_v32  ;;  %v6349_v24 = vld [vmem:[#allocation10 + $0x3a8] sm:$0xf0]  ;;  %v6283_v27 = vld [vmem:[#allocation10 + $0x320] sm:$0xf]  ;;  %v2478_v16 = vrot.slane %v9293_v6, 1 }
 0x376   : > { %v7704_v29 = vld [vmem:[#allocation10 + $0x324] sm:$0xf0]  ;;  %v6276_v63 = vor.u32 %v7702_v47, %v6275_v54  ;;  %v7757_v54 = vld [vmem:[#allocation10 + $0x4d4] sm:$0xf]  ;;  %v6501_v47 = vld [vmem:[#allocation10 + $0x4d8] sm:$0xf0] }
 0x377   : > { %2382 = vmatpush.bf16.msra.mxu3 %v6140_v60  ;;  %2410 = vmatpush.bf16.msra.mxu1 %v6144_v61  ;;  %v6355_v60 = vld [vmem:[#allocation10 + $0x3b0] sm:$0xf]  ;;  %v7722_v61 = vld [vmem:[#allocation10 + $0x3b4] sm:$0xf0] }
 0x378   : > { %2397 = vmatmul.bf16.vlgmr.msrb.gmra.mxu0 %v2212_v28  ;;  %2425 = vmatmul.bf16.vlgmr.msra.gmra.mxu2 %v2212_v28  ;;  %v6356_v12 = vor.u32 %v7722_v61, %v6355_v60  ;;  %v2479_v28 = vrot.slane %v9282_v55, 2  ;;  %v6515_v60 = vld [vmem:[#allocation10 + $0x4f0] sm:$0xf]  ;;  %v7762_v61 = vld [vmem:[#allocation10 + $0x4f4] sm:$0xf0] }
 0x379   : > { %2663 = vmatpush.bf16.msra.mxu0 %v6388_v51  ;;  %2691 = vmatpush.bf16.msrb.mxu2 %v6392_v53  ;;  %v6301_v51 = vld [vmem:[#allocation10 + $0x348] sm:$0xf0]  ;;  %v6364_v53 = vor.u32 %v7724_v43, %v6363_v42  ;;  %v6341_v42 = vld [vmem:[#allocation10 + $0x398] sm:$0xf0]  ;;  %v6284_v43 = vor.u32 %v7704_v29, %v6283_v27 }
 0x37a   : > { %2383 = vmatmul.bf16.vlgmr.msra.gmra.mxu3 %v2209_v39  ;;  %2411 = vmatmul.bf16.vlgmr.msra.gmra.mxu1 %v2209_v39  ;;  %v2484_v39 = vrot.slane %v9296_v7, 2  ;;  %v6331_v7 = vld [vmem:[#allocation10 + $0x380] sm:$0xf]  ;;  %v2480_v5 = vor.u32 %v2479_v28, %v2478_v16  ;;  %v6499_v28 = vld [vmem:[#allocation10 + $0x4d0] sm:$0xf] }
 0x37b   : > { %2649 = vmatpush.bf16.msrb.mxu3 %v6324_v4  ;;  %2677 = vmatpush.bf16.msrb.mxu1 %v6328_v8  ;;  %v6304_v4 = vor.u32 %v7707_v50, %v6301_v51  ;;  %v6291_v8 = vld [vmem:[#allocation10 + $0x330] sm:$0xf]  ;;  %v6277_v50 = vld [vmem:[#allocation10 + $0x318] sm:$0xf0]  ;;  %v7716_v51 = vld [vmem:[#allocation10 + $0x384] sm:$0xf0] }
 0x37c   : > { %v6292_v25 = vor.u32 %v7706_v9, %v6291_v8  ;;  %v6280_v0 = vor.u32 %v7701_v49, %v6277_v50  ;;  %v7699_v8 = vld [vmem:[#allocation10 + $0x304] sm:$0xf]  ;;  %v6269_v9 = vld [vmem:[#allocation10 + $0x308] sm:$0xf0]  ;;  %v6332_v10 = vor.u32 %v7716_v51, %v6331_v7  ;;  %v6435_v50 = vld [vmem:[#allocation10 + $0x450] sm:$0xf] }
 0x37d   : > { %2664 = vmatpush.bf16.msra.mxu0 %v6380_v22  ;;  %2692 = vmatpush.bf16.msrb.mxu2 %v6384_v23  ;;  %v7720_v22 = vld [vmem:[#allocation10 + $0x3a4] sm:$0xf0]  ;;  %v7719_v23 = vld [vmem:[#allocation10 + $0x3a4] sm:$0xf]  ;;  %v6272_v29 = vor.u32 %v7699_v8, %v6269_v9  ;;  %v6437_v7 = vld [vmem:[#allocation10 + $0x458] sm:$0xf0] }
 0x37e   : > { %v6348_v32 = vor.u32 %v7720_v22, %v6347_v20  ;;  %v6352_v52 = vor.u32 %v7719_v23, %v6349_v24  ;;  %v2475_v20 = vrot.slane %v9305_v18, 2  ;;  %v6516_v22 = vor.u32 %v7762_v61, %v6515_v60  ;;  %v7746_v24 = vld [vmem:[#allocation10 + $0x474] sm:$0xf0]  ;;  %v6509_v18 = vld [vmem:[#allocation10 + $0x4e8] sm:$0xf0] }
 0x37f   : > { %2650 = vmatpush.bf16.msrb.mxu3 %v6316_v30  ;;  %2678 = vmatpush.bf16.msrb.mxu1 %v6320_v31  ;;  %v7703_v30 = vld [vmem:[#allocation10 + $0x324] sm:$0xf]  ;;  %v6285_v31 = vld [vmem:[#allocation10 + $0x328] sm:$0xf0]  ;;  %v7756_v60 = vld [vmem:[#allocation10 + $0x4c4] sm:$0xf0] }
 0x380   : > { %v6288_v44 = vor.u32 %v7703_v30, %v6285_v31  ;;  %v2485_v30 = vor.u32 %v2484_v39, %v2483_v36  ;;  %v6507_v31 = vld [vmem:[#allocation10 + $0x4e0] sm:$0xf]  ;;  %v7743_v36 = vld [vmem:[#allocation10 + $0x464] sm:$0xf]  ;;  %v6445_v39 = vld [vmem:[#allocation10 + $0x468] sm:$0xf0] }
 0x381   : > { %2665 = vmatpush.bf16.msra.mxu0 %v6372_v40  ;;  %2693 = vmatpush.bf16.msrb.mxu2 %v6376_v41  ;;  %v7718_v40 = vld [vmem:[#allocation10 + $0x394] sm:$0xf0]  ;;  %v7717_v41 = vld [vmem:[#allocation10 + $0x394] sm:$0xf]  ;;  %v7755_v61 = vld [vmem:[#allocation10 + $0x4c4] sm:$0xf] }
 0x382   : > { %v6340_v62 = vor.u32 %v7718_v40, %v6339_v33  ;;  %v6344_v17 = vor.u32 %v7717_v41, %v6341_v42  ;;  %v6443_v41 = vld [vmem:[#allocation10 + $0x460] sm:$0xf]  ;;  %v2486_v55 = vsel %vm2468_vm9, %v2480_v5, %v2485_v30  ;;  %v6429_v8 = vld [vmem:[#allocation10 + $0x448] sm:$0xf0]  ;;  %v7752_v5 = vld [vmem:[#allocation10 + $0x4a4] sm:$0xf0] }
 0x383   : > { %2651 = vmatpush.bf16.msrb.mxu3 %v6308_v45  ;;  %2679 = vmatpush.bf16.msrb.mxu1 %v6312_v46  ;;  %v2469_v45 = vrot.slane %v9302_v13, 1  ;;  %v2470_v46 = vrot.slane %v9285_v56, 2  ;;  %v7761_v13 = vld [vmem:[#allocation10 + $0x4f4] sm:$0xf]  ;;  %v6267_v56 = vld [vmem:[#allocation10 + $0x300] sm:$0xf] }
 0x385   : > { %2666 = vmatpush.bf16.msra.mxu0 %v6364_v53  ;;  %2694 = vmatpush.bf16.msrb.mxu2 %v6368_v59  ;;  %v7715_v53 = vld [vmem:[#allocation10 + $0x384] sm:$0xf]  ;;  %v6333_v59 = vld [vmem:[#allocation10 + $0x388] sm:$0xf0]  ;;  %v2471_v42 = vor.u32 %v2470_v46, %v2469_v45  ;;  %v6448_v46 = vor.u32 %v7743_v36, %v6445_v39  ;;  %v6467_v39 = vld [vmem:[#allocation10 + $0x490] sm:$0xf] }
 0x386   : > { %v6336_v11 = vor.u32 %v7715_v53, %v6333_v59  ;;  %v6504_v53 = vor.u32 %v7757_v54, %v6501_v47  ;;  %v6491_v59 = vld [vmem:[#allocation10 + $0x4c0] sm:$0xf]  ;;  %v6403_v54 = vld [vmem:[#allocation10 + $0x410] sm:$0xf]  ;;  %v7734_v47 = vld [vmem:[#allocation10 + $0x414] sm:$0xf0] }
 0x387   : > { %2652 = vmatpush.bf16.msrb.mxu3 %v6300_v1  ;;  %2680 = vmatpush.bf16.msrb.mxu1 %v6304_v4  ;;  %v6517_v1 = vld [vmem:[#allocation10 + $0x4f8] sm:$0xf0]  ;;  %v7700_v4 = vld [vmem:[#allocation10 + $0x304] sm:$0xf0]  ;;  %v6492_v9 = vor.u32 %v7756_v60, %v6491_v59  ;;  %v7794_v59 = vld [vmem:[#allocation10 + $0x5f4] sm:$0xf0]  ;;  %v6404_v60 = vor.u32 %v7734_v47, %v6403_v54 }
 0x388   : > { %v6520_v23 = vor.u32 %v7761_v13, %v6517_v1  ;;  %v6268_v27 = vor.u32 %v7700_v4, %v6267_v56  ;;  %v6427_v1 = vld [vmem:[#allocation10 + $0x440] sm:$0xf]  ;;  %v7740_v56 = vld [vmem:[#allocation10 + $0x444] sm:$0xf0]  ;;  %v7739_v4 = vld [vmem:[#allocation10 + $0x444] sm:$0xf] }
 0x389   : > { %2667 = vmatpush.bf16.msra.mxu0 %v6356_v12  ;;  %2695 = vmatpush.bf16.msrb.mxu2 %v6360_v15  ;;  %v6451_v12 = vld [vmem:[#allocation10 + $0x470] sm:$0xf]  ;;  %v2474_v15 = vrot.slane %v2472_v21, 1  ;;  %v7760_v21 = vld [vmem:[#allocation10 + $0x4e4] sm:$0xf0] }
 0x38a   : > { %v6508_v6 = vor.u32 %v7760_v21, %v6507_v31  ;;  %v6475_v31 = vld [vmem:[#allocation10 + $0x4a0] sm:$0xf]  ;;  %v7751_v21 = vld [vmem:[#allocation10 + $0x4a4] sm:$0xf]  ;;  %v7788_v47 = vld [vmem:[#allocation10 + $0x5c4] sm:$0xf0] }
 0x38b   : > { %2653 = vmatpush.bf16.msrb.mxu3 %v6292_v25  ;;  %2681 = vmatpush.bf16.msrb.mxu1 %v6296_v26  ;;  %v7745_v25 = vld [vmem:[#allocation10 + $0x474] sm:$0xf]  ;;  %v6453_v26 = vld [vmem:[#allocation10 + $0x478] sm:$0xf0]  ;;  %v2476_v40 = vor.u32 %v2475_v20, %v2474_v15 }
 0x38c   : > { %v6456_v33 = vor.u32 %v7745_v25, %v6453_v26  ;;  %v7753_v15 = vld [vmem:[#allocation10 + $0x4b4] sm:$0xf]  ;;  %v6485_v20 = vld [vmem:[#allocation10 + $0x4b8] sm:$0xf0]  ;;  %v7738_v25 = vld [vmem:[#allocation10 + $0x434] sm:$0xf0] }
 0x38d   : > { %2668 = vmatpush.bf16.msra.mxu0 %v6348_v32  ;;  %2696 = vmatpush.bf16.msrb.mxu2 %v6352_v52  ;;  %v7759_v32 = vld [vmem:[#allocation10 + $0x4e4] sm:$0xf]  ;;  %v6452_v52 = vor.u32 %v7746_v24, %v6451_v12  ;;  %v2477_v49 = vsel %vm2468_vm9, %v2471_v42, %v2476_v40  ;;  %v7754_v12 = vld [vmem:[#allocation10 + $0x4b4] sm:$0xf0]  ;;  %v6419_v24 = vld [vmem:[#allocation10 + $0x430] sm:$0xf]  ;;  %v6488_v30 = vor.u32 %v7753_v15, %v6485_v20 }
 0x38e   : > { %v6512_v16 = vor.u32 %v7759_v32, %v6509_v18  ;;  %v7737_v26 = vld [vmem:[#allocation10 + $0x434] sm:$0xf]  ;;  %v6477_v32 = vld [vmem:[#allocation10 + $0x4a8] sm:$0xf0]  ;;  %v6420_v18 = vor.u32 %v7738_v25, %v6419_v24  ;;  %v7736_v40 = vld [vmem:[#allocation10 + $0x424] sm:$0xf0] }
 0x38f   : > { %2654 = vmatpush.bf16.msrb.mxu3 %v6284_v43  ;;  %2682 = vmatpush.bf16.msrb.mxu1 %v6288_v44  ;;  %v7744_v43 = vld [vmem:[#allocation10 + $0x464] sm:$0xf0]  ;;  %v7758_v44 = vld [vmem:[#allocation10 + $0x4d4] sm:$0xf0]  ;;  %v6413_v42 = vld [vmem:[#allocation10 + $0x428] sm:$0xf0]  ;;  %v6480_v36 = vor.u32 %v7751_v21, %v6477_v32 }
 0x390   : > { %v6444_v45 = vor.u32 %v7744_v43, %v6443_v41  ;;  %v6500_v51 = vor.u32 %v7758_v44, %v6499_v28  ;;  %v7735_v41 = vld [vmem:[#allocation10 + $0x424] sm:$0xf]  ;;  %v6476_v43 = vor.u32 %v7752_v5, %v6475_v31  ;;  %v7778_v15 = vld [vmem:[#allocation10 + $0x574] sm:$0xf0]  ;;  %v7777_v20 = vld [vmem:[#allocation10 + $0x574] sm:$0xf] }
 0x391   : > { %2669 = vmatpush.bf16.msra.mxu0 %v6340_v62  ;;  %2697 = vmatpush.bf16.msrb.mxu2 %v6344_v17  ;;  %v7742_v62 = vld [vmem:[#allocation10 + $0x454] sm:$0xf0]  ;;  %v7741_v17 = vld [vmem:[#allocation10 + $0x454] sm:$0xf]  ;;  %v6416_v44 = vor.u32 %v7735_v41, %v6413_v42  ;;  %v6635_v25 = vld [vmem:[#allocation10 + $0x5e0] sm:$0xf] }
 0x392   : > { %v6440_v13 = vor.u32 %v7741_v17, %v6437_v7  ;;  %v7748_v17 = vld [vmem:[#allocation10 + $0x484] sm:$0xf0]  ;;  %v7747_v7 = vld [vmem:[#allocation10 + $0x484] sm:$0xf]  ;;  %v6571_v5 = vld [vmem:[#allocation10 + $0x560] sm:$0xf] }
 0x393   : > { %2655 = vmatpush.bf16.msrb.mxu3 %v6276_v63  ;;  %2683 = vmatpush.bf16.msrb.mxu1 %v6280_v0  ;;  %v6493_v63 = vld [vmem:[#allocation10 + $0x4c8] sm:$0xf0]  ;;  %v6436_v0 = vor.u32 %v7742_v62, %v6435_v50  ;;  %v6459_v62 = vld [vmem:[#allocation10 + $0x480] sm:$0xf]  ;;  %v7776_v21 = vld [vmem:[#allocation10 + $0x564] sm:$0xf0] }
 0x394   : > { %v7775_v32 = vld [vmem:[#allocation10 + $0x564] sm:$0xf]  ;;  %v7790_v41 = vld [vmem:[#allocation10 + $0x5d4] sm:$0xf0]  ;;  %v7789_v42 = vld [vmem:[#allocation10 + $0x5d4] sm:$0xf] }
 0x395   : > { %2670 = vmatpush.bf16.msra.mxu0 %v6332_v10  ;;  %2698 = vmatpush.bf16.msrb.mxu2 %v6336_v11  ;;  %v6496_v10 = vor.u32 %v7755_v61, %v6493_v63  ;;  %v6483_v11 = vld [vmem:[#allocation10 + $0x4b0] sm:$0xf]  ;;  %v7793_v63 = vld [vmem:[#allocation10 + $0x5f4] sm:$0xf] }
 0x397   : > { %2656 = vmatpush.bf16.msrb.mxu3 %v6268_v27  ;;  %2684 = vmatpush.bf16.msrb.mxu1 %v6272_v29  ;;  %v6421_v27 = vld [vmem:[#allocation10 + $0x438] sm:$0xf0]  ;;  %v6484_v29 = vor.u32 %v7754_v12, %v6483_v11 }
 0x398   : > { %2671 = vmatmul.bf16.vlgmr.msra.gmra.mxu0 %v2486_v55  ;;  %2699 = vmatmul.bf16.vlgmr.msrb.gmra.mxu2 %v2486_v55  ;;  %v7750_v55 = vld [vmem:[#allocation10 + $0x494] sm:$0xf0] }
 0x399   : > { %2925 = vmatpush.bf16.msrb.mxu0 %v6516_v22  ;;  %2953 = vmatpush.bf16.msra.mxu2 %v6520_v23  ;;  %v6428_v22 = vor.u32 %v7740_v56, %v6427_v1  ;;  %v6432_v23 = vor.u32 %v7739_v4, %v6429_v8  ;;  %v7732_v1 = vld [vmem:[#allocation10 + $0x404] sm:$0xf0]  ;;  %v7731_v56 = vld [vmem:[#allocation10 + $0x404] sm:$0xf]  ;;  %v6397_v4 = vld [vmem:[#allocation10 + $0x408] sm:$0xf0]  ;;  %v6460_v8 = vor.u32 %v7748_v17, %v6459_v62 }
 0x39a   : > { %2657 = vmatmul.bf16.vlgmr.msrb.gmra.mxu3 %v2477_v49  ;;  %2685 = vmatmul.bf16.vlgmr.msrb.gmra.mxu1 %v2477_v49  ;;  %v7733_v49 = vld [vmem:[#allocation10 + $0x414] sm:$0xf]  ;;  %v6400_v24 = vor.u32 %v7731_v56, %v6397_v4  ;;  %v6555_v62 = vld [vmem:[#allocation10 + $0x540] sm:$0xf]  ;;  %v7772_v17 = vld [vmem:[#allocation10 + $0x544] sm:$0xf0] }
 0x39b   : > { %2911 = vmatpush.bf16.msra.mxu3 %v6452_v52  ;;  %2939 = vmatpush.bf16.msra.mxu1 %v6456_v33  ;;  %v6424_v52 = vor.u32 %v7737_v26, %v6421_v27  ;;  %v6411_v33 = vld [vmem:[#allocation10 + $0x420] sm:$0xf]  ;;  %v7792_v26 = vld [vmem:[#allocation10 + $0x5e4] sm:$0xf0]  ;;  %v7791_v27 = vld [vmem:[#allocation10 + $0x5e4] sm:$0xf] }
 0x39c   : > { %v6412_v28 = vor.u32 %v7736_v40, %v6411_v33  ;;  %v6627_v40 = vld [vmem:[#allocation10 + $0x5d0] sm:$0xf]  ;;  %v7770_v56 = vld [vmem:[#allocation10 + $0x534] sm:$0xf0]  ;;  %v7769_v4 = vld [vmem:[#allocation10 + $0x534] sm:$0xf] }
 0x39d   : > { %2926 = vmatpush.bf16.msrb.mxu0 %v6508_v6  ;;  %2954 = vmatpush.bf16.msra.mxu2 %v6512_v16  ;;  %v7749_v6 = vld [vmem:[#allocation10 + $0x494] sm:$0xf]  ;;  %v6469_v16 = vld [vmem:[#allocation10 + $0x498] sm:$0xf0] }
 0x39e   : > { %v6472_v50 = vor.u32 %v7749_v6, %v6469_v16  ;;  %v7774_v6 = vld [vmem:[#allocation10 + $0x554] sm:$0xf0]  ;;  %v7773_v16 = vld [vmem:[#allocation10 + $0x554] sm:$0xf] }
 0x39f   : > { %2912 = vmatpush.bf16.msra.mxu3 %v6444_v45  ;;  %2940 = vmatpush.bf16.msra.mxu1 %v6448_v46  ;;  %v6405_v45 = vld [vmem:[#allocation10 + $0x418] sm:$0xf0]  ;;  %v6468_v46 = vor.u32 %v7750_v55, %v6467_v39  ;;  %v6563_v55 = vld [vmem:[#allocation10 + $0x550] sm:$0xf] }
 0x3a0   : > { %v6408_v61 = vor.u32 %v7733_v49, %v6405_v45  ;;  %v7787_v49 = vld [vmem:[#allocation10 + $0x5c4] sm:$0xf]  ;;  %v6621_v45 = vld [vmem:[#allocation10 + $0x5c8] sm:$0xf0] }
 0x3a1   : > { %2927 = vmatpush.bf16.msrb.mxu0 %v6500_v51  ;;  %2955 = vmatpush.bf16.msra.mxu2 %v6504_v53  ;;  %v6461_v51 = vld [vmem:[#allocation10 + $0x488] sm:$0xf0]  ;;  %v6643_v53 = vld [vmem:[#allocation10 + $0x5f0] sm:$0xf] }
 0x3a2   : > { %v6644_v11 = vor.u32 %v7794_v59, %v6643_v53  ;;  %v6624_v53 = vor.u32 %v7787_v49, %v6621_v45  ;;  %v6611_v59 = vld [vmem:[#allocation10 + $0x5b0] sm:$0xf]  ;;  %v6773_v49 = vld [vmem:[#allocation10 + $0x6f8] sm:$0xf0]  ;;  %v6523_v45 = vld [vmem:[#allocation10 + $0x500] sm:$0xf] }
 0x3a3   : > { %2913 = vmatpush.bf16.msra.mxu3 %v6436_v0  ;;  %2941 = vmatpush.bf16.msra.mxu1 %v6440_v13  ;;  %v6645_v0 = vld [vmem:[#allocation10 + $0x5f8] sm:$0xf0]  ;;  %v6395_v13 = vld [vmem:[#allocation10 + $0x400] sm:$0xf] }
 0x3a4   : > { %v6648_v12 = vor.u32 %v7793_v63, %v6645_v0  ;;  %v6613_v63 = vld [vmem:[#allocation10 + $0x5b8] sm:$0xf0]  ;;  %v6556_v0 = vor.u32 %v7772_v17, %v6555_v62  ;;  %v6525_v62 = vld [vmem:[#allocation10 + $0x508] sm:$0xf0] }
 0x3a5   : > { %2928 = vmatpush.bf16.msrb.mxu0 %v6492_v9  ;;  %2956 = vmatpush.bf16.msra.mxu2 %v6496_v10  ;;  %v6464_v9 = vor.u32 %v7747_v7, %v6461_v51  ;;  %v6579_v10 = vld [vmem:[#allocation10 + $0x570] sm:$0xf]  ;;  %v7771_v7 = vld [vmem:[#allocation10 + $0x544] sm:$0xf]  ;;  %v6557_v51 = vld [vmem:[#allocation10 + $0x548] sm:$0xf0] }
 0x3a7   : > { %2914 = vmatpush.bf16.msra.mxu3 %v6428_v22  ;;  %2942 = vmatpush.bf16.msra.mxu1 %v6432_v23  ;;  %v6581_v22 = vld [vmem:[#allocation10 + $0x578] sm:$0xf0]  ;;  %v6396_v23 = vor.u32 %v7732_v1, %v6395_v13  ;;  %v6560_v13 = vor.u32 %v7771_v7, %v6557_v51  ;;  %v6547_v1 = vld [vmem:[#allocation10 + $0x530] sm:$0xf] }
 0x3a8   : > { %v6584_v31 = vor.u32 %v7777_v20, %v6581_v22  ;;  %v6605_v20 = vld [vmem:[#allocation10 + $0x5a8] sm:$0xf0]  ;;  %v6548_v22 = vor.u32 %v7770_v56, %v6547_v1  ;;  %v6707_v51 = vld [vmem:[#allocation10 + $0x670] sm:$0xf]  ;;  %v7824_v1 = vld [vmem:[#allocation10 + $0x6e4] sm:$0xf0] }
 0x3a9   : > { %2929 = vmatpush.bf16.msrb.mxu0 %v6484_v29  ;;  %2957 = vmatpush.bf16.msra.mxu2 %v6488_v30  ;;  %v6637_v29 = vld [vmem:[#allocation10 + $0x5e8] sm:$0xf0]  ;;  %v6580_v30 = vor.u32 %v7778_v15, %v6579_v10  ;;  %v7783_v15 = vld [vmem:[#allocation10 + $0x5a4] sm:$0xf] }
 0x3aa   : > { %v6640_v33 = vor.u32 %v7791_v27, %v6637_v29  ;;  %v6541_v27 = vld [vmem:[#allocation10 + $0x528] sm:$0xf0]  ;;  %v7823_v56 = vld [vmem:[#allocation10 + $0x6e4] sm:$0xf] }
 0x3ab   : > { %2915 = vmatpush.bf16.msra.mxu3 %v6420_v18  ;;  %2943 = vmatpush.bf16.msra.mxu1 %v6424_v52  ;;  %v6573_v18 = vld [vmem:[#allocation10 + $0x568] sm:$0xf0]  ;;  %v6636_v52 = vor.u32 %v7792_v26, %v6635_v25  ;;  %v7768_v25 = vld [vmem:[#allocation10 + $0x524] sm:$0xf0]  ;;  %v7767_v26 = vld [vmem:[#allocation10 + $0x524] sm:$0xf] }
 0x3ac   : > { %v6576_v39 = vor.u32 %v7775_v32, %v6573_v18  ;;  %v6597_v32 = vld [vmem:[#allocation10 + $0x598] sm:$0xf0] }
 0x3ad   : > { %2930 = vmatpush.bf16.msrb.mxu0 %v6476_v43  ;;  %2958 = vmatpush.bf16.msra.mxu2 %v6480_v36  ;;  %v6629_v43 = vld [vmem:[#allocation10 + $0x5d8] sm:$0xf0]  ;;  %v6572_v36 = vor.u32 %v7776_v21, %v6571_v5  ;;  %v7782_v5 = vld [vmem:[#allocation10 + $0x594] sm:$0xf0]  ;;  %v7781_v21 = vld [vmem:[#allocation10 + $0x594] sm:$0xf] }
 0x3ae   : > { %v6632_v54 = vor.u32 %v7789_v42, %v6629_v43  ;;  %v6533_v42 = vld [vmem:[#allocation10 + $0x518] sm:$0xf0] }
 0x3af   : > { %2916 = vmatpush.bf16.msra.mxu3 %v6412_v28  ;;  %2944 = vmatpush.bf16.msra.mxu1 %v6416_v44  ;;  %v6565_v28 = vld [vmem:[#allocation10 + $0x558] sm:$0xf0]  ;;  %v6628_v44 = vor.u32 %v7790_v41, %v6627_v40  ;;  %v7766_v40 = vld [vmem:[#allocation10 + $0x514] sm:$0xf0]  ;;  %v7765_v41 = vld [vmem:[#allocation10 + $0x514] sm:$0xf] }
 0x3b1   : > { %2931 = vmatpush.bf16.msrb.mxu0 %v6468_v46  ;;  %2959 = vmatpush.bf16.msra.mxu2 %v6472_v50  ;;  %v6564_v46 = vor.u32 %v7774_v6, %v6563_v55  ;;  %v6568_v50 = vor.u32 %v7773_v16, %v6565_v28  ;;  %v7780_v55 = vld [vmem:[#allocation10 + $0x584] sm:$0xf0]  ;;  %v7779_v6 = vld [vmem:[#allocation10 + $0x584] sm:$0xf]  ;;  %v6589_v16 = vld [vmem:[#allocation10 + $0x588] sm:$0xf0] }
 0x3b2   : > { %v6771_v28 = vld [vmem:[#allocation10 + $0x6f0] sm:$0xf]  ;;  %v6592_v7 = vor.u32 %v7779_v6, %v6589_v16  ;;  %v6685_v6 = vld [vmem:[#allocation10 + $0x648] sm:$0xf0] }
 0x3b3   : > { %2917 = vmatpush.bf16.msra.mxu3 %v6404_v60  ;;  %2945 = vmatpush.bf16.msra.mxu1 %v6408_v61  ;;  %v7786_v60 = vld [vmem:[#allocation10 + $0x5b4] sm:$0xf0]  ;;  %v7785_v61 = vld [vmem:[#allocation10 + $0x5b4] sm:$0xf] }
 0x3b4   : > { %v6616_v10 = vor.u32 %v7785_v61, %v6613_v63  ;;  %v6709_v61 = vld [vmem:[#allocation10 + $0x678] sm:$0xf0] }
 0x3b5   : > { %2932 = vmatpush.bf16.msrb.mxu0 %v6460_v8  ;;  %2960 = vmatpush.bf16.msra.mxu2 %v6464_v9  ;;  %v6549_v8 = vld [vmem:[#allocation10 + $0x538] sm:$0xf0]  ;;  %v6612_v9 = vor.u32 %v7786_v60, %v6611_v59  ;;  %v7810_v59 = vld [vmem:[#allocation10 + $0x674] sm:$0xf0]  ;;  %v7809_v60 = vld [vmem:[#allocation10 + $0x674] sm:$0xf] }
 0x3b7   : > { %2918 = vmatpush.bf16.msra.mxu3 %v6396_v23  ;;  %2946 = vmatpush.bf16.msra.mxu1 %v6400_v24  ;;  %v6552_v23 = vor.u32 %v7769_v4, %v6549_v8  ;;  %v6539_v24 = vld [vmem:[#allocation10 + $0x520] sm:$0xf]  ;;  %v6765_v4 = vld [vmem:[#allocation10 + $0x6e8] sm:$0xf0]  ;;  %v6708_v8 = vor.u32 %v7810_v59, %v6707_v51 }
 0x3b8   : > { %2933 = vmatmul.bf16.vlgmr.msrb.gmra.mxu0 %v9315_v19  ;;  %2961 = vmatmul.bf16.vlgmr.msra.gmra.mxu2 %v9315_v19  ;;  %v6619_v19 = vld [vmem:[#allocation10 + $0x5c0] sm:$0xf]  ;;  %v6540_v18 = vor.u32 %v7768_v25, %v6539_v24  ;;  %v7822_v24 = vld [vmem:[#allocation10 + $0x6d4] sm:$0xf0]  ;;  %v7821_v25 = vld [vmem:[#allocation10 + $0x6d4] sm:$0xf] }
 0x3b9   : > { %3195 = vmatpush.bf16.msra.mxu0 %v6644_v11  ;;  %3223 = vmatpush.bf16.msrb.mxu2 %v6648_v12  ;;  %v6603_v11 = vld [vmem:[#allocation10 + $0x5a0] sm:$0xf]  ;;  %v7784_v12 = vld [vmem:[#allocation10 + $0x5a4] sm:$0xf0] }
 0x3ba   : > { %2919 = vmatmul.bf16.vlgmr.msra.gmra.mxu3 %v9322_v35  ;;  %2947 = vmatmul.bf16.vlgmr.msra.gmra.mxu1 %v9322_v35  ;;  %v6620_v35 = vor.u32 %v7788_v47, %v6619_v19  ;;  %v6604_v29 = vor.u32 %v7784_v12, %v6603_v11  ;;  %v6536_v19 = vor.u32 %v7765_v41, %v6533_v42  ;;  %v7825_v47 = vld [vmem:[#allocation10 + $0x6f4] sm:$0xf]  ;;  %v7808_v11 = vld [vmem:[#allocation10 + $0x664] sm:$0xf0]  ;;  %v7807_v12 = vld [vmem:[#allocation10 + $0x664] sm:$0xf] }
 0x3bb   : > { %3181 = vmatpush.bf16.msrb.mxu3 %v6580_v30  ;;  %3209 = vmatpush.bf16.msrb.mxu1 %v6584_v31  ;;  %v6608_v30 = vor.u32 %v7783_v15, %v6605_v20  ;;  %v6595_v31 = vld [vmem:[#allocation10 + $0x590] sm:$0xf]  ;;  %v6701_v15 = vld [vmem:[#allocation10 + $0x668] sm:$0xf0]  ;;  %v6731_v59 = vld [vmem:[#allocation10 + $0x6a0] sm:$0xf] }
 0x3bc   : > { %v6596_v43 = vor.u32 %v7782_v5, %v6595_v31  ;;  %v7806_v31 = vld [vmem:[#allocation10 + $0x654] sm:$0xf0]  ;;  %v7805_v5 = vld [vmem:[#allocation10 + $0x654] sm:$0xf] }
 0x3bd   : > { %3196 = vmatpush.bf16.msra.mxu0 %v6636_v52  ;;  %3224 = vmatpush.bf16.msrb.mxu2 %v6640_v33  ;;  %v6544_v52 = vor.u32 %v7767_v26, %v6541_v27  ;;  %v6531_v33 = vld [vmem:[#allocation10 + $0x510] sm:$0xf]  ;;  %v6757_v26 = vld [vmem:[#allocation10 + $0x6d8] sm:$0xf0] }
 0x3bf   : > { %3182 = vmatpush.bf16.msrb.mxu3 %v6572_v36  ;;  %3210 = vmatpush.bf16.msrb.mxu1 %v6576_v39  ;;  %v6600_v36 = vor.u32 %v7781_v21, %v6597_v32  ;;  %v6587_v39 = vld [vmem:[#allocation10 + $0x580] sm:$0xf]  ;;  %v6693_v21 = vld [vmem:[#allocation10 + $0x658] sm:$0xf0] }
 0x3c0   : > { %v6588_v17 = vor.u32 %v7780_v55, %v6587_v39  ;;  %v7803_v55 = vld [vmem:[#allocation10 + $0x644] sm:$0xf] }
 0x3c1   : > { %3197 = vmatpush.bf16.msra.mxu0 %v6628_v44  ;;  %3225 = vmatpush.bf16.msrb.mxu2 %v6632_v54  ;;  %v7826_v44 = vld [vmem:[#allocation10 + $0x6f4] sm:$0xf0]  ;;  %v6532_v54 = vor.u32 %v7766_v40, %v6531_v33  ;;  %v7819_v33 = vld [vmem:[#allocation10 + $0x6c4] sm:$0xf]  ;;  %v6749_v40 = vld [vmem:[#allocation10 + $0x6c8] sm:$0xf0] }
 0x3c3   : > { %3183 = vmatpush.bf16.msrb.mxu3 %v6564_v46  ;;  %3211 = vmatpush.bf16.msrb.mxu1 %v6568_v50  ;;  %v7764_v46 = vld [vmem:[#allocation10 + $0x504] sm:$0xf0]  ;;  %v7763_v50 = vld [vmem:[#allocation10 + $0x504] sm:$0xf] }
 0x3c4   : > { %v6524_v63 = vor.u32 %v7764_v46, %v6523_v45  ;;  %v6688_v45 = vor.u32 %v7803_v55, %v6685_v6  ;;  %v6675_v46 = vld [vmem:[#allocation10 + $0x630] sm:$0xf]  ;;  %v7795_v55 = vld [vmem:[#allocation10 + $0x604] sm:$0xf]  ;;  %v6653_v6 = vld [vmem:[#allocation10 + $0x608] sm:$0xf0] }
 0x3c5   : > { %3198 = vmatpush.bf16.msra.mxu0 %v6620_v35  ;;  %3226 = vmatpush.bf16.msrb.mxu2 %v6624_v53  ;;  %v6772_v35 = vor.u32 %v7826_v44, %v6771_v28  ;;  %v6776_v53 = vor.u32 %v7825_v47, %v6773_v49  ;;  %v6752_v28 = vor.u32 %v7819_v33, %v6749_v40  ;;  %v6739_v44 = vld [vmem:[#allocation10 + $0x6b0] sm:$0xf]  ;;  %v6741_v47 = vld [vmem:[#allocation10 + $0x6b8] sm:$0xf0]  ;;  %v7811_v33 = vld [vmem:[#allocation10 + $0x684] sm:$0xf] }
 0x3c6   : > { %v6717_v40 = vld [vmem:[#allocation10 + $0x688] sm:$0xf0] }
 0x3c7   : > { %3184 = vmatpush.bf16.msrb.mxu3 %v6556_v0  ;;  %3212 = vmatpush.bf16.msrb.mxu1 %v6560_v13  ;;  %v6528_v0 = vor.u32 %v7763_v50, %v6525_v62  ;;  %v6763_v13 = vld [vmem:[#allocation10 + $0x6e0] sm:$0xf]  ;;  %v7802_v62 = vld [vmem:[#allocation10 + $0x634] sm:$0xf0] }
 0x3c8   : > { %v6764_v20 = vor.u32 %v7824_v1, %v6763_v13  ;;  %v6676_v13 = vor.u32 %v7802_v62, %v6675_v46 }
 0x3c9   : > { %3199 = vmatpush.bf16.msra.mxu0 %v6612_v9  ;;  %3227 = vmatpush.bf16.msrb.mxu2 %v6616_v10  ;;  %v6712_v9 = vor.u32 %v7809_v60, %v6709_v61  ;;  %v6699_v10 = vld [vmem:[#allocation10 + $0x660] sm:$0xf]  ;;  %v7816_v61 = vld [vmem:[#allocation10 + $0x6a4] sm:$0xf0] }
 0x3ca   : > { %v6700_v27 = vor.u32 %v7808_v11, %v6699_v10  ;;  %v6669_v10 = vld [vmem:[#allocation10 + $0x628] sm:$0xf0] }
 0x3cb   : > { %3185 = vmatpush.bf16.msrb.mxu3 %v6548_v22  ;;  %3213 = vmatpush.bf16.msrb.mxu1 %v6552_v23  ;;  %v6768_v22 = vor.u32 %v7823_v56, %v6765_v4  ;;  %v6755_v23 = vld [vmem:[#allocation10 + $0x6d0] sm:$0xf]  ;;  %v6667_v56 = vld [vmem:[#allocation10 + $0x620] sm:$0xf] }
 0x3cc   : > { %v6756_v32 = vor.u32 %v7822_v24, %v6755_v23  ;;  %v7813_v23 = vld [vmem:[#allocation10 + $0x694] sm:$0xf]  ;;  %v6725_v24 = vld [vmem:[#allocation10 + $0x698] sm:$0xf0] }
 0x3cd   : > { %3200 = vmatpush.bf16.msra.mxu0 %v6604_v29  ;;  %3228 = vmatpush.bf16.msrb.mxu2 %v6608_v30  ;;  %v6704_v29 = vor.u32 %v7807_v12, %v6701_v15  ;;  %v6691_v30 = vld [vmem:[#allocation10 + $0x650] sm:$0xf]  ;;  %v6732_v12 = vor.u32 %v7816_v61, %v6731_v59 }
 0x3ce   : > { %v6692_v42 = vor.u32 %v7806_v31, %v6691_v30  ;;  %v7798_v30 = vld [vmem:[#allocation10 + $0x614] sm:$0xf0]  ;;  %v7797_v31 = vld [vmem:[#allocation10 + $0x614] sm:$0xf] }
 0x3cf   : > { %3186 = vmatpush.bf16.msrb.mxu3 %v6540_v18  ;;  %3214 = vmatpush.bf16.msrb.mxu1 %v6544_v52  ;;  %v6760_v18 = vor.u32 %v7821_v25, %v6757_v26  ;;  %v7820_v52 = vld [vmem:[#allocation10 + $0x6c4] sm:$0xf0] }
 0x3d1   : > { %3201 = vmatpush.bf16.msra.mxu0 %v6596_v43  ;;  %3229 = vmatpush.bf16.msrb.mxu2 %v6600_v36  ;;  %v6696_v43 = vor.u32 %v7805_v5, %v6693_v21  ;;  %v6683_v36 = vld [vmem:[#allocation10 + $0x640] sm:$0xf]  ;;  %v6661_v5 = vld [vmem:[#allocation10 + $0x618] sm:$0xf0] }
 0x3d3   : > { %3187 = vmatpush.bf16.msrb.mxu3 %v6532_v54  ;;  %3215 = vmatpush.bf16.msrb.mxu1 %v6536_v19  ;;  %v7818_v54 = vld [vmem:[#allocation10 + $0x6b4] sm:$0xf0]  ;;  %v7817_v19 = vld [vmem:[#allocation10 + $0x6b4] sm:$0xf] }
 0x3d5   : > { %3202 = vmatpush.bf16.msra.mxu0 %v6588_v17  ;;  %3230 = vmatpush.bf16.msrb.mxu2 %v6592_v7  ;;  %v9383_v41 = vpop.f32.mrf.mxu0  ;;  %v7801_v17 = vld [vmem:[#allocation10 + $0x634] sm:$0xf]  ;;  %v6677_v7 = vld [vmem:[#allocation10 + $0x638] sm:$0xf0] }
 0x3d6   : > { %v6680_v1 = vor.u32 %v7801_v17, %v6677_v7 }
 0x3d7   : > { %3188 = vmatpush.bf16.msrb.mxu3 %v6524_v63  ;;  %3216 = vmatpush.bf16.msrb.mxu1 %v6528_v0  ;;  %v1935_v39 = vpop.f32.mrf.mxu1  ;;  %v7815_v63 = vld [vmem:[#allocation10 + $0x6a4] sm:$0xf]  ;;  %v6733_v0 = vld [vmem:[#allocation10 + $0x6a8] sm:$0xf0] }
 0x3d8   : > { %3203 = vmatmul.bf16.vlgmr.msra.gmra.mxu0 %v9337_v2  ;;  %3231 = vmatmul.bf16.vlgmr.msrb.gmra.mxu2 %v9337_v2  ;;  %v6747_v2 = vld [vmem:[#allocation10 + $0x6c0] sm:$0xf]  ;;  %v6736_v15 = vor.u32 %v7815_v63, %v6733_v0 }
 0x3d9   : > { %3457 = vmatpush.bf16.msrb.mxu0 %v6772_v35  ;;  %3485 = vmatpush.bf16.msra.mxu2 %v6776_v53  ;;  %v6748_v16 = vor.u32 %v7820_v52, %v6747_v2  ;;  %v6740_v35 = vor.u32 %v7818_v54, %v6739_v44  ;;  %v6744_v53 = vor.u32 %v7817_v19, %v6741_v47  ;;  %v7812_v52 = vld [vmem:[#allocation10 + $0x684] sm:$0xf0] }
 0x3da   : > { %3189 = vmatmul.bf16.vlgmr.msrb.gmra.mxu3 %v9341_v37  ;;  %3217 = vmatmul.bf16.vlgmr.msrb.gmra.mxu1 %v9341_v37  ;;  %v7804_v37 = vld [vmem:[#allocation10 + $0x644] sm:$0xf0]  ;;  %v6720_v44 = vor.u32 %v7811_v33, %v6717_v40  ;;  %v6656_v47 = vor.u32 %v7795_v55, %v6653_v6 }
 0x3db   : > { %3443 = vmatpush.bf16.msra.mxu3 %v6708_v8  ;;  %3471 = vmatpush.bf16.msra.mxu1 %v6712_v9  ;;  %v6684_v49 = vor.u32 %v7804_v37, %v6683_v36  ;;  %v1949_v50 = vpop.f32.mrf.mxu2  ;;  %v7800_v8 = vld [vmem:[#allocation10 + $0x624] sm:$0xf0]  ;;  %v7799_v9 = vld [vmem:[#allocation10 + $0x624] sm:$0xf]  ;;  %v6651_v36 = vld [vmem:[#allocation10 + $0x600] sm:$0xf] }
 0x3dc   : > { %v1950_v51 = vadd.f32 %v1949_v50, %v1935_v39  ;;  %v6668_v25 = vor.u32 %v7800_v8, %v6667_v56  ;;  %v6672_v26 = vor.u32 %v7799_v9, %v6669_v10  ;;  %v7796_v37 = vld [vmem:[#allocation10 + $0x604] sm:$0xf0] }
 0x3dd   : > { %3458 = vmatpush.bf16.msrb.mxu0 %v6764_v20  ;;  %3486 = vmatpush.bf16.msra.mxu2 %v6768_v22  ;;  %v9385_v60 = vpop.f32.mrf.mxu3  ;;  %v9389_v11 = vpop.f32.mrf.mxu0  ;;  %v6723_v20 = vld [vmem:[#allocation10 + $0x690] sm:$0xf]  ;;  %v7814_v22 = vld [vmem:[#allocation10 + $0x694] sm:$0xf0]  ;;  %v6652_v19 = vor.u32 %v7796_v37, %v6651_v36 }
 0x3de   : > { %v6724_v21 = vor.u32 %v7814_v22, %v6723_v20  ;;  %v1922_v33 = vadd.f32 %v9383_v41, %v9385_v60 }
 0x3df   : > { %3444 = vmatpush.bf16.msra.mxu3 %v6700_v27  ;;  %3472 = vmatpush.bf16.msra.mxu1 %v6704_v29  ;;  %v9387_v4 = vpop.f32.mrf.mxu1  ;;  %v6659_v27 = vld [vmem:[#allocation10 + $0x610] sm:$0xf] }
 0x3e1   : > { %3459 = vmatpush.bf16.msrb.mxu0 %v6756_v32  ;;  %3487 = vmatpush.bf16.msra.mxu2 %v6760_v18  ;;  %v6728_v32 = vor.u32 %v7813_v23, %v6725_v24  ;;  %v6715_v18 = vld [vmem:[#allocation10 + $0x680] sm:$0xf] }
 0x3e3   : > { %3445 = vmatpush.bf16.msra.mxu3 %v6692_v42  ;;  %3473 = vmatpush.bf16.msra.mxu1 %v6696_v43  ;;  %v9391_v29 = vpop.f32.mrf.mxu2  ;;  %v6660_v42 = vor.u32 %v7798_v30, %v6659_v27  ;;  %v6664_v43 = vor.u32 %v7797_v31, %v6661_v5 }
 0x3e5   : > { %3460 = vmatpush.bf16.msrb.mxu0 %v6748_v16  ;;  %3488 = vmatpush.bf16.msra.mxu2 %v6752_v28  ;;  %v9393_v2 = vpop.f32.mrf.mxu3  ;;  %v6716_v28 = vor.u32 %v7812_v52, %v6715_v18  ;;  %v2137_v54 = vpop.f32.mrf.mxu0 }
 0x3e7   : > { %3446 = vmatpush.bf16.msra.mxu3 %v6684_v49  ;;  %3474 = vmatpush.bf16.msra.mxu1 %v6688_v45  ;;  %v2151_v39 = vpop.f32.mrf.mxu1 }
 0x3e8   : > { %v2152_v16 = vadd.f32 %v2151_v39, %v1950_v51 }
 0x3e9   : > { %3461 = vmatpush.bf16.msrb.mxu0 %v6740_v35  ;;  %3489 = vmatpush.bf16.msra.mxu2 %v6744_v53 }
 0x3eb   : > { %3447 = vmatpush.bf16.msra.mxu3 %v6676_v13  ;;  %3475 = vmatpush.bf16.msra.mxu1 %v6680_v1  ;;  %v2165_v49 = vpop.f32.mrf.mxu2 }
 0x3ec   : > { %v2166_v45 = vadd.f32 %v2165_v49, %v2152_v16 }
 0x3ed   : > { %3462 = vmatpush.bf16.msrb.mxu0 %v6732_v12  ;;  %3490 = vmatpush.bf16.msra.mxu2 %v6736_v15  ;;  %v2123_v46 = vpop.f32.mrf.mxu3  ;;  %v9399_v17 = vpop.f32.mrf.mxu0 }
 0x3ef   : > { %3448 = vmatpush.bf16.msra.mxu3 %v6668_v25  ;;  %3476 = vmatpush.bf16.msra.mxu1 %v6672_v26  ;;  %v2153_v50 = vpop.f32.mrf.mxu1 }
 0x3f1   : > { %3463 = vmatpush.bf16.msrb.mxu0 %v6724_v21  ;;  %3491 = vmatpush.bf16.msra.mxu2 %v6728_v32 }
 0x3f3   : > { %3449 = vmatpush.bf16.msra.mxu3 %v6660_v42  ;;  %3477 = vmatpush.bf16.msra.mxu1 %v6664_v43  ;;  %v2167_v62 = vpop.f32.mrf.mxu2  ;;  %v2124_v42 = vadd.f32 %v2123_v46, %v1922_v33 }
 0x3f5   : > { %3464 = vmatpush.bf16.msrb.mxu0 %v6716_v28  ;;  %3492 = vmatpush.bf16.msra.mxu2 %v6720_v44  ;;  %v2125_v7 = vpop.f32.mrf.mxu3  ;;  %v2398_v59 = vpop.f32.mrf.mxu0  ;;  %v2138_v55 = vadd.f32 %v2137_v54, %v2124_v42  ;;  %v1952_v28 = vadd.f32 %v9391_v29, %v9387_v4  ;;  %v1924_v44 = vadd.f32 %v9389_v11, %v9393_v2  ;;  %v3503_v4 = vld [vmem:[#allocation11] sm:$0x3] }
 0x3f7   : > { %3450 = vmatpush.bf16.msra.mxu3 %v6652_v19  ;;  %3478 = vmatpush.bf16.msra.mxu1 %v6656_v47  ;;  %v2412_v51 = vpop.f32.mrf.mxu1  ;;  %v2154_v41 = vadd.f32 %v2153_v50, %v1952_v28  ;;  %v2126_v60 = vadd.f32 %v2125_v7, %v1924_v44  ;;  %v6895_v44 = vld [vmem:[#allocation13 + $0x1e0] sm:$0xf] }
 0x3f8   : > { %3465 = vmatmul.bf16.vlgmr.msrb.gmra.mxu0 %v9346_v48  ;;  %3493 = vmatmul.bf16.vlgmr.msra.gmra.mxu2 %v9346_v48 }
 0x3f9   : > { %v2168_v54 = vadd.f32 %v2167_v62, %v2154_v41  ;;  %v2140_v2 = vadd.f32 %v9399_v17, %v2126_v60 }
 0x3fa   : > { %3451 = vmatmul.bf16.vlgmr.msra.gmra.mxu3 %v9351_v3  ;;  %3479 = vmatmul.bf16.vlgmr.msra.gmra.mxu1 %v9351_v3 }
 0x3fb   : > { %v2426_v35 = vpop.f32.mrf.mxu2 }
 0x3fc   : > { %v2427_v53 = vadd.f32 %v2426_v35, %v2412_v51 }
 0x3fd   : > { %v2384_v61 = vpop.f32.mrf.mxu3  ;;  %v2400_v1 = vpop.f32.mrf.mxu0 }
 0x3fe   : > { %v2432_v63 = vadd.f32 %v2427_v53, %v2166_v45  ;;  %v2399_v0 = vadd.f32 %v2398_v59, %v2384_v61 }
 0x3ff   : > { %v2414_v13 = vpop.f32.mrf.mxu1 }
 0x400   : > { %v2431_v19 = vadd.f32 %v2399_v0, %v2138_v55 }
 0x403   : > { %v2428_v56 = vpop.f32.mrf.mxu2 }
 0x404   : > { %v2429_v46 = vadd.f32 %v2428_v56, %v2414_v13 }
 0x405   : > { %v2386_v48 = vpop.f32.mrf.mxu3 }
 0x406   : > { %v2401_v61 = vadd.f32 %v2400_v1, %v2386_v48 }
 0x415   : > { %v2672_v9 = vpop.f32.mrf.mxu0 }
 0x417   : > { %v2686_v8 = vpop.f32.mrf.mxu1 }
 0x41b   : > { %v2700_v10 = vpop.f32.mrf.mxu2 }
 0x41c   : > { %v2701_v39 = vadd.f32 %v2700_v10, %v2686_v8 }
 0x41d   : > { %v2658_v3 = vpop.f32.mrf.mxu3  ;;  %v2674_v15 = vpop.f32.mrf.mxu0 }
 0x41e   : > { %v2673_v6 = vadd.f32 %v2672_v9, %v2658_v3  ;;  %v2706_v47 = vadd.f32 %v2701_v39, %v2432_v63  ;;  %v2434_v63 = vadd.f32 %v2429_v46, %v2168_v54  ;;  %v7874_v46 = vld [vmem:[#allocation13 + $0x174] sm:$0xf0] }
 0x41f   : > { %v2688_v12 = vpop.f32.mrf.mxu1 }
 0x420   : > { %v2705_v35 = vadd.f32 %v2673_v6, %v2431_v19  ;;  %v7888_v19 = vld [vmem:[#allocation13 + $0x1e4] sm:$0xf0] }
 0x421   : > { %v6896_v60 = vor.u32 %v7888_v19, %v6895_v44  ;;  %v7867_v44 = vld [vmem:[#allocation13 + $0x144] sm:$0xf]  ;;  %v6817_v19 = vld [vmem:[#allocation13 + $0x148] sm:$0xf0] }
 0x423   : > { %v2702_v20 = vpop.f32.mrf.mxu2 }
 0x424   : > { %v2703_v8 = vadd.f32 %v2702_v20, %v2688_v12  ;;  %v3505_v20 = vperm.slane %v3503_v4, 0 }
 0x425   : > { %v2660_v22 = vpop.f32.mrf.mxu3 }
 0x426   : > { %v2675_v0 = vadd.f32 %v2674_v15, %v2660_v22  ;;  %v2708_v62 = vadd.f32 %v2703_v8, %v2434_v63 }
 0x435   : > { %v2934_v24 = vpop.f32.mrf.mxu0 }
 0x437   : > { %v2948_v23 = vpop.f32.mrf.mxu1 }
 0x43b   : > { %v2962_v25 = vpop.f32.mrf.mxu2 }
 0x43c   : > { %v2963_v16 = vadd.f32 %v2962_v25, %v2948_v23  ;;  %v3506_v23 = vperm.slane %v3503_v4, 1  ;;  %v2433_v25 = vadd.f32 %v2401_v61, %v2140_v2  ;;  %v7872_v4 = vld [vmem:[#allocation13 + $0x164] sm:$0xf0] }
 0x43d   : > { %v2920_v26 = vpop.f32.mrf.mxu3  ;;  %v2936_v30 = vpop.f32.mrf.mxu0 }
 0x43e   : > { %v2935_v49 = vadd.f32 %v2934_v24, %v2920_v26  ;;  %v2968_v53 = vadd.f32 %v2963_v16, %v2706_v47  ;;  %v2707_v26 = vadd.f32 %v2675_v0, %v2433_v25  ;;  %v6839_v47 = vld [vmem:[#allocation13 + $0x170] sm:$0xf]  ;;  %v7873_v0 = vld [vmem:[#allocation13 + $0x174] sm:$0xf] }
 0x43f   : > { %v2950_v27 = vpop.f32.mrf.mxu1 }
 0x440   : > { %v2967_v29 = vadd.f32 %v2935_v49, %v2705_v35  ;;  %v6840_v35 = vor.u32 %v7874_v46, %v6839_v47  ;;  %v7864_v46 = vld [vmem:[#allocation13 + $0x124] sm:$0xf0] }
 0x442   : > { %3819 = vmatpush.bf16.msrb.mxu1 %v6840_v35  ;;  %v6873_v35 = vld [vmem:[#allocation13 + $0x1b8] sm:$0xf0] }
 0x443   : > { %v2964_v31 = vpop.f32.mrf.mxu2 }
 0x444   : > { %v2965_v50 = vadd.f32 %v2964_v31, %v2950_v27 }
 0x445   : > { %v2922_v5 = vpop.f32.mrf.mxu3 }
 0x446   : > { %v2937_v1 = vadd.f32 %v2936_v30, %v2922_v5  ;;  %v3517_v5 = vstv %s5674_s22 }
 0x448   : > { %v2969_v15 = vadd.f32 %v2937_v1, %v2707_v26  ;;  %v7871_v26 = vld [vmem:[#allocation13 + $0x164] sm:$0xf] }
 0x455   : > { %v3204_v32 = vpop.f32.mrf.mxu0 }
 0x457   : > { %v3218_v21 = vpop.f32.mrf.mxu1 }
 0x45b   : > { %v3232_v18 = vpop.f32.mrf.mxu2 }
 0x45c   : > { %v3233_v45 = vadd.f32 %v3232_v18, %v3218_v21  ;;  %v2970_v21 = vadd.f32 %v2965_v50, %v2708_v62  ;;  %v6841_v50 = vld [vmem:[#allocation13 + $0x178] sm:$0xf0] }
 0x45d   : > { %v3190_v52 = vpop.f32.mrf.mxu3  ;;  %v3206_v43 = vpop.f32.mrf.mxu0 }
 0x45e   : > { %v3205_v59 = vadd.f32 %v3204_v32, %v3190_v52  ;;  %v3238_v3 = vadd.f32 %v3233_v45, %v2968_v53  ;;  %v6887_v53 = vld [vmem:[#allocation13 + $0x1d0] sm:$0xf] }
 0x45f   : > { %v3220_v40 = vpop.f32.mrf.mxu1 }
 0x460   : > { %v3237_v13 = vadd.f32 %v3205_v59, %v2967_v29  ;;  %v7886_v59 = vld [vmem:[#allocation13 + $0x1d4] sm:$0xf0] }
 0x461   : > { %v6888_v63 = vor.u32 %v7886_v59, %v6887_v53  ;;  %v6820_v53 = vor.u32 %v7867_v44, %v6817_v19  ;;  %v7841_v44 = vld [vmem:[#allocation13 + $0x74] sm:$0xf]  ;;  %v6969_v19 = vld [vmem:[#allocation13 + $0x78] sm:$0xf0] }
 0x463   : > { %v3234_v36 = vpop.f32.mrf.mxu2 }
 0x464   : > { %v3235_v48 = vadd.f32 %v3234_v36, %v3220_v40  ;;  %v6903_v40 = vld [vmem:[#allocation13 + $0x1f0] sm:$0xf]  ;;  %v7890_v36 = vld [vmem:[#allocation13 + $0x1f4] sm:$0xf0] }
 0x465   : > { %v3192_v37 = vpop.f32.mrf.mxu3  ;;  %v6904_v28 = vor.u32 %v7890_v36, %v6903_v40  ;;  %v6807_v40 = vld [vmem:[#allocation13 + $0x130] sm:$0xf]  ;;  %v7866_v36 = vld [vmem:[#allocation13 + $0x134] sm:$0xf0] }
 0x466   : > { %v3207_v32 = vadd.f32 %v3206_v43, %v3192_v37  ;;  %v3240_v22 = vadd.f32 %v3235_v48, %v2970_v21  ;;  %v7887_v48 = vld [vmem:[#allocation13 + $0x1e4] sm:$0xf]  ;;  %v6833_v21 = vld [vmem:[#allocation13 + $0x168] sm:$0xf0]  ;;  %v6808_v47 = vor.u32 %v7866_v36, %v6807_v40  ;;  %v7842_v36 = vld [vmem:[#allocation13 + $0x74] sm:$0xf0] }
 0x467   : > { %3833 = vmatpush.bf16.msrb.mxu2 %v6904_v28 }
 0x468   : > { %v3239_v39 = vadd.f32 %v3207_v32, %v2969_v15  ;;  %v6815_v15 = vld [vmem:[#allocation13 + $0x140] sm:$0xf] }
 0x46b   : > { %3834 = vmatpush.bf16.msrb.mxu2 %v6896_v60  ;;  %v6799_v60 = vld [vmem:[#allocation13 + $0x120] sm:$0xf] }
 0x46f   : > { %3835 = vmatpush.bf16.msrb.mxu2 %v6888_v63 }
 0x475   : > { %v3466_v9 = vpop.f32.mrf.mxu0 }
 0x477   : > { %v3480_v51 = vpop.f32.mrf.mxu1 }
 0x47b   : > { %v3494_v10 = vpop.f32.mrf.mxu2 }
 0x47c   : > { %v3495_v11 = vadd.f32 %v3494_v10, %v3480_v51  ;;  %v7889_v51 = vld [vmem:[#allocation13 + $0x1f4] sm:$0xf]  ;;  %v6831_v10 = vld [vmem:[#allocation13 + $0x160] sm:$0xf] }
 0x47d   : > { %v3452_v7 = vpop.f32.mrf.mxu3  ;;  %v3468_v33 = vpop.f32.mrf.mxu0  ;;  %v6832_v29 = vor.u32 %v7872_v4, %v6831_v10  ;;  %v7876_v4 = vld [vmem:[#allocation13 + $0x184] sm:$0xf0] }
 0x47e   : > { %v3500_v56 = vadd.f32 %v3495_v11, %v3238_v3  ;;  %v3467_v24 = vadd.f32 %v3466_v9, %v3452_v7  ;;  %v6905_v9 = vld [vmem:[#allocation13 + $0x1f8] sm:$0xf0]  ;;  %v6879_v7 = vld [vmem:[#allocation13 + $0x1c0] sm:$0xf] }
 0x47f   : > { %v3482_v17 = vpop.f32.mrf.mxu1  ;;  %3820 = vmatpush.bf16.msrb.mxu1 %v6832_v29  ;;  %v6791_v29 = vld [vmem:[#allocation13 + $0x110] sm:$0xf] }
 0x480   : > { %v3499_v12 = vadd.f32 %v3467_v24, %v3237_v13  ;;  %v3510_v18 = vadd.f32 %v3506_v23, %v3500_v56  ;;  %v6908_v13 = vor.u32 %v7889_v51, %v6905_v9  ;;  %v7884_v56 = vld [vmem:[#allocation13 + $0x1c4] sm:$0xf0]  ;;  %v7870_v24 = vld [vmem:[#allocation13 + $0x154] sm:$0xf0]  ;;  %v7881_v51 = vld [vmem:[#allocation13 + $0x1b4] sm:$0xf] }
 0x481   : > { %v6847_v9 = vld [vmem:[#allocation13 + $0x180] sm:$0xf]  ;;  %v6876_v10 = vor.u32 %v7881_v51, %v6873_v35 }
 0x482   : > { %v3509_v27 = vadd.f32 %v3505_v20, %v3499_v12  ;;  %v3514_v55 = vmul.f32 %v3510_v18, %v9264_v57  ;;  %v6897_v12 = vld [vmem:[#allocation13 + $0x1e8] sm:$0xf0]  ;;  %v6871_v18 = vld [vmem:[#allocation13 + $0x1b0] sm:$0xf]  ;;  %v7007_v51 = vld [vmem:[#allocation13 + $0xc0] sm:$0xf] }
 0x483   : > { %v3496_v52 = vpop.f32.mrf.mxu2 }
 0x484   : > { %v3497_v31 = vadd.f32 %v3496_v52, %v3482_v17  ;;  %v3513_v16 = vmul.f32 %v3509_v27, %v9252_v34  ;;  %v3519_v49 = vmul.f32 %v3517_v5, %v3514_v55  ;;  %v6900_v17 = vor.u32 %v7887_v48, %v6897_v12  ;;  %v7882_v52 = vld [vmem:[#allocation13 + $0x1b4] sm:$0xf0]  ;;  %v9920_v48 = vld [vmem:[#allocation32_spill] sm:$0xff] }
 0x485   : > { %v3454_v42 = vpop.f32.mrf.mxu3  ;;  %v8191_v27 = vld [vmem:[%s9916_s30] sm:$0xff] }
 0x486   : > { %v3502_v6 = vadd.f32 %v3497_v31, %v3240_v22  ;;  %v3469_v30 = vadd.f32 %v3468_v33, %v3454_v42  ;;  %v3518_v54 = vmul.f32 %v3517_v5, %v3513_v16  ;;  %v3523_v11 = vadd.f32 %v3519_v49, %v9264_v57  ;;  %v7868_v22 = vld [vmem:[#allocation13 + $0x144] sm:$0xf0]  ;;  %v7869_v42 = vld [vmem:[#allocation13 + $0x154] sm:$0xf]  ;;  %v7883_v16 = vld [vmem:[#allocation13 + $0x1c4] sm:$0xf] }
 0x487   : > { %v6836_v31 = vor.u32 %v7871_v26, %v6833_v21  ;;  %v6872_v33 = vor.u32 %v7882_v52, %v6871_v18  ;;  %v6816_v55 = vor.u32 %v7868_v22, %v6815_v15  ;;  %v6855_v49 = vld [vmem:[#allocation13 + $0x190] sm:$0xf]  ;;  %v7875_v26 = vld [vmem:[#allocation13 + $0x184] sm:$0xf]  ;;  %v6849_v21 = vld [vmem:[#allocation13 + $0x188] sm:$0xf0] }
 0x488   : > { %v3512_v43 = vadd.f32 %v3506_v23, %v3502_v6  ;;  %v3501_v37 = vadd.f32 %v3469_v30, %v3239_v39  ;;  %v6823_v23 = vld [vmem:[#allocation13 + $0x150] sm:$0xf]  ;;  %v3522_v62 = vadd.f32 %v3518_v54, %v9252_v34  ;;  %v7885_v34 = vld [vmem:[#allocation13 + $0x1d4] sm:$0xf]  ;;  %v6825_v39 = vld [vmem:[#allocation13 + $0x158] sm:$0xf0]  ;;  %v6852_v52 = vor.u32 %v7875_v26, %v6849_v21 }
 0x489   : > { %v6824_v32 = vor.u32 %v7870_v24, %v6823_v23  ;;  %v6863_v6 = vld [vmem:[#allocation13 + $0x1a0] sm:$0xf]  ;;  %v7865_v54 = vld [vmem:[#allocation13 + $0x134] sm:$0xf]  ;;  %v7033_v18 = vld [vmem:[#allocation13 + $0xf8] sm:$0xf0] }
 0x48a   : > { %v3516_v45 = vmul.f32 %v3512_v43, %v9266_v58  ;;  %v3511_v41 = vadd.f32 %v3505_v20, %v3501_v37  ;;  %v6844_v20 = vor.u32 %v7873_v0, %v6841_v50  ;;  %v6881_v43 = vld [vmem:[#allocation13 + $0x1c8] sm:$0xf0]  ;;  %v6828_v37 = vor.u32 %v7869_v42, %v6825_v39  ;;  %v7031_v0 = vld [vmem:[#allocation13 + $0xf0] sm:$0xf]  ;;  %v7858_v50 = vld [vmem:[#allocation13 + $0xf4] sm:$0xf0] }
 0x48b   : > { %3821 = vmatpush.bf16.msrb.mxu1 %v6824_v32  ;;  %v7857_v32 = vld [vmem:[#allocation13 + $0xf4] sm:$0xf]  ;;  %v7023_v22 = vld [vmem:[#allocation13 + $0xe0] sm:$0xf]  ;;  %v7860_v42 = vld [vmem:[#allocation13 + $0x104] sm:$0xf0] }
 0x48c   : > { %v3521_v61 = vmul.f32 %v3517_v5, %v3516_v45  ;;  %v3515_v8 = vmul.f32 %v3511_v41, %v9255_v38  ;;  %v6884_v45 = vor.u32 %v7883_v16, %v6881_v43  ;;  %v7878_v41 = vld [vmem:[#allocation13 + $0x194] sm:$0xf0]  ;;  %v7036_v15 = vor.u32 %v7857_v32, %v7033_v18  ;;  %v7015_v16 = vld [vmem:[#allocation13 + $0xd0] sm:$0xf]  ;;  %v7847_v21 = vld [vmem:[#allocation13 + $0xa4] sm:$0xf] }
 0x48d   : > { %v6856_v59 = vor.u32 %v7878_v41, %v6855_v49  ;;  %v7854_v43 = vld [vmem:[#allocation13 + $0xd4] sm:$0xf0]  ;;  %v6972_v49 = vor.u32 %v7841_v44, %v6969_v19  ;;  %v6993_v32 = vld [vmem:[#allocation13 + $0xa8] sm:$0xf0]  ;;  %v6935_v18 = vld [vmem:[#allocation13 + $0x30] sm:$0xf] }
 0x48e   : > { %v3520_v3 = vmul.f32 %v3517_v5, %v3515_v8  ;;  %v3525_v2 = vadd.f32 %v3521_v61, %v9266_v58  ;;  %v6880_v58 = vor.u32 %v7884_v56, %v6879_v7  ;;  %v7880_v5 = vld [vmem:[#allocation13 + $0x1a4] sm:$0xf0]  ;;  %v6809_v61 = vld [vmem:[#allocation13 + $0x138] sm:$0xf0]  ;;  %v6800_v8 = vor.u32 %v7864_v46, %v6799_v60  ;;  %v6801_v56 = vld [vmem:[#allocation13 + $0x128] sm:$0xf0] }
 0x48f   : > { %3822 = vmatpush.bf16.msrb.mxu1 %v6816_v55  ;;  %v6864_v28 = vor.u32 %v7880_v5, %v6863_v6  ;;  %v6812_v63 = vor.u32 %v7865_v54, %v6809_v61  ;;  %v6848_v7 = vor.u32 %v7876_v4, %v6847_v9  ;;  %v7859_v6 = vld [vmem:[#allocation13 + $0x104] sm:$0xf]  ;;  %v6967_v5 = vld [vmem:[#allocation13 + $0x70] sm:$0xf]  ;;  %v6959_v60 = vld [vmem:[#allocation13 + $0x60] sm:$0xf] }
 0x490   : > { %v3527_v25 = vpack.c.bf16 %v3525_v2, %v3523_v11  ;;  %v3524_v1 = vadd.f32 %v3520_v3, %v9255_v38  ;;  %v6889_v38 = vld [vmem:[#allocation13 + $0x1d8] sm:$0xf0]  ;;  %3836 = vmatpush.bf16.msrb.mxu2 %v6880_v58  ;;  %v7862_v3 = vld [vmem:[#allocation13 + $0x114] sm:$0xf0]  ;;  %v7879_v11 = vld [vmem:[#allocation13 + $0x1a4] sm:$0xf] }
 0x491   : > { %v6892_v30 = vor.u32 %v7885_v34, %v6889_v38  ;;  %v6865_v2 = vld [vmem:[#allocation13 + $0x1a8] sm:$0xf0]  ;;  %v6792_v23 = vor.u32 %v7862_v3, %v6791_v29  ;;  %v7856_v34 = vld [vmem:[#allocation13 + $0xe4] sm:$0xf0]  ;;  %v7855_v38 = vld [vmem:[#allocation13 + $0xe4] sm:$0xf] }
 0x492   : > { %3553 = vmatpush.bf16.msra.mxu0 %v3527_v25  ;;  %v3526_v57 = vpack.c.bf16 %v3524_v1, %v3522_v62  ;;  %v6868_v24 = vor.u32 %v7879_v11, %v6865_v2  ;;  %v7877_v25 = vld [vmem:[#allocation13 + $0x194] sm:$0xf]  ;;  %v6857_v62 = vld [vmem:[#allocation13 + $0x198] sm:$0xf0]  ;;  %v7032_v1 = vor.u32 %v7858_v50, %v7031_v0  ;;  %v7840_v46 = vld [vmem:[#allocation13 + $0x64] sm:$0xf0] }
 0x493   : > { %3823 = vmatpush.bf16.msrb.mxu1 %v6808_v47  ;;  %v6860_v58 = vor.u32 %v7877_v25, %v6857_v62  ;;  %v7853_v47 = vld [vmem:[#allocation13 + $0xd4] sm:$0xf]  ;;  %v6960_v35 = vor.u32 %v7840_v46, %v6959_v60  ;;  %v6961_v54 = vld [vmem:[#allocation13 + $0x68] sm:$0xf0]  ;;  %v7851_v9 = vld [vmem:[#allocation13 + $0xc4] sm:$0xf] }
 0x494   : > { %3535 = vmatpush.bf16.msrb.mxu3 %v3526_v57  ;;  %3837 = vmatpush.bf16.msrb.mxu2 %v6872_v33  ;;  %v6793_v57 = vld [vmem:[#allocation13 + $0x118] sm:$0xf0]  ;;  %v6783_v33 = vld [vmem:[#allocation13 + $0x100] sm:$0xf]  ;;  %v6951_v4 = vld [vmem:[#allocation13 + $0x50] sm:$0xf] }
 0x495   : > { %6779 = vmatmul.msk.bf16.vlgmr.msra.gmra.mxu0 %vm886_vm0, %v8191_v27  ;;  %v6784_v55 = vor.u32 %v7860_v42, %v6783_v33  ;;  %v7838_v3 = vld [vmem:[#allocation13 + $0x54] sm:$0xf0]  ;;  %v6999_v11 = vld [vmem:[#allocation13 + $0xb0] sm:$0xf]  ;;  %v7837_v50 = vld [vmem:[#allocation13 + $0x54] sm:$0xf] }
 0x496   : > { %3861 = vmatpush.bf16.msrb.mxu0 %v6908_v13  ;;  %v7863_v13 = vld [vmem:[#allocation13 + $0x124] sm:$0xf]  ;;  %v7850_v2 = vld [vmem:[#allocation13 + $0xb4] sm:$0xf0]  ;;  %v6943_v25 = vld [vmem:[#allocation13 + $0x40] sm:$0xf] }
 0x497   : > { %6777 = vmatmul.msk.bf16.vlgmr.msrb.gmra.mxu3 %vm886_vm0, %v8191_v27  ;;  %3824 = vmatpush.bf16.msrb.mxu1 %v6800_v8  ;;  %v6804_v12 = vor.u32 %v7863_v13, %v6801_v56  ;;  %v7024_v27 = vor.u32 %v7856_v34, %v7023_v22  ;;  %v7000_v0 = vor.u32 %v7850_v2, %v6999_v11  ;;  %v7849_v13 = vld [vmem:[#allocation13 + $0xb4] sm:$0xf]  ;;  %v7836_v62 = vld [vmem:[#allocation13 + $0x44] sm:$0xf0]  ;;  %v7846_v22 = vld [vmem:[#allocation13 + $0x94] sm:$0xf0] }
 0x498   : > { %3847 = vmatpush.bf16.msra.mxu3 %v6844_v20  ;;  %3838 = vmatpush.bf16.msrb.mxu2 %v6864_v28  ;;  %v7861_v20 = vld [vmem:[#allocation13 + $0x114] sm:$0xf]  ;;  %v7016_v28 = vor.u32 %v7854_v43, %v7015_v16  ;;  %v7831_v16 = vld [vmem:[#allocation13 + $0x24] sm:$0xf]  ;;  %v6929_v43 = vld [vmem:[#allocation13 + $0x28] sm:$0xf0] }
 0x499   : > { %v7845_v33 = vld [vmem:[#allocation13 + $0x94] sm:$0xf]  ;;  %v7843_v44 = vld [vmem:[#allocation13 + $0x84] sm:$0xf]  ;;  %v6977_v19 = vld [vmem:[#allocation13 + $0x88] sm:$0xf0] }
 0x49a   : > { %3862 = vmatpush.bf16.msrb.mxu0 %v6900_v17  ;;  %v6796_v17 = vor.u32 %v7861_v20, %v6793_v57  ;;  %v7835_v20 = vld [vmem:[#allocation13 + $0x44] sm:$0xf]  ;;  %v6945_v57 = vld [vmem:[#allocation13 + $0x48] sm:$0xf0]  ;;  %v7829_v60 = vld [vmem:[#allocation13 + $0x14] sm:$0xf] }
 0x49b   : > { %3825 = vmatpush.bf16.msrb.mxu1 %v6792_v23  ;;  %v7001_v23 = vld [vmem:[#allocation13 + $0xb8] sm:$0xf0]  ;;  %v6948_v26 = vor.u32 %v7835_v20, %v6945_v57  ;;  %v7151_v20 = vld [vmem:[#allocation13 + $0x2e0] sm:$0xf] }
 0x49c   : > { %3848 = vmatpush.bf16.msra.mxu3 %v6836_v31  ;;  %3839 = vmatpush.bf16.msrb.mxu2 %v6856_v59  ;;  %v7025_v31 = vld [vmem:[#allocation13 + $0xe8] sm:$0xf0]  ;;  %v7839_v59 = vld [vmem:[#allocation13 + $0x64] sm:$0xf] }
 0x49d   : > { %v7028_v39 = vor.u32 %v7855_v38, %v7025_v31  ;;  %v6964_v8 = vor.u32 %v7839_v59, %v6961_v54  ;;  %v6937_v31 = vld [vmem:[#allocation13 + $0x38] sm:$0xf0]  ;;  %v7828_v59 = vld [vmem:[#allocation13 + $0x4] sm:$0xf0]  ;;  %v7827_v54 = vld [vmem:[#allocation13 + $0x4] sm:$0xf] }
 0x49e   : > { %3863 = vmatpush.bf16.msrb.mxu0 %v6892_v30  ;;  %v6785_v30 = vld [vmem:[#allocation13 + $0x108] sm:$0xf0] }
 0x49f   : > { %v6788_v40 = vor.u32 %v7859_v6, %v6785_v30  ;;  %3826 = vmatpush.bf16.msrb.mxu1 %v6784_v55  ;;  %v6927_v6 = vld [vmem:[#allocation13 + $0x20] sm:$0xf]  ;;  %v7832_v30 = vld [vmem:[#allocation13 + $0x24] sm:$0xf0] }
 0x4a0   : > { %3849 = vmatpush.bf16.msra.mxu3 %v6828_v37  ;;  %3840 = vmatpush.bf16.msrb.mxu2 %v6848_v7  ;;  %v6968_v37 = vor.u32 %v7842_v36, %v6967_v5  ;;  %v6953_v7 = vld [vmem:[#allocation13 + $0x58] sm:$0xf0]  ;;  %v6975_v5 = vld [vmem:[#allocation13 + $0x80] sm:$0xf]  ;;  %v7844_v36 = vld [vmem:[#allocation13 + $0x84] sm:$0xf0] }
 0x4a1   : > { %v6956_v56 = vor.u32 %v7837_v50, %v6953_v7  ;;  %v7159_v7 = vld [vmem:[#allocation13 + $0x2f0] sm:$0xf] }
 0x4a2   : > { %3864 = vmatpush.bf16.msrb.mxu0 %v6884_v45  ;;  %v7017_v45 = vld [vmem:[#allocation13 + $0xd8] sm:$0xf0] }
 0x4a3   : > { %4035 = vmatpush.bf16.msra.mxu1 %v6968_v37  ;;  %v7020_v41 = vor.u32 %v7853_v47, %v7017_v45  ;;  %v6976_v37 = vor.u32 %v7844_v36, %v6975_v5  ;;  %v6919_v45 = vld [vmem:[#allocation13 + $0x10] sm:$0xf]  ;;  %v7145_v5 = vld [vmem:[#allocation13 + $0x2d8] sm:$0xf0] }
 0x4a4   : > { %3850 = vmatpush.bf16.msra.mxu3 %v6820_v53  ;;  %4049 = vmatpush.bf16.msra.mxu2 %v7032_v1  ;;  %v7852_v53 = vld [vmem:[#allocation13 + $0xc4] sm:$0xf0]  ;;  %v6991_v1 = vld [vmem:[#allocation13 + $0xa0] sm:$0xf] }
 0x4a5   : > { %6780 = vmatmul.msk.bf16.gmra.mxu0 %vm886_vm0, %v9920_v48  ;;  %v7008_v61 = vor.u32 %v7852_v53, %v7007_v51  ;;  %v6921_v51 = vld [vmem:[#allocation13 + $0x18] sm:$0xf0]  ;;  %v6911_v53 = vld [vmem:[#allocation13] sm:$0xf] }
 0x4a6   : > { %3865 = vmatpush.bf16.msrb.mxu0 %v6876_v10  ;;  %v7009_v10 = vld [vmem:[#allocation13 + $0xc8] sm:$0xf0] }
 0x4a7   : > { %6778 = vmatmul.msk.bf16.gmra.mxu3 %vm886_vm0, %v9920_v48  ;;  %4036 = vmatpush.bf16.msra.mxu1 %v6960_v35  ;;  %v7012_v29 = vor.u32 %v7851_v9, %v7009_v10  ;;  %v6944_v48 = vor.u32 %v7836_v62, %v6943_v25  ;;  %v6924_v35 = vor.u32 %v7829_v60, %v6921_v51  ;;  %v7089_v60 = vld [vmem:[#allocation13 + $0x268] sm:$0xf0] }
 0x4a8   : > { %3851 = vmatpush.bf16.msra.mxu3 %v6812_v63  ;;  %4050 = vmatpush.bf16.msra.mxu2 %v7024_v27  ;;  %v6952_v63 = vor.u32 %v7838_v3, %v6951_v4  ;;  %v7833_v27 = vld [vmem:[#allocation13 + $0x34] sm:$0xf]  ;;  %v7137_v51 = vld [vmem:[#allocation13 + $0x2c8] sm:$0xf0] }
 0x4a9   : > { %v6940_v42 = vor.u32 %v7833_v27, %v6937_v31  ;;  %v7906_v27 = vld [vmem:[#allocation13 + $0x274] sm:$0xf0]  ;;  %v7143_v31 = vld [vmem:[#allocation13 + $0x2d0] sm:$0xf] }
 0x4aa   : > { %3866 = vmatpush.bf16.msrb.mxu0 %v6868_v24  ;;  %v7004_v24 = vor.u32 %v7849_v13, %v7001_v23  ;;  %v7922_v13 = vld [vmem:[#allocation13 + $0x2f4] sm:$0xf0]  ;;  %v7161_v23 = vld [vmem:[#allocation13 + $0x2f8] sm:$0xf0] }
 0x4ab   : > { %4037 = vmatpush.bf16.msra.mxu1 %v6952_v63  ;;  %v7160_v62 = vor.u32 %v7922_v13, %v7159_v7 }
 0x4ac   : > { %3852 = vmatpush.bf16.msra.mxu3 %v6804_v12  ;;  %4051 = vmatpush.bf16.msra.mxu2 %v7016_v28  ;;  %v7848_v12 = vld [vmem:[#allocation13 + $0xa4] sm:$0xf0]  ;;  %v6932_v28 = vor.u32 %v7831_v16, %v6929_v43 }
 0x4ae   : > { %3867 = vmatpush.bf16.msrb.mxu0 %v6860_v58  ;;  %v6992_v58 = vor.u32 %v7848_v12, %v6991_v1 }
 0x4af   : > { %4038 = vmatpush.bf16.msra.mxu1 %v6944_v48 }
 0x4b0   : > { %3853 = vmatpush.bf16.msra.mxu3 %v6796_v17  ;;  %4052 = vmatpush.bf16.msra.mxu2 %v7008_v61  ;;  %v6996_v17 = vor.u32 %v7847_v21, %v6993_v32  ;;  %v6913_v61 = vld [vmem:[#allocation13 + $0x8] sm:$0xf0] }
 0x4b1   : > { %v6916_v9 = vor.u32 %v7827_v54, %v6913_v61  ;;  %v7153_v21 = vld [vmem:[#allocation13 + $0x2e8] sm:$0xf0]  ;;  %v7079_v54 = vld [vmem:[#allocation13 + $0x250] sm:$0xf]  ;;  %v7902_v61 = vld [vmem:[#allocation13 + $0x254] sm:$0xf0] }
 0x4b2   : > { %3868 = vmatpush.bf16.msrb.mxu0 %v6852_v52  ;;  %v7834_v52 = vld [vmem:[#allocation13 + $0x34] sm:$0xf0]  ;;  %v7080_v7 = vor.u32 %v7902_v61, %v7079_v54  ;;  %v7892_v54 = vld [vmem:[#allocation13 + $0x204] sm:$0xf0] }
 0x4b3   : > { %v6936_v34 = vor.u32 %v7834_v52, %v6935_v18 }
 0x4b4   : > { %3854 = vmatpush.bf16.msra.mxu3 %v6788_v40  ;;  %4053 = vmatpush.bf16.msra.mxu2 %v7000_v0  ;;  %v6928_v40 = vor.u32 %v7832_v30, %v6927_v6  ;;  %v7917_v30 = vld [vmem:[#allocation13 + $0x2d4] sm:$0xf] }
 0x4b5   : > { %4039 = vmatpush.bf16.msra.mxu1 %v6936_v34 }
 0x4b6   : > { %4077 = vmatpush.bf16.msra.mxu0 %v7036_v15  ;;  %v6983_v15 = vld [vmem:[#allocation13 + $0x90] sm:$0xf] }
 0x4b7   : > { %v6984_v38 = vor.u32 %v7846_v22, %v6983_v15 }
 0x4b8   : > { %4063 = vmatpush.bf16.msrb.mxu3 %v6972_v49  ;;  %4054 = vmatpush.bf16.msra.mxu2 %v6992_v58  ;;  %v6980_v49 = vor.u32 %v7843_v44, %v6977_v19  ;;  %v7920_v58 = vld [vmem:[#allocation13 + $0x2e4] sm:$0xf0]  ;;  %v7148_v19 = vor.u32 %v7917_v30, %v7145_v5  ;;  %v7103_v5 = vld [vmem:[#allocation13 + $0x280] sm:$0xf] }
 0x4b9   : > { %4040 = vmatpush.bf16.msra.mxu1 %v6928_v40  ;;  %v7152_v22 = vor.u32 %v7920_v58, %v7151_v20  ;;  %v7911_v20 = vld [vmem:[#allocation13 + $0x2a4] sm:$0xf] }
 0x4ba   : > { %4078 = vmatpush.bf16.msra.mxu0 %v7028_v39  ;;  %v6985_v39 = vld [vmem:[#allocation13 + $0x98] sm:$0xf0] }
 0x4bb   : > { %v6988_v55 = vor.u32 %v7845_v33, %v6985_v39  ;;  %v7918_v33 = vld [vmem:[#allocation13 + $0x2d4] sm:$0xf0]  ;;  %v7097_v39 = vld [vmem:[#allocation13 + $0x278] sm:$0xf0] }
 0x4bc   : > { %4064 = vmatpush.bf16.msrb.mxu3 %v6964_v8  ;;  %4055 = vmatpush.bf16.msra.mxu2 %v6984_v38  ;;  %v6912_v8 = vor.u32 %v7828_v59, %v6911_v53  ;;  %v7144_v43 = vor.u32 %v7918_v33, %v7143_v31  ;;  %v7113_v31 = vld [vmem:[#allocation13 + $0x298] sm:$0xf0] }
 0x4be   : > { %4079 = vmatpush.bf16.msra.mxu0 %v7020_v41  ;;  %v7830_v41 = vld [vmem:[#allocation13 + $0x14] sm:$0xf0] }
 0x4bf   : > { %v6920_v46 = vor.u32 %v7830_v41, %v6919_v45  ;;  %v7903_v45 = vld [vmem:[#allocation13 + $0x264] sm:$0xf] }
 0x4c0   : > { %4065 = vmatpush.bf16.msrb.mxu3 %v6956_v56  ;;  %4056 = vmatpush.bf16.msra.mxu2 %v6976_v37  ;;  %v7921_v56 = vld [vmem:[#allocation13 + $0x2f4] sm:$0xf]  ;;  %v7087_v37 = vld [vmem:[#allocation13 + $0x260] sm:$0xf] }
 0x4c1   : > { %4041 = vmatpush.bf16.msra.mxu1 %v6920_v46  ;;  %v7164_v12 = vor.u32 %v7921_v56, %v7161_v23  ;;  %v7915_v46 = vld [vmem:[#allocation13 + $0x2c4] sm:$0xf]  ;;  %v7071_v56 = vld [vmem:[#allocation13 + $0x240] sm:$0xf]  ;;  %v7900_v23 = vld [vmem:[#allocation13 + $0x244] sm:$0xf0] }
 0x4c2   : > { %4080 = vmatpush.bf16.msra.mxu0 %v7012_v29  ;;  %v7072_v58 = vor.u32 %v7900_v23, %v7071_v56  ;;  %v9468_v56 = vld [vmem:[#allocation22 + $0xf0] sm:$0xff]  ;;  %v9472_v23 = vld [vmem:[#allocation22 + $0xf8] sm:$0xff] }
 0x4c4   : > { %4066 = vmatpush.bf16.msrb.mxu3 %v6948_v26  ;;  %v7919_v26 = vld [vmem:[#allocation13 + $0x2e4] sm:$0xf] }
 0x4c5   : > { %4042 = vmatpush.bf16.msra.mxu1 %v6912_v8  ;;  %v7156_v34 = vor.u32 %v7919_v26, %v7153_v21  ;;  %v7092_v8 = vor.u32 %v7903_v45, %v7089_v60  ;;  %v7063_v21 = vld [vmem:[#allocation13 + $0x230] sm:$0xf]  ;;  %v7894_v45 = vld [vmem:[#allocation13 + $0x214] sm:$0xf0]  ;;  %v7893_v60 = vld [vmem:[#allocation13 + $0x214] sm:$0xf] }
 0x4c6   : > { %4081 = vmatpush.bf16.msra.mxu0 %v7004_v24 }
 0x4c8   : > { %4067 = vmatpush.bf16.msrb.mxu3 %v6940_v42  ;;  %v7905_v42 = vld [vmem:[#allocation13 + $0x274] sm:$0xf] }
 0x4c9   : > { %v7100_v44 = vor.u32 %v7905_v42, %v7097_v39  ;;  %v7055_v39 = vld [vmem:[#allocation13 + $0x220] sm:$0xf] }
 0x4ca   : > { %4082 = vmatpush.bf16.msra.mxu0 %v6996_v17  ;;  %v7095_v17 = vld [vmem:[#allocation13 + $0x270] sm:$0xf] }
 0x4cb   : > { %v7096_v16 = vor.u32 %v7906_v27, %v7095_v17  ;;  %v7909_v27 = vld [vmem:[#allocation13 + $0x294] sm:$0xf] }
 0x4cc   : > { %4068 = vmatpush.bf16.msrb.mxu3 %v6932_v28  ;;  %v7904_v28 = vld [vmem:[#allocation13 + $0x264] sm:$0xf0]  ;;  %v7116_v30 = vor.u32 %v7909_v27, %v7113_v31  ;;  %v9532_v27 = vld [vmem:[#allocation22 + $0xa8] sm:$0xff]  ;;  %v9535_v31 = vld [vmem:[#allocation22 + $0x170] sm:$0xff] }
 0x4cd   : > { %v7088_v53 = vor.u32 %v7904_v28, %v7087_v37  ;;  %v7105_v37 = vld [vmem:[#allocation13 + $0x288] sm:$0xf0] }
 0x4ce   : > { %4083 = vmatpush.bf16.msra.mxu0 %v6988_v55 }
 0x4d0   : > { %4069 = vmatpush.bf16.msrb.mxu3 %v6924_v35 }
 0x4d2   : > { %4084 = vmatpush.bf16.msra.mxu0 %v6980_v49  ;;  %v7916_v49 = vld [vmem:[#allocation13 + $0x2c4] sm:$0xf0] }
 0x4d4   : > { %4070 = vmatpush.bf16.msrb.mxu3 %v6916_v9  ;;  %v7140_v9 = vor.u32 %v7915_v46, %v7137_v51  ;;  %v7049_v46 = vld [vmem:[#allocation13 + $0x218] sm:$0xf0] }
 0x512   : > { %v3555_v47 = vpop.f32.mrf.mxu0 }
 0x51a   : > { %v3537_v10 = vpop.f32.mrf.mxu3  ;;  %v3557_v4 = vpop.f32.mrf.mxu0 }
 0x51b   : > { %v9425_v29 = vpack.c.bf16 %v3557_v4, %v3555_v47  ;;  %v7135_v47 = vld [vmem:[#allocation13 + $0x2c0] sm:$0xf]  ;;  %v7914_v4 = vld [vmem:[#allocation13 + $0x2b4] sm:$0xf0] }
 0x51c   : > { %v7136_v59 = vor.u32 %v7916_v49, %v7135_v47  ;;  %v7047_v49 = vld [vmem:[#allocation13 + $0x210] sm:$0xf] }
 0x51d   : > { %v3648_v3 = vshll.u32 %v9425_v29, 16  ;;  %v3646_v25 = vshrl.u32 %v9425_v29, 16  ;;  %v4131_v51 = vrot.slane %v9425_v29, 1 }
 0x51f   : > { %v3650_v50 = vrot.slane %v3648_v3, 1  ;;  %v7901_v3 = vld [vmem:[#allocation13 + $0x254] sm:$0xf] }
 0x521   : > { %v3651_v48 = vor.u32 %v3650_v50, %v3646_v25  ;;  %v7129_v50 = vld [vmem:[#allocation13 + $0x2b8] sm:$0xf0] }
 0x522   : > { %v3539_v11 = vpop.f32.mrf.mxu3  ;;  %v3560_v2 = vpop.f32.mrf.mxu0 }
 0x523   : > { %v9428_v63 = vpack.c.bf16 %v3539_v11, %v3537_v10  ;;  %v9430_v0 = vpack.c.bf16 %v3560_v2, %v3560_v2  ;;  %v7127_v10 = vld [vmem:[#allocation13 + $0x2b0] sm:$0xf]  ;;  %v7081_v11 = vld [vmem:[#allocation13 + $0x258] sm:$0xf0]  ;;  %v7913_v2 = vld [vmem:[#allocation13 + $0x2b4] sm:$0xf] }
 0x524   : > { %v7128_v13 = vor.u32 %v7914_v4, %v7127_v10  ;;  %v7132_v25 = vor.u32 %v7913_v2, %v7129_v50  ;;  %v9448_v10 = vld [vmem:[#allocation22 + $0x1f0] sm:$0xff]  ;;  %v9458_v2 = vld [vmem:[#allocation22 + $0x1e8] sm:$0xff] }
 0x525   : > { %v3653_v24 = vshll.u32 %v9430_v0, 16  ;;  %v3636_v57 = vshll.u32 %v9428_v63, 16  ;;  %v3634_v6 = vshrl.u32 %v9428_v63, 16  ;;  %v9461_v50 = vld [vmem:[#allocation22 + $0x1d0] sm:$0xff] }
 0x527   : > { %v3655_v1 = vrot.slane %v3653_v24, 1  ;;  %v3638_v38 = vrot.slane %v3636_v57, 1  ;;  %v7084_v24 = vor.u32 %v7901_v3, %v7081_v11  ;;  %v7121_v57 = vld [vmem:[#allocation13 + $0x2a8] sm:$0xf0] }
 0x528   : > { %v7124_v17 = vor.u32 %v7911_v20, %v7121_v57  ;;  %v9454_v3 = vld [vmem:[#allocation22 + $0x1e0] sm:$0xff]  ;;  %v9496_v20 = vld [vmem:[#allocation22 + $0xd8] sm:$0xff] }
 0x529   : > { %v3656_v32 = vsel %vm946_vm1, %v3651_v48, %v3655_v1  ;;  %v3639_v36 = vor.u32 %v3638_v38, %v3634_v6  ;;  %v7912_v1 = vld [vmem:[#allocation13 + $0x2a4] sm:$0xf0]  ;;  %v7899_v48 = vld [vmem:[#allocation13 + $0x244] sm:$0xf]  ;;  %v7065_v38 = vld [vmem:[#allocation13 + $0x238] sm:$0xf0] }
 0x52a   : > { %v3542_v18 = vpop.f32.mrf.mxu3  ;;  %3841 = vmatmul.bf16.vlgmr.msrb.gmra.mxu2 %v3656_v32  ;;  %3869 = vmatmul.bf16.vlgmr.msrb.gmra.mxu0 %v3656_v32  ;;  %v3562_v52 = vpop.f32.mrf.mxu0  ;;  %v7898_v32 = vld [vmem:[#allocation13 + $0x234] sm:$0xf0]  ;;  %v9499_v57 = vld [vmem:[#allocation22 + $0x1a0] sm:$0xff] }
 0x52b   : > { %v9436_v15 = vpack.c.bf16 %v3542_v18, %v3542_v18  ;;  %4310 = vmatpush.bf16.msrb.mxu2 %v7160_v62  ;;  %4338 = vmatpush.bf16.msrb.mxu0 %v7164_v12  ;;  %v7119_v62 = vld [vmem:[#allocation13 + $0x2a0] sm:$0xf]  ;;  %v7073_v12 = vld [vmem:[#allocation13 + $0x248] sm:$0xf0]  ;;  %v7111_v52 = vld [vmem:[#allocation13 + $0x290] sm:$0xf]  ;;  %v7064_v33 = vor.u32 %v7898_v32, %v7063_v21 }
 0x52c   : > { %v7120_v26 = vor.u32 %v7912_v1, %v7119_v62  ;;  %v7076_v18 = vor.u32 %v7899_v48, %v7073_v12  ;;  %v9484_v62 = vld [vmem:[#allocation22 + $0xe8] sm:$0xff]  ;;  %v9487_v1 = vld [vmem:[#allocation22 + $0x1b0] sm:$0xff]  ;;  %v9493_v12 = vld [vmem:[#allocation22 + $0x1b8] sm:$0xff] }
 0x52d   : > { %v3641_v55 = vshll.u32 %v9436_v15, 16  ;;  %v4129_v11 = vrot.slane %v9436_v15, 1  ;;  %v9490_v48 = vld [vmem:[#allocation22 + $0xd0] sm:$0xff]  ;;  %v9508_v21 = vld [vmem:[#allocation22 + $0xc8] sm:$0xff] }
 0x52e   : > { %v9511_v32 = vld [vmem:[#allocation22 + $0x190] sm:$0xff] }
 0x52f   : > { %v3643_v40 = vrot.slane %v3641_v55, 1  ;;  %4311 = vmatpush.bf16.msrb.mxu2 %v7152_v22  ;;  %4339 = vmatpush.bf16.msrb.mxu0 %v7156_v34  ;;  %v7910_v22 = vld [vmem:[#allocation13 + $0x294] sm:$0xf0]  ;;  %v7897_v34 = vld [vmem:[#allocation13 + $0x234] sm:$0xf] }
 0x530   : > { %v7112_v42 = vor.u32 %v7910_v22, %v7111_v52  ;;  %v7896_v55 = vld [vmem:[#allocation13 + $0x224] sm:$0xf0]  ;;  %v7068_v6 = vor.u32 %v7897_v34, %v7065_v38  ;;  %v9523_v22 = vld [vmem:[#allocation22 + $0x180] sm:$0xff]  ;;  %v9529_v38 = vld [vmem:[#allocation22 + $0x188] sm:$0xff] }
 0x531   : > { %v3644_v41 = vsel %vm946_vm1, %v3639_v36, %v3643_v40  ;;  %v7908_v40 = vld [vmem:[#allocation13 + $0x284] sm:$0xf0]  ;;  %v7895_v36 = vld [vmem:[#allocation13 + $0x224] sm:$0xf]  ;;  %v7056_v28 = vor.u32 %v7896_v55, %v7055_v39  ;;  %v9526_v34 = vld [vmem:[#allocation22 + $0xa0] sm:$0xff] }
 0x532   : > { %3827 = vmatmul.bf16.vlgmr.msrb.gmra.mxu1 %v3644_v41  ;;  %3855 = vmatmul.bf16.vlgmr.msra.gmra.mxu3 %v3644_v41  ;;  %v3544_v35 = vpop.f32.mrf.mxu3  ;;  %v4132_v41 = vrot.slane %v9430_v0, 1  ;;  %v9451_v0 = vld [vmem:[#allocation22 + $0x1f8] sm:$0xff]  ;;  %v9547_v55 = vld [vmem:[#allocation22 + $0x160] sm:$0xff] }
 0x533   : > { %4296 = vmatpush.bf16.msrb.mxu1 %v7096_v16  ;;  %4312 = vmatpush.bf16.msrb.mxu2 %v7144_v43  ;;  %v7057_v16 = vld [vmem:[#allocation13 + $0x228] sm:$0xf0]  ;;  %v7907_v43 = vld [vmem:[#allocation13 + $0x284] sm:$0xf]  ;;  %v7048_v35 = vor.u32 %v7894_v45, %v7047_v49  ;;  %v9586_v49 = vld [vmem:[#allocation22 + $0x50] sm:$0xff] }
 0x534   : > { %4324 = vmatpush.bf16.msra.mxu3 %v7100_v44  ;;  %4340 = vmatpush.bf16.msrb.mxu0 %v7148_v19  ;;  %v7104_v44 = vor.u32 %v7908_v40, %v7103_v5  ;;  %v7060_v19 = vor.u32 %v7895_v36, %v7057_v16  ;;  %v7108_v47 = vor.u32 %v7907_v43, %v7105_v37  ;;  %v9520_v52 = vld [vmem:[#allocation22 + $0xb8] sm:$0xff]  ;;  %v9556_v5 = vld [vmem:[#allocation22 + $0x88] sm:$0xff]  ;;  %v9559_v40 = vld [vmem:[#allocation22 + $0x150] sm:$0xff] }
 0x535   : > { %v4133_v61 = vsel %vm1195_vm2, %v4131_v51, %v4132_v41  ;;  %v9544_v39 = vld [vmem:[#allocation22 + $0x98] sm:$0xff]  ;;  %v9562_v36 = vld [vmem:[#allocation22 + $0x70] sm:$0xff]  ;;  %v9571_v37 = vld [vmem:[#allocation22 + $0x140] sm:$0xff] }
 0x536   : > { %v9565_v16 = vld [vmem:[#allocation22 + $0x158] sm:$0xff]  ;;  %v9601_v51 = vld [vmem:[#allocation22 + $0x128] sm:$0xff] }
 0x537   : > { %4297 = vmatpush.bf16.msrb.mxu1 %v7088_v53  ;;  %4313 = vmatpush.bf16.msrb.mxu2 %v7136_v59  ;;  %v7052_v53 = vor.u32 %v7893_v60, %v7049_v46  ;;  %v7039_v59 = vld [vmem:[#allocation13 + $0x200] sm:$0xf]  ;;  %v9568_v43 = vld [vmem:[#allocation22 + $0x78] sm:$0xff]  ;;  %v9595_v60 = vld [vmem:[#allocation22 + $0x120] sm:$0xff] }
 0x538   : > { %4325 = vmatpush.bf16.msra.mxu3 %v7092_v8  ;;  %4341 = vmatpush.bf16.msrb.mxu0 %v7140_v9  ;;  %v7891_v8 = vld [vmem:[#allocation13 + $0x204] sm:$0xf]  ;;  %v7041_v9 = vld [vmem:[#allocation13 + $0x208] sm:$0xf0] }
 0x539   : > { %v7044_v4 = vor.u32 %v7891_v8, %v7041_v9  ;;  %v9589_v45 = vld [vmem:[#allocation22 + $0x138] sm:$0xff]  ;;  %v9598_v46 = vld [vmem:[#allocation22 + $0x40] sm:$0xff] }
 0x53a   : > { %4057 = vmatmul.bf16.vlgmr.msra.gmra.mxu2 %v9425_v29  ;;  %4085 = vmatmul.bf16.vlgmr.msra.gmra.mxu0 %v9425_v29  ;;  %v7040_v29 = vor.u32 %v7892_v54, %v7039_v59  ;;  %v9592_v41 = vld [vmem:[#allocation22 + $0x58] sm:$0xff]  ;;  %v9610_v59 = vld [vmem:[#allocation22 + $0x30] sm:$0xff]  ;;  %v9619_v8 = vld [vmem:[#allocation22 + $0x100] sm:$0xff] }
 0x53b   : > { %4298 = vmatpush.bf16.msrb.mxu1 %v7080_v7  ;;  %4314 = vmatpush.bf16.msrb.mxu2 %v7128_v13  ;;  %v4128_v7 = vrot.slane %v9428_v63, 1  ;;  %v9465_v13 = vld [vmem:[#allocation22 + $0x1d8] sm:$0xff]  ;;  %v9622_v9 = vld [vmem:[#allocation22 + $0x20] sm:$0xff] }
 0x53c   : > { %4326 = vmatpush.bf16.msra.mxu3 %v7084_v24  ;;  %4342 = vmatpush.bf16.msrb.mxu0 %v7132_v25  ;;  %v9475_v24 = vld [vmem:[#allocation22 + $0x1c0] sm:$0xff]  ;;  %v9613_v54 = vld [vmem:[#allocation22 + $0x118] sm:$0xff] }
 0x53d   : > { %v4130_v15 = vsel %vm1195_vm2, %v4128_v7, %v4129_v11  ;;  %v9481_v25 = vld [vmem:[#allocation22 + $0xe0] sm:$0xff]  ;;  %v9632_v11 = vld [vmem:[#allocation22 + $0x10] sm:$0xff]  ;;  %v9636_v7 = vld [vmem:[#allocation22 + $0x18] sm:$0xff] }
 0x53f   : > { %4299 = vmatpush.bf16.msrb.mxu1 %v7072_v58  ;;  %4315 = vmatpush.bf16.msrb.mxu2 %v7120_v26  ;;  %v9502_v58 = vld [vmem:[#allocation22 + $0xc0] sm:$0xff]  ;;  %v9505_v26 = vld [vmem:[#allocation22 + $0x1a8] sm:$0xff] }
 0x540   : > { %4327 = vmatpush.bf16.msra.mxu3 %v7076_v18  ;;  %4343 = vmatpush.bf16.msrb.mxu0 %v7124_v17  ;;  %v9514_v18 = vld [vmem:[#allocation22 + $0xb0] sm:$0xff]  ;;  %v9517_v17 = vld [vmem:[#allocation22 + $0x198] sm:$0xff] }
 0x542   : > { %4043 = vmatmul.bf16.vlgmr.msra.gmra.mxu1 %v9428_v63  ;;  %4071 = vmatmul.bf16.vlgmr.msrb.gmra.mxu3 %v9428_v63  ;;  %v9478_v63 = vld [vmem:[#allocation22 + $0x1c8] sm:$0xff] }
 0x543   : > { %4300 = vmatpush.bf16.msrb.mxu1 %v7064_v33  ;;  %4316 = vmatpush.bf16.msrb.mxu2 %v7112_v42  ;;  %v9538_v33 = vld [vmem:[#allocation22 + $0x90] sm:$0xff]  ;;  %v9541_v42 = vld [vmem:[#allocation22 + $0x178] sm:$0xff] }
 0x544   : > { %4328 = vmatpush.bf16.msra.mxu3 %v7068_v6  ;;  %4344 = vmatpush.bf16.msrb.mxu0 %v7116_v30  ;;  %v9550_v6 = vld [vmem:[#allocation22 + $0x80] sm:$0xff]  ;;  %v9553_v30 = vld [vmem:[#allocation22 + $0x168] sm:$0xff] }
 0x547   : > { %4301 = vmatpush.bf16.msrb.mxu1 %v7056_v28  ;;  %4317 = vmatpush.bf16.msrb.mxu2 %v7104_v44  ;;  %v9574_v28 = vld [vmem:[#allocation22 + $0x60] sm:$0xff]  ;;  %v9577_v44 = vld [vmem:[#allocation22 + $0x148] sm:$0xff] }
 0x548   : > { %4329 = vmatpush.bf16.msra.mxu3 %v7060_v19  ;;  %4345 = vmatpush.bf16.msrb.mxu0 %v7108_v47  ;;  %v9580_v19 = vld [vmem:[#allocation22 + $0x68] sm:$0xff]  ;;  %v9583_v47 = vld [vmem:[#allocation22 + $0x130] sm:$0xff] }
 0x54a   : > { %4318 = vmatmul.bf16.vlgmr.msrb.gmra.mxu2 %v4133_v61 }
 0x54b   : > { %4391 = vmatpush.msra.mxu2 %v9448_v10  ;;  %4346 = vmatmul.bf16.vlgmr.msrb.gmra.mxu0 %v4133_v61  ;;  %v9616_v61 = vld [vmem:[#allocation22 + $0x38] sm:$0xff] }
 0x54c   : > { %4437 = vmatpush.msra.mxu0 %v9451_v0  ;;  %4302 = vmatpush.bf16.msrb.mxu1 %v7048_v35  ;;  %v9604_v35 = vld [vmem:[#allocation22 + $0x48] sm:$0xff] }
 0x54d   : > { %4330 = vmatpush.bf16.msra.mxu3 %v7052_v53  ;;  %4392 = vmatpush.msra.mxu2 %v9454_v3  ;;  %v9607_v53 = vld [vmem:[#allocation22 + $0x110] sm:$0xff] }
 0x54e   : > { %4438 = vmatpush.msra.mxu0 %v9458_v2 }
 0x54f   : > { %4393 = vmatpush.msra.mxu2 %v9461_v50 }
 0x550   : > { %4303 = vmatpush.bf16.msrb.mxu1 %v7040_v29  ;;  %4439 = vmatpush.msra.mxu0 %v9465_v13  ;;  %v9625_v29 = vld [vmem:[#allocation22 + $0x108] sm:$0xff] }
 0x551   : > { %4331 = vmatpush.bf16.msra.mxu3 %v7044_v4  ;;  %4394 = vmatpush.msra.mxu2 %v9475_v24  ;;  %v9628_v4 = vld [vmem:[#allocation22 + $0x28] sm:$0xff] }
 0x552   : > { %4440 = vmatpush.msra.mxu0 %v9478_v63 }
 0x553   : > { %4304 = vmatmul.bf16.vlgmr.msrb.gmra.mxu1 %v4130_v15  ;;  %4395 = vmatpush.msra.mxu2 %v9487_v1 }
 0x554   : > { %4368 = vmatpush.msra.mxu1 %v9468_v56  ;;  %4332 = vmatmul.bf16.vlgmr.msra.gmra.mxu3 %v4130_v15  ;;  %v8254_v15 = vld [vmem:[#allocation22] sm:$0xff] }
 0x555   : > { %4414 = vmatpush.msrb.mxu3 %v9472_v23  ;;  %4441 = vmatpush.msra.mxu0 %v9493_v12 }
 0x556   : > { %4369 = vmatpush.msra.mxu1 %v9481_v25  ;;  %4396 = vmatpush.msra.mxu2 %v9499_v57 }
 0x557   : > { %4415 = vmatpush.msrb.mxu3 %v9484_v62  ;;  %4442 = vmatpush.msra.mxu0 %v9505_v26 }
 0x558   : > { %4370 = vmatpush.msra.mxu1 %v9490_v48  ;;  %4397 = vmatpush.msra.mxu2 %v9511_v32 }
 0x559   : > { %4416 = vmatpush.msrb.mxu3 %v9496_v20  ;;  %4443 = vmatpush.msra.mxu0 %v9517_v17 }
 0x55a   : > { %4371 = vmatpush.msra.mxu1 %v9502_v58  ;;  %4398 = vmatpush.msra.mxu2 %v9523_v22 }
 0x55b   : > { %4417 = vmatpush.msrb.mxu3 %v9508_v21  ;;  %4444 = vmatpush.msra.mxu0 %v9529_v38 }
 0x55c   : > { %4372 = vmatpush.msra.mxu1 %v9514_v18  ;;  %4399 = vmatpush.msra.mxu2 %v9535_v31 }
 0x55d   : > { %4418 = vmatpush.msrb.mxu3 %v9520_v52  ;;  %4445 = vmatpush.msra.mxu0 %v9541_v42 }
 0x55e   : > { %4373 = vmatpush.msra.mxu1 %v9526_v34  ;;  %4400 = vmatpush.msra.mxu2 %v9547_v55 }
 0x55f   : > { %4419 = vmatpush.msrb.mxu3 %v9532_v27  ;;  %4446 = vmatpush.msra.mxu0 %v9553_v30 }
 0x560   : > { %4374 = vmatpush.msra.mxu1 %v9538_v33  ;;  %4401 = vmatpush.msra.mxu2 %v9559_v40 }
 0x561   : > { %4420 = vmatpush.msrb.mxu3 %v9544_v39  ;;  %4447 = vmatpush.msra.mxu0 %v9565_v16 }
 0x562   : > { %4375 = vmatpush.msra.mxu1 %v9550_v6  ;;  %4402 = vmatpush.msra.mxu2 %v9571_v37 }
 0x563   : > { %4421 = vmatpush.msrb.mxu3 %v9556_v5  ;;  %4448 = vmatpush.msra.mxu0 %v9577_v44 }
 0x564   : > { %4376 = vmatpush.msra.mxu1 %v9562_v36  ;;  %4403 = vmatpush.msra.mxu2 %v9583_v47 }
 0x565   : > { %4422 = vmatpush.msrb.mxu3 %v9568_v43  ;;  %4449 = vmatpush.msra.mxu0 %v9589_v45 }
 0x566   : > { %4377 = vmatpush.msra.mxu1 %v9574_v28  ;;  %4404 = vmatpush.msra.mxu2 %v9595_v60 }
 0x567   : > { %4423 = vmatpush.msrb.mxu3 %v9580_v19  ;;  %4450 = vmatpush.msra.mxu0 %v9601_v51 }
 0x568   : > { %4378 = vmatpush.msra.mxu1 %v9586_v49  ;;  %4405 = vmatpush.msra.mxu2 %v9607_v53 }
 0x569   : > { %4424 = vmatpush.msrb.mxu3 %v9592_v41  ;;  %4451 = vmatpush.msra.mxu0 %v9613_v54 }
 0x56a   : > { %4379 = vmatpush.msra.mxu1 %v9598_v46  ;;  %4406 = vmatpush.msra.mxu2 %v9619_v8 }
 0x56b   : > { %4425 = vmatpush.msrb.mxu3 %v9604_v35  ;;  %4452 = vmatpush.msra.mxu0 %v9625_v29 }
 0x56c   : > { %4380 = vmatpush.msra.mxu1 %v9610_v59  ;;  %4491 = vmatpush.msrb.mxu2 %v9448_v10 }
 0x56d   : > { %4426 = vmatpush.msrb.mxu3 %v9616_v61  ;;  %4537 = vmatpush.msrb.mxu0 %v9451_v0 }
 0x56e   : > { %4381 = vmatpush.msra.mxu1 %v9622_v9  ;;  %4492 = vmatpush.msrb.mxu2 %v9454_v3 }
 0x56f   : > { %4427 = vmatpush.msrb.mxu3 %v9628_v4  ;;  %4538 = vmatpush.msrb.mxu0 %v9458_v2 }
 0x570   : > { %4382 = vmatpush.msra.mxu1 %v9632_v11  ;;  %4493 = vmatpush.msrb.mxu2 %v9461_v50 }
 0x571   : > { %4428 = vmatpush.msrb.mxu3 %v9636_v7  ;;  %4539 = vmatpush.msrb.mxu0 %v9465_v13 }
 0x572   : > { %4383 = vmatpush.msra.mxu1 %v8254_v15  ;;  %4494 = vmatpush.msrb.mxu2 %v9475_v24 }
 0x573   : > { %4429 = vmatpush.msrb.mxu3 %v8255_v14  ;;  %4540 = vmatpush.msrb.mxu0 %v9478_v63 }
 0x574   : > { %4468 = vmatpush.msrb.mxu1 %v9468_v56  ;;  %4495 = vmatpush.msrb.mxu2 %v9487_v1 }
 0x575   : > { %4514 = vmatpush.msra.mxu3 %v9472_v23  ;;  %4541 = vmatpush.msrb.mxu0 %v9493_v12 }
 0x576   : > { %4469 = vmatpush.msrb.mxu1 %v9481_v25  ;;  %4496 = vmatpush.msrb.mxu2 %v9499_v57 }
 0x577   : > { %4515 = vmatpush.msra.mxu3 %v9484_v62  ;;  %4542 = vmatpush.msrb.mxu0 %v9505_v26 }
 0x578   : > { %4470 = vmatpush.msrb.mxu1 %v9490_v48  ;;  %4497 = vmatpush.msrb.mxu2 %v9511_v32 }
 0x579   : > { %4516 = vmatpush.msra.mxu3 %v9496_v20  ;;  %4543 = vmatpush.msrb.mxu0 %v9517_v17 }
 0x57a   : > { %4471 = vmatpush.msrb.mxu1 %v9502_v58  ;;  %4498 = vmatpush.msrb.mxu2 %v9523_v22 }
 0x57b   : > { %4517 = vmatpush.msra.mxu3 %v9508_v21  ;;  %4544 = vmatpush.msrb.mxu0 %v9529_v38 }
 0x57c   : > { %4472 = vmatpush.msrb.mxu1 %v9514_v18  ;;  %4499 = vmatpush.msrb.mxu2 %v9535_v31 }
 0x57d   : > { %4518 = vmatpush.msra.mxu3 %v9520_v52  ;;  %4545 = vmatpush.msrb.mxu0 %v9541_v42 }
 0x57e   : > { %4473 = vmatpush.msrb.mxu1 %v9526_v34  ;;  %4500 = vmatpush.msrb.mxu2 %v9547_v55 }
 0x57f   : > { %4519 = vmatpush.msra.mxu3 %v9532_v27  ;;  %4546 = vmatpush.msrb.mxu0 %v9553_v30 }
 0x580   : > { %4474 = vmatpush.msrb.mxu1 %v9538_v33  ;;  %4501 = vmatpush.msrb.mxu2 %v9559_v40 }
 0x581   : > { %4520 = vmatpush.msra.mxu3 %v9544_v39  ;;  %4547 = vmatpush.msrb.mxu0 %v9565_v16 }
 0x582   : > { %4475 = vmatpush.msrb.mxu1 %v9550_v6  ;;  %4502 = vmatpush.msrb.mxu2 %v9571_v37 }
 0x583   : > { %4521 = vmatpush.msra.mxu3 %v9556_v5  ;;  %4548 = vmatpush.msrb.mxu0 %v9577_v44 }
 0x584   : > { %4476 = vmatpush.msrb.mxu1 %v9562_v36  ;;  %4503 = vmatpush.msrb.mxu2 %v9583_v47 }
 0x585   : > { %4522 = vmatpush.msra.mxu3 %v9568_v43  ;;  %4549 = vmatpush.msrb.mxu0 %v9589_v45 }
 0x586   : > { %4477 = vmatpush.msrb.mxu1 %v9574_v28  ;;  %4504 = vmatpush.msrb.mxu2 %v9595_v60 }
 0x587   : > { %4523 = vmatpush.msra.mxu3 %v9580_v19  ;;  %4550 = vmatpush.msrb.mxu0 %v9601_v51  ;;  %v7335_v51 = vld [vmem:[#allocation19 + $0x150] sm:$0xf] }
 0x588   : > { %4478 = vmatpush.msrb.mxu1 %v9586_v49  ;;  %4505 = vmatpush.msrb.mxu2 %v9607_v53  ;;  %v7965_v53 = vld [vmem:[#allocation19 + $0x154] sm:$0xf] }
 0x589   : > { %4524 = vmatpush.msra.mxu3 %v9592_v41  ;;  %4551 = vmatpush.msrb.mxu0 %v9613_v54  ;;  %v7337_v54 = vld [vmem:[#allocation19 + $0x168] sm:$0xf0] }
 0x58a   : > { %4479 = vmatpush.msrb.mxu1 %v9598_v46  ;;  %4506 = vmatpush.msrb.mxu2 %v9619_v8  ;;  %v7962_v8 = vld [vmem:[#allocation19 + $0x134] sm:$0xf0] }
 0x58b   : > { %4525 = vmatpush.msra.mxu3 %v9604_v35  ;;  %4552 = vmatpush.msrb.mxu0 %v9625_v29  ;;  %v7968_v35 = vld [vmem:[#allocation19 + $0x164] sm:$0xf0]  ;;  %v7959_v29 = vld [vmem:[#allocation19 + $0x124] sm:$0xf] }
 0x58c   : > { %4480 = vmatpush.msrb.mxu1 %v9610_v59  ;;  %v7336_v59 = vor.u32 %v7968_v35, %v7335_v51  ;;  %v7941_v51 = vld [vmem:[#allocation19 + $0x94] sm:$0xf] }
 0x58d   : > { %4526 = vmatpush.msra.mxu3 %v9616_v61  ;;  %v7311_v61 = vld [vmem:[#allocation19 + $0x120] sm:$0xf] }
 0x58e   : > { %4481 = vmatpush.msrb.mxu1 %v9622_v9  ;;  %v7340_v9 = vor.u32 %v7965_v53, %v7337_v54  ;;  %v7241_v53 = vld [vmem:[#allocation19 + $0xa8] sm:$0xf0]  ;;  %v7455_v54 = vld [vmem:[#allocation19 + $0x240] sm:$0xf] }
 0x58f   : > { %4527 = vmatpush.msra.mxu3 %v9628_v4  ;;  %v7313_v4 = vld [vmem:[#allocation19 + $0x138] sm:$0xf0] }
 0x590   : > { %4482 = vmatpush.msrb.mxu1 %v9632_v11  ;;  %v7527_v11 = vld [vmem:[#allocation19 + $0x2d0] sm:$0xf] }
 0x591   : > { %4528 = vmatpush.msra.mxu3 %v9636_v7  ;;  %v7312_v7 = vor.u32 %v7962_v8, %v7311_v61  ;;  %v7998_v61 = vld [vmem:[#allocation19 + $0x254] sm:$0xf0]  ;;  %v7995_v8 = vld [vmem:[#allocation19 + $0x244] sm:$0xf] }
 0x592   : > { %4483 = vmatpush.msrb.mxu1 %v8254_v15  ;;  %v8016_v15 = vld [vmem:[#allocation19 + $0x2e4] sm:$0xf0] }
 0x593   : > { %4529 = vmatpush.msra.mxu3 %v8255_v14  ;;  %v4356_v14 = vld [vmem:[#allocation14] sm:$0x3] }
 0x594   : > { %v4358_v17 = vperm.slane %v4356_v14, 0  ;;  %v4359_v30 = vperm.slane %v4356_v14, 1 }
 0x5a7   : > { %v3870_v10 = vpop.f32.mrf.mxu0 }
 0x5ad   : > { %v3842_v0 = vpop.f32.mrf.mxu2 }
 0x5af   : > { %v3828_v3 = vpop.f32.mrf.mxu1  ;;  %v3872_v13 = vpop.f32.mrf.mxu0 }
 0x5b0   : > { %v3843_v12 = vadd.f32 %v3842_v0, %v3828_v3  ;;  %v7529_v0 = vld [vmem:[#allocation19 + $0x2e8] sm:$0xf0]  ;;  %v7316_v3 = vor.u32 %v7959_v29, %v7313_v4  ;;  %v7457_v29 = vld [vmem:[#allocation19 + $0x258] sm:$0xf0] }
 0x5b1   : > { %v7460_v4 = vor.u32 %v7995_v8, %v7457_v29  ;;  %v7960_v29 = vld [vmem:[#allocation19 + $0x12c] sm:$0xf] }
 0x5b5   : > { %v3844_v2 = vpop.f32.mrf.mxu2  ;;  %v3856_v50 = vpop.f32.mrf.mxu3 }
 0x5b6   : > { %v3871_v52 = vadd.f32 %v3870_v10, %v3856_v50  ;;  %v8013_v10 = vld [vmem:[#allocation19 + $0x2d4] sm:$0xf] }
 0x5b7   : > { %v3830_v56 = vpop.f32.mrf.mxu1  ;;  %v4086_v25 = vpop.f32.mrf.mxu0  ;;  %v7532_v50 = vor.u32 %v8013_v10, %v7529_v0 }
 0x5b8   : > { %v3845_v22 = vadd.f32 %v3844_v2, %v3830_v56  ;;  %v7528_v2 = vor.u32 %v8016_v15, %v7527_v11  ;;  %v7956_v56 = vld [vmem:[#allocation19 + $0x104] sm:$0xf0]  ;;  %v7215_v11 = vld [vmem:[#allocation19 + $0x60] sm:$0xf]  ;;  %v7935_v15 = vld [vmem:[#allocation19 + $0x64] sm:$0xf] }
 0x5bd   : > { %v3858_v23 = vpop.f32.mrf.mxu3  ;;  %v4058_v24 = vpop.f32.mrf.mxu2 }
 0x5be   : > { %v3873_v16 = vadd.f32 %v3872_v13, %v3858_v23  ;;  %v7287_v13 = vld [vmem:[#allocation19 + $0xf0] sm:$0xf]  ;;  %v7953_v23 = vld [vmem:[#allocation19 + $0xf4] sm:$0xf] }
 0x5bf   : > { %v4044_v63 = vpop.f32.mrf.mxu1  ;;  %v4088_v20 = vpop.f32.mrf.mxu0 }
 0x5c0   : > { %v4045_v57 = vadd.f32 %v4044_v63, %v3843_v12  ;;  %v7288_v63 = vor.u32 %v7956_v56, %v7287_v13  ;;  %v7431_v56 = vld [vmem:[#allocation19 + $0x210] sm:$0xf] }
 0x5c2   : > { %v4059_v32 = vadd.f32 %v4058_v24, %v4045_v57  ;;  %v7289_v24 = vld [vmem:[#allocation19 + $0x108] sm:$0xf0] }
 0x5c5   : > { %v4060_v62 = vpop.f32.mrf.mxu2  ;;  %v4072_v1 = vpop.f32.mrf.mxu3 }
 0x5c6   : > { %v4073_v38 = vadd.f32 %v4072_v1, %v3871_v52 }
 0x5c7   : > { %v4046_v48 = vpop.f32.mrf.mxu1 }
 0x5c8   : > { %v4047_v27 = vadd.f32 %v4046_v48, %v3845_v22  ;;  %v4347_v31 = vpop.f32.mrf.mxu0  ;;  %v4087_v39 = vadd.f32 %v4086_v25, %v4073_v38  ;;  %v7292_v25 = vor.u32 %v7953_v23, %v7289_v24  ;;  %v7992_v23 = vld [vmem:[#allocation19 + $0x224] sm:$0xf0] }
 0x5c9   : > { %v7432_v24 = vor.u32 %v7992_v23, %v7431_v56  ;;  %v7971_v56 = vld [vmem:[#allocation19 + $0x184] sm:$0xf]  ;;  %v7361_v23 = vld [vmem:[#allocation19 + $0x198] sm:$0xf0] }
 0x5ca   : > { %v4061_v40 = vadd.f32 %v4060_v62, %v4047_v27 }
 0x5cd   : > { %v4074_v58 = vpop.f32.mrf.mxu3  ;;  %v4319_v26 = vpop.f32.mrf.mxu2 }
 0x5ce   : > { %v4075_v28 = vadd.f32 %v4074_v58, %v3873_v16 }
 0x5d0   : > { %v4305_v21 = vpop.f32.mrf.mxu1  ;;  %v4349_v47 = vpop.f32.mrf.mxu0  ;;  %v4089_v45 = vadd.f32 %v4088_v20, %v4075_v28  ;;  %v7479_v28 = vld [vmem:[#allocation19 + $0x270] sm:$0xf] }
 0x5d1   : > { %v4320_v18 = vadd.f32 %v4319_v26, %v4305_v21 }
 0x5d3   : > { %v4352_v34 = vadd.f32 %v4320_v18, %v4059_v32 }
 0x5d5   : > { %v9699_v33 = vadd.f32 %v4358_v17, %v4352_v34  ;;  %v4321_v55 = vpop.f32.mrf.mxu2 }
 0x5d7   : > { %v4333_v42 = vpop.f32.mrf.mxu3  ;;  %4384 = vmatmul.f32.vlgmr.msra.gmra.mxu1 %v9699_v33  ;;  %4430 = vmatmul.f32.vlgmr.msrb.gmra.mxu3 %v9699_v33 }
 0x5d8   : > { %v4348_v6 = vadd.f32 %v4347_v31, %v4333_v42  ;;  %v4307_v5 = vpop.f32.mrf.mxu1  ;;  %5230 = vmatpush.bf16.msra.mxu1 %v7336_v59  ;;  %5258 = vmatpush.bf16.msrb.mxu3 %v7340_v9  ;;  %v7503_v42 = vld [vmem:[#allocation19 + $0x2a0] sm:$0xf]  ;;  %v7244_v59 = vor.u32 %v7941_v51, %v7241_v53  ;;  %v7456_v9 = vor.u32 %v7998_v61, %v7455_v54  ;;  %v7385_v53 = vld [vmem:[#allocation19 + $0x1c8] sm:$0xf0] }
 0x5d9   : > { %v4322_v36 = vadd.f32 %v4321_v55, %v4307_v5  ;;  %v8007_v55 = vld [vmem:[#allocation19 + $0x2a4] sm:$0xf]  ;;  %v7263_v5 = vld [vmem:[#allocation19 + $0xc0] sm:$0xf] }
 0x5da   : > { %v4353_v43 = vadd.f32 %v4348_v6, %v4087_v39  ;;  %v8010_v39 = vld [vmem:[#allocation19 + $0x2b4] sm:$0xf0] }
 0x5db   : > { %v4354_v37 = vadd.f32 %v4322_v36, %v4061_v40  ;;  %v7504_v6 = vor.u32 %v8010_v39, %v7503_v42  ;;  %v7950_v40 = vld [vmem:[#allocation19 + $0xd4] sm:$0xf0]  ;;  %v7167_v39 = vld [vmem:[#allocation19] sm:$0xf] }
 0x5dc   : > { %v4363_v44 = vadd.f32 %v4359_v30, %v4353_v43  ;;  %5231 = vmatpush.bf16.msra.mxu1 %v7312_v7  ;;  %5259 = vmatpush.bf16.msrb.mxu3 %v7316_v3  ;;  %v7264_v16 = vor.u32 %v7950_v40, %v7263_v5  ;;  %v7947_v43 = vld [vmem:[#allocation19 + $0xc4] sm:$0xf]  ;;  %v7938_v7 = vld [vmem:[#allocation19 + $0x74] sm:$0xf0]  ;;  %v7169_v40 = vld [vmem:[#allocation19 + $0x18] sm:$0xf0] }
 0x5dd   : > { %v9703_v19 = vadd.f32 %v4358_v17, %v4354_v37  ;;  %v7265_v37 = vld [vmem:[#allocation19 + $0xd8] sm:$0xf0]  ;;  %v7216_v3 = vor.u32 %v7938_v7, %v7215_v11  ;;  %v7923_v5 = vld [vmem:[#allocation19 + $0x4] sm:$0xf] }
 0x5de   : > { %4407 = vmatmul.f32.vlgmr.msra.gmra.mxu2 %v4363_v44  ;;  %4453 = vmatmul.f32.vlgmr.msra.gmra.mxu0 %v4363_v44  ;;  %v9737_v11 = vld [vmem:[#allocation16] sm:$0x3] }
 0x5df   : > { %v4335_v49 = vpop.f32.mrf.mxu3  ;;  %4387 = vmatmul.f32.gmra.mxu1 %v9703_v19  ;;  %4433 = vmatmul.f32.gmra.mxu3 %v9703_v19 }
 0x5e0   : > { %v4350_v41 = vadd.f32 %v4349_v47, %v4335_v49  ;;  %5244 = vmatpush.bf16.msra.mxu2 %v7528_v2  ;;  %5272 = vmatpush.bf16.msra.mxu0 %v7532_v50  ;;  %v8001_v47 = vld [vmem:[#allocation19 + $0x274] sm:$0xf]  ;;  %v7481_v49 = vld [vmem:[#allocation19 + $0x288] sm:$0xf0]  ;;  %v7217_v2 = vld [vmem:[#allocation19 + $0x78] sm:$0xf0] }
 0x5e1   : > { %5232 = vmatpush.bf16.msra.mxu1 %v7288_v63  ;;  %5260 = vmatpush.bf16.msrb.mxu3 %v7292_v25  ;;  %v7220_v13 = vor.u32 %v7935_v15, %v7217_v2  ;;  %v7989_v63 = vld [vmem:[#allocation19 + $0x214] sm:$0xf]  ;;  %v7433_v25 = vld [vmem:[#allocation19 + $0x228] sm:$0xf0] }
 0x5e2   : > { %v4355_v60 = vadd.f32 %v4350_v41, %v4089_v45  ;;  %v7484_v41 = vor.u32 %v8001_v47, %v7481_v49  ;;  %v7345_v49 = vld [vmem:[#allocation19 + $0x170] sm:$0xf0] }
 0x5e4   : > { %v4365_v46 = vadd.f32 %v4359_v30, %v4355_v60  ;;  %v7505_v30 = vld [vmem:[#allocation19 + $0x2b8] sm:$0xf0]  ;;  %5245 = vmatpush.bf16.msra.mxu2 %v7504_v6  ;;  %v7239_v60 = vld [vmem:[#allocation19 + $0x90] sm:$0xf] }
 0x5e5   : > { %v7508_v36 = vor.u32 %v8007_v55, %v7505_v30  ;;  %5233 = vmatpush.bf16.msra.mxu1 %v7264_v16  ;;  %v7926_v55 = vld [vmem:[#allocation19 + $0x14] sm:$0xf0] }
 0x5e6   : > { %4410 = vmatmul.f32.gmra.mxu2 %v4365_v46  ;;  %4456 = vmatmul.f32.gmra.mxu0 %v4365_v46  ;;  %v7168_v30 = vor.u32 %v7926_v55, %v7167_v39  ;;  %v7511_v55 = vld [vmem:[#allocation19 + $0x2a8] sm:$0xf] }
 0x5e7   : > { %5273 = vmatpush.bf16.msra.mxu0 %v7508_v36  ;;  %v7343_v36 = vld [vmem:[#allocation19 + $0x158] sm:$0xf] }
 0x5eb   : > { %5274 = vmatpush.bf16.msra.mxu0 %v7484_v41  ;;  %v7980_v41 = vld [vmem:[#allocation19 + $0x1c4] sm:$0xf0] }
 0x5ef   : > { %5275 = vmatpush.bf16.msra.mxu0 %v7460_v4  ;;  %v7321_v4 = vld [vmem:[#allocation19 + $0x140] sm:$0xf0] }
 0x5f0   : > { %v7324_v15 = vor.u32 %v7960_v29, %v7321_v4  ;;  %v8005_v29 = vld [vmem:[#allocation19 + $0x28c] sm:$0xf0]  ;;  %v8002_v4 = vld [vmem:[#allocation19 + $0x27c] sm:$0xf] }
 0x654   : > { %v4385_v20 = vpop.f32.mrf.mxu1 }
 0x65a   : > { %v4431_v62 = vpop.f32.mrf.mxu3 }
 0x65b   : > { %v4454_v1 = vpop.f32.mrf.mxu0 }
 0x65c   : > { %v4455_v48 = vadd.f32 %v4454_v1, %v4431_v62  ;;  %v4388_v34 = vpop.f32.mrf.mxu1  ;;  %v7436_v1 = vor.u32 %v7989_v63, %v7433_v25  ;;  %v7364_v25 = vor.u32 %v7971_v56, %v7361_v23  ;;  %v7942_v23 = vld [vmem:[#allocation19 + $0x9c] sm:$0xf] }
 0x65e   : > { %v9707_v12 = vsub.f32 %v4363_v44, %v4455_v48  ;;  %v7268_v44 = vor.u32 %v7947_v43, %v7265_v37  ;;  %v7191_v48 = vld [vmem:[#allocation19 + $0x30] sm:$0xf]  ;;  %5276 = vmatpush.bf16.msra.mxu0 %v7436_v1  ;;  %v7172_v37 = vor.u32 %v7923_v5, %v7169_v40 }
 0x65f   : > { %v8017_v1 = vld [vmem:[#allocation19 + $0x2ec] sm:$0xf0] }
 0x660   : > { %v4465_v57 = vmul.f32 %v9707_v12, %v9707_v12  ;;  %5261 = vmatpush.bf16.msrb.mxu3 %v7268_v44  ;;  %v7966_v44 = vld [vmem:[#allocation19 + $0x15c] sm:$0xf] }
 0x661   : > { %v4408_v58 = vpop.f32.mrf.mxu2  ;;  %v7348_v51 = vor.u32 %v7966_v44, %v7345_v49  ;;  %v7951_v49 = vld [vmem:[#allocation19 + $0xdc] sm:$0xf0] }
 0x662   : > { %v4409_v26 = vadd.f32 %v4408_v58, %v4385_v20  ;;  %4507 = vmatmul.f32.vlgmr.msrb.gmra.mxu2 %v4465_v57  ;;  %4553 = vmatmul.f32.vlgmr.msrb.gmra.mxu0 %v4465_v57  ;;  %v4434_v14 = vpop.f32.mrf.mxu3  ;;  %v7932_v20 = vld [vmem:[#allocation19 + $0x44] sm:$0xf0]  ;;  %v7929_v57 = vld [vmem:[#allocation19 + $0x34] sm:$0xf] }
 0x663   : > { %v4457_v21 = vpop.f32.mrf.mxu0  ;;  %v7192_v58 = vor.u32 %v7932_v20, %v7191_v48  ;;  %v8014_v48 = vld [vmem:[#allocation19 + $0x2dc] sm:$0xf] }
 0x664   : > { %v9712_v32 = vsub.f32 %v9699_v33, %v4409_v26  ;;  %v4458_v18 = vadd.f32 %v4457_v21, %v4434_v14  ;;  %5262 = vmatpush.bf16.msrb.mxu3 %v7244_v59  ;;  %v7193_v26 = vld [vmem:[#allocation19 + $0x48] sm:$0xf0]  ;;  %v7407_v21 = vld [vmem:[#allocation19 + $0x1e0] sm:$0xf]  ;;  %v7319_v59 = vld [vmem:[#allocation19 + $0x128] sm:$0xf] }
 0x665   : > { %v7196_v14 = vor.u32 %v7929_v57, %v7193_v26  ;;  %v4605_v57 = vperm.slane %v9737_v11, 0 }
 0x666   : > { %v4464_v17 = vmul.f32 %v9712_v32, %v9712_v32  ;;  %v9716_v52 = vsub.f32 %v4365_v46, %v4458_v18  ;;  %v7944_v46 = vld [vmem:[#allocation19 + $0xa4] sm:$0xf0]  ;;  %v7986_v18 = vld [vmem:[#allocation19 + $0x1f4] sm:$0xf0] }
 0x667   : > { %v7240_v35 = vor.u32 %v7944_v46, %v7239_v60 }
 0x668   : > { %4484 = vmatmul.f32.vlgmr.msrb.gmra.mxu1 %v4464_v17  ;;  %4530 = vmatmul.f32.vlgmr.msra.gmra.mxu3 %v4464_v17  ;;  %v4467_v22 = vmul.f32 %v9716_v52, %v9716_v52  ;;  %v7983_v17 = vld [vmem:[#allocation19 + $0x1e4] sm:$0xf] }
 0x669   : > { %v4411_v38 = vpop.f32.mrf.mxu2  ;;  %5234 = vmatpush.bf16.msra.mxu1 %v7240_v35  ;;  %5263 = vmatpush.bf16.msrb.mxu3 %v7220_v13  ;;  %v7977_v35 = vld [vmem:[#allocation19 + $0x1b4] sm:$0xf] }
 0x66a   : > { %v4412_v27 = vadd.f32 %v4411_v38, %v4388_v34  ;;  %4510 = vmatmul.f32.gmra.mxu2 %v4467_v22  ;;  %4556 = vmatmul.f32.gmra.mxu0 %v4467_v22  ;;  %v7408_v38 = vor.u32 %v7986_v18, %v7407_v21  ;;  %v7388_v8 = vor.u32 %v7977_v35, %v7385_v53  ;;  %v7295_v21 = vld [vmem:[#allocation19 + $0xf8] sm:$0xf] }
 0x66c   : > { %v9721_v31 = vsub.f32 %v9703_v19, %v4412_v27  ;;  %v8004_v19 = vld [vmem:[#allocation19 + $0x284] sm:$0xf0]  ;;  %v7409_v27 = vld [vmem:[#allocation19 + $0x1f8] sm:$0xf0] }
 0x66d   : > { %v7480_v45 = vor.u32 %v8004_v19, %v7479_v28  ;;  %5235 = vmatpush.bf16.msra.mxu1 %v7216_v3  ;;  %5264 = vmatpush.bf16.msrb.mxu3 %v7196_v14  ;;  %v7412_v42 = vor.u32 %v7983_v17, %v7409_v27  ;;  %v7969_v28 = vld [vmem:[#allocation19 + $0x16c] sm:$0xf0]  ;;  %v9740_v3 = vld [vmem:[#allocation17] sm:$0x3]  ;;  %v7537_v14 = vld [vmem:[#allocation19 + $0x2f0] sm:$0xf0] }
 0x66e   : > { %v4466_v33 = vmul.f32 %v9721_v31, %v9721_v31  ;;  %v7344_v47 = vor.u32 %v7969_v28, %v7343_v36  ;;  %v7297_v27 = vld [vmem:[#allocation19 + $0x110] sm:$0xf0]  ;;  %v4614_v5 = vperm.slane %v9740_v3, 0 }
 0x66f   : > { %5246 = vmatpush.bf16.msra.mxu2 %v7480_v45  ;;  %5277 = vmatpush.bf16.msra.mxu0 %v7412_v42  ;;  %v7383_v45 = vld [vmem:[#allocation19 + $0x1b0] sm:$0xf] }
 0x670   : > { %4487 = vmatmul.f32.gmra.mxu1 %v4466_v33  ;;  %4533 = vmatmul.f32.gmra.mxu3 %v4466_v33  ;;  %v7384_v61 = vor.u32 %v7980_v41, %v7383_v45  ;;  %v7948_v45 = vld [vmem:[#allocation19 + $0xcc] sm:$0xf]  ;;  %v4606_v41 = vperm.slane %v9737_v11, 1  ;;  %v7975_v11 = vld [vmem:[#allocation19 + $0x19c] sm:$0xf0] }
 0x671   : > { %5236 = vmatpush.bf16.msra.mxu1 %v7192_v58  ;;  %5265 = vmatpush.bf16.msrb.mxu3 %v7172_v37  ;;  %v7513_v37 = vld [vmem:[#allocation19 + $0x2c0] sm:$0xf0] }
 0x673   : > { %5247 = vmatpush.bf16.msra.mxu2 %v7456_v9  ;;  %v7963_v9 = vld [vmem:[#allocation19 + $0x13c] sm:$0xf0]  ;;  %5278 = vmatpush.bf16.msra.mxu0 %v7388_v8 }
 0x674   : > { %v7320_v7 = vor.u32 %v7963_v9, %v7319_v59  ;;  %v7487_v59 = vld [vmem:[#allocation19 + $0x278] sm:$0xf] }
 0x675   : > { %5237 = vmatpush.bf16.msra.mxu1 %v7168_v30  ;;  %5314 = vmatpush.bf16.msra.mxu3 %v7348_v51  ;;  %v4615_v51 = vperm.slane %v9740_v3, 1 }
 0x677   : > { %5248 = vmatpush.bf16.msra.mxu2 %v7432_v24  ;;  %v7535_v24 = vld [vmem:[#allocation19 + $0x2d8] sm:$0xf]  ;;  %5279 = vmatpush.bf16.msra.mxu0 %v7364_v25 }
 0x678   : > { %v7536_v26 = vor.u32 %v8017_v1, %v7535_v24  ;;  %v7249_v24 = vld [vmem:[#allocation19 + $0xb0] sm:$0xf0]  ;;  %v7463_v1 = vld [vmem:[#allocation19 + $0x248] sm:$0xf] }
 0x679   : > { %5286 = vmatpush.bf16.msrb.mxu1 %v7344_v47  ;;  %5315 = vmatpush.bf16.msra.mxu3 %v7324_v15  ;;  %v7271_v47 = vld [vmem:[#allocation19 + $0xc8] sm:$0xf]  ;;  %v7488_v15 = vor.u32 %v8005_v29, %v7487_v59  ;;  %v7252_v25 = vor.u32 %v7942_v23, %v7249_v24  ;;  %v7199_v59 = vld [vmem:[#allocation19 + $0x38] sm:$0xf]  ;;  %v7924_v23 = vld [vmem:[#allocation19 + $0xc] sm:$0xf] }
 0x67a   : > { %v7272_v53 = vor.u32 %v7951_v49, %v7271_v47  ;;  %v7990_v47 = vld [vmem:[#allocation19 + $0x21c] sm:$0xf]  ;;  %v7441_v49 = vld [vmem:[#allocation19 + $0x230] sm:$0xf0]  ;;  %v7415_v29 = vld [vmem:[#allocation19 + $0x1e8] sm:$0xf] }
 0x67b   : > { %5249 = vmatpush.bf16.msra.mxu2 %v7408_v38  ;;  %v7954_v38 = vld [vmem:[#allocation19 + $0xfc] sm:$0xf]  ;;  %v7177_v24 = vld [vmem:[#allocation19 + $0x20] sm:$0xf0] }
 0x67c   : > { %v7300_v40 = vor.u32 %v7954_v38, %v7297_v27 }
 0x67d   : > { %5287 = vmatpush.bf16.msrb.mxu1 %v7320_v7 }
 0x67e   : > { %5316 = vmatpush.bf16.msra.mxu3 %v7300_v40 }
 0x67f   : > { %5250 = vmatpush.bf16.msra.mxu2 %v7384_v61 }
 0x6df   : > { %v4554_v22 = vpop.f32.mrf.mxu0 }
 0x6e5   : > { %v4485_v10 = vpop.f32.mrf.mxu1  ;;  %v4508_v0 = vpop.f32.mrf.mxu2 }
 0x6e6   : > { %v4486_v50 = vadd.f32 1e-05, %v4485_v10  ;;  %v7359_v10 = vld [vmem:[#allocation19 + $0x180] sm:$0xf] }
 0x6e7   : > { %v4557_v58 = vpop.f32.mrf.mxu0 }
 0x6e8   : > { %v9725_v62 = vadd.f32 %v4508_v0, %v4486_v50  ;;  %v7974_v0 = vld [vmem:[#allocation19 + $0x194] sm:$0xf0] }
 0x6e9   : > { %v7360_v13 = vor.u32 %v7974_v0, %v7359_v10  ;;  %v7489_v10 = vld [vmem:[#allocation19 + $0x290] sm:$0xf0]  ;;  %v7247_v0 = vld [vmem:[#allocation19 + $0x98] sm:$0xf] }
 0x6ea   : > { %8183 = vrsqrt.f32 %v9725_v62  ;;  %vm4566_vm1 = vweird.f32 %v9725_v62 }
 0x6eb   : > { %v4531_v34 = vpop.f32.mrf.mxu3  ;;  %5251 = vmatpush.bf16.msra.mxu2 %v7360_v13 }
 0x6ec   : > { %v4532_v33 = vadd.f32 1e-05, %v4531_v34  ;;  %v7957_v34 = vld [vmem:[#allocation19 + $0x10c] sm:$0xf0] }
 0x6ed   : > { %v4488_v6 = vpop.f32.mrf.mxu1  ;;  %v4511_v19 = vpop.f32.mrf.mxu2  ;;  %v7296_v39 = vor.u32 %v7957_v34, %v7295_v21  ;;  %v7465_v21 = vld [vmem:[#allocation19 + $0x260] sm:$0xf0] }
 0x6ee   : > { %v9728_v16 = vadd.f32 %v4554_v22, %v4532_v33  ;;  %v4489_v43 = vadd.f32 1e-05, %v4488_v6  ;;  %v7540_v22 = vor.u32 %v8014_v48, %v7537_v14  ;;  %v8011_v6 = vld [vmem:[#allocation19 + $0x2bc] sm:$0xf0] }
 0x6ef   : > { %5300 = vmatpush.bf16.msrb.mxu2 %v7536_v26  ;;  %v7512_v36 = vor.u32 %v8011_v6, %v7511_v55  ;;  %5288 = vmatpush.bf16.msrb.mxu1 %v7296_v39  ;;  %v7999_v48 = vld [vmem:[#allocation19 + $0x25c] sm:$0xf0] }
 0x6f0   : > { %v9730_v60 = vpop.eup %8183  ;;  %8185 = vrsqrt.f32 %v9728_v16  ;;  %v9733_v46 = vadd.f32 %v4511_v19, %v4489_v43  ;;  %5328 = vmatpush.bf16.msrb.mxu0 %v7540_v22  ;;  %v8008_v43 = vld [vmem:[#allocation19 + $0x2ac] sm:$0xf]  ;;  %vm4576_vm11 = vweird.f32 %v9728_v16  ;;  %v7223_v22 = vld [vmem:[#allocation19 + $0x68] sm:$0xf]  ;;  %v7464_v38 = vor.u32 %v7999_v48, %v7463_v1  ;;  %v7970_v48 = vld [vmem:[#allocation19 + $0x174] sm:$0xf0] }
 0x6f1   : > { %v4561_v54 = vmul.f32 %v9730_v60, %v9725_v62  ;;  %vm4567_vm0 = vweird.f32 %v9730_v60  ;;  %v7516_v35 = vor.u32 %v8008_v43, %v7513_v37  ;;  %v7273_v62 = vld [vmem:[#allocation19 + $0xe0] sm:$0xf0]  ;;  %v7439_v43 = vld [vmem:[#allocation19 + $0x218] sm:$0xf]  ;;  %v7993_v37 = vld [vmem:[#allocation19 + $0x22c] sm:$0xf0] }
 0x6f2   : > { %8187 = vrsqrt.f32 %v9733_v46  ;;  %vm4568_vm2 = vmor %vm4566_vm1, %vm4567_vm0  ;;  %v7276_v9 = vor.u32 %v7948_v45, %v7273_v62  ;;  %vm4586_vm14 = vweird.f32 %v9733_v46  ;;  %v7444_v62 = vor.u32 %v7990_v47, %v7441_v49  ;;  %v7543_v47 = vld [vmem:[#allocation19 + $0x2e0] sm:$0xf]  ;;  %v8018_v49 = vld [vmem:[#allocation19 + $0x2f4] sm:$0xf0] }
 0x6f3   : > { %v4562_v2 = vmul.f32 %v9730_v60, %v4561_v54  ;;  %v4534_v50 = vpop.f32.mrf.mxu3  ;;  %5301 = vmatpush.bf16.msrb.mxu2 %v7512_v36  ;;  %5289 = vmatpush.bf16.msrb.mxu1 %v7272_v53  ;;  %v7225_v36 = vld [vmem:[#allocation19 + $0x80] sm:$0xf0]  ;;  %v7440_v53 = vor.u32 %v7993_v37, %v7439_v43  ;;  %v7329_v37 = vld [vmem:[#allocation19 + $0x148] sm:$0xf0] }
 0x6f4   : > { %v4535_v63 = vadd.f32 1e-05, %v4534_v50  ;;  %5329 = vmatpush.bf16.msrb.mxu0 %v7516_v35  ;;  %5317 = vmatpush.bf16.msra.mxu3 %v7276_v9  ;;  %v7201_v9 = vld [vmem:[#allocation19 + $0x50] sm:$0xf0] }
 0x6f5   : > { %v4563_v20 = vmul.f32 0.5, %v4562_v2  ;;  %v7945_v2 = vld [vmem:[#allocation19 + $0xac] sm:$0xf0] }
 0x6f6   : > { %v9744_v18 = vpop.eup %8185  ;;  %v9746_v17 = vadd.f32 %v4557_v58, %v4535_v63  ;;  %v7248_v56 = vor.u32 %v7945_v2, %v7247_v0  ;;  %v7417_v2 = vld [vmem:[#allocation19 + $0x200] sm:$0xf0] }
 0x6f7   : > { %v4564_v33 = vsub.f32 1.5, %v4563_v20  ;;  %v4571_v42 = vmul.f32 %v9744_v18, %v9728_v16  ;;  %vm4577_vm10 = vweird.f32 %v9744_v18  ;;  %v7996_v20 = vld [vmem:[#allocation19 + $0x24c] sm:$0xf]  ;;  %5302 = vmatpush.bf16.msrb.mxu2 %v7488_v15  ;;  %v7978_v16 = vld [vmem:[#allocation19 + $0x1bc] sm:$0xf] }
 0x6f8   : > { %v9751_v30 = vpop.eup %8187  ;;  %8189 = vrsqrt.f32 %v9746_v17  ;;  %vm9782_vm13 = vmor %vm4576_vm11, %vm4577_vm10  ;;  %v7468_v27 = vor.u32 %v7996_v20, %v7465_v21  ;;  %5290 = vmatpush.bf16.msrb.mxu1 %v7248_v56  ;;  %5318 = vmatpush.bf16.msra.mxu3 %v7252_v25  ;;  %v7984_v15 = vld [vmem:[#allocation19 + $0x1ec] sm:$0xf]  ;;  %vm4596_vm5 = vweird.f32 %v9746_v17  ;;  %v7967_v20 = vld [vmem:[#allocation19 + $0x164] sm:$0xf] }
 0x6f9   : > { %v4565_v28 = vmul.f32 %v9730_v60, %v4564_v33  ;;  %v4572_v44 = vmul.f32 %v9744_v18, %v4571_v42  ;;  %v4581_v19 = vmul.f32 %v9751_v30, %v9733_v46  ;;  %vm4587_vm12 = vweird.f32 %v9751_v30  ;;  %v7939_v33 = vld [vmem:[#allocation19 + $0x7c] sm:$0xf0]  ;;  %v7936_v42 = vld [vmem:[#allocation19 + $0x6c] sm:$0xf]  ;;  %v7930_v46 = vld [vmem:[#allocation19 + $0x3c] sm:$0xf] }
 0x6fa   : > { %v7224_v40 = vor.u32 %v7939_v33, %v7223_v22  ;;  %vm4588_vm3 = vmor %vm4586_vm14, %vm4587_vm12  ;;  %v7981_v21 = vld [vmem:[#allocation19 + $0x1cc] sm:$0xf0] }
 0x6fb   : > { %v4569_v54 = vsel %vm4568_vm2, %v9730_v60, %v4565_v28  ;;  %v4573_v61 = vmul.f32 0.5, %v4572_v44  ;;  %v4582_v8 = vmul.f32 %v9751_v30, %v4581_v19  ;;  %v7492_v60 = vor.u32 %v8002_v4, %v7489_v10  ;;  %v9923_v28 = vld [vmem:[#allocation33_spill] sm:$0xff]  ;;  %5303 = vmatpush.bf16.msrb.mxu2 %v7464_v38 }
 0x6fc   : > { %v4600_v7 = vmul.f32 %v4569_v54, %v9712_v32  ;;  %v7933_v54 = vld [vmem:[#allocation19 + $0x4c] sm:$0xf0]  ;;  %5291 = vmatpush.bf16.msrb.mxu1 %v7224_v40  ;;  %v7393_v38 = vld [vmem:[#allocation19 + $0x1d0] sm:$0xf0] }
 0x6fd   : > { %v4574_v50 = vsub.f32 1.5, %v4573_v61  ;;  %v4583_v13 = vmul.f32 0.5, %v4582_v8  ;;  %5330 = vmatpush.bf16.msrb.mxu0 %v7492_v60  ;;  %v7327_v33 = vld [vmem:[#allocation19 + $0x130] sm:$0xf]  ;;  %v7961_v40 = vld [vmem:[#allocation19 + $0x134] sm:$0xf]  ;;  %v7396_v43 = vor.u32 %v7978_v16, %v7393_v38 }
 0x6fe   : > { %v9768_v63 = vpop.eup %8189  ;;  %v4609_v32 = vmul.f32 %v4605_v57, %v4600_v7  ;;  %v7987_v7 = vld [vmem:[#allocation19 + $0x1fc] sm:$0xf0]  ;;  %v7332_v3 = vor.u32 %v7961_v40, %v7329_v37  ;;  %v7994_v40 = vld [vmem:[#allocation19 + $0x234] sm:$0xf0] }
 0x6ff   : > { %v4575_v58 = vmul.f32 %v9744_v18, %v4574_v50  ;;  %v4584_v26 = vsub.f32 1.5, %v4583_v13  ;;  %v4591_v14 = vmul.f32 %v9768_v63, %v9746_v17  ;;  %vm4597_vm4 = vweird.f32 %v9768_v63  ;;  %v7175_v50 = vld [vmem:[#allocation19 + $0x8] sm:$0xf]  ;;  %v7927_v13 = vld [vmem:[#allocation19 + $0x1c] sm:$0xf0]  ;;  %5304 = vmatpush.bf16.msrb.mxu2 %v7440_v53 }
 0x700   : > { %v4618_v34 = vadd.f32 %v4614_v5, %v4609_v32  ;;  %v7416_v56 = vor.u32 %v7987_v7, %v7415_v29  ;;  %v7351_v32 = vld [vmem:[#allocation19 + $0x160] sm:$0xf]  ;;  %vm4598_vm7 = vmor %vm4596_vm5, %vm4597_vm4  ;;  %v7544_v29 = vor.u32 %v8018_v49, %v7543_v47 }
 0x701   : > { %v4579_v39 = vsel %vm9782_vm13, %v9744_v18, %v4575_v58  ;;  %v4585_v55 = vmul.f32 %v9751_v30, %v4584_v26  ;;  %v4592_v6 = vmul.f32 %v9768_v63, %v4591_v14  ;;  %v7228_v18 = vor.u32 %v7936_v42, %v7225_v36  ;;  %5331 = vmatpush.bf16.msrb.mxu0 %v7468_v27  ;;  %v7353_v26 = vld [vmem:[#allocation19 + $0x178] sm:$0xf0]  ;;  %v7391_v14 = vld [vmem:[#allocation19 + $0x1b8] sm:$0xf] }
 0x702   : > { %vm4622_vm15 = vcmp.gt.f32.partialorder %v4618_v34, 0.0  ;;  %v4626_v44 = vmul.f32 %v4618_v34, %v9923_v28  ;;  %v4601_v19 = vmul.f32 %v4579_v39, %v9707_v12  ;;  %v7176_v58 = vor.u32 %v7927_v13, %v7175_v50  ;;  %v7949_v50 = vld [vmem:[#allocation19 + $0xd4] sm:$0xf]  ;;  %v7281_v13 = vld [vmem:[#allocation19 + $0xe8] sm:$0xf0] }
 0x703   : > { %v4589_v45 = vsel %vm4588_vm3, %v9751_v30, %v4585_v55  ;;  %v4593_v35 = vmul.f32 0.5, %v4592_v6  ;;  %v7200_v30 = vor.u32 %v7933_v54, %v7199_v59  ;;  %5319 = vmatpush.bf16.msra.mxu3 %v7228_v18  ;;  %v7352_v27 = vor.u32 %v7970_v48, %v7351_v32  ;;  %5305 = vmatpush.bf16.msrb.mxu2 %v7416_v56  ;;  %v7964_v6 = vld [vmem:[#allocation19 + $0x144] sm:$0xf0]  ;;  %v7369_v18 = vld [vmem:[#allocation19 + $0x1a0] sm:$0xf0] }
 0x704   : > { %v4630_v61 = vsel %vm4622_vm15, %v4618_v34, %v4626_v44  ;;  %v4610_v12 = vmul.f32 %v4606_v41, %v4601_v19  ;;  %v4602_v8 = vmul.f32 %v4589_v45, %v9721_v31  ;;  %v7204_v31 = vor.u32 %v7930_v46, %v7201_v9  ;;  %v7367_v44 = vld [vmem:[#allocation19 + $0x188] sm:$0xf]  ;;  %v8015_v45 = vld [vmem:[#allocation19 + $0x2e4] sm:$0xf]  ;;  %v7958_v59 = vld [vmem:[#allocation19 + $0x114] sm:$0xf0] }
 0x705   : > { %4634 = vst [vmem:[%s9795_s2] sm:$0xff] %v4630_v61  ;;  %v4594_v4 = vsub.f32 1.5, %v4593_v35  ;;  %5332 = vmatpush.bf16.msrb.mxu0 %v7444_v62  ;;  %5292 = vmatpush.bf16.msrb.mxu1 %v7200_v30  ;;  %v7180_v34 = vor.u32 %v7924_v23, %v7177_v24  ;;  %v7356_v55 = vor.u32 %v7967_v20, %v7353_v26  ;;  %v7303_v62 = vld [vmem:[#allocation19 + $0x100] sm:$0xf]  ;;  %v7955_v54 = vld [vmem:[#allocation19 + $0x104] sm:$0xf] }
 0x706   : > { %v4619_v10 = vadd.f32 %v4615_v51, %v4610_v12  ;;  %v4611_v0 = vmul.f32 %v4605_v57, %v4602_v8  ;;  %v7420_v57 = vor.u32 %v7984_v15, %v7417_v2  ;;  %v7392_v36 = vor.u32 %v7981_v21, %v7391_v14  ;;  %v8012_v30 = vld [vmem:[#allocation19 + $0x2c4] sm:$0xf0]  ;;  %v7495_v23 = vld [vmem:[#allocation19 + $0x280] sm:$0xf]  ;;  %v7946_v20 = vld [vmem:[#allocation19 + $0xb4] sm:$0xf0] }
 0x707   : > { %v4595_v60 = vmul.f32 %v9768_v63, %v4594_v4  ;;  %5320 = vmatpush.bf16.msra.mxu3 %v7204_v31  ;;  %v7328_v53 = vor.u32 %v7964_v6, %v7327_v33  ;;  %v7368_v8 = vor.u32 %v7975_v11, %v7367_v44  ;;  %v7304_v7 = vor.u32 %v7958_v59, %v7303_v62  ;;  %v7279_v31 = vld [vmem:[#allocation19 + $0xd0] sm:$0xf]  ;;  %v7952_v2 = vld [vmem:[#allocation19 + $0xe4] sm:$0xf0]  ;;  %v7255_v48 = vld [vmem:[#allocation19 + $0xa0] sm:$0xf] }
 0x708   : > { %vm4623_vm6 = vcmp.gt.f32.partialorder %v4619_v10, 0.0  ;;  %v4627_v25 = vmul.f32 %v4619_v10, %v9923_v28  ;;  %v4620_v1 = vadd.f32 %v4614_v5, %v4611_v0  ;;  %5306 = vmatpush.bf16.msrb.mxu2 %v7392_v36  ;;  %v7521_v0 = vld [vmem:[#allocation19 + $0x2c8] sm:$0xf0]  ;;  %v7280_v24 = vor.u32 %v7952_v2, %v7279_v31  ;;  %v7471_v21 = vld [vmem:[#allocation19 + $0x250] sm:$0xf] }
 0x709   : > { %v4599_v17 = vsel %vm4598_vm7, %v9768_v63, %v4595_v60  ;;  %5333 = vmatpush.bf16.msrb.mxu0 %v7420_v57  ;;  %5293 = vmatpush.bf16.msrb.mxu1 %v7176_v58  ;;  %v7284_v32 = vor.u32 %v7949_v50, %v7281_v13  ;;  %v7497_v57 = vld [vmem:[#allocation19 + $0x298] sm:$0xf0]  ;;  %v7256_v16 = vor.u32 %v7946_v20, %v7255_v48  ;;  %v7940_v33 = vld [vmem:[#allocation19 + $0x84] sm:$0xf0]  ;;  %v7447_v6 = vld [vmem:[#allocation19 + $0x220] sm:$0xf] }
 0x70a   : > { %vm4624_vm8 = vcmp.gt.f32.partialorder %v4620_v1, 0.0  ;;  %v4628_v22 = vmul.f32 %v4620_v1, %v9923_v28  ;;  %v4603_v5 = vmul.f32 %v4599_v17, %v9716_v52  ;;  %v4631_v63 = vsel %vm4623_vm6, %v4619_v10, %v4627_v25  ;;  %v8009_v10 = vld [vmem:[#allocation19 + $0x2b4] sm:$0xf]  ;;  %v8006_v25 = vld [vmem:[#allocation19 + $0x294] sm:$0xf0] }
 0x70b   : > { %4635 = vst [vmem:[%s9795_s2 + $0x8] sm:$0xff] %v4631_v63  ;;  %5321 = vmatpush.bf16.msra.mxu3 %v7180_v34  ;;  %v7524_v56 = vor.u32 %v8009_v10, %v7521_v0  ;;  %v7943_v17 = vld [vmem:[#allocation19 + $0xa4] sm:$0xf]  ;;  %v7257_v58 = vld [vmem:[#allocation19 + $0xb8] sm:$0xf0]  ;;  %v7496_v26 = vor.u32 %v8006_v25, %v7495_v23  ;;  %v7448_v47 = vor.u32 %v7994_v40, %v7447_v6 }
 0x70c   : > { %v4632_v42 = vsel %vm4624_vm8, %v4620_v1, %v4628_v22  ;;  %v4612_v39 = vmul.f32 %v4606_v41, %v4603_v5  ;;  %v7972_v41 = vld [vmem:[#allocation19 + $0x18c] sm:$0xf]  ;;  %5307 = vmatpush.bf16.msrb.mxu2 %v7368_v8  ;;  %v8003_v1 = vld [vmem:[#allocation19 + $0x284] sm:$0xf]  ;;  %v8000_v22 = vld [vmem:[#allocation19 + $0x264] sm:$0xf0]  ;;  %v7260_v38 = vor.u32 %v7943_v17, %v7257_v58 }
 0x70d   : > { %4636 = vst [vmem:[%s9795_s2 + $0x10] sm:$0xff] %v4632_v42  ;;  %v9828_v52 = vpack.c.bf16 %v4632_v42, %v4630_v61  ;;  %5334 = vmatpush.bf16.msrb.mxu0 %v7396_v43  ;;  %v7305_v61 = vld [vmem:[#allocation19 + $0x118] sm:$0xf0]  ;;  %v7372_v46 = vor.u32 %v7972_v41, %v7369_v18  ;;  %v7500_v14 = vor.u32 %v8003_v1, %v7497_v57  ;;  %v7997_v5 = vld [vmem:[#allocation19 + $0x254] sm:$0xf] }
 0x70e   : > { %v4621_v19 = vadd.f32 %v4615_v51, %v4612_v39  ;;  %v7545_v51 = vld [vmem:[#allocation19 + $0x2f8] sm:$0xf0]  ;;  %v7308_v15 = vor.u32 %v7955_v54, %v7305_v61  ;;  %v7473_v34 = vld [vmem:[#allocation19 + $0x268] sm:$0xf0]  ;;  %v7472_v39 = vor.u32 %v8000_v22, %v7471_v21  ;;  %v7991_v36 = vld [vmem:[#allocation19 + $0x224] sm:$0xf] }
 0x70f   : > { %5238 = vmatmul.bf16.vlgmr.msra.gmra.mxu1 %v9828_v52  ;;  %5266 = vmatmul.bf16.vlgmr.msrb.gmra.mxu3 %v9828_v52  ;;  %v7548_v4 = vor.u32 %v8015_v45, %v7545_v51  ;;  %v7233_v42 = vld [vmem:[#allocation19 + $0x88] sm:$0xf0]  ;;  %v7449_v43 = vld [vmem:[#allocation19 + $0x238] sm:$0xf0]  ;;  %v7934_v11 = vld [vmem:[#allocation19 + $0x54] sm:$0xf0] }
 0x710   : > { %vm4625_vm9 = vcmp.gt.f32.partialorder %v4621_v19, 0.0  ;;  %v4629_v35 = vmul.f32 %v4621_v19, %v9923_v28  ;;  %5342 = vmatpush.bf16.msra.mxu1 %v7352_v27  ;;  %5370 = vmatpush.bf16.msrb.mxu3 %v7356_v55  ;;  %v7519_v28 = vld [vmem:[#allocation19 + $0x2b0] sm:$0xf]  ;;  %v7476_v55 = vor.u32 %v7997_v5, %v7473_v34  ;;  %v7931_v41 = vld [vmem:[#allocation19 + $0x44] sm:$0xf]  ;;  %v7452_v49 = vor.u32 %v7991_v36, %v7449_v43 }
 0x711   : > { %5335 = vmatpush.bf16.msrb.mxu0 %v7372_v46  ;;  %v7520_v60 = vor.u32 %v8012_v30, %v7519_v28  ;;  %v7231_v27 = vld [vmem:[#allocation19 + $0x70] sm:$0xf]  ;;  %v7209_v18 = vld [vmem:[#allocation19 + $0x58] sm:$0xf0]  ;;  %v7928_v54 = vld [vmem:[#allocation19 + $0x24] sm:$0xf0] }
 0x712   : > { %v4633_v12 = vsel %vm4625_vm9, %v4621_v19, %v4629_v35  ;;  %v7232_v37 = vor.u32 %v7940_v33, %v7231_v27  ;;  %v7207_v19 = vld [vmem:[#allocation19 + $0x40] sm:$0xf]  ;;  %v7423_v45 = vld [vmem:[#allocation19 + $0x1f0] sm:$0xf]  ;;  %v7988_v35 = vld [vmem:[#allocation19 + $0x204] sm:$0xf0]  ;;  %v7212_v62 = vor.u32 %v7931_v41, %v7209_v18 }
 0x713   : > { %4637 = vst [vmem:[%s9795_s2 + $0x18] sm:$0xff] %v4633_v12  ;;  %v9836_v9 = vpack.c.bf16 %v4633_v12, %v4631_v63  ;;  %v7937_v63 = vld [vmem:[#allocation19 + $0x74] sm:$0xf]  ;;  %v7208_v51 = vor.u32 %v7934_v11, %v7207_v19  ;;  %v7183_v59 = vld [vmem:[#allocation19 + $0x10] sm:$0xf]  ;;  %v7424_v8 = vor.u32 %v7988_v35, %v7423_v45 }
 0x714   : > { %5343 = vmatpush.bf16.msra.mxu1 %v7328_v53  ;;  %5371 = vmatpush.bf16.msrb.mxu3 %v7332_v3  ;;  %v7236_v44 = vor.u32 %v7937_v63, %v7233_v42  ;;  %v7985_v53 = vld [vmem:[#allocation19 + $0x1f4] sm:$0xf]  ;;  %v7425_v3 = vld [vmem:[#allocation19 + $0x208] sm:$0xf0]  ;;  %v7979_v28 = vld [vmem:[#allocation19 + $0x1c4] sm:$0xf] }
 0x715   : > { %5252 = vmatmul.bf16.vlgmr.msra.gmra.mxu2 %v9836_v9  ;;  %5280 = vmatmul.bf16.vlgmr.msra.gmra.mxu0 %v9836_v9  ;;  %v7925_v61 = vld [vmem:[#allocation19 + $0x14] sm:$0xf]  ;;  %v7185_v12 = vld [vmem:[#allocation19 + $0x28] sm:$0xf0]  ;;  %v7428_v46 = vor.u32 %v7985_v53, %v7425_v3  ;;  %v7401_v30 = vld [vmem:[#allocation19 + $0x1d8] sm:$0xf0] }
 0x716   : > { %5356 = vmatpush.bf16.msra.mxu2 %v7544_v29  ;;  %5384 = vmatpush.bf16.msra.mxu0 %v7548_v4  ;;  %v7399_v29 = vld [vmem:[#allocation19 + $0x1c0] sm:$0xf]  ;;  %v7982_v4 = vld [vmem:[#allocation19 + $0x1d4] sm:$0xf0]  ;;  %v7404_v0 = vor.u32 %v7979_v28, %v7401_v30  ;;  %v7375_v31 = vld [vmem:[#allocation19 + $0x190] sm:$0xf] }
 0x717   : > { %v7400_v10 = vor.u32 %v7982_v4, %v7399_v29  ;;  %v7976_v2 = vld [vmem:[#allocation19 + $0x1a4] sm:$0xf0]  ;;  %v7973_v50 = vld [vmem:[#allocation19 + $0x194] sm:$0xf]  ;;  %v7377_v13 = vld [vmem:[#allocation19 + $0x1a8] sm:$0xf0] }
 0x718   : > { %5344 = vmatpush.bf16.msra.mxu1 %v7304_v7  ;;  %5372 = vmatpush.bf16.msrb.mxu3 %v7308_v15  ;;  %v7184_v7 = vor.u32 %v7928_v54, %v7183_v59  ;;  %v7188_v15 = vor.u32 %v7925_v61, %v7185_v12 }
 0x71a   : > { %5357 = vmatpush.bf16.msra.mxu2 %v7520_v60  ;;  %5385 = vmatpush.bf16.msra.mxu0 %v7524_v56  ;;  %v7376_v60 = vor.u32 %v7976_v2, %v7375_v31  ;;  %v7380_v56 = vor.u32 %v7973_v50, %v7377_v13 }
 0x71c   : > { %5345 = vmatpush.bf16.msra.mxu1 %v7280_v24  ;;  %5373 = vmatpush.bf16.msrb.mxu3 %v7284_v32  ;;  %v9848_v24 = vld [vmem:[#allocation20] sm:$0x3f] }
 0x71d   : > { %v4739_v32 = vperm.slane %v9848_v24, 1  ;;  %v4738_v57 = vperm.slane %v9848_v24, 0  ;;  %v4740_v42 = vperm.slane %v9848_v24, 2  ;;  %v4743_v18 = vperm.slane %v9848_v24, 5 }
 0x71e   : > { %5358 = vmatpush.bf16.msra.mxu2 %v7496_v26  ;;  %5386 = vmatpush.bf16.msra.mxu0 %v7500_v14  ;;  %v4742_v3 = vperm.slane %v9848_v24, 4 }
 0x71f   : > { %5294 = vmatmul.bf16.vlgmr.msrb.gmra.mxu1 %v9828_v52  ;;  %5322 = vmatmul.bf16.vlgmr.msra.gmra.mxu3 %v9828_v52 }
 0x720   : > { %5346 = vmatpush.bf16.msra.mxu1 %v7256_v16  ;;  %5374 = vmatpush.bf16.msrb.mxu3 %v7260_v38  ;;  %v4741_v38 = vperm.slane %v9848_v24, 3 }
 0x722   : > { %5359 = vmatpush.bf16.msra.mxu2 %v7472_v39  ;;  %5387 = vmatpush.bf16.msra.mxu0 %v7476_v55 }
 0x724   : > { %5347 = vmatpush.bf16.msra.mxu1 %v7232_v37  ;;  %5375 = vmatpush.bf16.msrb.mxu3 %v7236_v44 }
 0x725   : > { %5308 = vmatmul.bf16.vlgmr.msrb.gmra.mxu2 %v9836_v9  ;;  %5336 = vmatmul.bf16.vlgmr.msrb.gmra.mxu0 %v9836_v9 }
 0x726   : > { %5360 = vmatpush.bf16.msra.mxu2 %v7448_v47  ;;  %5388 = vmatpush.bf16.msra.mxu0 %v7452_v49 }
 0x728   : > { %5348 = vmatpush.bf16.msra.mxu1 %v7208_v51  ;;  %5376 = vmatpush.bf16.msrb.mxu3 %v7212_v62 }
 0x72a   : > { %5361 = vmatpush.bf16.msra.mxu2 %v7424_v8  ;;  %5389 = vmatpush.bf16.msra.mxu0 %v7428_v46 }
 0x72c   : > { %5349 = vmatpush.bf16.msra.mxu1 %v7184_v7  ;;  %5377 = vmatpush.bf16.msrb.mxu3 %v7188_v15 }
 0x72e   : > { %5362 = vmatpush.bf16.msra.mxu2 %v7400_v10  ;;  %5390 = vmatpush.bf16.msra.mxu0 %v7404_v0 }
 0x72f   : > { %5350 = vmatmul.bf16.vlgmr.msra.gmra.mxu1 %v9828_v52  ;;  %5378 = vmatmul.bf16.vlgmr.msrb.gmra.mxu3 %v9828_v52 }
 0x732   : > { %5363 = vmatpush.bf16.msra.mxu2 %v7376_v60  ;;  %5391 = vmatpush.bf16.msra.mxu0 %v7380_v56 }
 0x735   : > { %5364 = vmatmul.bf16.vlgmr.msra.gmra.mxu2 %v9836_v9  ;;  %5392 = vmatmul.bf16.vlgmr.msra.gmra.mxu0 %v9836_v9 }
 0x78c   : > { %v5239_v23 = vpop.f32.mrf.mxu1 }
 0x78d   : > { %v5240_v20 = vadd.f32 %v5239_v23, %v4738_v57 }
 0x792   : > { %v5267_v25 = vpop.f32.mrf.mxu3  ;;  %v5281_v1 = vpop.f32.mrf.mxu0 }
 0x793   : > { %v5268_v48 = vadd.f32 %v5267_v25, %v4739_v32 }
 0x794   : > { %v5241_v52 = vpop.f32.mrf.mxu1 }
 0x795   : > { %v5282_v9 = vadd.f32 %v5281_v1, %v5268_v48  ;;  %v5242_v34 = vadd.f32 %v5241_v52, %v4738_v57 }
 0x797   : > { %5399 = vst [vmem:[%s9856_s8 + $0x8] sm:$0xff] %v5282_v9 }
 0x798   : > { %v5253_v17 = vpop.f32.mrf.mxu2 }
 0x799   : > { %v5254_v58 = vadd.f32 %v5253_v17, %v5240_v20 }
 0x79a   : > { %v5269_v26 = vpop.f32.mrf.mxu3  ;;  %v5283_v14 = vpop.f32.mrf.mxu0 }
 0x79b   : > { %5398 = vst [vmem:[%s9856_s8] sm:$0xff] %v5254_v58  ;;  %v5270_v21 = vadd.f32 %v5269_v26, %v4739_v32 }
 0x79c   : > { %v5295_v5 = vpop.f32.mrf.mxu1 }
 0x79d   : > { %v5284_v22 = vadd.f32 %v5283_v14, %v5270_v21  ;;  %v5296_v6 = vadd.f32 %v5295_v5, %v4740_v42 }
 0x79f   : > { %5405 = vst [vmem:[%s9856_s8 + $0x38] sm:$0xff] %v5284_v22 }
 0x7a0   : > { %v5255_v16 = vpop.f32.mrf.mxu2 }
 0x7a1   : > { %v5256_v27 = vadd.f32 %v5255_v16, %v5242_v34 }
 0x7a2   : > { %v5323_v33 = vpop.f32.mrf.mxu3  ;;  %v5337_v63 = vpop.f32.mrf.mxu0 }
 0x7a3   : > { %5404 = vst [vmem:[%s9856_s8 + $0x30] sm:$0xff] %v5256_v27  ;;  %v5324_v39 = vadd.f32 %v5323_v33, %v4741_v38 }
 0x7a4   : > { %v5297_v40 = vpop.f32.mrf.mxu1 }
 0x7a5   : > { %v5338_v55 = vadd.f32 %v5337_v63, %v5324_v39  ;;  %v5298_v41 = vadd.f32 %v5297_v40, %v4740_v42 }
 0x7a7   : > { %5401 = vst [vmem:[%s9856_s8 + $0x18] sm:$0xff] %v5338_v55 }
 0x7a8   : > { %v5309_v36 = vpop.f32.mrf.mxu2 }
 0x7a9   : > { %v5310_v43 = vadd.f32 %v5309_v36, %v5296_v6 }
 0x7aa   : > { %v5325_v37 = vpop.f32.mrf.mxu3  ;;  %v5339_v44 = vpop.f32.mrf.mxu0 }
 0x7ab   : > { %5400 = vst [vmem:[%s9856_s8 + $0x10] sm:$0xff] %v5310_v43  ;;  %v5326_v19 = vadd.f32 %v5325_v37, %v4741_v38 }
 0x7ac   : > { %v5351_v49 = vpop.f32.mrf.mxu1 }
 0x7ad   : > { %v5340_v11 = vadd.f32 %v5339_v44, %v5326_v19  ;;  %v5352_v59 = vadd.f32 %v5351_v49, %v4742_v3 }
 0x7af   : > { %5407 = vst [vmem:[%s9856_s8 + $0x48] sm:$0xff] %v5340_v11 }
 0x7b0   : > { %v5311_v47 = vpop.f32.mrf.mxu2 }
 0x7b1   : > { %v5312_v45 = vadd.f32 %v5311_v47, %v5298_v41 }
 0x7b2   : > { %v5379_v35 = vpop.f32.mrf.mxu3  ;;  %v5393_v53 = vpop.f32.mrf.mxu0 }
 0x7b3   : > { %5406 = vst [vmem:[%s9856_s8 + $0x40] sm:$0xff] %v5312_v45  ;;  %v5380_v51 = vadd.f32 %v5379_v35, %v4743_v18 }
 0x7b4   : > { %v5353_v46 = vpop.f32.mrf.mxu1 }
 0x7b5   : > { %v5394_v62 = vadd.f32 %v5393_v53, %v5380_v51  ;;  %v5354_v28 = vadd.f32 %v5353_v46, %v4742_v3 }
 0x7b7   : > { %5403 = vst [vmem:[%s9856_s8 + $0x28] sm:$0xff] %v5394_v62 }
 0x7b8   : > { %v5365_v54 = vpop.f32.mrf.mxu2 }
 0x7b9   : > { %v5366_v61 = vadd.f32 %v5365_v54, %v5352_v59 }
 0x7ba   : > { %v5381_v12 = vpop.f32.mrf.mxu3  ;;  %v5395_v29 = vpop.f32.mrf.mxu0 }
 0x7bb   : > { %5402 = vst [vmem:[%s9856_s8 + $0x20] sm:$0xff] %v5366_v61  ;;  %v5382_v8 = vadd.f32 %v5381_v12, %v4743_v18 }
 0x7bd   : > { %v5396_v4 = vadd.f32 %v5395_v29, %v5382_v8 }
 0x7bf   : > { %5409 = vst [vmem:[%s9856_s8 + $0x58] sm:$0xff] %v5396_v4 }
 0x7c0   : > { %v5367_v30 = vpop.f32.mrf.mxu2 }
 0x7c1   : > { %v5368_v7 = vadd.f32 %v5367_v30, %v5354_v28 }
 0x7c3   : > { %5408 = vst [vmem:[%s9856_s8 + $0x50] sm:$0xff] %v5368_v7 }
 0x7c4 PF: > { %s37_s27 = sadd.s32 1, %s8699_s27  }
 0x7c5   : > { %p34_p7 = scmp.ge.s32.totalorder %s37_s27, 4  }
 0x7c7   :  { %36 = sbr.rel (!%p34_p7) target bundleno = 16 (0x10), region = 198 }
 0x7cc   :  { %5447 = vsyncpa [#allocation3], 1 }
 0x7cd   :  { %5449 = vsyncpa [#allocation3 + $0x1], 1 }
 0x7ce   :  { %5450 = vsyncpa [#allocation6], 1 }
 0x7cf   :  { %5451 = vsyncpa [#allocation9], 1 }
 0x7d0   :  { %5452 = vsyncpa [#allocation12], 1 }
 0x7d1   :  { %5453 = vsyncpa [#allocation15], 1 }
 0x7d2   :  { %5454 = vsyncpa [#allocation18], 1 }
 0x7d3   :  { %5455 = vsyncpa [#allocation21], 1 }
 0x7d4   :  { %5456 = vsyncpa [#allocation4], 1 }
 0x7d5   :  { %5458 = vsyncpa [#allocation4 + $0x1], 1 }

// kernel: sr_block_forward.5
= control target key start
LH: loop header
LB: loop body
LE: loop exit
PB: predicated region body
PF: predicated region fallthrough
CT: control target
= control target key end

     0   :  { %16 = vsyncpa [#allocation3], 0  ;;  %s1462_s17 = smov 0   ;;  %s1810_s0 = inlined_call_operand.vmem [shape: f32[2,16,256], index: 0, kind: input, shape index: {}]   ;;  %s1811_s1 = inlined_call_operand.vmem [shape: f32[2,16,256], index: 1, kind: input, shape index: {}]   ;;  %s1812_s2 = inlined_call_operand.vmem [shape: f32[2,16,128], index: 2, kind: input, shape index: {}]   ;;  %s1813_s3 = inlined_call_operand.vmem [shape: bf16[256,256], index: 3, kind: input, shape index: {}]   ;;  %s1814_s4 = inlined_call_operand.vmem [shape: f32[1,256], index: 4, kind: input, shape index: {}]   ;;  %s1815_s5 = inlined_call_operand.vmem [shape: bf16[256,128], index: 5, kind: input, shape index: {}]   ;;  %s1816_s6 = inlined_call_operand.vmem [shape: f32[1,128], index: 6, kind: input, shape index: {}]   ;;  %s1817_s7 = inlined_call_operand.vmem [shape: f32[1,128], index: 7, kind: input, shape index: {}]   ;;  %s1818_s8 = inlined_call_operand.vmem [shape: f32[1,128], index: 8, kind: input, shape index: {}]   ;;  %s1819_s9 = inlined_call_operand.vmem [shape: f32[128,128], index: 9, kind: input, shape index: {}]   ;;  %s1820_s10 = inlined_call_operand.vmem [shape: f32[2], index: 10, kind: input, shape index: {}]   ;;  %s1821_s11 = inlined_call_operand.vmem [shape: f32[2,16,128], index: 11, kind: output, shape index: {}]  }
   0x1 LB: > { %s1468_s18 = sadd.s32 4294967295, %s1399_s17   ;;  %p1088_p0 = scmp.ge.s32.totalorder %s1399_s17, 1  ;;  %s1399_s17 = sphi %s1462_s17, %s22_s17  }
   0x2   : > { %p299_p1 = scmp.lt.s32.totalorder %s1399_s17, 3  ;;  %s332_s21 = sshll.u32 %s1820_s10, 4  ;;  %s333_s21 = int_to_ptr.vmem [resolvable:$true] %s332_s21 }
   0x3   : > { %p1356_p3 = scmp.eq.s32.totalorder %s1468_s18, 0  ;;  %s1401_s22 = smov [#allocation2]  }
   0x4   : > { %p300_p2 = pnand %p1088_p0, %p299_p1 }
   0x6   : > { %p1352_p4 = pneg %p300_p2  ;;  %369 = sbr.rel (%p300_p2) target bundleno = 638 (0x27e), region = 64 }
   0x8   : > { %p1353_p5 = pnand %p1356_p3, %p1352_p4 }
   0xa   : > { %1355 = dma.vmem_to_smem (!%p1353_p5), %s333_s21, 16, %s1401_s22, [#allocation3]  }
   0xb   : > { %1394 = dma.done.wait (%p1356_p3), [#allocation3], 16  }
   0xc   : > { %1396 = vsyncadd (%p1356_p3), [#allocation3], 4294967280 }
   0xd   : > { %376 = sfence }
   0xe   : > { %v1160_v0 = vld [vmem:[%s1813_s3 + $0x70] sm:$0xf]  ;;  %v1315_v1 = vld [vmem:[%s1813_s3 + $0x74] sm:$0xf0]  ;;  %v1314_v5 = vld [vmem:[%s1813_s3 + $0x74] sm:$0xf] }
   0xf   : > { %v1224_v2 = vld [vmem:[%s1813_s3 + $0xf0] sm:$0xf]  ;;  %v1161_v3 = vor.u32 %v1315_v1, %v1160_v0  ;;  %v1331_v4 = vld [vmem:[%s1813_s3 + $0xf4] sm:$0xf0]  ;;  %v1162_v6 = vld [vmem:[%s1813_s3 + $0x78] sm:$0xf0] }
  0x10   : > { %v1225_v7 = vor.u32 %v1331_v4, %v1224_v2  ;;  %v1165_v8 = vor.u32 %v1314_v5, %v1162_v6  ;;  %v1330_v9 = vld [vmem:[%s1813_s3 + $0xf4] sm:$0xf]  ;;  %v1226_v10 = vld [vmem:[%s1813_s3 + $0xf8] sm:$0xf0]  ;;  %v1152_v11 = vld [vmem:[%s1813_s3 + $0x60] sm:$0xf] }
  0x11   : > { %651 = vmatpush.bf16.msra.mxu0 %v1161_v3  ;;  %v1229_v12 = vor.u32 %v1330_v9, %v1226_v10  ;;  %v1313_v13 = vld [vmem:[%s1813_s3 + $0x64] sm:$0xf0]  ;;  %v1216_v14 = vld [vmem:[%s1813_s3 + $0xe0] sm:$0xf]  ;;  %v1312_v18 = vld [vmem:[%s1813_s3 + $0x64] sm:$0xf] }
  0x12   : > { %v1329_v15 = vld [vmem:[%s1813_s3 + $0xe4] sm:$0xf0]  ;;  %665 = vmatpush.bf16.msra.mxu1 %v1225_v7  ;;  %679 = vmatpush.bf16.msra.mxu2 %v1165_v8  ;;  %v1153_v16 = vor.u32 %v1313_v13, %v1152_v11  ;;  %v1154_v19 = vld [vmem:[%s1813_s3 + $0x68] sm:$0xf0]  ;;  %v1328_v20 = vld [vmem:[%s1813_s3 + $0xe4] sm:$0xf] }
  0x13   : > { %v1217_v17 = vor.u32 %v1329_v15, %v1216_v14  ;;  %693 = vmatpush.bf16.msra.mxu3 %v1229_v12  ;;  %v1157_v21 = vor.u32 %v1312_v18, %v1154_v19  ;;  %v1218_v22 = vld [vmem:[%s1813_s3 + $0xe8] sm:$0xf0]  ;;  %v1144_v23 = vld [vmem:[%s1813_s3 + $0x50] sm:$0xf]  ;;  %v1311_v24 = vld [vmem:[%s1813_s3 + $0x54] sm:$0xf0] }
  0x14   : > { %v1221_v25 = vor.u32 %v1328_v20, %v1218_v22  ;;  %v1208_v26 = vld [vmem:[%s1813_s3 + $0xd0] sm:$0xf]  ;;  %v1327_v27 = vld [vmem:[%s1813_s3 + $0xd4] sm:$0xf0]  ;;  %v1310_v28 = vld [vmem:[%s1813_s3 + $0x54] sm:$0xf]  ;;  %v1145_v29 = vor.u32 %v1311_v24, %v1144_v23 }
  0x15   : > { %652 = vmatpush.bf16.msra.mxu0 %v1153_v16  ;;  %v1146_v30 = vld [vmem:[%s1813_s3 + $0x58] sm:$0xf0]  ;;  %v1326_v31 = vld [vmem:[%s1813_s3 + $0xd4] sm:$0xf]  ;;  %v1209_v33 = vor.u32 %v1327_v27, %v1208_v26  ;;  %v1136_v35 = vld [vmem:[%s1813_s3 + $0x40] sm:$0xf] }
  0x16   : > { %v1210_v32 = vld [vmem:[%s1813_s3 + $0xd8] sm:$0xf0]  ;;  %666 = vmatpush.bf16.msra.mxu1 %v1217_v17  ;;  %680 = vmatpush.bf16.msra.mxu2 %v1157_v21  ;;  %v1149_v34 = vor.u32 %v1310_v28, %v1146_v30  ;;  %v1309_v36 = vld [vmem:[%s1813_s3 + $0x44] sm:$0xf0]  ;;  %v1200_v37 = vld [vmem:[%s1813_s3 + $0xc0] sm:$0xf] }
  0x17   : > { %694 = vmatpush.bf16.msra.mxu3 %v1221_v25  ;;  %v1213_v38 = vor.u32 %v1326_v31, %v1210_v32  ;;  %v1325_v39 = vld [vmem:[%s1813_s3 + $0xc4] sm:$0xf0]  ;;  %v1308_v40 = vld [vmem:[%s1813_s3 + $0x44] sm:$0xf]  ;;  %v1138_v41 = vld [vmem:[%s1813_s3 + $0x48] sm:$0xf0]  ;;  %v1137_v44 = vor.u32 %v1309_v36, %v1136_v35 }
  0x18   : > { %v1324_v42 = vld [vmem:[%s1813_s3 + $0xc4] sm:$0xf]  ;;  %v1202_v43 = vld [vmem:[%s1813_s3 + $0xc8] sm:$0xf0]  ;;  %v1201_v45 = vor.u32 %v1325_v39, %v1200_v37  ;;  %v1141_v46 = vor.u32 %v1308_v40, %v1138_v41  ;;  %v1128_v47 = vld [vmem:[%s1813_s3 + $0x30] sm:$0xf] }
  0x19   : > { %653 = vmatpush.bf16.msra.mxu0 %v1145_v29  ;;  %v1307_v48 = vld [vmem:[%s1813_s3 + $0x34] sm:$0xf0]  ;;  %v1192_v49 = vld [vmem:[%s1813_s3 + $0xb0] sm:$0xf]  ;;  %v1205_v50 = vor.u32 %v1324_v42, %v1202_v43  ;;  %v1306_v52 = vld [vmem:[%s1813_s3 + $0x34] sm:$0xf] }
  0x1a   : > { %667 = vmatpush.bf16.msra.mxu1 %v1209_v33  ;;  %681 = vmatpush.bf16.msra.mxu2 %v1149_v34  ;;  %v1323_v51 = vld [vmem:[%s1813_s3 + $0xb4] sm:$0xf0]  ;;  %v1130_v53 = vld [vmem:[%s1813_s3 + $0x38] sm:$0xf0]  ;;  %v1322_v54 = vld [vmem:[%s1813_s3 + $0xb4] sm:$0xf]  ;;  %v1129_v56 = vor.u32 %v1307_v48, %v1128_v47 }
  0x1b   : > { %695 = vmatpush.bf16.msra.mxu3 %v1213_v38  ;;  %v1194_v55 = vld [vmem:[%s1813_s3 + $0xb8] sm:$0xf0]  ;;  %v1193_v57 = vor.u32 %v1323_v51, %v1192_v49  ;;  %v1133_v58 = vor.u32 %v1306_v52, %v1130_v53  ;;  %v1120_v59 = vld [vmem:[%s1813_s3 + $0x20] sm:$0xf]  ;;  %v1305_v60 = vld [vmem:[%s1813_s3 + $0x24] sm:$0xf0] }
  0x1c   : > { %v1184_v61 = vld [vmem:[%s1813_s3 + $0xa0] sm:$0xf]  ;;  %v1197_v62 = vor.u32 %v1322_v54, %v1194_v55  ;;  %v1321_v63 = vld [vmem:[%s1813_s3 + $0xa4] sm:$0xf0]  ;;  %v1304_v0 = vld [vmem:[%s1813_s3 + $0x24] sm:$0xf]  ;;  %v1121_v4 = vor.u32 %v1305_v60, %v1120_v59 }
  0x1d   : > { %654 = vmatpush.bf16.msra.mxu0 %v1137_v44  ;;  %v1122_v1 = vld [vmem:[%s1813_s3 + $0x28] sm:$0xf0]  ;;  %v1320_v2 = vld [vmem:[%s1813_s3 + $0xa4] sm:$0xf]  ;;  %v1112_v5 = vld [vmem:[%s1813_s3 + $0x10] sm:$0xf]  ;;  %v1185_v7 = vor.u32 %v1321_v63, %v1184_v61 }
  0x1e   : > { %668 = vmatpush.bf16.msra.mxu1 %v1201_v45  ;;  %682 = vmatpush.bf16.msra.mxu2 %v1141_v46  ;;  %v1186_v3 = vld [vmem:[%s1813_s3 + $0xa8] sm:$0xf0]  ;;  %v1303_v6 = vld [vmem:[%s1813_s3 + $0x14] sm:$0xf0]  ;;  %v1125_v8 = vor.u32 %v1304_v0, %v1122_v1  ;;  %v1176_v9 = vld [vmem:[%s1813_s3 + $0x90] sm:$0xf] }
  0x1f   : > { %696 = vmatpush.bf16.msra.mxu3 %v1205_v50  ;;  %v1319_v10 = vld [vmem:[%s1813_s3 + $0x94] sm:$0xf0]  ;;  %v1302_v11 = vld [vmem:[%s1813_s3 + $0x14] sm:$0xf]  ;;  %v1189_v12 = vor.u32 %v1320_v2, %v1186_v3  ;;  %v1114_v13 = vld [vmem:[%s1813_s3 + $0x18] sm:$0xf0]  ;;  %v1113_v18 = vor.u32 %v1303_v6, %v1112_v5 }
  0x20   : > { %v1318_v14 = vld [vmem:[%s1813_s3 + $0x94] sm:$0xf]  ;;  %p421_p6 = scmp.lt.s32.totalorder %s1468_s18, 1  ;;  %v1178_v15 = vld [vmem:[%s1813_s3 + $0x98] sm:$0xf0]  ;;  %v1177_v19 = vor.u32 %v1319_v10, %v1176_v9  ;;  %v1117_v20 = vor.u32 %v1302_v11, %v1114_v13  ;;  %v1337_v41 = vld [vmem:[%s1815_s5 + $0x28] sm:$0xff] }
  0x21   : > { %655 = vmatpush.bf16.msra.mxu0 %v1129_v56  ;;  %v1104_v16 = vld [vmem:[%s1813_s3] sm:$0xf]  ;;  %v1301_v17 = vld [vmem:[%s1813_s3 + $0x4] sm:$0xf0]  ;;  %v1181_v23 = vor.u32 %v1318_v14, %v1178_v15  ;;  %v1300_v24 = vld [vmem:[%s1813_s3 + $0x4] sm:$0xf] }
  0x22   : > { %669 = vmatpush.bf16.msra.mxu1 %v1193_v57  ;;  %683 = vmatpush.bf16.msra.mxu2 %v1133_v58  ;;  %s1823_s18 = smov (!%p421_p6, %s1468_s18), 1  ;;  %v1168_v21 = vld [vmem:[%s1813_s3 + $0x80] sm:$0xf]  ;;  %v1317_v22 = vld [vmem:[%s1813_s3 + $0x84] sm:$0xf0]  ;;  %v1105_v28 = vor.u32 %v1301_v17, %v1104_v16  ;;  %v1339_v36 = vld [vmem:[%s1815_s5 + $0x38] sm:$0xff] }
  0x23   : > { %697 = vmatpush.bf16.msra.mxu3 %v1197_v62  ;;  %v1106_v25 = vld [vmem:[%s1813_s3 + $0x8] sm:$0xf0]  ;;  %s1296_s28 = sshll.u32 %s1823_s18, 5  ;;  %v1316_v26 = vld [vmem:[%s1813_s3 + $0x84] sm:$0xf]  ;;  %v1169_v31 = vor.u32 %v1317_v22, %v1168_v21  ;;  %v1347_v38 = vld [vmem:[%s1815_s5 + $0x78] sm:$0xff] }
  0x24   : > { %v1170_v27 = vld [vmem:[%s1813_s3 + $0x88] sm:$0xf0]  ;;  %s425_s16 = scalar_lea.vmem %s1810_s0, %s1296_s28  ;;  %v1109_v32 = vor.u32 %v1300_v24, %v1106_v25  ;;  %v1338_v40 = vld [vmem:[%s1815_s5 + $0x30] sm:$0xff]  ;;  %v1336_v43 = vld [vmem:[%s1815_s5 + $0x20] sm:$0xff]  ;;  %s1101_s30 = sld [smem:[#allocation2 + $0x1]] }
  0x25   : > { %656 = vmatpush.bf16.msra.mxu0 %v1121_v4  ;;  %v443_v29 = vld [vmem:[%s425_s16] sm:$0xff]  ;;  %v445_v30 = vld [vmem:[%s425_s16 + $0x10] sm:$0xff]  ;;  %v444_v33 = vld [vmem:[%s425_s16 + $0x8] sm:$0xff]  ;;  %v1173_v35 = vor.u32 %v1316_v26, %v1170_v27  ;;  %s1791_s25 = sld [smem:[#allocation2]]  ;;  %s1298_s29 = sshll.u32 %s1823_s18, 4 }
  0x26   : > { %670 = vmatpush.bf16.msra.mxu1 %v1185_v7  ;;  %684 = vmatpush.bf16.msra.mxu2 %v1125_v8  ;;  %v446_v34 = vld [vmem:[%s425_s16 + $0x18] sm:$0xff]  ;;  %v451_v37 = vpack.c.bf16 %v445_v30, %v443_v29  ;;  %v1346_v42 = vld [vmem:[%s1815_s5 + $0x70] sm:$0xff]  ;;  %v1345_v44 = vld [vmem:[%s1815_s5 + $0x68] sm:$0xff]  ;;  %s1749_s16 = scalar_lea.vmem %s1811_s1, %s1296_s28  ;;  %s435_s15 = scalar_lea.vmem %s1812_s2, %s1298_s29 }
  0x27   : > { %698 = vmatpush.bf16.msra.mxu3 %v1189_v12  ;;  %v452_v39 = vpack.c.bf16 %v446_v34, %v444_v33  ;;  %v1335_v45 = vld [vmem:[%s1815_s5 + $0x18] sm:$0xff]  ;;  %v1344_v46 = vld [vmem:[%s1815_s5 + $0x60] sm:$0xff]  ;;  %v1334_v47 = vld [vmem:[%s1815_s5 + $0x10] sm:$0xff]  ;;  %s440_s19 = scalar_lea.vmem %s1821_s11, %s1298_s29 }
  0x28   : > { %v1343_v48 = vld [vmem:[%s1815_s5 + $0x58] sm:$0xff]  ;;  %v1333_v49 = vld [vmem:[%s1815_s5 + $0x8] sm:$0xff]  ;;  %v1342_v50 = vld [vmem:[%s1815_s5 + $0x50] sm:$0xff] }
  0x29   : > { %657 = vmatpush.bf16.msra.mxu0 %v1113_v18  ;;  %v1332_v51 = vld [vmem:[%s1815_s5] sm:$0xff]  ;;  %v1341_v52 = vld [vmem:[%s1815_s5 + $0x48] sm:$0xff]  ;;  %v897_v55 = vld [vmem:[%s1819_s9 + $0x78] sm:$0xff] }
  0x2a   : > { %671 = vmatpush.bf16.msra.mxu1 %v1177_v19  ;;  %685 = vmatpush.bf16.msra.mxu2 %v1117_v20  ;;  %v1340_v53 = vld [vmem:[%s1815_s5 + $0x40] sm:$0xff]  ;;  %v896_v56 = vld [vmem:[%s1819_s9 + $0x70] sm:$0xff]  ;;  %v895_v58 = vld [vmem:[%s1819_s9 + $0x68] sm:$0xff]  ;;  %v711_v12 = vstv %s1101_s30 }
  0x2b   : > { %699 = vmatpush.bf16.msra.mxu3 %v1181_v23  ;;  %v485_v54 = vld [vmem:[%s1814_s4] sm:$0x3]  ;;  %v893_v63 = vld [vmem:[%s1819_s9 + $0x58] sm:$0xff]  ;;  %v892_v1 = vld [vmem:[%s1819_s9 + $0x50] sm:$0xff] }
  0x2c   : > { %v487_v57 = vperm.slane %v485_v54, 0  ;;  %v894_v60 = vld [vmem:[%s1819_s9 + $0x60] sm:$0xff]  ;;  %v488_v0 = vperm.slane %v485_v54, 1  ;;  %v891_v4 = vld [vmem:[%s1819_s9 + $0x48] sm:$0xff]  ;;  %v449_v13 = vld [vmem:[%s1749_s16 + $0x10] sm:$0xff] }
  0x2d   : > { %658 = vmatpush.bf16.msra.mxu0 %v1105_v28  ;;  %v447_v3 = vld [vmem:[%s1749_s16] sm:$0xff]  ;;  %v889_v15 = vld [vmem:[%s1819_s9 + $0x38] sm:$0xff]  ;;  %v888_v18 = vld [vmem:[%s1819_s9 + $0x30] sm:$0xff] }
  0x2e   : > { %672 = vmatpush.bf16.msra.mxu1 %v1169_v31  ;;  %686 = vmatpush.bf16.msra.mxu2 %v1109_v32  ;;  %v890_v9 = vld [vmem:[%s1819_s9 + $0x40] sm:$0xff]  ;;  %v448_v20 = vld [vmem:[%s1749_s16 + $0x8] sm:$0xff]  ;;  %v450_v29 = vld [vmem:[%s1749_s16 + $0x18] sm:$0xff] }
  0x2f   : > { %700 = vmatpush.bf16.msra.mxu3 %v1173_v35  ;;  %v887_v22 = vld [vmem:[%s1819_s9 + $0x28] sm:$0xff] }
  0x30   : > { %659 = vmatmul.bf16.vlgmr.msra.gmra.mxu0 %v451_v37 }
  0x31   : > { %854 = vmatpush.bf16.msrb.mxu0 %v1339_v36  ;;  %673 = vmatmul.bf16.vlgmr.msra.gmra.mxu1 %v452_v39 }
  0x32   : > { %868 = vmatpush.bf16.msrb.mxu1 %v1347_v38  ;;  %687 = vmatmul.bf16.vlgmr.msra.gmra.mxu2 %v451_v37 }
  0x33   : > { %701 = vmatmul.bf16.vlgmr.msra.gmra.mxu3 %v452_v39  ;;  %898 = vmatpush.msrb.mxu2 %v897_v55  ;;  %v886_v39 = vld [vmem:[%s1819_s9 + $0x20] sm:$0xff] }
  0x34   : > { %925 = vmatpush.msrb.mxu3 %v897_v55 }
  0x35   : > { %855 = vmatpush.bf16.msrb.mxu0 %v1338_v40  ;;  %899 = vmatpush.msrb.mxu2 %v896_v56  ;;  %v885_v40 = vld [vmem:[%s1819_s9 + $0x18] sm:$0xff] }
  0x36   : > { %869 = vmatpush.bf16.msrb.mxu1 %v1346_v42  ;;  %926 = vmatpush.msrb.mxu3 %v896_v56  ;;  %v883_v42 = vld [vmem:[%s1819_s9 + $0x8] sm:$0xff] }
  0x37   : > { %900 = vmatpush.msrb.mxu2 %v895_v58 }
  0x38   : > { %927 = vmatpush.msrb.mxu3 %v895_v58 }
  0x39   : > { %856 = vmatpush.bf16.msrb.mxu0 %v1337_v41  ;;  %901 = vmatpush.msrb.mxu2 %v894_v60  ;;  %v884_v41 = vld [vmem:[%s1819_s9 + $0x10] sm:$0xff] }
  0x3a   : > { %870 = vmatpush.bf16.msrb.mxu1 %v1345_v44  ;;  %928 = vmatpush.msrb.mxu3 %v894_v60 }
  0x3b   : > { %902 = vmatpush.msrb.mxu2 %v893_v63 }
  0x3c   : > { %929 = vmatpush.msrb.mxu3 %v893_v63 }
  0x3d   : > { %857 = vmatpush.bf16.msrb.mxu0 %v1336_v43  ;;  %903 = vmatpush.msrb.mxu2 %v892_v1  ;;  %v882_v43 = vld [vmem:[%s1819_s9] sm:$0xff] }
  0x3e   : > { %871 = vmatpush.bf16.msrb.mxu1 %v1344_v46  ;;  %930 = vmatpush.msrb.mxu3 %v892_v1 }
  0x3f   : > { %904 = vmatpush.msrb.mxu2 %v891_v4 }
  0x40   : > { %931 = vmatpush.msrb.mxu3 %v891_v4 }
  0x41   : > { %858 = vmatpush.bf16.msrb.mxu0 %v1335_v45  ;;  %905 = vmatpush.msrb.mxu2 %v890_v9  ;;  %v1367_v45 = vld [vmem:[%s1816_s6] ss:$0 sm:$0xff] }
  0x42   : > { %872 = vmatpush.bf16.msrb.mxu1 %v1343_v48  ;;  %932 = vmatpush.msrb.mxu3 %v890_v9 }
  0x43   : > { %906 = vmatpush.msrb.mxu2 %v889_v15 }
  0x44   : > { %933 = vmatpush.msrb.mxu3 %v889_v15 }
  0x45   : > { %859 = vmatpush.bf16.msrb.mxu0 %v1334_v47  ;;  %907 = vmatpush.msrb.mxu2 %v888_v18 }
  0x46   : > { %873 = vmatpush.bf16.msrb.mxu1 %v1342_v50  ;;  %934 = vmatpush.msrb.mxu3 %v888_v18  ;;  %v989_v18 = vld [vmem:[%s435_s15] sm:$0xff] }
  0x47   : > { %908 = vmatpush.msrb.mxu2 %v887_v22 }
  0x48   : > { %935 = vmatpush.msrb.mxu3 %v887_v22 }
  0x49   : > { %860 = vmatpush.bf16.msrb.mxu0 %v1333_v49  ;;  %909 = vmatpush.msrb.mxu2 %v886_v39 }
  0x4a   : > { %874 = vmatpush.bf16.msrb.mxu1 %v1341_v52  ;;  %936 = vmatpush.msrb.mxu3 %v886_v39 }
  0x4b   : > { %910 = vmatpush.msrb.mxu2 %v885_v40 }
  0x4c   : > { %937 = vmatpush.msrb.mxu3 %v885_v40 }
  0x4d   : > { %861 = vmatpush.bf16.msrb.mxu0 %v1332_v51  ;;  %911 = vmatpush.msrb.mxu2 %v884_v41 }
  0x4e   : > { %875 = vmatpush.bf16.msrb.mxu1 %v1340_v53  ;;  %938 = vmatpush.msrb.mxu3 %v884_v41 }
  0x4f   : > { %912 = vmatpush.msrb.mxu2 %v883_v42 }
  0x50   : > { %939 = vmatpush.msrb.mxu3 %v883_v42 }
  0x51   : > { %913 = vmatpush.msrb.mxu2 %v882_v43 }
  0x52   : > { %940 = vmatpush.msrb.mxu3 %v882_v43 }
  0xad   : > { %v660_v59 = vpop.f32.mrf.mxu0 }
  0xae   : > { %v661_v61 = vadd.f32 %v660_v59, %v487_v57  ;;  %v674_v62 = vpop.f32.mrf.mxu1 }
  0xb0   : > { %v675_v2 = vadd.f32 %v674_v62, %v661_v61 }
  0xb2   : > { %v707_v10 = vmul.f32 %v675_v2, %v447_v3 }
  0xb4   : > { %v712_v19 = vmul.f32 %v711_v12, %v707_v10 }
  0xb5   : > { %v688_v5 = vpop.f32.mrf.mxu2  ;;  %v662_v8 = vpop.f32.mrf.mxu0 }
  0xb6   : > { %v689_v6 = vadd.f32 %v688_v5, %v488_v0  ;;  %v702_v7 = vpop.f32.mrf.mxu3  ;;  %v663_v11 = vadd.f32 %v662_v8, %v487_v57  ;;  %v676_v14 = vpop.f32.mrf.mxu1  ;;  %v716_v27 = vadd.f32 %v712_v19, %v447_v3 }
  0xb8   : > { %v677_v16 = vadd.f32 %v676_v14, %v663_v11  ;;  %v703_v17 = vadd.f32 %v702_v7, %v689_v6  ;;  %v1368_v7 = vld [vmem:[%s1817_s7] ss:$0 sm:$0xff]  ;;  %v984_v14 = vstv %s1791_s25 }
  0xb9   : > { %v1369_v11 = vld [vmem:[%s1818_s8] ss:$0 sm:$0xff] }
  0xba   : > { %v709_v21 = vmul.f32 %v677_v16, %v449_v13  ;;  %v708_v25 = vmul.f32 %v703_v17, %v448_v20 }
  0xbc   : > { %v714_v23 = vmul.f32 %v711_v12, %v709_v21  ;;  %v713_v33 = vmul.f32 %v711_v12, %v708_v25 }
  0xbd   : > { %v690_v24 = vpop.f32.mrf.mxu2 }
  0xbe   : > { %v691_v26 = vadd.f32 %v690_v24, %v488_v0  ;;  %v718_v28 = vadd.f32 %v714_v23, %v449_v13  ;;  %v704_v30 = vpop.f32.mrf.mxu3  ;;  %v717_v36 = vadd.f32 %v713_v33, %v448_v20 }
  0xc0   : > { %v705_v31 = vadd.f32 %v704_v30, %v691_v26  ;;  %v720_v32 = vpack.c.bf16 %v718_v28, %v716_v27  ;;  %v990_v26 = vld [vmem:[%s435_s15 + $0x8] sm:$0xff] }
  0xc2   : > { %v710_v34 = vmul.f32 %v705_v31, %v450_v29  ;;  %862 = vmatmul.bf16.vlgmr.msrb.gmra.mxu0 %v720_v32 }
  0xc4   : > { %v715_v35 = vmul.f32 %v711_v12, %v710_v34 }
  0xc6   : > { %v719_v37 = vadd.f32 %v715_v35, %v450_v29 }
  0xc8   : > { %v721_v38 = vpack.c.bf16 %v719_v37, %v717_v36 }
  0xca   : > { %876 = vmatmul.bf16.vlgmr.msrb.gmra.mxu1 %v721_v38 }
 0x13f   : > { %v863_v44 = vpop.f32.mrf.mxu0 }
 0x140   : > { %v864_v46 = vadd.f32 %v1367_v45, %v863_v44 }
 0x147   : > { %v877_v47 = vpop.f32.mrf.mxu1  ;;  %v865_v49 = vpop.f32.mrf.mxu0 }
 0x148   : > { %v878_v48 = vadd.f32 %v877_v47, %v864_v46  ;;  %v866_v50 = vadd.f32 %v1367_v45, %v865_v49 }
 0x14a   : > { %914 = vmatmul.f32.vlgmr.msrb.gmra.mxu2 %v878_v48 }
 0x14f   : > { %v879_v51 = vpop.f32.mrf.mxu1 }
 0x150   : > { %v880_v52 = vadd.f32 %v879_v51, %v866_v50 }
 0x152   : > { %917 = vmatmul.f32.gmra.mxu2 %v880_v52 }
 0x1cd   : > { %v915_v53 = vpop.f32.mrf.mxu2 }
 0x1ce   : > { %v921_v54 = vsub.f32 %v878_v48, %v915_v53 }
 0x1d0   : > { %v923_v55 = vmul.f32 %v921_v54, %v921_v54 }
 0x1d2   : > { %941 = vmatmul.f32.vlgmr.msrb.gmra.mxu3 %v923_v55 }
 0x1d5   : > { %v918_v56 = vpop.f32.mrf.mxu2 }
 0x1d6   : > { %v922_v57 = vsub.f32 %v880_v52, %v918_v56 }
 0x1d8   : > { %v924_v58 = vmul.f32 %v922_v57, %v922_v57 }
 0x1da   : > { %944 = vmatmul.f32.gmra.mxu3 %v924_v58 }
 0x255   : > { %v942_v59 = vpop.f32.mrf.mxu3 }
 0x256   : > { %v943_v60 = vadd.f32 1e-05, %v942_v59 }
 0x258   : > { %1370 = vrsqrt.f32 %v943_v60  ;;  %vm954_vm1 = vweird.f32 %v943_v60 }
 0x25d   : > { %v945_v61 = vpop.f32.mrf.mxu3 }
 0x25e   : > { %v1371_v62 = vpop.eup %1370  ;;  %v946_v63 = vadd.f32 1e-05, %v945_v61 }
 0x25f   : > { %v949_v0 = vmul.f32 %v1371_v62, %v943_v60  ;;  %vm955_vm0 = vweird.f32 %v1371_v62 }
 0x260   : > { %1372 = vrsqrt.f32 %v946_v63  ;;  %vm956_vm2 = vmor %vm954_vm1, %vm955_vm0  ;;  %vm964_vm4 = vweird.f32 %v946_v63 }
 0x261   : > { %v950_v1 = vmul.f32 %v1371_v62, %v949_v0 }
 0x263   : > { %v951_v2 = vmul.f32 0.5, %v950_v1 }
 0x265   : > { %v952_v3 = vsub.f32 1.5, %v951_v2 }
 0x266   : > { %v1373_v4 = vpop.eup %1372 }
 0x267   : > { %v953_v5 = vmul.f32 %v1371_v62, %v952_v3  ;;  %v959_v6 = vmul.f32 %v1373_v4, %v946_v63  ;;  %vm965_vm3 = vweird.f32 %v1373_v4 }
 0x268   : > { %vm966_vm6 = vmor %vm964_vm4, %vm965_vm3 }
 0x269   : > { %v957_v8 = vsel %vm956_vm2, %v1371_v62, %v953_v5  ;;  %v960_v9 = vmul.f32 %v1373_v4, %v959_v6 }
 0x26a   : > { %v968_v10 = vmul.f32 %v957_v8, %v921_v54 }
 0x26b   : > { %v961_v12 = vmul.f32 0.5, %v960_v9 }
 0x26c   : > { %v974_v13 = vmul.f32 %v1368_v7, %v968_v10 }
 0x26d   : > { %v962_v15 = vsub.f32 1.5, %v961_v12 }
 0x26e   : > { %v980_v16 = vadd.f32 %v1369_v11, %v974_v13 }
 0x26f   : > { %v963_v17 = vmul.f32 %v1373_v4, %v962_v15 }
 0x270   : > { %vm982_vm5 = vcmp.gt.f32.partialorder %v980_v16, 0.0  ;;  %v985_v19 = vmul.f32 %v984_v14, %v980_v16 }
 0x271   : > { %v967_v20 = vsel %vm966_vm6, %v1373_v4, %v963_v17 }
 0x272   : > { %v987_v21 = vsel %vm982_vm5, %v980_v16, %v985_v19  ;;  %v969_v22 = vmul.f32 %v967_v20, %v922_v57 }
 0x273   : > { %v991_v23 = vadd.f32 %v989_v18, %v987_v21 }
 0x274   : > { %v975_v24 = vmul.f32 %v1368_v7, %v969_v22 }
 0x275   : > { %993 = vst [vmem:[%s440_s19] sm:$0xff] %v991_v23 }
 0x276   : > { %v981_v25 = vadd.f32 %v1369_v11, %v975_v24 }
 0x278   : > { %vm983_vm7 = vcmp.gt.f32.partialorder %v981_v25, 0.0  ;;  %v986_v27 = vmul.f32 %v984_v14, %v981_v25 }
 0x27a   : > { %v988_v28 = vsel %vm983_vm7, %v981_v25, %v986_v27 }
 0x27b   : > { %v992_v29 = vadd.f32 %v990_v26, %v988_v28 }
 0x27d   : > { %994 = vst [vmem:[%s440_s19 + $0x8] sm:$0xff] %v992_v29 }
 0x27e PF: > { %s22_s17 = sadd.s32 1, %s1399_s17  }
 0x27f   : > { %p19_p7 = scmp.ge.s32.totalorder %s22_s17, 4  }
 0x281   :  { %21 = sbr.rel (!%p19_p7) target bundleno = 1 (0x1), region = 105 }
 0x286   :  { %1016 = vsyncpa [#allocation3], 1 }
 0x287   :  { %1018 = vsyncpa [#allocation3 + $0x1], 1 }

// kernel: sr_block_forward.4
= control target key start
LH: loop header
LB: loop body
LE: loop exit
PB: predicated region body
PF: predicated region fallthrough
CT: control target
= control target key end

     0   :  { %s5764_s12 = smov 0   ;;  %s8654_s0 = inlined_call_operand.vmem [shape: f32[36,56,8], index: 0, kind: input, shape index: {}]   ;;  %s8655_s1 = inlined_call_operand.vmem [shape: f32[36,56,8], index: 1, kind: input, shape index: {}]   ;;  %s8656_s2 = inlined_call_operand.vmem [shape: f32[36,56,8], index: 2, kind: input, shape index: {}]   ;;  %s8657_s3 = inlined_call_operand.vmem [shape: f32[36,56,8], index: 3, kind: output, shape index: {}]  }
   0x1 LB: > { %s4834_s13 = sadd.s32 4294967295, %s5742_s12   ;;  %p4838_p0 = scmp.ge.s32.totalorder %s5742_s12, 1  ;;  %s5742_s12 = sphi %s5764_s12, %s13_s12  }
   0x2   : > { %p163_p1 = scmp.lt.s32.totalorder %s5742_s12, 3 }
   0x4   : > { %p164_p2 = pnand %p4838_p0, %p163_p1 }
   0x6   : > { %167 = sbr.rel (%p164_p2) target bundleno = 976 (0x3d0), region = 32 }
   0xb   : > { %s201_s14 = smul.u32 18, %s4834_s13  ;;  %vm607_vm0 = vcmask 64512   ;;  %vm2177_vm2 = vcmask 457728  }
   0xd   : > { %p202_p3 = scmp.lt.s32.totalorder %s201_s14, 35 }
   0xf   : > { %s8904_s14 = smov (!%p202_p3, %s201_s14), 35 }
  0x10   : > { %s5772_s15 = smul.u32 56, %s8904_s14 }
  0x12   : > { %s5778_s18 = scalar_lea.vmem %s8655_s1, %s5772_s15  ;;  %s5834_s21 = scalar_lea.vmem %s8654_s0, %s5772_s15 }
  0x13   : > { %v361_v0 = vld [vmem:[%s5778_s18 + $0x30] sm:$0xff]  ;;  %v368_v1 = vld [vmem:[%s5778_s18 + $0x68] sm:$0xff]  ;;  %v375_v2 = vld [vmem:[%s5778_s18 + $0xa0] sm:$0xff]  ;;  %s6463_s24 = scalar_lea.vmem %s8656_s2, %s5772_s15  ;;  %s7492_s27 = scalar_lea.vmem %s8657_s3, %s5772_s15 }
  0x14   : > { %4843 = vmatpush.xpose.msk.msra.mxu0 %vm607_vm0, %v361_v0  ;;  %4857 = vmatpush.xpose.msk.msra.mxu1 %vm607_vm0, %v368_v1  ;;  %v382_v3 = vld [vmem:[%s5778_s18 + $0xd8] sm:$0xff]  ;;  %v360_v4 = vld [vmem:[%s5778_s18 + $0x28] sm:$0xff]  ;;  %v367_v5 = vld [vmem:[%s5778_s18 + $0x60] sm:$0xff] }
  0x15   : > { %4871 = vmatpush.xpose.msk.msra.mxu2 %vm607_vm0, %v375_v2  ;;  %4885 = vmatpush.xpose.msk.msra.mxu3 %vm607_vm0, %v382_v3  ;;  %v374_v6 = vld [vmem:[%s5778_s18 + $0x98] sm:$0xff]  ;;  %v381_v7 = vld [vmem:[%s5778_s18 + $0xd0] sm:$0xff]  ;;  %v359_v8 = vld [vmem:[%s5778_s18 + $0x20] sm:$0xff] }
  0x16   : > { %v366_v9 = vld [vmem:[%s5778_s18 + $0x58] sm:$0xff]  ;;  %v373_v10 = vld [vmem:[%s5778_s18 + $0x90] sm:$0xff]  ;;  %v380_v11 = vld [vmem:[%s5778_s18 + $0xc8] sm:$0xff] }
  0x17   : > { %v358_v12 = vld [vmem:[%s5778_s18 + $0x18] sm:$0xff]  ;;  %v365_v13 = vld [vmem:[%s5778_s18 + $0x50] sm:$0xff]  ;;  %v372_v14 = vld [vmem:[%s5778_s18 + $0x88] sm:$0xff] }
  0x18   : > { %4844 = vmatpush.xpose.msk.msra.mxu0 %vm607_vm0, %v360_v4  ;;  %4858 = vmatpush.xpose.msk.msra.mxu1 %vm607_vm0, %v367_v5  ;;  %v379_v15 = vld [vmem:[%s5778_s18 + $0xc0] sm:$0xff]  ;;  %v357_v16 = vld [vmem:[%s5778_s18 + $0x10] sm:$0xff]  ;;  %v364_v17 = vld [vmem:[%s5778_s18 + $0x48] sm:$0xff] }
  0x19   : > { %4872 = vmatpush.xpose.msk.msra.mxu2 %vm607_vm0, %v374_v6  ;;  %4886 = vmatpush.xpose.msk.msra.mxu3 %vm607_vm0, %v381_v7  ;;  %v371_v18 = vld [vmem:[%s5778_s18 + $0x80] sm:$0xff]  ;;  %v378_v19 = vld [vmem:[%s5778_s18 + $0xb8] sm:$0xff]  ;;  %v356_v20 = vld [vmem:[%s5778_s18 + $0x8] sm:$0xff] }
  0x1a   : > { %v363_v21 = vld [vmem:[%s5778_s18 + $0x40] sm:$0xff]  ;;  %v370_v22 = vld [vmem:[%s5778_s18 + $0x78] sm:$0xff]  ;;  %v377_v23 = vld [vmem:[%s5778_s18 + $0xb0] sm:$0xff] }
  0x1b   : > { %v355_v24 = vld [vmem:[%s5778_s18] sm:$0xff]  ;;  %v362_v25 = vld [vmem:[%s5778_s18 + $0x38] sm:$0xff]  ;;  %v369_v26 = vld [vmem:[%s5778_s18 + $0x70] sm:$0xff] }
  0x1c   : > { %4845 = vmatpush.xpose.msk.msra.mxu0 %vm607_vm0, %v359_v8  ;;  %4859 = vmatpush.xpose.msk.msra.mxu1 %vm607_vm0, %v366_v9  ;;  %v376_v27 = vld [vmem:[%s5778_s18 + $0xa8] sm:$0xff]  ;;  %v389_v28 = vld [vmem:[%s5778_s18 + $0x110] sm:$0xff]  ;;  %v229_v30 = vld [vmem:[%s5834_s21] sm:$0xff] }
  0x1d   : > { %4873 = vmatpush.xpose.msk.msra.mxu2 %vm607_vm0, %v373_v10  ;;  %4887 = vmatpush.xpose.msk.msra.mxu3 %vm607_vm0, %v380_v11  ;;  %v396_v29 = vld [vmem:[%s5778_s18 + $0x148] sm:$0xff]  ;;  %v236_v31 = vld [vmem:[%s5834_s21 + $0x38] sm:$0xff]  ;;  %v243_v32 = vld [vmem:[%s5834_s21 + $0x70] sm:$0xff] }
  0x1e   : > { %v250_v33 = vld [vmem:[%s5834_s21 + $0xa8] sm:$0xff]  ;;  %v403_v34 = vld [vmem:[%s5778_s18 + $0x180] sm:$0xff]  ;;  %v410_v35 = vld [vmem:[%s5778_s18 + $0x1b8] sm:$0xff] }
  0x1f   : > { %v388_v36 = vld [vmem:[%s5778_s18 + $0x108] sm:$0xff]  ;;  %v395_v37 = vld [vmem:[%s5778_s18 + $0x140] sm:$0xff]  ;;  %v402_v38 = vld [vmem:[%s5778_s18 + $0x178] sm:$0xff] }
  0x20   : > { %4846 = vmatpush.xpose.msk.msra.mxu0 %vm607_vm0, %v358_v12  ;;  %4860 = vmatpush.xpose.msk.msra.mxu1 %vm607_vm0, %v365_v13  ;;  %v409_v39 = vld [vmem:[%s5778_s18 + $0x1b0] sm:$0xff]  ;;  %v387_v40 = vld [vmem:[%s5778_s18 + $0x100] sm:$0xff]  ;;  %v394_v41 = vld [vmem:[%s5778_s18 + $0x138] sm:$0xff] }
  0x21   : > { %4874 = vmatpush.xpose.msk.msra.mxu2 %vm607_vm0, %v372_v14  ;;  %4888 = vmatpush.xpose.msk.msra.mxu3 %vm607_vm0, %v379_v15  ;;  %v230_v42 = vld [vmem:[%s5834_s21 + $0x8] sm:$0xff]  ;;  %v237_v43 = vld [vmem:[%s5834_s21 + $0x40] sm:$0xff]  ;;  %v244_v44 = vld [vmem:[%s5834_s21 + $0x78] sm:$0xff] }
  0x22   : > { %v251_v45 = vld [vmem:[%s5834_s21 + $0xb0] sm:$0xff]  ;;  %v408_v47 = vld [vmem:[%s5778_s18 + $0x1a8] sm:$0xff]  ;;  %v386_v48 = vld [vmem:[%s5778_s18 + $0xf8] sm:$0xff] }
  0x23   : > { %v401_v46 = vld [vmem:[%s5778_s18 + $0x170] sm:$0xff]  ;;  %v392_v51 = vld [vmem:[%s5778_s18 + $0x128] sm:$0xff]  ;;  %v245_v54 = vld [vmem:[%s5834_s21 + $0x80] sm:$0xff] }
  0x24   : > { %4847 = vmatpush.xpose.msk.msra.mxu0 %vm607_vm0, %v357_v16  ;;  %4861 = vmatpush.xpose.msk.msra.mxu1 %vm607_vm0, %v364_v17  ;;  %v393_v49 = vld [vmem:[%s5778_s18 + $0x130] sm:$0xff]  ;;  %v238_v53 = vld [vmem:[%s5834_s21 + $0x48] sm:$0xff]  ;;  %v252_v55 = vld [vmem:[%s5834_s21 + $0xb8] sm:$0xff] }
  0x25   : > { %4875 = vmatpush.xpose.msk.msra.mxu2 %vm607_vm0, %v371_v18  ;;  %4889 = vmatpush.xpose.msk.msra.mxu3 %vm607_vm0, %v378_v19  ;;  %v385_v50 = vld [vmem:[%s5778_s18 + $0xf0] sm:$0xff]  ;;  %v400_v56 = vld [vmem:[%s5778_s18 + $0x168] sm:$0xff]  ;;  %v407_v57 = vld [vmem:[%s5778_s18 + $0x1a0] sm:$0xff] }
  0x26   : > { %v231_v52 = vld [vmem:[%s5834_s21 + $0x10] sm:$0xff]  ;;  %v384_v58 = vld [vmem:[%s5778_s18 + $0xe8] sm:$0xff]  ;;  %v391_v59 = vld [vmem:[%s5778_s18 + $0x120] sm:$0xff] }
  0x27   : > { %v383_v60 = vld [vmem:[%s5778_s18 + $0xe0] sm:$0xff]  ;;  %v390_v61 = vld [vmem:[%s5778_s18 + $0x118] sm:$0xff]  ;;  %v239_v63 = vld [vmem:[%s5834_s21 + $0x50] sm:$0xff] }
  0x28   : > { %4848 = vmatpush.xpose.msk.msra.mxu0 %vm607_vm0, %v356_v20  ;;  %4862 = vmatpush.xpose.msk.msra.mxu1 %vm607_vm0, %v363_v21  ;;  %v232_v62 = vld [vmem:[%s5834_s21 + $0x18] sm:$0xff]  ;;  %v246_v0 = vld [vmem:[%s5834_s21 + $0x88] sm:$0xff]  ;;  %v253_v1 = vld [vmem:[%s5834_s21 + $0xc0] sm:$0xff] }
  0x29   : > { %4876 = vmatpush.xpose.msk.msra.mxu2 %vm607_vm0, %v370_v22  ;;  %4890 = vmatpush.xpose.msk.msra.mxu3 %vm607_vm0, %v377_v23  ;;  %v399_v2 = vld [vmem:[%s5778_s18 + $0x160] sm:$0xff]  ;;  %v406_v3 = vld [vmem:[%s5778_s18 + $0x198] sm:$0xff]  ;;  %v247_v6 = vld [vmem:[%s5834_s21 + $0x90] sm:$0xff] }
  0x2a   : > { %v233_v4 = vld [vmem:[%s5834_s21 + $0x20] sm:$0xff]  ;;  %v240_v5 = vld [vmem:[%s5834_s21 + $0x58] sm:$0xff]  ;;  %v254_v7 = vld [vmem:[%s5834_s21 + $0xc8] sm:$0xff] }
  0x2b   : > { %v398_v8 = vld [vmem:[%s5778_s18 + $0x158] sm:$0xff]  ;;  %v405_v9 = vld [vmem:[%s5778_s18 + $0x190] sm:$0xff]  ;;  %v234_v11 = vld [vmem:[%s5834_s21 + $0x28] sm:$0xff] }
  0x2c   : > { %4849 = vmatpush.xpose.msk.msra.mxu0 %vm607_vm0, %v355_v24  ;;  %4863 = vmatpush.xpose.msk.msra.mxu1 %vm607_vm0, %v362_v25  ;;  %v397_v10 = vld [vmem:[%s5778_s18 + $0x150] sm:$0xff]  ;;  %v241_v12 = vld [vmem:[%s5834_s21 + $0x60] sm:$0xff]  ;;  %v248_v13 = vld [vmem:[%s5834_s21 + $0x98] sm:$0xff] }
  0x2d   : > { %4877 = vmatpush.xpose.msk.msra.mxu2 %vm607_vm0, %v369_v26  ;;  %4891 = vmatpush.xpose.msk.msra.mxu3 %vm607_vm0, %v376_v27  ;;  %v255_v14 = vld [vmem:[%s5834_s21 + $0xd0] sm:$0xff]  ;;  %v404_v15 = vld [vmem:[%s5778_s18 + $0x188] sm:$0xff]  ;;  %v249_v18 = vld [vmem:[%s5834_s21 + $0xa0] sm:$0xff] }
  0x2e   : > { %v235_v16 = vld [vmem:[%s5834_s21 + $0x30] sm:$0xff]  ;;  %v242_v17 = vld [vmem:[%s5834_s21 + $0x68] sm:$0xff]  ;;  %v256_v19 = vld [vmem:[%s5834_s21 + $0xd8] sm:$0xff] }
  0x2f   : > { %4850 = vmatmul.msk.f32.vlgmr.msra.gmra.mxu0 %vm607_vm0, %v229_v30  ;;  %4864 = vmatmul.msk.f32.vlgmr.msra.gmra.mxu1 %vm607_vm0, %v236_v31  ;;  %v417_v20 = vld [vmem:[%s5778_s18 + $0x1f0] sm:$0xff]  ;;  %v424_v21 = vld [vmem:[%s5778_s18 + $0x228] sm:$0xff]  ;;  %v257_v22 = vld [vmem:[%s5834_s21 + $0xe0] sm:$0xff] }
  0x30   : > { %4899 = vmatpush.xpose.msk.msrb.mxu0 %vm607_vm0, %v389_v28  ;;  %4913 = vmatpush.xpose.msk.msrb.mxu1 %vm607_vm0, %v396_v29  ;;  %v264_v23 = vld [vmem:[%s5834_s21 + $0x118] sm:$0xff]  ;;  %v271_v24 = vld [vmem:[%s5834_s21 + $0x150] sm:$0xff]  ;;  %v278_v25 = vld [vmem:[%s5834_s21 + $0x188] sm:$0xff] }
  0x31   : > { %4878 = vmatmul.msk.f32.vlgmr.msra.gmra.mxu2 %vm607_vm0, %v243_v32  ;;  %4892 = vmatmul.msk.f32.vlgmr.msra.gmra.mxu3 %vm607_vm0, %v250_v33  ;;  %v416_v26 = vld [vmem:[%s5778_s18 + $0x1e8] sm:$0xff]  ;;  %v423_v27 = vld [vmem:[%s5778_s18 + $0x220] sm:$0xff]  ;;  %v422_v29 = vld [vmem:[%s5778_s18 + $0x218] sm:$0xff] }
  0x32   : > { %4927 = vmatpush.xpose.msk.msrb.mxu2 %vm607_vm0, %v403_v34  ;;  %4941 = vmatpush.xpose.msk.msrb.mxu3 %vm607_vm0, %v410_v35  ;;  %v415_v28 = vld [vmem:[%s5778_s18 + $0x1e0] sm:$0xff]  ;;  %v258_v30 = vld [vmem:[%s5834_s21 + $0xe8] sm:$0xff]  ;;  %v272_v32 = vld [vmem:[%s5834_s21 + $0x158] sm:$0xff] }
  0x33   : > { %v265_v31 = vld [vmem:[%s5834_s21 + $0x120] sm:$0xff]  ;;  %v279_v33 = vld [vmem:[%s5834_s21 + $0x190] sm:$0xff]  ;;  %v438_v35 = vld [vmem:[%s5778_s18 + $0x298] sm:$0xff] }
  0x34   : > { %4900 = vmatpush.xpose.msk.msrb.mxu0 %vm607_vm0, %v388_v36  ;;  %4914 = vmatpush.xpose.msk.msrb.mxu1 %vm607_vm0, %v395_v37  ;;  %v431_v34 = vld [vmem:[%s5778_s18 + $0x260] sm:$0xff]  ;;  %v414_v36 = vld [vmem:[%s5778_s18 + $0x1d8] sm:$0xff]  ;;  %v421_v37 = vld [vmem:[%s5778_s18 + $0x210] sm:$0xff] }
  0x36   : > { %4928 = vmatpush.xpose.msk.msrb.mxu2 %vm607_vm0, %v402_v38  ;;  %4942 = vmatpush.xpose.msk.msrb.mxu3 %vm607_vm0, %v409_v39  ;;  %v413_v38 = vld [vmem:[%s5778_s18 + $0x1d0] sm:$0xff]  ;;  %v420_v39 = vld [vmem:[%s5778_s18 + $0x208] sm:$0xff] }
  0x37   : > { %4851 = vmatmul.msk.f32.gmra.mxu0 %vm607_vm0, %v230_v42  ;;  %4865 = vmatmul.msk.f32.gmra.mxu1 %vm607_vm0, %v237_v43  ;;  %v273_v42 = vld [vmem:[%s5834_s21 + $0x160] sm:$0xff]  ;;  %v280_v43 = vld [vmem:[%s5834_s21 + $0x198] sm:$0xff] }
  0x38   : > { %4901 = vmatpush.xpose.msk.msrb.mxu0 %vm607_vm0, %v387_v40  ;;  %4915 = vmatpush.xpose.msk.msrb.mxu1 %vm607_vm0, %v394_v41  ;;  %v259_v40 = vld [vmem:[%s5834_s21 + $0xf0] sm:$0xff]  ;;  %v266_v41 = vld [vmem:[%s5834_s21 + $0x128] sm:$0xff] }
  0x39   : > { %4879 = vmatmul.msk.f32.gmra.mxu2 %vm607_vm0, %v244_v44  ;;  %4893 = vmatmul.msk.f32.gmra.mxu3 %vm607_vm0, %v251_v45  ;;  %v430_v44 = vld [vmem:[%s5778_s18 + $0x258] sm:$0xff]  ;;  %v437_v45 = vld [vmem:[%s5778_s18 + $0x290] sm:$0xff] }
  0x3a   : > { %4929 = vmatpush.xpose.msk.msrb.mxu2 %vm607_vm0, %v401_v46  ;;  %4943 = vmatpush.xpose.msk.msrb.mxu3 %vm607_vm0, %v408_v47  ;;  %v412_v46 = vld [vmem:[%s5778_s18 + $0x1c8] sm:$0xff]  ;;  %v419_v47 = vld [vmem:[%s5778_s18 + $0x200] sm:$0xff] }
  0x3c   : > { %4902 = vmatpush.xpose.msk.msrb.mxu0 %vm607_vm0, %v386_v48  ;;  %4916 = vmatpush.xpose.msk.msrb.mxu1 %vm607_vm0, %v393_v49  ;;  %v411_v48 = vld [vmem:[%s5778_s18 + $0x1c0] sm:$0xff]  ;;  %v418_v49 = vld [vmem:[%s5778_s18 + $0x1f8] sm:$0xff] }
  0x3e   : > { %4930 = vmatpush.xpose.msk.msrb.mxu2 %vm607_vm0, %v400_v56  ;;  %4944 = vmatpush.xpose.msk.msrb.mxu3 %vm607_vm0, %v407_v57  ;;  %v261_v56 = vld [vmem:[%s5834_s21 + $0x100] sm:$0xff]  ;;  %v268_v57 = vld [vmem:[%s5834_s21 + $0x138] sm:$0xff] }
  0x3f   : > { %4852 = vmatmul.msk.f32.gmra.mxu0 %vm607_vm0, %v231_v52  ;;  %4866 = vmatmul.msk.f32.gmra.mxu1 %vm607_vm0, %v238_v53  ;;  %v274_v52 = vld [vmem:[%s5834_s21 + $0x168] sm:$0xff]  ;;  %v281_v53 = vld [vmem:[%s5834_s21 + $0x1a0] sm:$0xff] }
  0x40   : > { %4903 = vmatpush.xpose.msk.msrb.mxu0 %vm607_vm0, %v385_v50  ;;  %4917 = vmatpush.xpose.msk.msrb.mxu1 %vm607_vm0, %v392_v51  ;;  %v260_v50 = vld [vmem:[%s5834_s21 + $0xf8] sm:$0xff]  ;;  %v267_v51 = vld [vmem:[%s5834_s21 + $0x130] sm:$0xff] }
  0x41   : > { %4880 = vmatmul.msk.f32.gmra.mxu2 %vm607_vm0, %v245_v54  ;;  %4894 = vmatmul.msk.f32.gmra.mxu3 %vm607_vm0, %v252_v55  ;;  %v429_v54 = vld [vmem:[%s5778_s18 + $0x250] sm:$0xff]  ;;  %v436_v55 = vld [vmem:[%s5778_s18 + $0x288] sm:$0xff] }
  0x42   : > { %4931 = vmatpush.xpose.msk.msrb.mxu2 %vm607_vm0, %v399_v2  ;;  %4945 = vmatpush.xpose.msk.msrb.mxu3 %vm607_vm0, %v406_v3  ;;  %v427_v2 = vld [vmem:[%s5778_s18 + $0x240] sm:$0xff]  ;;  %v434_v3 = vld [vmem:[%s5778_s18 + $0x278] sm:$0xff] }
  0x44   : > { %4904 = vmatpush.xpose.msk.msrb.mxu0 %vm607_vm0, %v384_v58  ;;  %4918 = vmatpush.xpose.msk.msrb.mxu1 %vm607_vm0, %v391_v59  ;;  %v275_v58 = vld [vmem:[%s5834_s21 + $0x170] sm:$0xff]  ;;  %v282_v59 = vld [vmem:[%s5834_s21 + $0x1a8] sm:$0xff] }
  0x46   : > { %4932 = vmatpush.xpose.msk.msrb.mxu2 %vm607_vm0, %v398_v8  ;;  %4946 = vmatpush.xpose.msk.msrb.mxu3 %vm607_vm0, %v405_v9  ;;  %v426_v8 = vld [vmem:[%s5778_s18 + $0x238] sm:$0xff]  ;;  %v433_v9 = vld [vmem:[%s5778_s18 + $0x270] sm:$0xff] }
  0x47   : > { %4853 = vmatmul.msk.f32.gmra.mxu0 %vm607_vm0, %v232_v62  ;;  %4867 = vmatmul.msk.f32.gmra.mxu1 %vm607_vm0, %v239_v63  ;;  %v262_v62 = vld [vmem:[%s5834_s21 + $0x108] sm:$0xff]  ;;  %v269_v63 = vld [vmem:[%s5834_s21 + $0x140] sm:$0xff] }
  0x48   : > { %4905 = vmatpush.xpose.msk.msrb.mxu0 %vm607_vm0, %v383_v60  ;;  %4919 = vmatpush.xpose.msk.msrb.mxu1 %vm607_vm0, %v390_v61  ;;  %v428_v60 = vld [vmem:[%s5778_s18 + $0x248] sm:$0xff]  ;;  %v435_v61 = vld [vmem:[%s5778_s18 + $0x280] sm:$0xff] }
  0x49   : > { %4881 = vmatmul.msk.f32.gmra.mxu2 %vm607_vm0, %v246_v0  ;;  %4895 = vmatmul.msk.f32.gmra.mxu3 %vm607_vm0, %v253_v1  ;;  %v276_v0 = vld [vmem:[%s5834_s21 + $0x178] sm:$0xff]  ;;  %v283_v1 = vld [vmem:[%s5834_s21 + $0x1b0] sm:$0xff] }
  0x4a   : > { %4933 = vmatpush.xpose.msk.msrb.mxu2 %vm607_vm0, %v397_v10  ;;  %4947 = vmatpush.xpose.msk.msrb.mxu3 %vm607_vm0, %v404_v15  ;;  %v285_v10 = vld [vmem:[%s5834_s21 + $0x1c0] sm:$0xff]  ;;  %v452_v15 = vld [vmem:[%s5778_s18 + $0x308] sm:$0xff] }
  0x4c   : > { %4955 = vmatpush.xpose.msk.msra.mxu0 %vm607_vm0, %v417_v20  ;;  %4969 = vmatpush.xpose.msk.msra.mxu1 %vm607_vm0, %v424_v21  ;;  %v2048_v20 = vlaneseq  ;;  %v286_v21 = vld [vmem:[%s5834_s21 + $0x1c8] sm:$0xff] }
  0x4e   : > { %4983 = vmatpush.xpose.msk.msra.mxu2 %vm607_vm0, %v431_v34  ;;  %4997 = vmatpush.xpose.msk.msra.mxu3 %vm607_vm0, %v438_v35  ;;  %v448_v34 = vld [vmem:[%s5778_s18 + $0x2e8] sm:$0xff] }
  0x4f   : > { %4854 = vmatmul.msk.f32.gmra.mxu0 %vm607_vm0, %v233_v4  ;;  %4868 = vmatmul.msk.f32.gmra.mxu1 %vm607_vm0, %v240_v5  ;;  %v263_v4 = vld [vmem:[%s5834_s21 + $0x110] sm:$0xff]  ;;  %v270_v5 = vld [vmem:[%s5834_s21 + $0x148] sm:$0xff] }
  0x50   : > { %4956 = vmatpush.xpose.msk.msra.mxu0 %vm607_vm0, %v416_v26  ;;  %4970 = vmatpush.xpose.msk.msra.mxu1 %vm607_vm0, %v423_v27  ;;  %v300_v26 = vld [vmem:[%s5834_s21 + $0x238] sm:$0xff]  ;;  %v307_v27 = vld [vmem:[%s5834_s21 + $0x270] sm:$0xff] }
  0x51   : > { %4882 = vmatmul.msk.f32.gmra.mxu2 %vm607_vm0, %v247_v6  ;;  %4896 = vmatmul.msk.f32.gmra.mxu3 %vm607_vm0, %v254_v7  ;;  %v277_v6 = vld [vmem:[%s5834_s21 + $0x180] sm:$0xff]  ;;  %v284_v7 = vld [vmem:[%s5834_s21 + $0x1b8] sm:$0xff] }
  0x52   : > { %4984 = vmatpush.xpose.msk.msra.mxu2 %vm607_vm0, %v430_v44  ;;  %4998 = vmatpush.xpose.msk.msra.mxu3 %vm607_vm0, %v437_v45 }
  0x54   : > { %4957 = vmatpush.xpose.msk.msra.mxu0 %vm607_vm0, %v415_v28  ;;  %4971 = vmatpush.xpose.msk.msra.mxu1 %vm607_vm0, %v422_v29  ;;  %v442_v28 = vld [vmem:[%s5778_s18 + $0x2b8] sm:$0xff]  ;;  %v449_v29 = vld [vmem:[%s5778_s18 + $0x2f0] sm:$0xff] }
  0x56   : > { %4985 = vmatpush.xpose.msk.msra.mxu2 %vm607_vm0, %v429_v54  ;;  %4999 = vmatpush.xpose.msk.msra.mxu3 %vm607_vm0, %v436_v55  ;;  %v446_v54 = vld [vmem:[%s5778_s18 + $0x2d8] sm:$0xff]  ;;  %v302_v55 = vld [vmem:[%s5834_s21 + $0x248] sm:$0xff] }
  0x57   : > { %4855 = vmatmul.msk.f32.gmra.mxu0 %vm607_vm0, %v234_v11  ;;  %4869 = vmatmul.msk.f32.gmra.mxu1 %vm607_vm0, %v241_v12  ;;  %v425_v11 = vld [vmem:[%s5778_s18 + $0x230] sm:$0xff]  ;;  %v432_v12 = vld [vmem:[%s5778_s18 + $0x268] sm:$0xff] }
  0x58   : > { %4958 = vmatpush.xpose.msk.msra.mxu0 %vm607_vm0, %v414_v36  ;;  %4972 = vmatpush.xpose.msk.msra.mxu1 %vm607_vm0, %v421_v37  ;;  %v287_v36 = vld [vmem:[%s5834_s21 + $0x1d0] sm:$0xff] }
  0x59   : > { %4883 = vmatmul.msk.f32.gmra.mxu2 %vm607_vm0, %v248_v13  ;;  %4897 = vmatmul.msk.f32.gmra.mxu3 %vm607_vm0, %v255_v14  ;;  %v292_v13 = vld [vmem:[%s5834_s21 + $0x1f8] sm:$0xff]  ;;  %v445_v14 = vld [vmem:[%s5778_s18 + $0x2d0] sm:$0xff] }
  0x5a   : > { %4986 = vmatpush.xpose.msk.msra.mxu2 %vm607_vm0, %v428_v60  ;;  %5000 = vmatpush.xpose.msk.msra.mxu3 %vm607_vm0, %v435_v61  ;;  %v466_v60 = vld [vmem:[%s5778_s18 + $0x378] sm:$0xff] }
  0x5c   : > { %4959 = vmatpush.xpose.msk.msra.mxu0 %vm607_vm0, %v413_v38  ;;  %4973 = vmatpush.xpose.msk.msra.mxu1 %vm607_vm0, %v420_v39 }
  0x5e   : > { %4987 = vmatpush.xpose.msk.msra.mxu2 %vm607_vm0, %v427_v2  ;;  %5001 = vmatpush.xpose.msk.msra.mxu3 %vm607_vm0, %v434_v3  ;;  %v296_v3 = vld [vmem:[%s5834_s21 + $0x218] sm:$0xff] }
  0x5f   : > { %4856 = vmatmul.msk.f32.gmra.mxu0 %vm607_vm0, %v235_v16  ;;  %4870 = vmatmul.msk.f32.gmra.mxu1 %vm607_vm0, %v242_v17  ;;  %v299_v16 = vld [vmem:[%s5834_s21 + $0x230] sm:$0xff]  ;;  %v306_v17 = vld [vmem:[%s5834_s21 + $0x268] sm:$0xff] }
  0x60   : > { %4960 = vmatpush.xpose.msk.msra.mxu0 %vm607_vm0, %v412_v46  ;;  %4974 = vmatpush.xpose.msk.msra.mxu1 %vm607_vm0, %v419_v47 }
  0x61   : > { %4884 = vmatmul.msk.f32.gmra.mxu2 %vm607_vm0, %v249_v18  ;;  %4898 = vmatmul.msk.f32.gmra.mxu3 %vm607_vm0, %v256_v19  ;;  %v444_v18 = vld [vmem:[%s5778_s18 + $0x2c8] sm:$0xff]  ;;  %v451_v19 = vld [vmem:[%s5778_s18 + $0x300] sm:$0xff] }
  0x62   : > { %4988 = vmatpush.xpose.msk.msra.mxu2 %vm607_vm0, %v426_v8  ;;  %5002 = vmatpush.xpose.msk.msra.mxu3 %vm607_vm0, %v433_v9  ;;  %v310_v9 = vld [vmem:[%s5834_s21 + $0x288] sm:$0xff] }
  0x64   : > { %4961 = vmatpush.xpose.msk.msra.mxu0 %vm607_vm0, %v411_v48  ;;  %4975 = vmatpush.xpose.msk.msra.mxu1 %vm607_vm0, %v418_v49  ;;  %v295_v49 = vld [vmem:[%s5834_s21 + $0x210] sm:$0xff] }
  0x66   : > { %4989 = vmatpush.xpose.msk.msra.mxu2 %vm607_vm0, %v425_v11  ;;  %5003 = vmatpush.xpose.msk.msra.mxu3 %vm607_vm0, %v432_v12  ;;  %v465_v11 = vld [vmem:[%s5778_s18 + $0x370] sm:$0xff] }
  0x67   : > { %4906 = vmatmul.msk.f32.vlgmr.msrb.gmra.mxu0 %vm607_vm0, %v257_v22  ;;  %4920 = vmatmul.msk.f32.vlgmr.msrb.gmra.mxu1 %vm607_vm0, %v264_v23  ;;  %v293_v22 = vld [vmem:[%s5834_s21 + $0x200] sm:$0xff] }
  0x68   : > { %5011 = vmatpush.xpose.msk.msrb.mxu0 %vm607_vm0, %v445_v14  ;;  %5025 = vmatpush.xpose.msk.msrb.mxu1 %vm607_vm0, %v452_v15  ;;  %v443_v23 = vld [vmem:[%s5778_s18 + $0x2c0] sm:$0xff] }
  0x69   : > { %4934 = vmatmul.msk.f32.vlgmr.msrb.gmra.mxu2 %vm607_vm0, %v271_v24  ;;  %4948 = vmatmul.msk.f32.vlgmr.msrb.gmra.mxu3 %vm607_vm0, %v278_v25  ;;  %v450_v24 = vld [vmem:[%s5778_s18 + $0x2f8] sm:$0xff]  ;;  %v6086_v25 = vand.u32 127, %v2048_v20  ;;  %v297_v20 = vld [vmem:[%s5834_s21 + $0x220] sm:$0xff] }
  0x6a   : > { %5053 = vmatpush.xpose.msk.msrb.mxu3 %vm607_vm0, %v466_v60 }
  0x6b   : > { %vm2050_vm1 = vcmp.lt.s32.totalorder %v6086_v25, 49 }
  0x6c   : > { %5012 = vmatpush.xpose.msk.msrb.mxu0 %vm607_vm0, %v444_v18  ;;  %5026 = vmatpush.xpose.msk.msrb.mxu1 %vm607_vm0, %v451_v19 }
  0x6e   : > { %5054 = vmatpush.xpose.msk.msrb.mxu3 %vm607_vm0, %v465_v11 }
  0x6f   : > { %4907 = vmatmul.msk.f32.gmra.mxu0 %vm607_vm0, %v258_v30  ;;  %4921 = vmatmul.msk.f32.gmra.mxu1 %vm607_vm0, %v265_v31 }
  0x70   : > { %5013 = vmatpush.xpose.msk.msrb.mxu0 %vm607_vm0, %v443_v23  ;;  %5027 = vmatpush.xpose.msk.msrb.mxu1 %vm607_vm0, %v450_v24  ;;  %v290_v24 = vld [vmem:[%s5834_s21 + $0x1e8] sm:$0xff] }
  0x71   : > { %4935 = vmatmul.msk.f32.gmra.mxu2 %vm607_vm0, %v272_v32  ;;  %4949 = vmatmul.msk.f32.gmra.mxu3 %vm607_vm0, %v279_v33  ;;  %v294_v32 = vld [vmem:[%s5834_s21 + $0x208] sm:$0xff]  ;;  %v441_v33 = vld [vmem:[%s5778_s18 + $0x2b0] sm:$0xff] }
  0x74   : > { %5014 = vmatpush.xpose.msk.msrb.mxu0 %vm607_vm0, %v442_v28  ;;  %5028 = vmatpush.xpose.msk.msrb.mxu1 %vm607_vm0, %v449_v29  ;;  %v311_v28 = vld [vmem:[%s5834_s21 + $0x290] sm:$0xff]  ;;  %v463_v29 = vld [vmem:[%s5778_s18 + $0x360] sm:$0xff] }
  0x77   : > { %4908 = vmatmul.msk.f32.gmra.mxu0 %vm607_vm0, %v259_v40  ;;  %4922 = vmatmul.msk.f32.gmra.mxu1 %vm607_vm0, %v266_v41  ;;  %v301_v40 = vld [vmem:[%s5834_s21 + $0x240] sm:$0xff]  ;;  %v308_v41 = vld [vmem:[%s5834_s21 + $0x278] sm:$0xff] }
  0x78   : > { %5015 = vmatpush.xpose.msk.msrb.mxu0 %vm607_vm0, %v441_v33  ;;  %5029 = vmatpush.xpose.msk.msrb.mxu1 %vm607_vm0, %v448_v34 }
  0x79   : > { %4936 = vmatmul.msk.f32.gmra.mxu2 %vm607_vm0, %v273_v42  ;;  %4950 = vmatmul.msk.f32.gmra.mxu3 %vm607_vm0, %v280_v43  ;;  %v440_v42 = vld [vmem:[%s5778_s18 + $0x2a8] sm:$0xff]  ;;  %v447_v43 = vld [vmem:[%s5778_s18 + $0x2e0] sm:$0xff] }
  0x7c   : > { %5016 = vmatpush.xpose.msk.msrb.mxu0 %vm607_vm0, %v440_v42  ;;  %5030 = vmatpush.xpose.msk.msrb.mxu1 %vm607_vm0, %v447_v43 }
  0x7f   : > { %4909 = vmatmul.msk.f32.gmra.mxu0 %vm607_vm0, %v260_v50  ;;  %4923 = vmatmul.msk.f32.gmra.mxu1 %vm607_vm0, %v267_v51  ;;  %v439_v51 = vld [vmem:[%s5778_s18 + $0x2a0] sm:$0xff] }
  0x80   : > { %5017 = vmatpush.xpose.msk.msrb.mxu0 %vm607_vm0, %v439_v51  ;;  %5031 = vmatpush.xpose.msk.msrb.mxu1 %vm607_vm0, %v446_v54  ;;  %v461_v51 = vld [vmem:[%s5778_s18 + $0x350] sm:$0xff] }
  0x81   : > { %4937 = vmatmul.msk.f32.gmra.mxu2 %vm607_vm0, %v274_v52  ;;  %4951 = vmatmul.msk.f32.gmra.mxu3 %vm607_vm0, %v281_v53  ;;  %v288_v53 = vld [vmem:[%s5834_s21 + $0x1d8] sm:$0xff] }
  0x87   : > { %4910 = vmatmul.msk.f32.gmra.mxu0 %vm607_vm0, %v261_v56  ;;  %4924 = vmatmul.msk.f32.gmra.mxu1 %vm607_vm0, %v268_v57  ;;  %v309_v57 = vld [vmem:[%s5834_s21 + $0x280] sm:$0xff] }
  0x89   : > { %4938 = vmatmul.msk.f32.gmra.mxu2 %vm607_vm0, %v275_v58  ;;  %4952 = vmatmul.msk.f32.gmra.mxu3 %vm607_vm0, %v282_v59  ;;  %v459_v59 = vld [vmem:[%s5778_s18 + $0x340] sm:$0xff] }
  0x8a   : > { %5039 = vmatpush.xpose.msk.msrb.mxu2 %vm607_vm0, %v459_v59 }
  0x8f   : > { %4911 = vmatmul.msk.f32.gmra.mxu0 %vm607_vm0, %v262_v62  ;;  %4925 = vmatmul.msk.f32.gmra.mxu1 %vm607_vm0, %v269_v63 }
  0x91   : > { %4939 = vmatmul.msk.f32.gmra.mxu2 %vm607_vm0, %v276_v0  ;;  %4953 = vmatmul.msk.f32.gmra.mxu3 %vm607_vm0, %v283_v1 }
  0x97   : > { %4912 = vmatmul.msk.f32.gmra.mxu0 %vm607_vm0, %v263_v4  ;;  %4926 = vmatmul.msk.f32.gmra.mxu1 %vm607_vm0, %v270_v5 }
  0x99   : > { %4940 = vmatmul.msk.f32.gmra.mxu2 %vm607_vm0, %v277_v6  ;;  %4954 = vmatmul.msk.f32.gmra.mxu3 %vm607_vm0, %v284_v7  ;;  %v289_v6 = vld [vmem:[%s5834_s21 + $0x1e0] sm:$0xff]  ;;  %v303_v7 = vld [vmem:[%s5834_s21 + $0x250] sm:$0xff] }
  0x9f   : > { %4962 = vmatmul.msk.f32.vlgmr.msra.gmra.mxu0 %vm607_vm0, %v285_v10  ;;  %4976 = vmatmul.msk.f32.vlgmr.msra.gmra.mxu1 %vm607_vm0, %v292_v13  ;;  %v458_v10 = vld [vmem:[%s5778_s18 + $0x338] sm:$0xff]  ;;  %v464_v13 = vld [vmem:[%s5778_s18 + $0x368] sm:$0xff] }
  0xa0   : > { %5040 = vmatpush.xpose.msk.msrb.mxu2 %vm607_vm0, %v458_v10  ;;  %5055 = vmatpush.xpose.msk.msrb.mxu3 %vm607_vm0, %v464_v13  ;;  %v472_v10 = vld [vmem:[%s5778_s18 + $0x3a8] sm:$0xff] }
  0xa1   : > { %4990 = vmatmul.msk.f32.vlgmr.msra.gmra.mxu2 %vm607_vm0, %v299_v16  ;;  %5004 = vmatmul.msk.f32.vlgmr.msra.gmra.mxu3 %vm607_vm0, %v306_v17 }
  0xa4   : > { %5056 = vmatpush.xpose.msk.msrb.mxu3 %vm607_vm0, %v463_v29  ;;  %v335_v29 = vld [vmem:[%s5834_s21 + $0x350] sm:$0xff] }
  0xa7   : > { %4963 = vmatmul.msk.f32.gmra.mxu0 %vm607_vm0, %v286_v21  ;;  %4977 = vmatmul.msk.f32.gmra.mxu1 %vm607_vm0, %v293_v22  ;;  %v457_v22 = vld [vmem:[%s5778_s18 + $0x330] sm:$0xff] }
  0xa8   : > { %5041 = vmatpush.xpose.msk.msrb.mxu2 %vm607_vm0, %v457_v22  ;;  %v471_v22 = vld [vmem:[%s5778_s18 + $0x3a0] sm:$0xff] }
  0xa9   : > { %4991 = vmatmul.msk.f32.gmra.mxu2 %vm607_vm0, %v300_v26  ;;  %5005 = vmatmul.msk.f32.gmra.mxu3 %vm607_vm0, %v307_v27  ;;  %v304_v26 = vld [vmem:[%s5834_s21 + $0x258] sm:$0xff] }
  0xac   : > { %v667_v30 = vpop.f32.mrf.mxu0  ;;  %v747_v31 = vpop.f32.mrf.mxu1 }
  0xad   : > { %v6106_v35 = vsel %vm2050_vm1, %v747_v31, -1e+30  ;;  %v6111_v37 = vsel %vm2050_vm1, %v667_v30, -1e+30  ;;  %v456_v30 = vld [vmem:[%s5778_s18 + $0x328] sm:$0xff] }
  0xae   : > { %v2199_v38 = vsel %vm2177_vm2, %v6106_v35, -inf  ;;  %v2178_v39 = vsel %vm2177_vm2, %v6111_v37, -inf  ;;  %5042 = vmatpush.xpose.msk.msrb.mxu2 %vm607_vm0, %v456_v30 }
  0xaf   : > { %4978 = vmatmul.msk.f32.gmra.mxu1 %vm607_vm0, %v294_v32  ;;  %2200 = vmax.xlane.f32.xlu1 %v2199_v38  ;;  %v462_v32 = vld [vmem:[%s5778_s18 + $0x358] sm:$0xff] }
  0xb0   : > { %4964 = vmatmul.msk.f32.gmra.mxu0 %vm607_vm0, %v287_v36  ;;  %2179 = vmax.xlane.f32.xlu0 %v2178_v39  ;;  %v298_v39 = vld [vmem:[%s5834_s21 + $0x228] sm:$0xff] }
  0xb1   : > { %4992 = vmatmul.msk.f32.gmra.mxu2 %vm607_vm0, %v301_v40  ;;  %5006 = vmatmul.msk.f32.gmra.mxu3 %vm607_vm0, %v308_v41  ;;  %v455_v41 = vld [vmem:[%s5778_s18 + $0x320] sm:$0xff] }
  0xb2   : > { %5057 = vmatpush.xpose.msk.msrb.mxu3 %vm607_vm0, %v462_v32  ;;  %5043 = vmatpush.xpose.msk.msrb.mxu2 %vm607_vm0, %v455_v41 }
  0xb4   : > { %v827_v44 = vpop.f32.mrf.mxu2  ;;  %v907_v45 = vpop.f32.mrf.mxu3 }
  0xb5   : > { %v670_v46 = vpop.f32.mrf.mxu0  ;;  %v750_v47 = vpop.f32.mrf.mxu1  ;;  %v6131_v48 = vsel %vm2050_vm1, %v827_v44, -1e+30  ;;  %v6136_v50 = vsel %vm2050_vm1, %v907_v45, -1e+30  ;;  %v291_v44 = vld [vmem:[%s5834_s21 + $0x1f0] sm:$0xff]  ;;  %v305_v45 = vld [vmem:[%s5834_s21 + $0x260] sm:$0xff] }
  0xb6   : > { %v2220_v52 = vsel %vm2177_vm2, %v6131_v48, -inf  ;;  %v2241_v56 = vsel %vm2177_vm2, %v6136_v50, -inf  ;;  %v6152_v58 = vsel %vm2050_vm1, %v750_v47, -1e+30  ;;  %v6170_v4 = vsel %vm2050_vm1, %v670_v46, -1e+30  ;;  %5058 = vmatpush.xpose.msk.msrb.mxu3 %vm607_vm0, %v461_v51 }
  0xb7   : > { %2221 = vmax.xlane.f32.xlu2 %v2220_v52  ;;  %4979 = vmatmul.msk.f32.gmra.mxu1 %vm607_vm0, %v295_v49  ;;  %v2202_v63 = vsel %vm2177_vm2, %v6152_v58, -inf  ;;  %v2181_v8 = vsel %vm2177_vm2, %v6170_v4, -inf  ;;  %v312_v49 = vld [vmem:[%s5834_s21 + $0x298] sm:$0xff] }
  0xb8   : > { %4965 = vmatmul.msk.f32.gmra.mxu0 %vm607_vm0, %v288_v53  ;;  %2242 = vmax.xlane.f32.xlu0 %v2241_v56  ;;  %v454_v53 = vld [vmem:[%s5778_s18 + $0x318] sm:$0xff]  ;;  %v460_v56 = vld [vmem:[%s5778_s18 + $0x348] sm:$0xff] }
  0xb9   : > { %4993 = vmatmul.msk.f32.gmra.mxu2 %vm607_vm0, %v302_v55  ;;  %5007 = vmatmul.msk.f32.gmra.mxu3 %vm607_vm0, %v309_v57 }
  0xba   : > { %5044 = vmatpush.xpose.msk.msrb.mxu2 %vm607_vm0, %v454_v53  ;;  %5059 = vmatpush.xpose.msk.msrb.mxu3 %vm607_vm0, %v460_v56  ;;  %v476_v53 = vld [vmem:[%s5778_s18 + $0x3c8] sm:$0xff]  ;;  %v329_v56 = vld [vmem:[%s5834_s21 + $0x320] sm:$0xff] }
  0xbc   : > { %v830_v61 = vpop.f32.mrf.mxu2  ;;  %v910_v62 = vpop.f32.mrf.mxu3 }
  0xbd   : > { %v673_v0 = vpop.f32.mrf.mxu0  ;;  %v753_v1 = vpop.f32.mrf.mxu1  ;;  %v6165_v2 = vsel %vm2050_vm1, %v910_v62, -1e+30  ;;  %v6203_v21 = vsel %vm2050_vm1, %v830_v61, -1e+30  ;;  %v320_v61 = vld [vmem:[%s5834_s21 + $0x2d8] sm:$0xff]  ;;  %v453_v62 = vld [vmem:[%s5778_s18 + $0x310] sm:$0xff] }
  0xbe   : > { %v2244_v5 = vsel %vm2177_vm2, %v6165_v2, -inf  ;;  %v6185_v12 = vsel %vm2050_vm1, %v673_v0, -1e+30  ;;  %v2223_v27 = vsel %vm2177_vm2, %v6203_v21, -inf  ;;  %v6235_v40 = vsel %vm2050_vm1, %v753_v1, -1e+30  ;;  %5045 = vmatpush.xpose.msk.msrb.mxu2 %vm607_vm0, %v453_v62 }
  0xbf   : > { %2245 = vmax.xlane.f32.xlu1 %v2244_v5  ;;  %2203 = vmax.xlane.f32.xlu2 %v2202_v63  ;;  %v2184_v16 = vsel %vm2177_vm2, %v6185_v12, -inf  ;;  %v2205_v46 = vsel %vm2177_vm2, %v6235_v40, -inf  ;;  %v473_v63 = vld [vmem:[%s5778_s18 + $0x3b0] sm:$0xff]  ;;  %v313_v1 = vld [vmem:[%s5834_s21 + $0x2a0] sm:$0xff]  ;;  %v480_v5 = vld [vmem:[%s5778_s18 + $0x3e8] sm:$0xff] }
  0xc0   : > { %4980 = vmatmul.msk.f32.gmra.mxu1 %vm607_vm0, %v296_v3  ;;  %4966 = vmatmul.msk.f32.gmra.mxu0 %vm607_vm0, %v289_v6 }
  0xc1   : > { %2182 = vmax.xlane.f32.xlu0 %v2181_v8  ;;  %4994 = vmatmul.msk.f32.gmra.mxu2 %vm607_vm0, %v303_v7  ;;  %v327_v7 = vld [vmem:[%s5834_s21 + $0x310] sm:$0xff]  ;;  %v334_v8 = vld [vmem:[%s5834_s21 + $0x348] sm:$0xff] }
  0xc2   : > { %5008 = vmatmul.msk.f32.gmra.mxu3 %vm607_vm0, %v310_v9  ;;  %5067 = vmatpush.xpose.msk.msra.mxu0 %vm607_vm0, %v473_v63  ;;  %v475_v63 = vld [vmem:[%s5778_s18 + $0x3c0] sm:$0xff] }
  0xc3   : > { %5081 = vmatpush.xpose.msk.msra.mxu1 %vm607_vm0, %v480_v5 }
  0xc4   : > { %v833_v14 = vpop.f32.mrf.mxu2  ;;  %v913_v15 = vpop.f32.mrf.mxu3 }
  0xc5   : > { %v676_v17 = vpop.f32.mrf.mxu0  ;;  %v6194_v18 = vpop.f32.mrf.mxu1  ;;  %v6198_v19 = vsel %vm2050_vm1, %v913_v15, -1e+30  ;;  %v6223_v31 = vsel %vm2050_vm1, %v833_v14, -1e+30  ;;  %v479_v14 = vld [vmem:[%s5778_s18 + $0x3e0] sm:$0xff] }
  0xc6   : > { %v2247_v23 = vsel %vm2177_vm2, %v6198_v19, -inf  ;;  %v2226_v43 = vsel %vm2177_vm2, %v6223_v31, -inf  ;;  %v6261_v54 = vsel %vm2050_vm1, %v676_v17, -1e+30  ;;  %5068 = vmatpush.xpose.msk.msra.mxu0 %vm607_vm0, %v472_v10  ;;  %v6298_v11 = vsel %vm2050_vm1, %v6194_v18, -1e+30 }
  0xc7   : > { %2248 = vmax.xlane.f32.xlu2 %v2247_v23  ;;  %2185 = vmax.xlane.f32.xlu1 %v2184_v16  ;;  %v2187_v0 = vsel %vm2177_vm2, %v6261_v54, -inf  ;;  %v321_v18 = vld [vmem:[%s5834_s21 + $0x2e0] sm:$0xff]  ;;  %v2208_v23 = vsel %vm2177_vm2, %v6298_v11, -inf }
  0xc8   : > { %4981 = vmatmul.msk.f32.gmra.mxu1 %vm607_vm0, %v297_v20  ;;  %4967 = vmatmul.msk.f32.gmra.mxu0 %vm607_vm0, %v290_v24  ;;  %v314_v24 = vld [vmem:[%s5834_s21 + $0x2a8] sm:$0xff] }
  0xc9   : > { %2224 = vmax.xlane.f32.xlu0 %v2223_v27  ;;  %4995 = vmatmul.msk.f32.gmra.mxu2 %vm607_vm0, %v304_v26  ;;  %v478_v27 = vld [vmem:[%s5778_s18 + $0x3d8] sm:$0xff] }
  0xca   : > { %5009 = vmatmul.msk.f32.gmra.mxu3 %vm607_vm0, %v311_v28  ;;  %5082 = vmatpush.xpose.msk.msra.mxu1 %vm607_vm0, %v479_v14  ;;  %v328_v28 = vld [vmem:[%s5834_s21 + $0x318] sm:$0xff] }
  0xcb   : > { %5069 = vmatpush.xpose.msk.msra.mxu0 %vm607_vm0, %v471_v22 }
  0xcc   : > { %v836_v33 = vpop.f32.mrf.mxu2  ;;  %v916_v47 = vpop.f32.mrf.mxu3 }
  0xcd   : > { %v679_v34 = vpop.f32.mrf.mxu0  ;;  %v759_v36 = vpop.f32.mrf.mxu1  ;;  %v6230_v38 = vsel %vm2050_vm1, %v836_v33, -1e+30  ;;  %v6265_v55 = vsel %vm2050_vm1, %v916_v47, -1e+30  ;;  %v470_v33 = vld [vmem:[%s5778_s18 + $0x398] sm:$0xff]  ;;  %v315_v47 = vld [vmem:[%s5834_s21 + $0x2b0] sm:$0xff] }
  0xce   : > { %v2229_v42 = vsel %vm2177_vm2, %v6230_v38, -inf  ;;  %v6254_v52 = vsel %vm2050_vm1, %v679_v34, -1e+30  ;;  %v2250_v3 = vsel %vm2177_vm2, %v6265_v55, -inf  ;;  %v6290_v9 = vsel %vm2050_vm1, %v759_v36, -1e+30  ;;  %5083 = vmatpush.xpose.msk.msra.mxu1 %vm607_vm0, %v478_v27 }
  0xcf   : > { %2230 = vmax.xlane.f32.xlu2 %v2229_v42  ;;  %2227 = vmax.xlane.f32.xlu1 %v2226_v43  ;;  %v2190_v57 = vsel %vm2177_vm2, %v6254_v52, -inf  ;;  %v2211_v15 = vsel %vm2177_vm2, %v6290_v9, -inf  ;;  %v477_v36 = vld [vmem:[%s5778_s18 + $0x3d0] sm:$0xff] }
  0xd0   : > { %4982 = vmatmul.msk.f32.gmra.mxu1 %vm607_vm0, %v298_v39  ;;  %4968 = vmatmul.msk.f32.gmra.mxu0 %vm607_vm0, %v291_v44 }
  0xd1   : > { %2206 = vmax.xlane.f32.xlu0 %v2205_v46  ;;  %4996 = vmatmul.msk.f32.gmra.mxu2 %vm607_vm0, %v305_v45  ;;  %v322_v45 = vld [vmem:[%s5834_s21 + $0x2e8] sm:$0xff]  ;;  %v469_v46 = vld [vmem:[%s5778_s18 + $0x390] sm:$0xff] }
  0xd2   : > { %5010 = vmatmul.msk.f32.gmra.mxu3 %vm607_vm0, %v312_v49  ;;  %5070 = vmatpush.xpose.msk.msra.mxu0 %vm607_vm0, %v470_v33  ;;  %v317_v33 = vld [vmem:[%s5834_s21 + $0x2c0] sm:$0xff] }
  0xd3   : > { %5084 = vmatpush.xpose.msk.msra.mxu1 %vm607_vm0, %v477_v36 }
  0xd4   : > { %v839_v6 = vpop.f32.mrf.mxu2  ;;  %v919_v16 = vpop.f32.mrf.mxu3 }
  0xd5   : > { %v682_v59 = vpop.f32.mrf.mxu0  ;;  %v762_v60 = vpop.f32.mrf.mxu1  ;;  %v6302_v13 = vsel %vm2050_vm1, %v839_v6, -1e+30  ;;  %v6327_v30 = vsel %vm2050_vm1, %v919_v16, -1e+30  ;;  %v323_v6 = vld [vmem:[%s5834_s21 + $0x2f0] sm:$0xff] }
  0xd6   : > { %v2232_v26 = vsel %vm2177_vm2, %v6302_v13, -inf  ;;  %v6331_v32 = vsel %vm2050_vm1, %v682_v59, -1e+30  ;;  %v6338_v34 = vsel %vm2050_vm1, %v762_v60, -1e+30  ;;  %v2253_v39 = vsel %vm2177_vm2, %v6327_v30, -inf  ;;  %5071 = vmatpush.xpose.msk.msra.mxu0 %vm607_vm0, %v469_v46 }
  0xd7   : > { %2188 = vmax.xlane.f32.xlu1 %v2187_v0  ;;  %2191 = vmax.xlane.f32.xlu2 %v2190_v57  ;;  %v2193_v41 = vsel %vm2177_vm2, %v6331_v32, -inf  ;;  %v2214_v49 = vsel %vm2177_vm2, %v6338_v34, -inf  ;;  %v336_v57 = vld [vmem:[%s5834_s21 + $0x358] sm:$0xff] }
  0xd8   : > { %5032 = vmatmul.msk.f32.vlgmr.msrb.gmra.mxu1 %vm607_vm0, %v320_v61  ;;  %5018 = vmatmul.msk.f32.vlgmr.msrb.gmra.mxu0 %vm607_vm0, %v313_v1  ;;  %v468_v61 = vld [vmem:[%s5778_s18 + $0x388] sm:$0xff] }
  0xd9   : > { %2251 = vmax.xlane.f32.xlu0 %v2250_v3  ;;  %5046 = vmatmul.msk.f32.vlgmr.msrb.gmra.mxu2 %vm607_vm0, %v327_v7  ;;  %v467_v7 = vld [vmem:[%s5778_s18 + $0x380] sm:$0xff] }
  0xda   : > { %5060 = vmatmul.msk.f32.vlgmr.msrb.gmra.mxu3 %vm607_vm0, %v334_v8  ;;  %5085 = vmatpush.xpose.msk.msra.mxu1 %vm607_vm0, %v476_v53  ;;  %v316_v8 = vld [vmem:[%s5834_s21 + $0x2b8] sm:$0xff] }
  0xdb   : > { %5072 = vmatpush.xpose.msk.msra.mxu0 %vm607_vm0, %v468_v61 }
  0xdc   : > { %v842_v42 = vpop.f32.mrf.mxu2  ;;  %v922_v51 = vpop.f32.mrf.mxu3 }
  0xdd   : > { %v685_v17 = vpop.f32.mrf.mxu0  ;;  %v6309_v20 = vpop.f32.mrf.mxu1  ;;  %v6365_v59 = vsel %vm2050_vm1, %v842_v42, -1e+30  ;;  %v6369_v60 = vsel %vm2050_vm1, %v922_v51, -1e+30  ;;  %v338_v42 = vld [vmem:[%s5834_s21 + $0x368] sm:$0xff] }
  0xde   : > { %v6376_v62 = vsel %vm2050_vm1, %v685_v17, -1e+30  ;;  %v2235_v0 = vsel %vm2177_vm2, %v6365_v59, -inf  ;;  %v2256_v1 = vsel %vm2177_vm2, %v6369_v60, -inf  ;;  %5086 = vmatpush.xpose.msk.msra.mxu1 %vm607_vm0, %v475_v63  ;;  %v330_v17 = vld [vmem:[%s5834_s21 + $0x328] sm:$0xff]  ;;  %v332_v63 = vld [vmem:[%s5834_s21 + $0x338] sm:$0xff] }
  0xdf   : > { %2209 = vmax.xlane.f32.xlu1 %v2208_v23  ;;  %2212 = vmax.xlane.f32.xlu2 %v2211_v15  ;;  %v2196_v10 = vsel %vm2177_vm2, %v6376_v62, -inf  ;;  %v474_v15 = vld [vmem:[%s5778_s18 + $0x3b8] sm:$0xff]  ;;  %v6402_v22 = vsel %vm2050_vm1, %v6309_v20, -1e+30 }
  0xe0   : > { %5033 = vmatmul.msk.f32.gmra.mxu1 %vm607_vm0, %v321_v18  ;;  %5019 = vmatmul.msk.f32.gmra.mxu0 %vm607_vm0, %v314_v24  ;;  %v337_v18 = vld [vmem:[%s5834_s21 + $0x360] sm:$0xff]  ;;  %v2217_v20 = vsel %vm2177_vm2, %v6402_v22, -inf }
  0xe1   : > { %2233 = vmax.xlane.f32.xlu0 %v2232_v26  ;;  %5047 = vmatmul.msk.f32.gmra.mxu2 %vm607_vm0, %v328_v28 }
  0xe2   : > { %5061 = vmatmul.msk.f32.gmra.mxu3 %vm607_vm0, %v335_v29  ;;  %5073 = vmatpush.xpose.msk.msra.mxu0 %vm607_vm0, %v467_v7  ;;  %v324_v29 = vld [vmem:[%s5834_s21 + $0x2f8] sm:$0xff]  ;;  %v487_v7 = vld [vmem:[%s6463_s24 + $0x30] sm:$0xff] }
  0xe3   : > { %5087 = vmatpush.xpose.msk.msra.mxu1 %vm607_vm0, %v474_v15  ;;  %3342 = vmatpush.msra.mxu2 %v487_v7 }
  0xe4   : > { %v845_v14 = vpop.f32.mrf.mxu2  ;;  %v925_v16 = vpop.f32.mrf.mxu3 }
  0xe5   : > { %v6347_v43 = vpop.f32.mrf.mxu0  ;;  %v6349_v44 = vpop.f32.mrf.mxu1  ;;  %v6406_v23 = vsel %vm2050_vm1, %v845_v14, -1e+30  ;;  %v6411_v24 = vsel %vm2050_vm1, %v925_v16, -1e+30  ;;  %v486_v16 = vld [vmem:[%s6463_s24 + $0x28] sm:$0xff] }
  0xe6   : > { %v2238_v26 = vsel %vm2177_vm2, %v6406_v23, -inf  ;;  %v2259_v36 = vsel %vm2177_vm2, %v6411_v24, -inf  ;;  %v6439_v46 = vsel %vm2050_vm1, %v6347_v43, -1e+30  ;;  %3343 = vmatpush.msra.mxu2 %v486_v16  ;;  %v341_v16 = vld [vmem:[%s5834_s21 + $0x380] sm:$0xff] }
  0xe7   : > { %2254 = vmax.xlane.f32.xlu1 %v2253_v39  ;;  %2194 = vmax.xlane.f32.xlu2 %v2193_v41  ;;  %v331_v41 = vld [vmem:[%s5834_s21 + $0x330] sm:$0xff] }
  0xe8   : > { %5034 = vmatmul.msk.f32.gmra.mxu1 %vm607_vm0, %v322_v45  ;;  %5020 = vmatmul.msk.f32.gmra.mxu0 %vm607_vm0, %v315_v47  ;;  %v6434_v45 = vsel %vm2050_vm1, %v6349_v44, -1e+30  ;;  %v2262_v44 = vsel %vm2177_vm2, %v6439_v46, -inf }
  0xe9   : > { %2215 = vmax.xlane.f32.xlu0 %v2214_v49  ;;  %5048 = vmatmul.msk.f32.gmra.mxu2 %vm607_vm0, %v329_v56  ;;  %v2283_v49 = vsel %vm2177_vm2, %v6434_v45, -inf  ;;  %v325_v56 = vld [vmem:[%s5834_s21 + $0x300] sm:$0xff] }
  0xea   : > { %5062 = vmatmul.msk.f32.gmra.mxu3 %vm607_vm0, %v336_v57  ;;  %v318_v57 = vld [vmem:[%s5834_s21 + $0x2c8] sm:$0xff] }
  0xec   : > { %v1147_v39 = vpop.f32.mrf.mxu2  ;;  %v1227_v51 = vpop.f32.mrf.mxu3 }
  0xed   : > { %v990_v3 = vpop.f32.mrf.mxu0  ;;  %v6385_v5 = vpop.f32.mrf.mxu1  ;;  %v6443_v47 = vsel %vm2050_vm1, %v1147_v39, -1e+30  ;;  %v492_v39 = vld [vmem:[%s6463_s24 + $0x58] sm:$0xff] }
  0xee   : > { %v2304_v61 = vsel %vm2177_vm2, %v6443_v47, -inf }
  0xef   : > { %2236 = vmax.xlane.f32.xlu1 %v2235_v0  ;;  %2257 = vmax.xlane.f32.xlu2 %v2256_v1  ;;  %v339_v0 = vld [vmem:[%s5834_s21 + $0x370] sm:$0xff]  ;;  %v6471_v1 = vsel %vm2050_vm1, %v1227_v51, -1e+30 }
  0xf0   : > { %5035 = vmatmul.msk.f32.gmra.mxu1 %vm607_vm0, %v323_v6  ;;  %5021 = vmatmul.msk.f32.gmra.mxu0 %vm607_vm0, %v316_v8  ;;  %v6475_v6 = vsel %vm2050_vm1, %v990_v3, -1e+30  ;;  %v494_v8 = vld [vmem:[%s6463_s24 + $0x68] sm:$0xff]  ;;  %v2325_v14 = vsel %vm2177_vm2, %v6471_v1, -inf }
  0xf1   : > { %2197 = vmax.xlane.f32.xlu0 %v2196_v10  ;;  %5049 = vmatmul.msk.f32.gmra.mxu2 %vm607_vm0, %v330_v17  ;;  %v6482_v10 = vsel %vm2050_vm1, %v6385_v5, -1e+30  ;;  %v2265_v3 = vsel %vm2177_vm2, %v6475_v6, -inf  ;;  %v493_v17 = vld [vmem:[%s6463_s24 + $0x60] sm:$0xff] }
  0xf2   : > { %5063 = vmatmul.msk.f32.gmra.mxu3 %vm607_vm0, %v337_v18 }
  0xf3   : > { %3401 = vmatpush.msra.mxu3 %v494_v8  ;;  %v482_v8 = vld [vmem:[%s6463_s24 + $0x8] sm:$0xff] }
  0xf4   : > { %v1150_v15 = vpop.f32.mrf.mxu2 }
  0xf5   : > { %v6419_v27 = vpop.f32.mrf.mxu0  ;;  %v6421_v28 = vpop.f32.mrf.mxu1  ;;  %3402 = vmatpush.msra.mxu3 %v493_v17 }
  0xf7   : > { %2218 = vmax.xlane.f32.xlu1 %v2217_v20  ;;  %2239 = vmax.xlane.f32.xlu2 %v2238_v26  ;;  %v326_v20 = vld [vmem:[%s5834_s21 + $0x308] sm:$0xff]  ;;  %v319_v26 = vld [vmem:[%s5834_s21 + $0x2d0] sm:$0xff] }
  0xf8   : > { %5036 = vmatmul.msk.f32.gmra.mxu1 %vm607_vm0, %v324_v29  ;;  %5022 = vmatmul.msk.f32.gmra.mxu0 %vm607_vm0, %v317_v33  ;;  %v2286_v29 = vsel %vm2177_vm2, %v6482_v10, -inf  ;;  %v1230_v33 = vpop.f32.mrf.mxu3 }
  0xf9   : > { %2260 = vmax.xlane.f32.xlu0 %v2259_v36  ;;  %5050 = vmatmul.msk.f32.gmra.mxu2 %vm607_vm0, %v331_v41  ;;  %v485_v36 = vld [vmem:[%s6463_s24 + $0x20] sm:$0xff]  ;;  %v6513_v51 = vsel %vm2050_vm1, %v1230_v33, -1e+30 }
  0xfa   : > { %5064 = vmatmul.msk.f32.gmra.mxu3 %vm607_vm0, %v338_v42  ;;  %3344 = vmatpush.msra.mxu2 %v485_v36  ;;  %v333_v41 = vld [vmem:[%s5834_s21 + $0x340] sm:$0xff]  ;;  %v340_v42 = vld [vmem:[%s5834_s21 + $0x378] sm:$0xff]  ;;  %v2328_v7 = vsel %vm2177_vm2, %v6513_v51, -inf  ;;  %v6546_v36 = vsel %vm2050_vm1, %v6421_v28, -1e+30 }
  0xfb   : > { %3403 = vmatpush.msra.mxu3 %v492_v39 }
  0xfd   : > { %v6451_v53 = vpop.f32.mrf.mxu0  ;;  %v6453_v43 = vpop.f32.mrf.mxu1 }
  0xff   : > { %2284 = vmax.xlane.f32.xlu2 %v2283_v49  ;;  %2263 = vmax.xlane.f32.xlu1 %v2262_v44  ;;  %v484_v49 = vld [vmem:[%s6463_s24 + $0x18] sm:$0xff]  ;;  %v6509_v44 = vsel %vm2050_vm1, %v1150_v15, -1e+30  ;;  %v489_v15 = vld [vmem:[%s6463_s24 + $0x40] sm:$0xff] }
 0x100   : > { %5037 = vmatmul.msk.f32.gmra.mxu1 %vm607_vm0, %v325_v56  ;;  %5023 = vmatmul.msk.f32.gmra.mxu0 %vm607_vm0, %v318_v57  ;;  %v491_v56 = vld [vmem:[%s6463_s24 + $0x50] sm:$0xff]  ;;  %v1233_v33 = vpop.f32.mrf.mxu3 }
 0x101   : > { %2305 = vmax.xlane.f32.xlu0 %v2304_v61  ;;  %5051 = vmatmul.msk.f32.gmra.mxu2 %vm607_vm0, %v332_v63  ;;  %v483_v57 = vld [vmem:[%s6463_s24 + $0x10] sm:$0xff]  ;;  %v6520_v61 = vsel %vm2050_vm1, %v6419_v27, -1e+30  ;;  %v490_v63 = vld [vmem:[%s6463_s24 + $0x48] sm:$0xff] }
 0x102   : > { %5065 = vmatmul.msk.f32.gmra.mxu3 %vm607_vm0, %v339_v0  ;;  %3345 = vmatpush.msra.mxu2 %v484_v49  ;;  %v2307_v0 = vsel %vm2177_vm2, %v6509_v44, -inf  ;;  %v2268_v17 = vsel %vm2177_vm2, %v6520_v61, -inf }
 0x103   : > { %3404 = vmatpush.msra.mxu3 %v491_v56 }
 0x104   : > { %3346 = vmatpush.msra.mxu2 %v483_v57  ;;  %v349_v57 = vld [vmem:[%s5834_s21 + $0x3c0] sm:$0xff] }
 0x105   : > { %v6492_v18 = vpop.f32.mrf.mxu0  ;;  %v6494_v5 = vpop.f32.mrf.mxu1  ;;  %3405 = vmatpush.msra.mxu3 %v490_v63  ;;  %v342_v63 = vld [vmem:[%s5834_s21 + $0x388] sm:$0xff] }
 0x106   : > { %3347 = vmatpush.msra.mxu2 %v482_v8  ;;  %v6573_v8 = vsel %vm2050_vm1, %v6453_v43, -1e+30  ;;  %v501_v43 = vld [vmem:[%s6463_s24 + $0xa0] sm:$0xff] }
 0x107   : > { %2326 = vmax.xlane.f32.xlu1 %v2325_v14  ;;  %2266 = vmax.xlane.f32.xlu2 %v2265_v3  ;;  %v348_v3 = vld [vmem:[%s5834_s21 + $0x3b8] sm:$0xff]  ;;  %8731 = vst [vmem:[#allocation4_spill] sm:$0xff] %v6573_v8 }
 0x108   : > { %5038 = vmatmul.msk.f32.gmra.mxu1 %vm607_vm0, %v326_v20  ;;  %5024 = vmatmul.msk.f32.gmra.mxu0 %vm607_vm0, %v319_v26  ;;  %v1153_v20 = vpop.f32.mrf.mxu2  ;;  %v481_v26 = vld [vmem:[%s6463_s24] sm:$0xff] }
 0x109   : > { %2287 = vmax.xlane.f32.xlu0 %v2286_v29  ;;  %5052 = vmatmul.msk.f32.gmra.mxu2 %vm607_vm0, %v333_v41  ;;  %v488_v29 = vld [vmem:[%s6463_s24 + $0x38] sm:$0xff]  ;;  %v6550_v39 = vsel %vm2050_vm1, %v1153_v20, -1e+30  ;;  %v6554_v41 = vsel %vm2050_vm1, %v1233_v33, -1e+30  ;;  %v1236_v20 = vpop.f32.mrf.mxu3 }
 0x10a   : > { %5066 = vmatmul.msk.f32.gmra.mxu3 %vm607_vm0, %v340_v42  ;;  %8729 = vst [vmem:[#allocation2_spill] sm:$0xff] %v6550_v39  ;;  %3348 = vmatpush.msra.mxu2 %v481_v26  ;;  %v2289_v42 = vsel %vm2177_vm2, %v6546_v36, -inf  ;;  %v2310_v49 = vsel %vm2177_vm2, %v6550_v39, -inf  ;;  %v508_v26 = vld [vmem:[%s6463_s24 + $0xd8] sm:$0xff]  ;;  %v353_v39 = vld [vmem:[%s5834_s21 + $0x3e0] sm:$0xff] }
 0x10b   : > { %3406 = vmatpush.msra.mxu3 %v489_v15  ;;  %8730 = vst [vmem:[#allocation3_spill] sm:$0xff] %v6554_v41  ;;  %3460 = vmatpush.msrb.mxu0 %v501_v43  ;;  %v6610_v43 = vsel %vm2050_vm1, %v6492_v18, -1e+30 }
 0x10c   : > { %3519 = vmatpush.msrb.mxu1 %v508_v26  ;;  %8735 = vst [vmem:[#allocation8_spill] sm:$0xff] %v6610_v43 }
 0x10d   : > { %v6530_v14 = vpop.f32.mrf.mxu0  ;;  %v6532_v27 = vpop.f32.mrf.mxu1  ;;  %3407 = vmatpush.msra.mxu3 %v488_v29 }
 0x10f   : > { %2308 = vmax.xlane.f32.xlu1 %v2307_v0  ;;  %2329 = vmax.xlane.f32.xlu2 %v2328_v7  ;;  %v2331_v0 = vsel %vm2177_vm2, %v6554_v41, -inf }
 0x110   : > { %5088 = vmatmul.msk.f32.vlgmr.msra.gmra.mxu1 %vm607_vm0, %v348_v3  ;;  %5074 = vmatmul.msk.f32.vlgmr.msra.gmra.mxu0 %vm607_vm0, %v341_v16  ;;  %v1156_v7 = vpop.f32.mrf.mxu2  ;;  %v6578_v3 = vsel %vm2050_vm1, %v6451_v53, -1e+30  ;;  %v2292_v16 = vsel %vm2177_vm2, %v6573_v8, -inf  ;;  %v350_v53 = vld [vmem:[%s5834_s21 + $0x3c8] sm:$0xff]  ;;  %v344_v8 = vld [vmem:[%s5834_s21 + $0x398] sm:$0xff] }
 0x111   : > { %2269 = vmax.xlane.f32.xlu0 %v2268_v17  ;;  %8732 = vst [vmem:[#allocation5_spill] sm:$0xff] %v6578_v3  ;;  %v6582_v15 = vsel %vm2050_vm1, %v1156_v7, -1e+30  ;;  %v2271_v17 = vsel %vm2177_vm2, %v6578_v3, -inf  ;;  %v6605_v7 = vsel %vm2050_vm1, %v1236_v20, -1e+30  ;;  %v1239_v41 = vpop.f32.mrf.mxu3 }
 0x112   : > { %8733 = vst [vmem:[#allocation6_spill] sm:$0xff] %v6582_v15  ;;  %v505_v20 = vld [vmem:[%s6463_s24 + $0xc0] sm:$0xff]  ;;  %v2334_v18 = vsel %vm2177_vm2, %v6605_v7, -inf }
 0x113   : > { %8734 = vst [vmem:[#allocation7_spill] sm:$0xff] %v6605_v7 }
 0x115   : > { %v6560_v56 = vpop.f32.mrf.mxu0  ;;  %v6562_v28 = vpop.f32.mrf.mxu1 }
 0x117   : > { %2290 = vmax.xlane.f32.xlu1 %v2289_v42  ;;  %2311 = vmax.xlane.f32.xlu2 %v2310_v49  ;;  %v343_v42 = vld [vmem:[%s5834_s21 + $0x390] sm:$0xff]  ;;  %v2313_v49 = vsel %vm2177_vm2, %v6582_v15, -inf }
 0x118   : > { %5089 = vmatmul.msk.f32.gmra.mxu1 %vm607_vm0, %v349_v57  ;;  %5075 = vmatmul.msk.f32.gmra.mxu0 %vm607_vm0, %v342_v63  ;;  %v500_v57 = vld [vmem:[%s6463_s24 + $0x98] sm:$0xff]  ;;  %v507_v63 = vld [vmem:[%s6463_s24 + $0xd0] sm:$0xff] }
 0x119   : > { %2332 = vmax.xlane.f32.xlu0 %v2331_v0  ;;  %3461 = vmatpush.msrb.mxu0 %v500_v57  ;;  %v499_v0 = vld [vmem:[%s6463_s24 + $0x90] sm:$0xff]  ;;  %v2274_v57 = vsel %vm2177_vm2, %v6610_v43, -inf  ;;  %v346_v43 = vld [vmem:[%s5834_s21 + $0x3a8] sm:$0xff] }
 0x11a   : > { %3520 = vmatpush.msrb.mxu1 %v507_v63  ;;  %v1159_v63 = vpop.f32.mrf.mxu2 }
 0x11b   : > { %3462 = vmatpush.msrb.mxu0 %v499_v0  ;;  %v497_v0 = vld [vmem:[%s6463_s24 + $0x80] sm:$0xff] }
 0x11d   : > { %v6590_v29 = vpop.f32.mrf.mxu0  ;;  %v6592_v33 = vpop.f32.mrf.mxu1 }
 0x11f   : > { %2293 = vmax.xlane.f32.xlu2 %v2292_v16  ;;  %2272 = vmax.xlane.f32.xlu1 %v2271_v17  ;;  %v506_v16 = vld [vmem:[%s6463_s24 + $0xc8] sm:$0xff] }
 0x120   : > { %5090 = vmatmul.msk.f32.gmra.mxu1 %vm607_vm0, %v350_v53  ;;  %5076 = vmatmul.msk.f32.gmra.mxu0 %vm607_vm0, %v343_v42  ;;  %v498_v17 = vld [vmem:[%s6463_s24 + $0x88] sm:$0xff]  ;;  %v6617_v53 = vsel %vm2050_vm1, %v6494_v5, -1e+30 }
 0x121   : > { %2314 = vmax.xlane.f32.xlu0 %v2313_v49  ;;  %8736 = vst [vmem:[#allocation9_spill] sm:$0xff] %v6617_v53  ;;  %3521 = vmatpush.msrb.mxu1 %v506_v16  ;;  %v2295_v7 = vsel %vm2177_vm2, %v6617_v53, -inf  ;;  %v496_v16 = vld [vmem:[%s6463_s24 + $0x78] sm:$0xff] }
 0x122   : > { %v2201_v26 = vpop.xlane.xlu1 %2200  ;;  %3463 = vmatpush.msrb.mxu0 %v498_v17 }
 0x123   : > { %v2563_v42 = vsub.f32 %v6106_v35, %v2201_v26  ;;  %v2180_v49 = vpop.xlane.xlu0 %2179  ;;  %v351_v35 = vld [vmem:[%s5834_s21 + $0x3d0] sm:$0xff]  ;;  %3522 = vmatpush.msrb.mxu1 %v505_v20  ;;  %v6642_v20 = vsel %vm2050_vm1, %v1159_v63, -1e+30  ;;  %v6657_v63 = vsel %vm2050_vm1, %v6530_v14, -1e+30 }
 0x124   : > { %v2556_v15 = vsub.f32 %v6111_v37, %v2180_v49  ;;  %3464 = vmatpush.msrb.mxu0 %v497_v0  ;;  %v504_v37 = vld [vmem:[%s6463_s24 + $0xb8] sm:$0xff]  ;;  %v495_v49 = vld [vmem:[%s6463_s24 + $0x70] sm:$0xff]  ;;  %8737 = vst [vmem:[#allocation10_spill] sm:$0xff] %v6642_v20  ;;  %v6680_v14 = vsel %vm2050_vm1, %v6532_v27, -1e+30 }
 0x125   : > { %v6627_v5 = vpop.f32.mrf.mxu0  ;;  %v6629_v3 = vpop.f32.mrf.mxu1  ;;  %v2696_v26 = vmul.f32 1.442695, %v2563_v42  ;;  %v503_v42 = vld [vmem:[%s6463_s24 + $0xb0] sm:$0xff]  ;;  %3523 = vmatpush.msrb.mxu1 %v504_v37  ;;  %8739 = vst [vmem:[#allocation12_spill] sm:$0xff] %v6657_v63 }
 0x126   : > { %v2682_v17 = vmul.f32 1.442695, %v2556_v15  ;;  %3465 = vmatpush.msrb.mxu0 %v496_v16  ;;  %v6646_v15 = vsel %vm2050_vm1, %v1239_v41, -1e+30  ;;  %v345_v16 = vld [vmem:[%s5834_s21 + $0x3a0] sm:$0xff]  ;;  %v1162_v37 = vpop.f32.mrf.mxu2  ;;  %8740 = vst [vmem:[#allocation13_spill] sm:$0xff] %v6680_v14 }
 0x127   : > { %2335 = vmax.xlane.f32.xlu1 %v2334_v18  ;;  %2275 = vmax.xlane.f32.xlu2 %v2274_v57  ;;  %5232 = vpow2.f32 %v2696_v26  ;;  %8738 = vst [vmem:[#allocation11_spill] sm:$0xff] %v6646_v15  ;;  %v502_v57 = vld [vmem:[%s6463_s24 + $0xa8] sm:$0xff] }
 0x128   : > { %5091 = vmatmul.msk.f32.gmra.mxu1 %vm607_vm0, %v351_v35  ;;  %5234 = vpow2.f32 %v2682_v17  ;;  %5077 = vmatmul.msk.f32.gmra.mxu0 %vm607_vm0, %v344_v8  ;;  %v2316_v8 = vsel %vm2177_vm2, %v6642_v20, -inf  ;;  %v352_v17 = vld [vmem:[%s5834_s21 + $0x3d8] sm:$0xff] }
 0x129   : > { %2296 = vmax.xlane.f32.xlu0 %v2295_v7  ;;  %3466 = vmatpush.msrb.mxu0 %v495_v49  ;;  %v2337_v7 = vsel %vm2177_vm2, %v6646_v15, -inf  ;;  %v2277_v15 = vsel %vm2177_vm2, %v6657_v63, -inf  ;;  %v1242_v63 = vpop.f32.mrf.mxu3 }
 0x12a   : > { %v2222_v18 = vpop.xlane.xlu2 %2221  ;;  %3524 = vmatpush.msrb.mxu1 %v503_v42  ;;  %v6684_v42 = vsel %vm2050_vm1, %v1162_v37, -1e+30  ;;  %v6693_v27 = vsel %vm2050_vm1, %v1242_v63, -1e+30 }
 0x12b   : > { %v2243_v0 = vpop.xlane.xlu0 %2242  ;;  %8741 = vst [vmem:[#allocation14_spill] sm:$0xff] %v6684_v42  ;;  %v2319_v20 = vsel %vm2177_vm2, %v6684_v42, -inf  ;;  %v2570_v42 = vsub.f32 %v6131_v48, %v2222_v18  ;;  %v6718_v48 = vsel %vm2050_vm1, %v6560_v56, -1e+30 }
 0x12c   : > { %3525 = vmatpush.msrb.mxu1 %v502_v57  ;;  %v2577_v63 = vsub.f32 %v6136_v50, %v2243_v0  ;;  %8742 = vst [vmem:[#allocation15_spill] sm:$0xff] %v6718_v48 }
 0x12d   : > { %v6659_v41 = vpop.f32.mrf.mxu1  ;;  %v6661_v35 = vpop.eup %5232 }
 0x12e   : > { %v6663_v26 = vpop.f32.mrf.mxu0  ;;  %v6667_v49 = vpop.eup %5234  ;;  %5102 = vmatmul.msk.f32.vlgmr.msra.gmra.mxu3 %vm2177_vm2, %v6661_v35  ;;  %v2724_v56 = vmul.f32 1.442695, %v2577_v63 }
 0x12f   : > { %2317 = vmax.xlane.f32.xlu1 %v2316_v8  ;;  %2338 = vmax.xlane.f32.xlu2 %v2337_v7 }
 0x130   : > { %5095 = vmatmul.msk.f32.vlgmr.msra.gmra.mxu2 %vm2177_vm2, %v6667_v49  ;;  %5078 = vmatmul.msk.f32.gmra.mxu0 %vm607_vm0, %v345_v16 }
 0x131   : > { %5092 = vmatmul.msk.f32.gmra.mxu1 %vm607_vm0, %v352_v17  ;;  %2278 = vmax.xlane.f32.xlu0 %v2277_v15  ;;  %v2298_v17 = vsel %vm2177_vm2, %v6680_v14, -inf  ;;  %v2340_v14 = vsel %vm2177_vm2, %v6693_v27, -inf }
 0x132   : > { %v2246_v57 = vpop.xlane.xlu1 %2245  ;;  %v2204_v8 = vpop.xlane.xlu2 %2203 }
 0x133   : > { %v2564_v7 = vsub.f32 %v6152_v58, %v2204_v8 }
 0x134   : > { %v2183_v16 = vpop.xlane.xlu0 %2182 }
 0x135   : > { %v2698_v53 = vmul.f32 1.442695, %v2564_v7  ;;  %v2557_v37 = vsub.f32 %v6170_v4, %v2183_v16  ;;  %v6700_v8 = vpop.f32.mrf.mxu1  ;;  %v6710_v4 = vsel %vm2050_vm1, %v6562_v28, -1e+30 }
 0x136   : > { %v6696_v15 = vpop.f32.mrf.mxu0  ;;  %v2301_v28 = vsel %vm2177_vm2, %v6710_v4, -inf }
 0x137   : > { %v2684_v58 = vmul.f32 1.442695, %v2557_v37  ;;  %2299 = vmax.xlane.f32.xlu1 %v2298_v17  ;;  %2320 = vmax.xlane.f32.xlu2 %v2319_v20  ;;  %5236 = vpow2.f32 %v2698_v53  ;;  %v2710_v53 = vmul.f32 1.442695, %v2570_v42  ;;  %v1245_v17 = vpop.f32.mrf.mxu3  ;;  %v354_v42 = vld [vmem:[%s5834_s21 + $0x3e8] sm:$0xff] }
 0x138   : > { %5079 = vmatmul.msk.f32.gmra.mxu0 %vm607_vm0, %v346_v43  ;;  %v1165_v43 = vpop.f32.mrf.mxu2 }
 0x139   : > { %5238 = vpow2.f32 %v2684_v58  ;;  %5093 = vmatmul.msk.f32.gmra.mxu1 %vm607_vm0, %v353_v39  ;;  %2341 = vmax.xlane.f32.xlu0 %v2340_v14  ;;  %v6725_v50 = vsel %vm2050_vm1, %v1165_v43, -1e+30  ;;  %v2280_v14 = vsel %vm2177_vm2, %v6718_v48, -inf  ;;  %v6751_v43 = vsel %vm2050_vm1, %v6590_v29, -1e+30 }
 0x13a   : > { %v6713_v20 = vpop.xlane.xlu2 %2248  ;;  %v2186_v7 = vpop.xlane.xlu1 %2185  ;;  %8743 = vst [vmem:[#allocation16_spill] sm:$0xff] %v6725_v50  ;;  %5240 = vpow2.f32 %v2710_v53  ;;  %v6765_v29 = vsel %vm2050_vm1, %v6592_v33, -1e+30 }
 0x13b   : > { %v2558_v39 = vsub.f32 %v6185_v12, %v2186_v7  ;;  %v347_v12 = vld [vmem:[%s5834_s21 + $0x3b0] sm:$0xff]  ;;  %v2322_v7 = vsel %vm2177_vm2, %v6725_v50, -inf  ;;  %8744 = vst [vmem:[#allocation17_spill] sm:$0xff] %v6751_v43 }
 0x13c   : > { %v2225_v18 = vpop.xlane.xlu0 %2224  ;;  %8746 = vst [vmem:[#allocation19_spill] sm:$0xff] %v6765_v29 }
 0x13d   : > { %v2686_v0 = vmul.f32 1.442695, %v2558_v39  ;;  %v6729_v16 = vpop.eup %5236  ;;  %v2578_v39 = vsub.f32 %v6165_v2, %v2246_v57  ;;  %v6744_v63 = vpop.f32.mrf.mxu1  ;;  %v2571_v53 = vsub.f32 %v6203_v21, %v2225_v18 }
 0x13e   : > { %v6731_v37 = vpop.f32.mrf.mxu0  ;;  %5103 = vmatmul.msk.f32.gmra.mxu3 %vm2177_vm2, %v6729_v16 }
 0x13f   : > { %v6735_v58 = vpop.eup %5238  ;;  %2302 = vmax.xlane.f32.xlu2 %v2301_v28  ;;  %2281 = vmax.xlane.f32.xlu1 %v2280_v14  ;;  %5242 = vpow2.f32 %v2686_v0  ;;  %v6758_v28 = vsel %vm2050_vm1, %v1245_v17, -1e+30  ;;  %v2726_v0 = vmul.f32 1.442695, %v2578_v39 }
 0x140   : > { %5096 = vmatmul.msk.f32.gmra.mxu2 %vm2177_vm2, %v6735_v58  ;;  %5080 = vmatmul.msk.f32.gmra.mxu0 %vm607_vm0, %v347_v12  ;;  %5244 = vpow2.f32 %v2724_v56  ;;  %8745 = vst [vmem:[#allocation18_spill] sm:$0xff] %v6758_v28  ;;  %v2346_v12 = vsel %vm2177_vm2, %v6751_v43, -inf  ;;  %v2343_v18 = vsel %vm2177_vm2, %v6758_v28, -inf  ;;  %v6770_v56 = vpop.eup %5240  ;;  %v1467_v17 = vpop.f32.mrf.mxu2  ;;  %v2367_v43 = vsel %vm2177_vm2, %v6765_v29, -inf }
 0x141   : > { %5094 = vmatmul.msk.f32.gmra.mxu1 %vm607_vm0, %v354_v42  ;;  %2323 = vmax.xlane.f32.xlu0 %v2322_v7  ;;  %v2712_v42 = vmul.f32 1.442695, %v2571_v53  ;;  %5246 = vpow2.f32 %v2726_v0  ;;  %v2579_v53 = vsub.f32 %v6198_v19, %v6713_v20  ;;  %v6795_v19 = vsel %vm2050_vm1, %v1467_v17, -1e+30 }
 0x142   : > { %v6754_v2 = vpop.xlane.xlu2 %2230  ;;  %v2228_v57 = vpop.xlane.xlu1 %2227  ;;  %8748 = vst [vmem:[#allocation21_spill] sm:$0xff] %v6795_v19 }
 0x143   : > { %v2572_v0 = vsub.f32 %v6223_v31, %v2228_v57  ;;  %v2728_v31 = vmul.f32 1.442695, %v2579_v53  ;;  %v2388_v57 = vsel %vm2177_vm2, %v6795_v19, -inf }
 0x144   : > { %v2207_v14 = vpop.xlane.xlu0 %2206 }
 0x145   : > { %v2565_v21 = vsub.f32 %v6235_v40, %v2207_v14  ;;  %v6774_v39 = vpop.eup %5242  ;;  %v1547_v40 = vpop.f32.mrf.mxu3 }
 0x146   : > { %v6772_v7 = vpop.f32.mrf.mxu0  ;;  %v6778_v33 = vpop.eup %5244  ;;  %v6790_v14 = vsel %vm2050_vm1, %v1547_v40, -1e+30  ;;  %v2714_v40 = vmul.f32 1.442695, %v2572_v0 }
 0x147   : > { %v2700_v50 = vmul.f32 1.442695, %v2565_v21  ;;  %2347 = vmax.xlane.f32.xlu2 %v2346_v12  ;;  %2344 = vmax.xlane.f32.xlu1 %v2343_v18  ;;  %8747 = vst [vmem:[#allocation20_spill] sm:$0xff] %v6790_v14  ;;  %v6797_v20 = vpop.f32.mrf.mxu1  ;;  %v2409_v29 = vsel %vm2177_vm2, %v6790_v14, -inf  ;;  %v6809_v17 = vpop.eup %5246 }
 0x148   : > { %5097 = vmatmul.msk.f32.gmra.mxu2 %vm2177_vm2, %v6774_v39  ;;  %5109 = vmatmul.msk.f32.vlgmr.msrb.gmra.mxu0 %vm2177_vm2, %v6770_v56 }
 0x149   : > { %5248 = vpow2.f32 %v2700_v50  ;;  %5116 = vmatmul.msk.f32.vlgmr.msrb.gmra.mxu1 %vm2177_vm2, %v6778_v33  ;;  %2368 = vmax.xlane.f32.xlu0 %v2367_v43 }
 0x14a   : > { %5250 = vpow2.f32 %v2712_v42  ;;  %v2189_v12 = vpop.xlane.xlu1 %2188  ;;  %v2192_v21 = vpop.xlane.xlu2 %2191  ;;  %v6805_v42 = vsel %vm2050_vm1, %v6627_v5, -1e+30 }
 0x14b   : > { %v2559_v50 = vsub.f32 %v6261_v54, %v2189_v12  ;;  %8749 = vst [vmem:[#allocation22_spill] sm:$0xff] %v6805_v42  ;;  %v2560_v28 = vsub.f32 %v6254_v52, %v2192_v21  ;;  %v2349_v5 = vsel %vm2177_vm2, %v6805_v42, -inf  ;;  %v2573_v52 = vsub.f32 %v6230_v38, %v6754_v2  ;;  %v515_v21 = vld [vmem:[%s6463_s24 + $0x110] sm:$0xff] }
 0x14c   : > { %v2252_v18 = vpop.xlane.xlu0 %2251  ;;  %3578 = vmatpush.msrb.mxu2 %v515_v21 }
 0x14d   : > { %v2688_v43 = vmul.f32 1.442695, %v2559_v50  ;;  %v1470_v50 = vpop.f32.mrf.mxu2  ;;  %v2690_v38 = vmul.f32 1.442695, %v2560_v28  ;;  %v2580_v2 = vsub.f32 %v6265_v55, %v2252_v18  ;;  %v1550_v42 = vpop.f32.mrf.mxu3  ;;  %v529_v18 = vld [vmem:[%s6463_s24 + $0x180] sm:$0xff] }
 0x14e   : > { %v6812_v54 = vpop.f32.mrf.mxu0  ;;  %v6835_v0 = vsel %vm2050_vm1, %v1470_v50, -1e+30  ;;  %v521_v50 = vld [vmem:[%s6463_s24 + $0x140] sm:$0xff]  ;;  %v6849_v55 = vsel %vm2050_vm1, %v1550_v42, -1e+30  ;;  %3696 = vmatpush.msra.mxu0 %v529_v18 }
 0x14f   : > { %v6814_v12 = vpop.eup %5248  ;;  %5252 = vpow2.f32 %v2688_v43  ;;  %2410 = vmax.xlane.f32.xlu2 %v2409_v29  ;;  %2389 = vmax.xlane.f32.xlu1 %v2388_v57  ;;  %v6831_v29 = vsel %vm2050_vm1, %v6629_v3, -1e+30  ;;  %8751 = vst [vmem:[#allocation24_spill] sm:$0xff] %v6835_v0  ;;  %v514_v3 = vld [vmem:[%s6463_s24 + $0x108] sm:$0xff]  ;;  %v2391_v28 = vsel %vm2177_vm2, %v6835_v0, -inf  ;;  %v6854_v21 = vpop.f32.mrf.mxu1 }
 0x150   : > { %v6818_v53 = vpop.eup %5250  ;;  %5104 = vmatmul.msk.f32.gmra.mxu3 %vm2177_vm2, %v6814_v12  ;;  %5254 = vpow2.f32 %v2728_v31  ;;  %8750 = vst [vmem:[#allocation23_spill] sm:$0xff] %v6831_v29  ;;  %v522_v31 = vld [vmem:[%s6463_s24 + $0x148] sm:$0xff]  ;;  %3579 = vmatpush.msrb.mxu2 %v514_v3  ;;  %v2730_v0 = vmul.f32 1.442695, %v2580_v2  ;;  %v528_v3 = vld [vmem:[%s6463_s24 + $0x178] sm:$0xff]  ;;  %v519_v2 = vld [vmem:[%s6463_s24 + $0x130] sm:$0xff] }
 0x151   : > { %5110 = vmatmul.msk.f32.gmra.mxu0 %vm2177_vm2, %v6818_v53  ;;  %5117 = vmatmul.msk.f32.gmra.mxu1 %vm2177_vm2, %v6809_v17  ;;  %5256 = vpow2.f32 %v2714_v40  ;;  %v2370_v40 = vsel %vm2177_vm2, %v6831_v29, -inf  ;;  %8752 = vst [vmem:[#allocation25_spill] sm:$0xff] %v6849_v55  ;;  %v520_v29 = vld [vmem:[%s6463_s24 + $0x138] sm:$0xff] }
 0x152   : > { %2350 = vmax.xlane.f32.xlu0 %v2349_v5  ;;  %v2210_v43 = vpop.xlane.xlu1 %2209  ;;  %v2213_v57 = vpop.xlane.xlu2 %2212  ;;  %3637 = vmatpush.msrb.mxu3 %v522_v31  ;;  %5258 = vpow2.f32 %v2690_v38  ;;  %v512_v38 = vld [vmem:[%s6463_s24 + $0xf8] sm:$0xff] }
 0x153   : > { %v2566_v19 = vsub.f32 %v6298_v11, %v2210_v43  ;;  %v2716_v11 = vmul.f32 1.442695, %v2573_v52  ;;  %v513_v43 = vld [vmem:[%s6463_s24 + $0x100] sm:$0xff]  ;;  %v2567_v52 = vsub.f32 %v6290_v9, %v2213_v57  ;;  %v6880_v9 = vsel %vm2050_vm1, %v6659_v41, -1e+30  ;;  %v527_v57 = vld [vmem:[%s6463_s24 + $0x170] sm:$0xff]  ;;  %3697 = vmatpush.msra.mxu0 %v528_v3 }
 0x154   : > { %v2234_v14 = vpop.xlane.xlu0 %2233  ;;  %3638 = vmatpush.msrb.mxu3 %v521_v50  ;;  %3580 = vmatpush.msrb.mxu2 %v513_v43 }
 0x155   : > { %v6852_v5 = vpop.eup %5252  ;;  %v2702_v31 = vmul.f32 1.442695, %v2566_v19  ;;  %v2412_v19 = vsel %vm2177_vm2, %v6849_v55, -inf  ;;  %v2574_v18 = vsub.f32 %v6302_v13, %v2234_v14  ;;  %v6886_v13 = vsel %vm2050_vm1, %v6663_v26, -1e+30  ;;  %v511_v14 = vld [vmem:[%s6463_s24 + $0xf0] sm:$0xff]  ;;  %3698 = vmatpush.msra.mxu0 %v527_v57 }
 0x156   : > { %v6858_v48 = vpop.f32.mrf.mxu0  ;;  %5098 = vmatmul.msk.f32.gmra.mxu2 %vm2177_vm2, %v6852_v5  ;;  %v6862_v42 = vpop.eup %5254  ;;  %3639 = vmatpush.msrb.mxu3 %v520_v29  ;;  %v2373_v55 = vsel %vm2177_vm2, %v6880_v9, -inf  ;;  %v526_v26 = vld [vmem:[%s6463_s24 + $0x168] sm:$0xff] }
 0x157   : > { %8753 = vst [vmem:[#allocation26_spill] sm:$0xff] %v6858_v48  ;;  %5260 = vpow2.f32 %v2702_v31  ;;  %2392 = vmax.xlane.f32.xlu2 %v2391_v28  ;;  %v6868_v50 = vpop.eup %5256  ;;  %2371 = vmax.xlane.f32.xlu1 %v2370_v40  ;;  %v518_v28 = vld [vmem:[%s6463_s24 + $0x128] sm:$0xff]  ;;  %v2704_v31 = vmul.f32 1.442695, %v2567_v52  ;;  %v2718_v48 = vmul.f32 1.442695, %v2574_v18  ;;  %v6909_v18 = vpop.f32.mrf.mxu1 }
 0x158   : > { %5262 = vpow2.f32 %v2716_v11  ;;  %v536_v11 = vld [vmem:[%s6463_s24 + $0x1b8] sm:$0xff]  ;;  %3581 = vmatpush.msrb.mxu2 %v512_v38  ;;  %3640 = vmatpush.msrb.mxu3 %v519_v2 }
 0x159   : > { %5111 = vmatmul.msk.f32.gmra.mxu0 %vm2177_vm2, %v6868_v50  ;;  %5118 = vmatmul.msk.f32.gmra.mxu1 %vm2177_vm2, %v6862_v42  ;;  %5264 = vpow2.f32 %v2730_v0  ;;  %v6893_v0 = vpop.eup %5258 }
 0x15a   : > { %2413 = vmax.xlane.f32.xlu0 %v2412_v19  ;;  %v2255_v29 = vpop.xlane.xlu1 %2254  ;;  %v2195_v40 = vpop.xlane.xlu2 %2194  ;;  %3755 = vmatpush.msra.mxu1 %v536_v11  ;;  %5266 = vpow2.f32 %v2704_v31  ;;  %v525_v11 = vld [vmem:[%s6463_s24 + $0x160] sm:$0xff]  ;;  %v516_v31 = vld [vmem:[%s6463_s24 + $0x118] sm:$0xff] }
 0x15b   : > { %v2581_v43 = vsub.f32 %v6327_v30, %v2255_v29  ;;  %v2561_v41 = vsub.f32 %v6331_v32, %v2195_v40  ;;  %v2352_v30 = vsel %vm2177_vm2, %v6886_v13, -inf  ;;  %3582 = vmatpush.msrb.mxu2 %v511_v14  ;;  %3641 = vmatpush.msrb.mxu3 %v518_v28  ;;  %v510_v32 = vld [vmem:[%s6463_s24 + $0xe8] sm:$0xff]  ;;  %v517_v40 = vld [vmem:[%s6463_s24 + $0x120] sm:$0xff]  ;;  %v535_v28 = vld [vmem:[%s6463_s24 + $0x1b0] sm:$0xff] }
 0x15c   : > { %v2216_v19 = vpop.xlane.xlu0 %2215  ;;  %3699 = vmatpush.msra.mxu0 %v526_v26  ;;  %v524_v26 = vld [vmem:[%s6463_s24 + $0x158] sm:$0xff]  ;;  %3756 = vmatpush.msra.mxu1 %v535_v28  ;;  %v2976_v28 = vsel %vm2177_vm2, %v6770_v56, 0.0 }
 0x15d   : > { %v6898_v3 = vpop.eup %5260  ;;  %v2692_v52 = vmul.f32 1.442695, %v2561_v41  ;;  %v2732_v38 = vmul.f32 1.442695, %v2581_v43  ;;  %v2568_v57 = vsub.f32 %v6338_v34, %v2216_v19  ;;  %3583 = vmatpush.msrb.mxu2 %v510_v32  ;;  %v2934_v34 = vsel %vm2177_vm2, %v6667_v49, 0.0  ;;  %3642 = vmatpush.msrb.mxu3 %v517_v40  ;;  %v534_v19 = vld [vmem:[%s6463_s24 + $0x1a8] sm:$0xff] }
 0x15e   : > { %5099 = vmatmul.msk.f32.gmra.mxu2 %vm2177_vm2, %v6893_v0  ;;  %5105 = vmatmul.msk.f32.gmra.mxu3 %vm2177_vm2, %v6898_v3  ;;  %v6907_v2 = vpop.eup %5262  ;;  %v6912_v29 = vpop.f32.mrf.mxu0  ;;  %v532_v56 = vld [vmem:[%s6463_s24 + $0x198] sm:$0xff] }
 0x15f   : > { %8754 = vst [vmem:[#allocation27_spill] sm:$0xff] %v6912_v29  ;;  %2374 = vmax.xlane.f32.xlu2 %v2373_v55  ;;  %v6915_v14 = vpop.eup %5264  ;;  %5268 = vpow2.f32 %v2692_v52  ;;  %2353 = vmax.xlane.f32.xlu1 %v2352_v30  ;;  %v509_v55 = vld [vmem:[%s6463_s24 + $0xe0] sm:$0xff]  ;;  %v2706_v52 = vmul.f32 1.442695, %v2568_v57 }
 0x160   : > { %5270 = vpow2.f32 %v2718_v48  ;;  %v1473_v48 = vpop.f32.mrf.mxu2  ;;  %3700 = vmatpush.msra.mxu0 %v525_v11  ;;  %3584 = vmatpush.msrb.mxu2 %v509_v55  ;;  %v1553_v55 = vpop.f32.mrf.mxu3 }
 0x161   : > { %5112 = vmatmul.msk.f32.gmra.mxu0 %vm2177_vm2, %v6907_v2  ;;  %5119 = vmatmul.msk.f32.gmra.mxu1 %vm2177_vm2, %v6915_v14  ;;  %5272 = vpow2.f32 %v2732_v38  ;;  %v6933_v49 = vsel %vm2050_vm1, %v1473_v48, -1e+30  ;;  %v6935_v38 = vpop.eup %5266 }
 0x162   : > { %2935 = vadd.xlane.f32.xlu0 %v2934_v34  ;;  %v2237_v43 = vpop.xlane.xlu1 %2236  ;;  %v2258_v41 = vpop.xlane.xlu2 %2257  ;;  %3643 = vmatpush.msrb.mxu3 %v516_v31  ;;  %5274 = vpow2.f32 %v2706_v52 }
 0x163   : > { %v2575_v30 = vsub.f32 %v6365_v59, %v2237_v43  ;;  %v2582_v32 = vsub.f32 %v6369_v60, %v2258_v41  ;;  %3757 = vmatpush.msra.mxu1 %v534_v19  ;;  %3701 = vmatpush.msra.mxu0 %v524_v26  ;;  %v533_v59 = vld [vmem:[%s6463_s24 + $0x1a0] sm:$0xff]  ;;  %v523_v43 = vld [vmem:[%s6463_s24 + $0x150] sm:$0xff]  ;;  %v6957_v19 = vpop.f32.mrf.mxu1 }
 0x164   : > { %v2198_v29 = vpop.xlane.xlu0 %2197 }
 0x165   : > { %v2720_v40 = vmul.f32 1.442695, %v2575_v30  ;;  %v2562_v34 = vsub.f32 %v6376_v62, %v2198_v29  ;;  %v6939_v57 = vpop.eup %5268  ;;  %v2734_v60 = vmul.f32 1.442695, %v2582_v32  ;;  %v2955_v62 = vsel %vm2177_vm2, %v6661_v35, 0.0  ;;  %3758 = vmatpush.msra.mxu1 %v533_v59  ;;  %3702 = vmatpush.msra.mxu0 %v523_v43  ;;  %v531_v32 = vld [vmem:[%s6463_s24 + $0x190] sm:$0xff] }
 0x166   : > { %5106 = vmatmul.msk.f32.gmra.mxu3 %vm2177_vm2, %v6935_v38  ;;  %v6945_v11 = vpop.eup %5270  ;;  %5100 = vmatmul.msk.f32.gmra.mxu2 %vm2177_vm2, %v6939_v57  ;;  %v2394_v29 = vsel %vm2177_vm2, %v6933_v49, -inf  ;;  %v6959_v26 = vpop.f32.mrf.mxu0  ;;  %v6968_v35 = vsel %vm2050_vm1, %v6696_v15, -1e+30  ;;  %v6972_v30 = vsel %vm2050_vm1, %v1553_v55, -1e+30 }
 0x167   : > { %v2694_v31 = vmul.f32 1.442695, %v2562_v34  ;;  %2977 = vadd.xlane.f32.xlu2 %v2976_v28  ;;  %v6954_v41 = vpop.eup %5272  ;;  %5276 = vpow2.f32 %v2720_v40  ;;  %2956 = vadd.xlane.f32.xlu1 %v2955_v62  ;;  %v2355_v15 = vsel %vm2177_vm2, %v6968_v35, -inf  ;;  %v530_v28 = vld [vmem:[%s6463_s24 + $0x188] sm:$0xff]  ;;  %v2415_v55 = vsel %vm2177_vm2, %v6972_v30, -inf }
 0x168   : > { %3759 = vmatpush.msra.mxu1 %v532_v56 }
 0x169   : > { %5278 = vpow2.f32 %v2694_v31  ;;  %5113 = vmatmul.msk.f32.gmra.mxu0 %vm2177_vm2, %v6945_v11  ;;  %5120 = vmatmul.msk.f32.gmra.mxu1 %vm2177_vm2, %v6954_v41  ;;  %v1476_v31 = vpop.f32.mrf.mxu2 }
 0x16a   : > { %5280 = vpow2.f32 %v2734_v60  ;;  %2395 = vmax.xlane.f32.xlu0 %v2394_v29  ;;  %v2219_v48 = vpop.xlane.xlu1 %2218  ;;  %v2240_v52 = vpop.xlane.xlu2 %2239  ;;  %3760 = vmatpush.msra.mxu1 %v531_v32 }
 0x16b   : > { %v2569_v40 = vsub.f32 %v6402_v22, %v2219_v48  ;;  %v2576_v34 = vsub.f32 %v6406_v23, %v2240_v52  ;;  %v6980_v60 = vpop.eup %5274  ;;  %v2997_v52 = vsel %vm2177_vm2, %v6778_v33, 0.0  ;;  %v7010_v33 = vsel %vm2050_vm1, %v6700_v8, -1e+30 }
 0x16c   : > { %v2261_v59 = vpop.xlane.xlu0 %2260  ;;  %3761 = vmatpush.msra.mxu1 %v530_v28  ;;  %v2937_v8 = vsel %vm2177_vm2, %v6735_v58, 0.0 }
 0x16d   : > { %v2708_v62 = vmul.f32 1.442695, %v2569_v40  ;;  %v2583_v29 = vsub.f32 %v6411_v24, %v2261_v59  ;;  %v6985_v43 = vpop.eup %5276  ;;  %v2722_v22 = vmul.f32 1.442695, %v2576_v34  ;;  %v1556_v24 = vpop.f32.mrf.mxu3 }
 0x16e   : > { %5107 = vmatmul.msk.f32.gmra.mxu3 %vm2177_vm2, %v6980_v60  ;;  %v7001_v34 = vpop.f32.mrf.mxu1  ;;  %v7003_v59 = vpop.f32.mrf.mxu0 }
 0x16f   : > { %v6989_v23 = vpop.eup %5278  ;;  %5282 = vpow2.f32 %v2708_v62  ;;  %v2736_v56 = vmul.f32 1.442695, %v2583_v29  ;;  %2356 = vmax.xlane.f32.xlu2 %v2355_v15  ;;  %2416 = vmax.xlane.f32.xlu1 %v2415_v55  ;;  %8755 = vst [vmem:[#allocation28_spill] sm:$0xff] %v7001_v34 }
 0x170   : > { %v6991_v48 = vpop.eup %5280  ;;  %5101 = vmatmul.msk.f32.gmra.mxu2 %vm2177_vm2, %v6989_v23  ;;  %8756 = vst [vmem:[#allocation29_spill] sm:$0xff] %v7003_v59 }
 0x171   : > { %5284 = vpow2.f32 %v2736_v56  ;;  %5121 = vmatmul.msk.f32.gmra.mxu1 %vm2177_vm2, %v6991_v48  ;;  %5114 = vmatmul.msk.f32.gmra.mxu0 %vm2177_vm2, %v6985_v43 }
 0x172   : > { %5286 = vpow2.f32 %v2722_v22  ;;  %2998 = vadd.xlane.f32.xlu0 %v2997_v52  ;;  %v2285_v32 = vpop.xlane.xlu2 %2284  ;;  %v2264_v40 = vpop.xlane.xlu1 %2263 }
 0x173   : > { %v2591_v15 = vsub.f32 %v6434_v45, %v2285_v32  ;;  %v2584_v28 = vsub.f32 %v6439_v46, %v2264_v40  ;;  %v2958_v45 = vsel %vm2177_vm2, %v6729_v16, 0.0  ;;  %v7021_v46 = vpop.f32.mrf.mxu2  ;;  %v2376_v40 = vsel %vm2177_vm2, %v7010_v33, -inf }
 0x174   : > { %v2306_v62 = vpop.xlane.xlu0 %2305  ;;  %v7035_v16 = vsel %vm2050_vm1, %v1556_v24, -1e+30 }
 0x175   : > { %v7012_v29 = vpop.eup %5282  ;;  %v2752_v55 = vmul.f32 1.442695, %v2591_v15  ;;  %v2738_v22 = vmul.f32 1.442695, %v2584_v28  ;;  %v2598_v56 = vsub.f32 %v6443_v47, %v2306_v62  ;;  %v7039_v28 = vsel %vm2050_vm1, %v1476_v31, -1e+30  ;;  %v7041_v62 = vpop.f32.mrf.mxu3 }
 0x176   : > { %5108 = vmatmul.msk.f32.gmra.mxu3 %vm2177_vm2, %v7012_v29  ;;  %v7049_v24 = vpop.f32.mrf.mxu1  ;;  %v2397_v34 = vsel %vm2177_vm2, %v7039_v28, -inf }
 0x177   : > { %v7019_v52 = vpop.eup %5284  ;;  %5288 = vpow2.f32 %v2752_v55  ;;  %v2766_v32 = vmul.f32 1.442695, %v2598_v56  ;;  %2959 = vadd.xlane.f32.xlu2 %v2958_v45  ;;  %2938 = vadd.xlane.f32.xlu1 %v2937_v8  ;;  %v2418_v45 = vsel %vm2177_vm2, %v7035_v16, -inf  ;;  %v7051_v8 = vpop.f32.mrf.mxu0 }
 0x178   : > { %v7027_v47 = vpop.eup %5286  ;;  %5290 = vpow2.f32 %v2738_v22  ;;  %8758 = vst [vmem:[#allocation31_spill] sm:$0xff] %v7051_v8 }
 0x179   : > { %5292 = vpow2.f32 %v2766_v32  ;;  %5122 = vmatmul.msk.f32.gmra.mxu1 %vm2177_vm2, %v7019_v52  ;;  %5115 = vmatmul.msk.f32.gmra.mxu0 %vm2177_vm2, %v7027_v47 }
 0x17a   : > { %2377 = vmax.xlane.f32.xlu0 %v2376_v40  ;;  %v2327_v58 = vpop.xlane.xlu1 %2326  ;;  %v2267_v15 = vpop.xlane.xlu2 %2266 }
 0x17b   : > { %v2605_v55 = vsub.f32 %v6471_v1, %v2327_v58  ;;  %v2585_v22 = vsub.f32 %v6475_v6, %v2267_v15  ;;  %v7064_v15 = vpop.f32.mrf.mxu2 }
 0x17c   : > { %v2288_v56 = vpop.xlane.xlu0 %2287 }
 0x17d   : > { %v7047_v32 = vpop.eup %5288  ;;  %v2780_v40 = vmul.f32 1.442695, %v2605_v55  ;;  %v2740_v59 = vmul.f32 1.442695, %v2585_v22  ;;  %v2592_v31 = vsub.f32 %v6482_v10, %v2288_v56  ;;  %v2979_v10 = vsel %vm2177_vm2, %v6818_v53, 0.0 }
 0x17e   : > { %8757 = vst [vmem:[#allocation30_spill] sm:$0xff] %v7047_v32  ;;  %v7056_v1 = vpop.eup %5290  ;;  %5130 = vmatmul.msk.f32.vlgmr.msrb.gmra.mxu3 %vm2177_vm2, %v7047_v32 }
 0x17f   : > { %v7060_v6 = vpop.eup %5292  ;;  %5294 = vpow2.f32 %v2780_v40  ;;  %v2754_v58 = vmul.f32 1.442695, %v2592_v31  ;;  %5123 = vmatmul.msk.f32.vlgmr.msrb.gmra.mxu2 %vm2177_vm2, %v7056_v1  ;;  %2419 = vmax.xlane.f32.xlu2 %v2418_v45  ;;  %v7079_v45 = vpop.f32.mrf.mxu3 }
 0x180   : > { %8759 = vst [vmem:[#allocation32_spill] sm:$0xff] %v7060_v6  ;;  %5296 = vpow2.f32 %v2740_v59  ;;  %2398 = vmax.xlane.f32.xlu1 %v2397_v34  ;;  %v7075_v34 = vsel %vm2050_vm1, %v6731_v37, -1e+30  ;;  %v7090_v37 = vpop.f32.mrf.mxu1 }
 0x181   : > { %5298 = vpow2.f32 %v2754_v58  ;;  %5137 = vmatmul.msk.f32.vlgmr.msra.gmra.mxu0 %vm2177_vm2, %v7060_v6 }
 0x182   : > { %2980 = vadd.xlane.f32.xlu0 %v2979_v10  ;;  %v2309_v55 = vpop.xlane.xlu1 %2308  ;;  %v2330_v22 = vpop.xlane.xlu2 %2329 }
 0x183   : > { %v2599_v56 = vsub.f32 %v6509_v44, %v2309_v55  ;;  %v2606_v40 = vsub.f32 %v6513_v51, %v2330_v22  ;;  %v2940_v44 = vsel %vm2177_vm2, %v6774_v39, 0.0  ;;  %v7092_v55 = vpop.f32.mrf.mxu0  ;;  %v7105_v39 = vsel %vm2050_vm1, %v7021_v46, -1e+30 }
 0x184   : > { %v2270_v31 = vpop.xlane.xlu0 %2269  ;;  %8762 = vst [vmem:[#allocation35_spill] sm:$0xff] %v7092_v55 }
 0x185   : > { %v7077_v59 = vpop.eup %5294  ;;  %v2768_v53 = vmul.f32 1.442695, %v2599_v56  ;;  %v2782_v58 = vmul.f32 1.442695, %v2606_v40  ;;  %v2586_v10 = vsub.f32 %v6520_v61, %v2270_v31  ;;  %v3000_v61 = vsel %vm2177_vm2, %v6809_v17, 0.0 }
 0x186   : > { %8760 = vst [vmem:[#allocation33_spill] sm:$0xff] %v7077_v59  ;;  %v7082_v6 = vpop.eup %5296  ;;  %5144 = vmatmul.msk.f32.vlgmr.msra.gmra.mxu1 %vm2177_vm2, %v7077_v59  ;;  %v2358_v56 = vsel %vm2177_vm2, %v7075_v34, -inf  ;;  %v7110_v17 = vsel %vm2050_vm1, %v6744_v63, -1e+30 }
 0x187   : > { %v7088_v51 = vpop.eup %5298  ;;  %5300 = vpow2.f32 %v2768_v53  ;;  %v2742_v22 = vmul.f32 1.442695, %v2586_v10  ;;  %5124 = vmatmul.msk.f32.gmra.mxu2 %vm2177_vm2, %v7082_v6  ;;  %2941 = vadd.xlane.f32.xlu2 %v2940_v44  ;;  %v7112_v53 = vpop.f32.mrf.mxu2  ;;  %v8763_v10 = vld [vmem:[#allocation2_spill] sm:$0xff]  ;;  %v2379_v63 = vsel %vm2177_vm2, %v7110_v17, -inf }
 0x188   : > { %8761 = vst [vmem:[#allocation34_spill] sm:$0xff] %v7088_v51  ;;  %5302 = vpow2.f32 %v2782_v58  ;;  %3001 = vadd.xlane.f32.xlu1 %v3000_v61  ;;  %5131 = vmatmul.msk.f32.gmra.mxu3 %vm2177_vm2, %v7088_v51  ;;  %v2400_v61 = vsel %vm2177_vm2, %v7105_v39, -inf  ;;  %v8765_v51 = vld [vmem:[#allocation3_spill] sm:$0xff] }
 0x189   : > { %5304 = vpow2.f32 %v2742_v22 }
 0x18a   : > { %2359 = vmax.xlane.f32.xlu0 %v2358_v56  ;;  %v2291_v40 = vpop.xlane.xlu1 %2290  ;;  %v2312_v31 = vpop.xlane.xlu2 %2311 }
 0x18b   : > { %v2593_v58 = vsub.f32 %v6546_v36, %v2291_v40  ;;  %v2600_v44 = vsub.f32 %v8763_v10, %v2312_v31  ;;  %v7129_v40 = vpop.f32.mrf.mxu3  ;;  %v2961_v10 = vsel %vm2177_vm2, %v6814_v12, 0.0  ;;  %v8774_v12 = vld [vmem:[#allocation6_spill] sm:$0xff] }
 0x18c   : > { %v2333_v22 = vpop.xlane.xlu0 %2332 }
 0x18d   : > { %v7118_v46 = vpop.eup %5300  ;;  %v2756_v56 = vmul.f32 1.442695, %v2593_v58  ;;  %v2770_v59 = vmul.f32 1.442695, %v2600_v44  ;;  %v2607_v32 = vsub.f32 %v8765_v51, %v2333_v22  ;;  %v7135_v51 = vpop.f32.mrf.mxu1  ;;  %v8770_v22 = vld [vmem:[#allocation4_spill] sm:$0xff] }
 0x18e   : > { %8764 = vst [vmem:[#allocation2_spill] sm:$0xff] %v7118_v46  ;;  %v7123_v55 = vpop.eup %5302  ;;  %5138 = vmatmul.msk.f32.gmra.mxu0 %vm2177_vm2, %v7118_v46  ;;  %v7137_v58 = vpop.f32.mrf.mxu0 }
 0x18f   : > { %8766 = vst [vmem:[#allocation3_spill] sm:$0xff] %v7123_v55  ;;  %v7127_v36 = vpop.eup %5304  ;;  %5306 = vpow2.f32 %v2756_v56  ;;  %v2784_v31 = vmul.f32 1.442695, %v2607_v32  ;;  %5145 = vmatmul.msk.f32.gmra.mxu1 %vm2177_vm2, %v7123_v55  ;;  %2401 = vmax.xlane.f32.xlu2 %v2400_v61  ;;  %v8771_v55 = vld [vmem:[#allocation5_spill] sm:$0xff] }
 0x190   : > { %8767 = vst [vmem:[#allocation36_spill] sm:$0xff] %v7127_v36  ;;  %5308 = vpow2.f32 %v2770_v59  ;;  %2380 = vmax.xlane.f32.xlu1 %v2379_v63  ;;  %5125 = vmatmul.msk.f32.gmra.mxu2 %vm2177_vm2, %v7127_v36  ;;  %v7146_v63 = vsel %vm2050_vm1, %v7041_v62, -1e+30 }
 0x191   : > { %8768 = vst [vmem:[#allocation37_spill] sm:$0xff] %v7135_v51  ;;  %5310 = vpow2.f32 %v2784_v31 }
 0x192   : > { %8769 = vst [vmem:[#allocation38_spill] sm:$0xff] %v7137_v58  ;;  %2962 = vadd.xlane.f32.xlu0 %v2961_v10  ;;  %v2294_v44 = vpop.xlane.xlu2 %2293  ;;  %v2273_v32 = vpop.xlane.xlu1 %2272 }
 0x193   : > { %v2594_v56 = vsub.f32 %v8770_v22, %v2294_v44  ;;  %v2587_v61 = vsub.f32 %v8771_v55, %v2273_v32  ;;  %8772 = vst [vmem:[#allocation4_spill] sm:$0xff] %v7146_v63  ;;  %v7150_v58 = vpop.f32.mrf.mxu2  ;;  %v3003_v55 = vsel %vm2177_vm2, %v6862_v42, 0.0  ;;  %v2982_v32 = vsel %vm2177_vm2, %v6868_v50, 0.0  ;;  %v7169_v42 = vpop.f32.mrf.mxu3 }
 0x194   : > { %v2315_v59 = vpop.xlane.xlu0 %2314  ;;  %v2421_v22 = vsel %vm2177_vm2, %v7146_v63, -inf }
 0x195   : > { %v7148_v46 = vpop.eup %5306  ;;  %v2758_v31 = vmul.f32 1.442695, %v2594_v56  ;;  %v2744_v51 = vmul.f32 1.442695, %v2587_v61  ;;  %v2601_v10 = vsub.f32 %v8774_v12, %v2315_v59  ;;  %v7174_v56 = vsel %vm2050_vm1, %v6797_v20, -1e+30  ;;  %v7186_v20 = vpop.f32.mrf.mxu1 }
 0x196   : > { %8773 = vst [vmem:[#allocation5_spill] sm:$0xff] %v7148_v46  ;;  %v7153_v36 = vpop.eup %5308  ;;  %5132 = vmatmul.msk.f32.gmra.mxu3 %vm2177_vm2, %v7148_v46  ;;  %v543_v59 = vld [vmem:[%s6463_s24 + $0x1f0] sm:$0xff]  ;;  %v8778_v12 = vld [vmem:[#allocation7_spill] sm:$0xff] }
 0x197   : > { %8775 = vst [vmem:[#allocation6_spill] sm:$0xff] %v7153_v36  ;;  %v7159_v44 = vpop.eup %5310  ;;  %5312 = vpow2.f32 %v2758_v31  ;;  %v2772_v62 = vmul.f32 1.442695, %v2601_v10  ;;  %5139 = vmatmul.msk.f32.gmra.mxu0 %vm2177_vm2, %v7153_v36  ;;  %3004 = vadd.xlane.f32.xlu2 %v3003_v55  ;;  %v7182_v31 = vpop.f32.mrf.mxu0  ;;  %v8779_v55 = vld [vmem:[#allocation8_spill] sm:$0xff]  ;;  %v550_v36 = vld [vmem:[%s6463_s24 + $0x228] sm:$0xff] }
 0x198   : > { %8776 = vst [vmem:[#allocation39_spill] sm:$0xff] %v7159_v44  ;;  %5314 = vpow2.f32 %v2744_v51  ;;  %2983 = vadd.xlane.f32.xlu1 %v2982_v32  ;;  %5146 = vmatmul.msk.f32.gmra.mxu1 %vm2177_vm2, %v7159_v44  ;;  %v7179_v51 = vsel %vm2050_vm1, %v6772_v7, -1e+30  ;;  %v542_v44 = vld [vmem:[%s6463_s24 + $0x1e8] sm:$0xff] }
 0x199   : > { %5316 = vpow2.f32 %v2772_v62  ;;  %8777 = vst [vmem:[#allocation40_spill] sm:$0xff] %v7182_v31  ;;  %3814 = vmatpush.msra.mxu2 %v543_v59  ;;  %v8782_v31 = vld [vmem:[#allocation9_spill] sm:$0xff]  ;;  %3873 = vmatpush.msra.mxu3 %v550_v36  ;;  %v541_v59 = vld [vmem:[%s6463_s24 + $0x1e0] sm:$0xff] }
 0x19a   : > { %2422 = vmax.xlane.f32.xlu0 %v2421_v22  ;;  %v2336_v50 = vpop.xlane.xlu1 %2335  ;;  %v2276_v61 = vpop.xlane.xlu2 %2275  ;;  %8780 = vst [vmem:[#allocation7_spill] sm:$0xff] %v7186_v20  ;;  %v2382_v22 = vsel %vm2177_vm2, %v7174_v56, -inf  ;;  %v540_v36 = vld [vmem:[%s6463_s24 + $0x1d8] sm:$0xff]  ;;  %v8786_v20 = vld [vmem:[#allocation11_spill] sm:$0xff] }
 0x19b   : > { %v2608_v10 = vsub.f32 %v8778_v12, %v2336_v50  ;;  %v2588_v62 = vsub.f32 %v8779_v55, %v2276_v61  ;;  %v2361_v50 = vsel %vm2177_vm2, %v7179_v51, -inf  ;;  %3815 = vmatpush.msra.mxu2 %v542_v44  ;;  %v549_v12 = vld [vmem:[%s6463_s24 + $0x220] sm:$0xff]  ;;  %v548_v44 = vld [vmem:[%s6463_s24 + $0x218] sm:$0xff] }
 0x19c   : > { %v2297_v32 = vpop.xlane.xlu0 %2296  ;;  %3874 = vmatpush.msra.mxu3 %v549_v12 }
 0x19d   : > { %v7192_v7 = vpop.eup %5312  ;;  %v2786_v46 = vmul.f32 1.442695, %v2608_v10  ;;  %v2746_v63 = vmul.f32 1.442695, %v2588_v62  ;;  %v2595_v8 = vsub.f32 %v8782_v31, %v2297_v32  ;;  %v7205_v10 = vpop.f32.mrf.mxu2  ;;  %3816 = vmatpush.msra.mxu2 %v541_v59  ;;  %v539_v32 = vld [vmem:[%s6463_s24 + $0x1d0] sm:$0xff]  ;;  %v556_v59 = vld [vmem:[%s6463_s24 + $0x258] sm:$0xff] }
 0x19e   : > { %8781 = vst [vmem:[#allocation8_spill] sm:$0xff] %v7192_v7  ;;  %v7197_v61 = vpop.eup %5314  ;;  %5133 = vmatmul.msk.f32.gmra.mxu3 %vm2177_vm2, %v7192_v7 }
 0x19f   : > { %8783 = vst [vmem:[#allocation9_spill] sm:$0xff] %v7197_v61  ;;  %v7203_v55 = vpop.eup %5316  ;;  %5318 = vpow2.f32 %v2786_v46  ;;  %v2760_v31 = vmul.f32 1.442695, %v2595_v8  ;;  %5126 = vmatmul.msk.f32.gmra.mxu2 %vm2177_vm2, %v7197_v61  ;;  %2383 = vmax.xlane.f32.xlu2 %v2382_v22  ;;  %v2943_v46 = vsel %vm2177_vm2, %v6852_v5, 0.0  ;;  %v547_v22 = vld [vmem:[%s6463_s24 + $0x210] sm:$0xff]  ;;  %v564_v61 = vld [vmem:[%s6463_s24 + $0x298] sm:$0xff] }
 0x1a0   : > { %8784 = vst [vmem:[#allocation41_spill] sm:$0xff] %v7203_v55  ;;  %5320 = vpow2.f32 %v2746_v63  ;;  %2362 = vmax.xlane.f32.xlu1 %v2361_v50  ;;  %5140 = vmatmul.msk.f32.gmra.mxu0 %vm2177_vm2, %v7203_v55  ;;  %v557_v63 = vld [vmem:[%s6463_s24 + $0x260] sm:$0xff]  ;;  %v7226_v5 = vsel %vm2050_vm1, %v7064_v15, -1e+30  ;;  %v8791_v15 = vld [vmem:[#allocation12_spill] sm:$0xff] }
 0x1a1   : > { %5322 = vpow2.f32 %v2760_v31  ;;  %v8785_v50 = vld [vmem:[#allocation10_spill] sm:$0xff]  ;;  %3817 = vmatpush.msra.mxu2 %v540_v36  ;;  %3875 = vmatpush.msra.mxu3 %v548_v44  ;;  %v7221_v31 = vpop.f32.mrf.mxu3 }
 0x1a2   : > { %2944 = vadd.xlane.f32.xlu0 %v2943_v46  ;;  %v2318_v8 = vpop.xlane.xlu1 %2317  ;;  %v2339_v62 = vpop.xlane.xlu2 %2338  ;;  %3932 = vmatpush.msrb.mxu0 %v557_v63  ;;  %v2403_v63 = vsel %vm2177_vm2, %v7226_v5, -inf }
 0x1a3   : > { %v2602_v7 = vsub.f32 %v8785_v50, %v2318_v8  ;;  %v2609_v55 = vsub.f32 %v8786_v20, %v2339_v62  ;;  %3991 = vmatpush.msrb.mxu1 %v564_v61  ;;  %v7231_v46 = vpop.f32.mrf.mxu0  ;;  %3818 = vmatpush.msra.mxu2 %v539_v32  ;;  %v7235_v62 = vpop.f32.mrf.mxu1  ;;  %v2985_v61 = vsel %vm2177_vm2, %v6907_v2, 0.0  ;;  %v563_v2 = vld [vmem:[%s6463_s24 + $0x290] sm:$0xff] }
 0x1a4   : > { %8788 = vst [vmem:[#allocation11_spill] sm:$0xff] %v7231_v46  ;;  %v2279_v44 = vpop.xlane.xlu0 %2278  ;;  %3876 = vmatpush.msra.mxu3 %v547_v22  ;;  %3933 = vmatpush.msrb.mxu0 %v556_v59  ;;  %v2964_v22 = vsel %vm2177_vm2, %v6898_v3, 0.0  ;;  %v537_v59 = vld [vmem:[%s6463_s24 + $0x1c0] sm:$0xff]  ;;  %v555_v3 = vld [vmem:[%s6463_s24 + $0x250] sm:$0xff]  ;;  %v8793_v46 = vld [vmem:[#allocation13_spill] sm:$0xff] }
 0x1a5   : > { %v7229_v12 = vpop.eup %5318  ;;  %v2774_v20 = vmul.f32 1.442695, %v2602_v7  ;;  %v2788_v36 = vmul.f32 1.442695, %v2609_v55  ;;  %8790 = vst [vmem:[#allocation43_spill] sm:$0xff] %v7235_v62  ;;  %v2589_v50 = vsub.f32 %v8791_v15, %v2279_v44  ;;  %v538_v7 = vld [vmem:[%s6463_s24 + $0x1c8] sm:$0xff]  ;;  %v7257_v15 = vpop.f32.mrf.mxu2  ;;  %3992 = vmatpush.msrb.mxu1 %v563_v2 }
 0x1a6   : > { %8787 = vst [vmem:[#allocation10_spill] sm:$0xff] %v7229_v12  ;;  %v7233_v8 = vpop.eup %5320  ;;  %5147 = vmatmul.msk.f32.gmra.mxu1 %vm2177_vm2, %v7229_v12  ;;  %v546_v55 = vld [vmem:[%s6463_s24 + $0x208] sm:$0xff]  ;;  %3819 = vmatpush.msra.mxu2 %v538_v7  ;;  %v7269_v12 = vsel %vm2050_vm1, %v7079_v45, -1e+30  ;;  %v8794_v62 = vld [vmem:[#allocation14_spill] sm:$0xff] }
 0x1a7   : > { %8789 = vst [vmem:[#allocation42_spill] sm:$0xff] %v7233_v8  ;;  %v7244_v32 = vpop.eup %5322  ;;  %5324 = vpow2.f32 %v2774_v20  ;;  %5127 = vmatmul.msk.f32.gmra.mxu2 %vm2177_vm2, %v7233_v8  ;;  %2986 = vadd.xlane.f32.xlu2 %v2985_v61  ;;  %v2748_v44 = vmul.f32 1.442695, %v2589_v50  ;;  %v545_v20 = vld [vmem:[%s6463_s24 + $0x200] sm:$0xff]  ;;  %v7262_v61 = vsel %vm2050_vm1, %v6812_v54, -1e+30 }
 0x1a8   : > { %8792 = vst [vmem:[#allocation12_spill] sm:$0xff] %v7244_v32  ;;  %5326 = vpow2.f32 %v2788_v36  ;;  %2965 = vadd.xlane.f32.xlu1 %v2964_v22  ;;  %5134 = vmatmul.msk.f32.gmra.mxu3 %vm2177_vm2, %v7244_v32  ;;  %v562_v36 = vld [vmem:[%s6463_s24 + $0x288] sm:$0xff]  ;;  %v544_v32 = vld [vmem:[%s6463_s24 + $0x1f8] sm:$0xff]  ;;  %v561_v7 = vld [vmem:[%s6463_s24 + $0x280] sm:$0xff] }
 0x1a9   : > { %3877 = vmatpush.msra.mxu3 %v546_v55  ;;  %5328 = vpow2.f32 %v2748_v44  ;;  %3820 = vmatpush.msra.mxu2 %v537_v59  ;;  %v2364_v55 = vsel %vm2177_vm2, %v7262_v61, -inf }
 0x1aa   : > { %2404 = vmax.xlane.f32.xlu0 %v2403_v63  ;;  %v2300_v50 = vpop.xlane.xlu1 %2299  ;;  %v2321_v22 = vpop.xlane.xlu2 %2320  ;;  %3934 = vmatpush.msrb.mxu0 %v555_v3  ;;  %v560_v3 = vld [vmem:[%s6463_s24 + $0x278] sm:$0xff] }
 0x1ab   : > { %v2596_v54 = vsub.f32 %v8793_v46, %v2300_v50  ;;  %v2603_v8 = vsub.f32 %v8794_v62, %v2321_v22  ;;  %3878 = vmatpush.msra.mxu3 %v545_v20  ;;  %3993 = vmatpush.msrb.mxu1 %v562_v36  ;;  %v2424_v46 = vsel %vm2177_vm2, %v7269_v12, -inf  ;;  %v554_v62 = vld [vmem:[%s6463_s24 + $0x248] sm:$0xff]  ;;  %v7284_v20 = vpop.f32.mrf.mxu3  ;;  %v7297_v22 = vpop.f32.mrf.mxu1 }
 0x1ac   : > { %v2342_v44 = vpop.xlane.xlu0 %2341  ;;  %3935 = vmatpush.msrb.mxu0 %v554_v62 }
 0x1ad   : > { %v7277_v63 = vpop.eup %5324  ;;  %v2762_v45 = vmul.f32 1.442695, %v2596_v54  ;;  %v2776_v2 = vmul.f32 1.442695, %v2603_v8  ;;  %3879 = vmatpush.msra.mxu3 %v544_v32  ;;  %v2610_v50 = vsub.f32 %v6693_v27, %v2342_v44  ;;  %3994 = vmatpush.msrb.mxu1 %v561_v7  ;;  %v7290_v8 = vpop.f32.mrf.mxu0  ;;  %v553_v32 = vld [vmem:[%s6463_s24 + $0x240] sm:$0xff]  ;;  %v559_v54 = vld [vmem:[%s6463_s24 + $0x270] sm:$0xff] }
 0x1ae   : > { %8795 = vst [vmem:[#allocation13_spill] sm:$0xff] %v7277_v63  ;;  %v7282_v59 = vpop.eup %5326  ;;  %5141 = vmatmul.msk.f32.gmra.mxu0 %vm2177_vm2, %v7277_v63  ;;  %v3006_v7 = vsel %vm2177_vm2, %v6915_v14, 0.0  ;;  %v558_v44 = vld [vmem:[%s6463_s24 + $0x268] sm:$0xff]  ;;  %v7308_v62 = vpop.f32.mrf.mxu2  ;;  %v7314_v14 = vsel %vm2050_vm1, %v6854_v21, -1e+30  ;;  %v2946_v21 = vsel %vm2177_vm2, %v6893_v0, 0.0 }
 0x1af   : > { %8796 = vst [vmem:[#allocation14_spill] sm:$0xff] %v7282_v59  ;;  %5330 = vpow2.f32 %v2762_v45  ;;  %5148 = vmatmul.msk.f32.gmra.mxu1 %vm2177_vm2, %v7282_v59  ;;  %2365 = vmax.xlane.f32.xlu2 %v2364_v55  ;;  %v7295_v36 = vpop.eup %5328  ;;  %v2790_v27 = vmul.f32 1.442695, %v2610_v50  ;;  %v552_v55 = vld [vmem:[%s6463_s24 + $0x238] sm:$0xff]  ;;  %v8798_v59 = vld [vmem:[#allocation15_spill] sm:$0xff] }
 0x1b0   : > { %8797 = vst [vmem:[#allocation44_spill] sm:$0xff] %v7295_v36  ;;  %5332 = vpow2.f32 %v2776_v2  ;;  %2425 = vmax.xlane.f32.xlu1 %v2424_v46  ;;  %5128 = vmatmul.msk.f32.gmra.mxu2 %vm2177_vm2, %v7295_v36  ;;  %v551_v46 = vld [vmem:[%s6463_s24 + $0x230] sm:$0xff]  ;;  %v7342_v0 = vsel %vm2050_vm1, %v7129_v40, -1e+30 }
 0x1b1   : > { %3995 = vmatpush.msrb.mxu1 %v560_v3  ;;  %5334 = vpow2.f32 %v2790_v27  ;;  %3936 = vmatpush.msrb.mxu0 %v553_v32 }
 0x1b2   : > { %3007 = vadd.xlane.f32.xlu0 %v3006_v7  ;;  %v2303_v45 = vpop.xlane.xlu2 %2302  ;;  %v2282_v50 = vpop.xlane.xlu1 %2281 }
 0x1b3   : > { %v2597_v2 = vsub.f32 %v6710_v4, %v2303_v45  ;;  %3996 = vmatpush.msrb.mxu1 %v559_v54  ;;  %v2590_v63 = vsub.f32 %v8798_v59, %v2282_v50  ;;  %3937 = vmatpush.msrb.mxu0 %v552_v55  ;;  %v8801_v54 = vld [vmem:[#allocation16_spill] sm:$0xff]  ;;  %v2967_v59 = vsel %vm2177_vm2, %v6935_v38, 0.0  ;;  %v7344_v50 = vpop.f32.mrf.mxu1 }
 0x1b4   : > { %v2324_v32 = vpop.xlane.xlu0 %2323  ;;  %8804 = vst [vmem:[#allocation47_spill] sm:$0xff] %v7344_v50 }
 0x1b5   : > { %v7316_v3 = vpop.eup %5330  ;;  %v2764_v27 = vmul.f32 1.442695, %v2597_v2  ;;  %3997 = vmatpush.msrb.mxu1 %v558_v44  ;;  %v2750_v4 = vmul.f32 1.442695, %v2590_v63  ;;  %v2604_v45 = vsub.f32 %v8801_v54, %v2324_v32  ;;  %3938 = vmatpush.msrb.mxu0 %v551_v46  ;;  %v2385_v63 = vsel %vm2177_vm2, %v7314_v14, -inf  ;;  %v7333_v44 = vpop.f32.mrf.mxu3 }
 0x1b6   : > { %8799 = vst [vmem:[#allocation15_spill] sm:$0xff] %v7316_v3  ;;  %v7318_v7 = vpop.eup %5332  ;;  %5135 = vmatmul.msk.f32.gmra.mxu3 %vm2177_vm2, %v7316_v3  ;;  %v7335_v38 = vpop.f32.mrf.mxu0 }
 0x1b7   : > { %8800 = vst [vmem:[#allocation45_spill] sm:$0xff] %v7318_v7  ;;  %5336 = vpow2.f32 %v2764_v27  ;;  %5142 = vmatmul.msk.f32.gmra.mxu0 %vm2177_vm2, %v7318_v7  ;;  %2968 = vadd.xlane.f32.xlu2 %v2967_v59  ;;  %v7331_v55 = vpop.eup %5334  ;;  %v2778_v2 = vmul.f32 1.442695, %v2604_v45  ;;  %v7349_v27 = vsel %vm2050_vm1, %v7112_v53, -1e+30  ;;  %v8806_v45 = vld [vmem:[#allocation18_spill] sm:$0xff]  ;;  %v7361_v3 = vpop.f32.mrf.mxu2 }
 0x1b8   : > { %8802 = vst [vmem:[#allocation16_spill] sm:$0xff] %v7331_v55  ;;  %5338 = vpow2.f32 %v2750_v4  ;;  %2947 = vadd.xlane.f32.xlu1 %v2946_v21  ;;  %5149 = vmatmul.msk.f32.gmra.mxu1 %vm2177_vm2, %v7331_v55  ;;  %v8805_v4 = vld [vmem:[#allocation17_spill] sm:$0xff]  ;;  %v2427_v21 = vsel %vm2177_vm2, %v7342_v0, -inf }
 0x1b9   : > { %8803 = vst [vmem:[#allocation46_spill] sm:$0xff] %v7335_v38  ;;  %5340 = vpow2.f32 %v2778_v2  ;;  %v8809_v38 = vld [vmem:[#allocation19_spill] sm:$0xff] }
 0x1ba   : > { %2386 = vmax.xlane.f32.xlu0 %v2385_v63  ;;  %v2348_v46 = vpop.xlane.xlu2 %2347  ;;  %v2345_v32 = vpop.xlane.xlu1 %2344  ;;  %v2406_v63 = vsel %vm2177_vm2, %v7349_v27, -inf }
 0x1bb   : > { %v2612_v54 = vsub.f32 %v8805_v4, %v2348_v46  ;;  %v2611_v59 = vsub.f32 %v8806_v45, %v2345_v32  ;;  %v2988_v4 = vsel %vm2177_vm2, %v6945_v11, 0.0  ;;  %v8812_v45 = vld [vmem:[#allocation20_spill] sm:$0xff] }
 0x1bc   : > { %v2369_v7 = vpop.xlane.xlu0 %2368 }
 0x1bd   : > { %v7355_v40 = vpop.eup %5336  ;;  %v2794_v55 = vmul.f32 1.442695, %v2612_v54  ;;  %v2792_v53 = vmul.f32 1.442695, %v2611_v59  ;;  %v2619_v36 = vsub.f32 %v8809_v38, %v2369_v7  ;;  %v7374_v7 = vpop.f32.mrf.mxu3 }
 0x1be   : > { %8807 = vst [vmem:[#allocation17_spill] sm:$0xff] %v7355_v40  ;;  %v7359_v2 = vpop.eup %5338  ;;  %5136 = vmatmul.msk.f32.gmra.mxu3 %vm2177_vm2, %v7355_v40  ;;  %v7376_v38 = vpop.f32.mrf.mxu0 }
 0x1bf   : > { %8808 = vst [vmem:[#allocation18_spill] sm:$0xff] %v7359_v2  ;;  %5342 = vpow2.f32 %v2794_v55  ;;  %5129 = vmatmul.msk.f32.gmra.mxu2 %vm2177_vm2, %v7359_v2  ;;  %2428 = vmax.xlane.f32.xlu2 %v2427_v21  ;;  %v7368_v46 = vpop.eup %5340  ;;  %v2808_v32 = vmul.f32 1.442695, %v2619_v36  ;;  %v7379_v21 = vpop.f32.mrf.mxu1  ;;  %v8814_v36 = vld [vmem:[#allocation21_spill] sm:$0xff] }
 0x1c0   : > { %8810 = vst [vmem:[#allocation19_spill] sm:$0xff] %v7368_v46  ;;  %5344 = vpow2.f32 %v2792_v53  ;;  %2407 = vmax.xlane.f32.xlu1 %v2406_v63  ;;  %5143 = vmatmul.msk.f32.gmra.mxu0 %vm2177_vm2, %v7368_v46  ;;  %v8815_v53 = vld [vmem:[#allocation26_spill] sm:$0xff] }
 0x1c1   : > { %5346 = vpow2.f32 %v2808_v32  ;;  %8811 = vst [vmem:[#allocation48_spill] sm:$0xff] %v7376_v38  ;;  %v7385_v46 = vsel %vm2050_vm1, %v8815_v53, -1e+30  ;;  %v8818_v38 = vld [vmem:[#allocation22_spill] sm:$0xff] }
 0x1c2   : > { %2989 = vadd.xlane.f32.xlu0 %v2988_v4  ;;  %v2411_v55 = vpop.xlane.xlu2 %2410  ;;  %v2390_v54 = vpop.xlane.xlu1 %2389  ;;  %8813 = vst [vmem:[#allocation20_spill] sm:$0xff] %v7379_v21 }
 0x1c3   : > { %v2633_v59 = vsub.f32 %v8812_v45, %v2411_v55  ;;  %v2626_v63 = vsub.f32 %v8814_v36, %v2390_v54  ;;  %v3009_v55 = vsel %vm2177_vm2, %v6954_v41, 0.0  ;;  %v2949_v54 = vsel %vm2177_vm2, %v6939_v57, 0.0  ;;  %v7404_v36 = vpop.f32.mrf.mxu2 }
 0x1c4   : > { %v2430_v45 = vsel %vm2177_vm2, %v7385_v46, -inf  ;;  %v7411_v57 = vsel %vm2050_vm1, %v6909_v18, -1e+30 }
 0x1c5   : > { %v7387_v11 = vpop.eup %5342  ;;  %v2836_v40 = vmul.f32 1.442695, %v2633_v59  ;;  %v2351_v32 = vpop.xlane.xlu0 %2350  ;;  %v2822_v50 = vmul.f32 1.442695, %v2626_v63  ;;  %v2451_v18 = vsel %vm2177_vm2, %v7411_v57, -inf }
 0x1c6   : > { %8816 = vst [vmem:[#allocation21_spill] sm:$0xff] %v7387_v11  ;;  %v7389_v4 = vpop.eup %5344  ;;  %v2613_v2 = vsub.f32 %v8818_v38, %v2351_v32  ;;  %v7416_v38 = vsel %vm2050_vm1, %v7150_v58, -1e+30  ;;  %v7419_v53 = vpop.f32.mrf.mxu3  ;;  %v8821_v32 = vld [vmem:[#allocation23_spill] sm:$0xff] }
 0x1c7   : > { %8817 = vst [vmem:[#allocation26_spill] sm:$0xff] %v7389_v4  ;;  %5348 = vpow2.f32 %v2836_v40  ;;  %5150 = vmatmul.msk.f32.gmra.mxu1 %vm2177_vm2, %v7389_v4  ;;  %5151 = vmatmul.msk.f32.vlgmr.msra.gmra.mxu2 %vm2177_vm2, %v7387_v11  ;;  %v7402_v59 = vpop.eup %5346  ;;  %v2472_v58 = vsel %vm2177_vm2, %v7416_v38, -inf  ;;  %v7432_v11 = vpop.f32.mrf.mxu1 }
 0x1c8   : > { %8819 = vst [vmem:[#allocation22_spill] sm:$0xff] %v7402_v59  ;;  %5350 = vpow2.f32 %v2822_v50  ;;  %v2796_v40 = vmul.f32 1.442695, %v2613_v2  ;;  %3010 = vadd.xlane.f32.xlu1 %v3009_v55  ;;  %2950 = vadd.xlane.f32.xlu2 %v2949_v54  ;;  %v8820_v2 = vld [vmem:[#allocation24_spill] sm:$0xff] }
 0x1c9   : > { %5158 = vmatmul.msk.f32.vlgmr.msra.gmra.mxu3 %vm2177_vm2, %v7402_v59 }
 0x1ca   : > { %5352 = vpow2.f32 %v2796_v40  ;;  %2431 = vmax.xlane.f32.xlu0 %v2430_v45  ;;  %v2393_v41 = vpop.xlane.xlu2 %2392  ;;  %v2372_v50 = vpop.xlane.xlu1 %2371 }
 0x1cb   : > { %v2627_v63 = vsub.f32 %v8820_v2, %v2393_v41  ;;  %v2620_v55 = vsub.f32 %v8821_v32, %v2372_v50  ;;  %v7424_v45 = vpop.f32.mrf.mxu0  ;;  %v8824_v2 = vld [vmem:[#allocation25_spill] sm:$0xff]  ;;  %v2970_v32 = vsel %vm2177_vm2, %v6980_v60, 0.0 }
 0x1cd   : > { %v7422_v54 = vpop.eup %5348  ;;  %v2824_v40 = vmul.f32 1.442695, %v2627_v63  ;;  %v2414_v59 = vpop.xlane.xlu0 %2413  ;;  %v2810_v41 = vmul.f32 1.442695, %v2620_v55 }
 0x1ce   : > { %8822 = vst [vmem:[#allocation24_spill] sm:$0xff] %v7422_v54  ;;  %v7430_v4 = vpop.eup %5350  ;;  %v2634_v21 = vsub.f32 %v8824_v2, %v2414_v59  ;;  %v7445_v59 = vpop.f32.mrf.mxu2 }
 0x1cf   : > { %8823 = vst [vmem:[#allocation23_spill] sm:$0xff] %v7430_v4  ;;  %5354 = vpow2.f32 %v2824_v40  ;;  %5165 = vmatmul.msk.f32.vlgmr.msrb.gmra.mxu0 %vm2177_vm2, %v7430_v4  ;;  %5172 = vmatmul.msk.f32.vlgmr.msrb.gmra.mxu1 %vm2177_vm2, %v7422_v54 }
 0x1d0   : > { %v7439_v50 = vpop.eup %5352  ;;  %5356 = vpow2.f32 %v2810_v41  ;;  %v2838_v63 = vmul.f32 1.442695, %v2634_v21  ;;  %2452 = vmax.xlane.f32.xlu1 %v2451_v18  ;;  %2473 = vmax.xlane.f32.xlu2 %v2472_v58  ;;  %v7452_v21 = vsel %vm2050_vm1, %v7169_v42, -1e+30 }
 0x1d1   : > { %8825 = vst [vmem:[#allocation25_spill] sm:$0xff] %v7439_v50  ;;  %5152 = vmatmul.msk.f32.gmra.mxu2 %vm2177_vm2, %v7439_v50  ;;  %v2493_v42 = vsel %vm2177_vm2, %v7452_v21, -inf }
 0x1d2   : > { %5358 = vpow2.f32 %v2838_v63  ;;  %2971 = vadd.xlane.f32.xlu0 %v2970_v32  ;;  %v2375_v55 = vpop.xlane.xlu2 %2374  ;;  %v2354_v2 = vpop.xlane.xlu1 %2353 }
 0x1d3   : > { %v2621_v40 = vsub.f32 %v6880_v9, %v2375_v55  ;;  %v2614_v54 = vsub.f32 %v6886_v13, %v2354_v2  ;;  %v7458_v63 = vpop.f32.mrf.mxu3  ;;  %v7460_v32 = vpop.f32.mrf.mxu0  ;;  %v2991_v9 = vsel %vm2177_vm2, %v6985_v43, 0.0  ;;  %v3012_v13 = vsel %vm2177_vm2, %v6991_v48, 0.0  ;;  %v8829_v48 = vld [vmem:[#allocation27_spill] sm:$0xff] }
 0x1d4   : > { %v7474_v55 = vpop.f32.mrf.mxu1  ;;  %v7481_v43 = vsel %vm2050_vm1, %v6957_v19, -1e+30  ;;  %v7486_v2 = vsel %vm2050_vm1, %v8829_v48, -1e+30 }
 0x1d5   : > { %v7454_v18 = vpop.eup %5354  ;;  %v2812_v58 = vmul.f32 1.442695, %v2621_v40  ;;  %v2936_v41 = vpop.xlane.xlu0 %2935  ;;  %v2798_v4 = vmul.f32 1.442695, %v2614_v54 }
 0x1d6   : > { %8826 = vst [vmem:[#allocation49_spill] sm:$0xff] %v7454_v18  ;;  %v7456_v60 = vpop.eup %5356  ;;  %5360 = vrcp.f32 %v2936_v41  ;;  %v3350_v41 = vpop.f32.mrf.mxu2 }
 0x1d7   : > { %8827 = vst [vmem:[#allocation50_spill] sm:$0xff] %v7456_v60  ;;  %5362 = vpow2.f32 %v2812_v58  ;;  %5159 = vmatmul.msk.f32.gmra.mxu3 %vm2177_vm2, %v7456_v60  ;;  %5166 = vmatmul.msk.f32.gmra.mxu0 %vm2177_vm2, %v7454_v18  ;;  %v2952_v60 = vsel %vm2177_vm2, %v6989_v23, 0.0 }
 0x1d8   : > { %v7472_v54 = vpop.eup %5358  ;;  %5364 = vpow2.f32 %v2798_v4  ;;  %2992 = vadd.xlane.f32.xlu1 %v2991_v9  ;;  %3013 = vadd.xlane.f32.xlu2 %v3012_v13 }
 0x1d9   : > { %8828 = vst [vmem:[#allocation51_spill] sm:$0xff] %v7472_v54  ;;  %5173 = vmatmul.msk.f32.gmra.mxu1 %vm2177_vm2, %v7472_v54 }
 0x1da   : > { %2494 = vmax.xlane.f32.xlu0 %v2493_v42  ;;  %v2978_v40 = vpop.xlane.xlu2 %2977  ;;  %v2957_v58 = vpop.xlane.xlu1 %2956  ;;  %v2454_v42 = vsel %vm2177_vm2, %v7481_v43, -inf }
 0x1db   : > { %5366 = vrcp.f32 %v2978_v40  ;;  %v2433_v40 = vsel %vm2177_vm2, %v7486_v2, -inf  ;;  %v3468_v18 = vpop.f32.mrf.mxu0 }
 0x1dc   : > { %v5361_v4 = vpop.eup %5360  ;;  %5368 = vrcp.f32 %v2957_v58 }
 0x1dd   : > { %v7494_v9 = vpop.eup %5362  ;;  %v4500_v19 = vmul.f32 %v5361_v4, %v3350_v41  ;;  %v2396_v13 = vpop.xlane.xlu0 %2395 }
 0x1de   : > { %8830 = vst [vmem:[#allocation27_spill] sm:$0xff] %v7494_v9  ;;  %v7500_v48 = vpop.eup %5364  ;;  %v2628_v54 = vsub.f32 %v6933_v49, %v2396_v13  ;;  %v3409_v41 = vpop.f32.mrf.mxu3 }
 0x1df   : > { %8831 = vst [vmem:[#allocation52_spill] sm:$0xff] %v7500_v48  ;;  %5153 = vmatmul.msk.f32.gmra.mxu2 %vm2177_vm2, %v7500_v48  ;;  %5160 = vmatmul.msk.f32.gmra.mxu3 %vm2177_vm2, %v7494_v9  ;;  %v7511_v13 = vpop.f32.mrf.mxu1 }
 0x1e0   : > { %4626 = vst.msk [vmem:[%s7492_s27] sm:$0xff] %vm607_vm0, %v4500_v19  ;;  %v2826_v58 = vmul.f32 1.442695, %v2628_v54  ;;  %2455 = vmax.xlane.f32.xlu2 %v2454_v42  ;;  %2434 = vmax.xlane.f32.xlu1 %v2433_v40  ;;  %v7520_v40 = vsel %vm2050_vm1, %v7205_v10, -1e+30 }
 0x1e1   : > { %v5367_v4 = vpop.eup %5366 }
 0x1e2   : > { %v5369_v49 = vpop.eup %5368  ;;  %v4514_v19 = vmul.f32 %v5367_v4, %v3468_v18  ;;  %5370 = vpow2.f32 %v2826_v58  ;;  %2953 = vadd.xlane.f32.xlu0 %v2952_v60  ;;  %v2357_v48 = vpop.xlane.xlu2 %2356  ;;  %v2994_v60 = vsel %vm2177_vm2, %v7027_v47, 0.0  ;;  %v7537_v47 = vsel %vm2050_vm1, %v7221_v31, -1e+30 }
 0x1e3   : > { %v4507_v50 = vmul.f32 %v5369_v49, %v3409_v41  ;;  %v2417_v9 = vpop.xlane.xlu1 %2416  ;;  %v2615_v54 = vsub.f32 %v6968_v35, %v2357_v48  ;;  %v2973_v35 = vsel %vm2177_vm2, %v7012_v29, 0.0  ;;  %v7542_v29 = vsel %vm2050_vm1, %v6959_v26, -1e+30 }
 0x1e4   : > { %4640 = vst.msk [vmem:[%s7492_s27 + $0x70] sm:$0xff] %vm607_vm0, %v4514_v19  ;;  %v2635_v42 = vsub.f32 %v6972_v30, %v2417_v9  ;;  %v2475_v30 = vsel %vm2177_vm2, %v7520_v40, -inf  ;;  %v2436_v31 = vsel %vm2177_vm2, %v7542_v29, -inf }
 0x1e5   : > { %4633 = vst.msk [vmem:[%s7492_s27 + $0x38] sm:$0xff] %vm607_vm0, %v4507_v50  ;;  %v2800_v23 = vmul.f32 1.442695, %v2615_v54  ;;  %v2999_v18 = vpop.xlane.xlu0 %2998  ;;  %v2496_v54 = vsel %vm2177_vm2, %v7537_v47, -inf }
 0x1e6   : > { %v2840_v58 = vmul.f32 1.442695, %v2635_v42  ;;  %5372 = vrcp.f32 %v2999_v18 }
 0x1e7   : > { %5374 = vpow2.f32 %v2800_v23  ;;  %v3527_v4 = vpop.f32.mrf.mxu1 }
 0x1e8   : > { %v7530_v9 = vpop.eup %5370  ;;  %5376 = vpow2.f32 %v2840_v58  ;;  %2995 = vadd.xlane.f32.xlu2 %v2994_v60  ;;  %2974 = vadd.xlane.f32.xlu1 %v2973_v35  ;;  %v3412_v58 = vpop.f32.mrf.mxu3  ;;  %v3015_v60 = vsel %vm2177_vm2, %v7019_v52, 0.0  ;;  %v8834_v52 = vld [vmem:[#allocation28_spill] sm:$0xff] }
 0x1e9   : > { %8832 = vst [vmem:[#allocation53_spill] sm:$0xff] %v7530_v9  ;;  %5167 = vmatmul.msk.f32.gmra.mxu0 %vm2177_vm2, %v7530_v9 }
 0x1ea   : > { %2476 = vmax.xlane.f32.xlu0 %v2475_v30  ;;  %v2960_v10 = vpop.xlane.xlu2 %2959 }
 0x1eb   : > { %v2939_v50 = vpop.xlane.xlu1 %2938  ;;  %5378 = vrcp.f32 %v2960_v10 }
 0x1ec   : > { %v5373_v48 = vpop.eup %5372  ;;  %5380 = vrcp.f32 %v2939_v50  ;;  %v7564_v50 = vsel %vm2050_vm1, %v7284_v20, -1e+30 }
 0x1ed   : > { %v7544_v41 = vpop.eup %5374  ;;  %v4521_v49 = vmul.f32 %v5373_v48, %v3527_v4  ;;  %v2378_v19 = vpop.xlane.xlu0 %2377  ;;  %v2499_v20 = vsel %vm2177_vm2, %v7564_v50, -inf }
 0x1ee   : > { %v7550_v42 = vpop.eup %5376  ;;  %v2622_v26 = vsub.f32 %v7010_v33, %v2378_v19  ;;  %5154 = vmatmul.msk.f32.gmra.mxu2 %vm2177_vm2, %v7544_v41  ;;  %v3353_v33 = vpop.f32.mrf.mxu2 }
 0x1ef   : > { %8833 = vst [vmem:[#allocation54_spill] sm:$0xff] %v7550_v42  ;;  %5174 = vmatmul.msk.f32.gmra.mxu1 %vm2177_vm2, %v7550_v42  ;;  %v568_v42 = vld [vmem:[%s6463_s24 + $0x2b8] sm:$0xff] }
 0x1f0   : > { %4647 = vst.msk [vmem:[%s7492_s27 + $0xa8] sm:$0xff] %vm607_vm0, %v4521_v49  ;;  %v2814_v23 = vmul.f32 1.442695, %v2622_v26  ;;  %2497 = vmax.xlane.f32.xlu1 %v2496_v54  ;;  %2437 = vmax.xlane.f32.xlu2 %v2436_v31  ;;  %v7573_v54 = vsel %vm2050_vm1, %v8834_v52, -1e+30 }
 0x1f1   : > { %v5379_v18 = vpop.eup %5378 }
 0x1f2   : > { %v5381_v35 = vpop.eup %5380  ;;  %v4508_v30 = vmul.f32 %v5379_v18, %v3412_v58  ;;  %5382 = vpow2.f32 %v2814_v23  ;;  %3016 = vadd.xlane.f32.xlu0 %v3015_v60  ;;  %v2420_v10 = vpop.xlane.xlu2 %2419  ;;  %v7590_v60 = vsel %vm2050_vm1, %v7257_v15, -1e+30 }
 0x1f3   : > { %v4501_v48 = vmul.f32 %v5381_v35, %v3353_v33  ;;  %v2399_v4 = vpop.xlane.xlu1 %2398  ;;  %v2636_v49 = vsub.f32 %v7035_v16, %v2420_v10  ;;  %v3018_v16 = vsel %vm2177_vm2, %v7056_v1, 0.0  ;;  %v3471_v33 = vpop.f32.mrf.mxu0 }
 0x1f4   : > { %4634 = vst.msk [vmem:[%s7492_s27 + $0x40] sm:$0xff] %vm607_vm0, %v4508_v30  ;;  %v2629_v19 = vsub.f32 %v7039_v28, %v2399_v4  ;;  %v2457_v28 = vsel %vm2177_vm2, %v7573_v54, -inf  ;;  %v8835_v30 = vld [vmem:[#allocation29_spill] sm:$0xff] }
 0x1f5   : > { %4627 = vst.msk [vmem:[%s7492_s27 + $0x8] sm:$0xff] %vm607_vm0, %v4501_v48  ;;  %v2842_v31 = vmul.f32 1.442695, %v2636_v49  ;;  %v2981_v26 = vpop.xlane.xlu0 %2980  ;;  %v7595_v10 = vsel %vm2050_vm1, %v8835_v30, -1e+30 }
 0x1f6   : > { %v2828_v23 = vmul.f32 1.442695, %v2629_v19  ;;  %5384 = vrcp.f32 %v2981_v26  ;;  %v2478_v19 = vsel %vm2177_vm2, %v7590_v60, -inf  ;;  %v2439_v26 = vsel %vm2177_vm2, %v7595_v10, -inf }
 0x1f7   : > { %5386 = vpow2.f32 %v2842_v31  ;;  %v3021_v31 = vsel %vm2177_vm2, %v7082_v6, 0.0  ;;  %v7617_v6 = vsel %vm2050_vm1, %v7049_v24, -1e+30 }
 0x1f8   : > { %v7583_v18 = vpop.eup %5382  ;;  %5388 = vpow2.f32 %v2828_v23  ;;  %3019 = vadd.xlane.f32.xlu1 %v3018_v16  ;;  %2500 = vmax.xlane.f32.xlu2 %v2499_v20 }
 0x1f9   : > { %5161 = vmatmul.msk.f32.gmra.mxu3 %vm2177_vm2, %v7583_v18 }
 0x1fa   : > { %2458 = vmax.xlane.f32.xlu0 %v2457_v28  ;;  %v2942_v58 = vpop.xlane.xlu2 %2941  ;;  %v3530_v28 = vpop.f32.mrf.mxu1 }
 0x1fb   : > { %v3002_v1 = vpop.xlane.xlu1 %3001  ;;  %5390 = vrcp.f32 %v2942_v58 }
 0x1fc   : > { %v5385_v35 = vpop.eup %5384  ;;  %5392 = vrcp.f32 %v3002_v1 }
 0x1fd   : > { %v7597_v48 = vpop.eup %5386  ;;  %v4515_v4 = vmul.f32 %v5385_v35, %v3471_v33  ;;  %v2360_v49 = vpop.xlane.xlu0 %2359  ;;  %v7622_v35 = vsel %vm2050_vm1, %v7308_v62, -1e+30  ;;  %v2460_v62 = vsel %vm2177_vm2, %v7617_v6, -inf }
 0x1fe   : > { %8836 = vst [vmem:[#allocation28_spill] sm:$0xff] %v7597_v48  ;;  %v7601_v52 = vpop.eup %5388  ;;  %v2616_v15 = vsub.f32 %v7075_v34, %v2360_v49  ;;  %5175 = vmatmul.msk.f32.gmra.mxu1 %vm2177_vm2, %v7597_v48  ;;  %v3356_v34 = vpop.f32.mrf.mxu2  ;;  %v578_v48 = vld [vmem:[%s6463_s24 + $0x308] sm:$0xff] }
 0x1ff   : > { %8837 = vst [vmem:[#allocation29_spill] sm:$0xff] %v7601_v52  ;;  %5168 = vmatmul.msk.f32.gmra.mxu0 %vm2177_vm2, %v7601_v52  ;;  %4109 = vmatpush.msrb.mxu3 %v578_v48  ;;  %v8847_v48 = vld [vmem:[#allocation42_spill] sm:$0xff] }
 0x200   : > { %4641 = vst.msk [vmem:[%s7492_s27 + $0x78] sm:$0xff] %vm607_vm0, %v4515_v4  ;;  %v2802_v20 = vmul.f32 1.442695, %v2616_v15  ;;  %2479 = vmax.xlane.f32.xlu1 %v2478_v19  ;;  %3022 = vadd.xlane.f32.xlu2 %v3021_v31  ;;  %v7631_v19 = vsel %vm2050_vm1, %v7333_v44, -1e+30  ;;  %v2481_v31 = vsel %vm2177_vm2, %v7622_v35, -inf }
 0x201   : > { %v5391_v23 = vpop.eup %5390 }
 0x202   : > { %v5393_v16 = vpop.eup %5392  ;;  %v4502_v58 = vmul.f32 %v5391_v23, %v3356_v34  ;;  %5394 = vpow2.f32 %v2802_v20  ;;  %2440 = vmax.xlane.f32.xlu0 %v2439_v26  ;;  %v2402_v1 = vpop.xlane.xlu2 %2401  ;;  %v7648_v20 = vsel %vm2050_vm1, %v7090_v37, -1e+30  ;;  %v8838_v23 = vld [vmem:[#allocation31_spill] sm:$0xff] }
 0x203   : > { %v4522_v33 = vmul.f32 %v5393_v16, %v3530_v28  ;;  %v2381_v30 = vpop.xlane.xlu1 %2380  ;;  %v2630_v4 = vsub.f32 %v7105_v39, %v2402_v1  ;;  %v7653_v34 = vsel %vm2050_vm1, %v8838_v23, -1e+30 }
 0x204   : > { %4628 = vst.msk [vmem:[%s7492_s27 + $0x10] sm:$0xff] %vm607_vm0, %v4502_v58  ;;  %v2623_v49 = vsub.f32 %v7110_v17, %v2381_v30  ;;  %v2502_v17 = vsel %vm2177_vm2, %v7631_v19, -inf  ;;  %v3415_v58 = vpop.f32.mrf.mxu3  ;;  %v2442_v37 = vsel %vm2177_vm2, %v7653_v34, -inf }
 0x205   : > { %4648 = vst.msk [vmem:[%s7492_s27 + $0xb0] sm:$0xff] %vm607_vm0, %v4522_v33  ;;  %v2830_v24 = vmul.f32 1.442695, %v2630_v4  ;;  %v2963_v15 = vpop.xlane.xlu0 %2962  ;;  %v2463_v4 = vsel %vm2177_vm2, %v7648_v20, -inf }
 0x206   : > { %v2816_v39 = vmul.f32 1.442695, %v2623_v49  ;;  %5396 = vrcp.f32 %v2963_v15 }
 0x207   : > { %5398 = vpow2.f32 %v2830_v24  ;;  %v8840_v24 = vld [vmem:[#allocation4_spill] sm:$0xff] }
 0x208   : > { %v7641_v26 = vpop.eup %5394  ;;  %5400 = vpow2.f32 %v2816_v39  ;;  %2461 = vmax.xlane.f32.xlu1 %v2460_v62  ;;  %2482 = vmax.xlane.f32.xlu2 %v2481_v31  ;;  %v3533_v39 = vpop.f32.mrf.mxu1 }
 0x209   : > { %5155 = vmatmul.msk.f32.gmra.mxu2 %vm2177_vm2, %v7641_v26 }
 0x20a   : > { %2503 = vmax.xlane.f32.xlu0 %v2502_v17  ;;  %v3005_v44 = vpop.xlane.xlu2 %3004  ;;  %v8841_v17 = vld [vmem:[#allocation36_spill] sm:$0xff] }
 0x20b   : > { %v2984_v16 = vpop.xlane.xlu1 %2983  ;;  %5402 = vrcp.f32 %v3005_v44  ;;  %v3024_v44 = vsel %vm2177_vm2, %v8841_v17, 0.0 }
 0x20c   : > { %v5397_v28 = vpop.eup %5396  ;;  %5404 = vrcp.f32 %v2984_v16  ;;  %v3474_v16 = vpop.f32.mrf.mxu0 }
 0x20d   : > { %v7655_v1 = vpop.eup %5398  ;;  %v4509_v33 = vmul.f32 %v5397_v28, %v3415_v58  ;;  %v2423_v30 = vpop.xlane.xlu0 %2422 }
 0x20e   : > { %8839 = vst [vmem:[#allocation31_spill] sm:$0xff] %v7655_v1  ;;  %v7661_v49 = vpop.eup %5400  ;;  %v2637_v15 = vsub.f32 %v8840_v24, %v2423_v30  ;;  %5169 = vmatmul.msk.f32.gmra.mxu0 %vm2177_vm2, %v7655_v1  ;;  %v8842_v30 = vld [vmem:[#allocation35_spill] sm:$0xff] }
 0x20f   : > { %4635 = vst.msk [vmem:[%s7492_s27 + $0x48] sm:$0xff] %vm607_vm0, %v4509_v33  ;;  %5162 = vmatmul.msk.f32.gmra.mxu3 %vm2177_vm2, %v7661_v49  ;;  %v7675_v33 = vsel %vm2050_vm1, %v7374_v7, -1e+30  ;;  %v8851_v1 = vld [vmem:[#allocation43_spill] sm:$0xff] }
 0x210   : > { %v2844_v62 = vmul.f32 1.442695, %v2637_v15  ;;  %2464 = vmax.xlane.f32.xlu2 %v2463_v4  ;;  %2443 = vmax.xlane.f32.xlu1 %v2442_v37  ;;  %v7680_v4 = vsel %vm2050_vm1, %v8842_v30, -1e+30  ;;  %v2505_v17 = vsel %vm2177_vm2, %v7675_v33, -inf  ;;  %v3359_v30 = vpop.f32.mrf.mxu2 }
 0x211   : > { %v5403_v31 = vpop.eup %5402 }
 0x212   : > { %v5405_v23 = vpop.eup %5404  ;;  %v4523_v28 = vmul.f32 %v5403_v31, %v3533_v39  ;;  %5406 = vpow2.f32 %v2844_v62  ;;  %3025 = vadd.xlane.f32.xlu0 %v3024_v44  ;;  %v2384_v58 = vpop.xlane.xlu2 %2383  ;;  %v7689_v31 = vsel %vm2050_vm1, %v7361_v3, -1e+30 }
 0x213   : > { %v4516_v37 = vmul.f32 %v5405_v23, %v3474_v16  ;;  %v2624_v24 = vsub.f32 %v7174_v56, %v2384_v58  ;;  %v2363_v15 = vpop.xlane.xlu1 %2362  ;;  %v2445_v56 = vsel %vm2177_vm2, %v7680_v4, -inf  ;;  %v7706_v16 = vsel %vm2050_vm1, %v7419_v53, -1e+30 }
 0x214   : > { %4649 = vst.msk [vmem:[%s7492_s27 + $0xb8] sm:$0xff] %vm607_vm0, %v4523_v28  ;;  %v2617_v62 = vsub.f32 %v7179_v51, %v2363_v15  ;;  %v2484_v51 = vsel %vm2177_vm2, %v7689_v31, -inf  ;;  %v571_v15 = vld [vmem:[%s6463_s24 + $0x2d0] sm:$0xff]  ;;  %v2508_v53 = vsel %vm2177_vm2, %v7706_v16, -inf }
 0x215   : > { %4642 = vst.msk [vmem:[%s7492_s27 + $0x80] sm:$0xff] %vm607_vm0, %v4516_v37  ;;  %v2818_v7 = vmul.f32 1.442695, %v2624_v24  ;;  %v2945_v39 = vpop.xlane.xlu0 %2944  ;;  %v8844_v37 = vld [vmem:[#allocation37_spill] sm:$0xff]  ;;  %4050 = vmatpush.msrb.mxu2 %v571_v15  ;;  %v7736_v15 = vsel %vm2050_vm1, %v7404_v36, -1e+30 }
 0x216   : > { %v2804_v44 = vmul.f32 1.442695, %v2617_v62  ;;  %5408 = vrcp.f32 %v2945_v39  ;;  %v7711_v24 = vsel %vm2050_vm1, %v8844_v37, -1e+30  ;;  %v3477_v37 = vpop.f32.mrf.mxu0  ;;  %v585_v36 = vld [vmem:[%s6463_s24 + $0x340] sm:$0xff] }
 0x217   : > { %5410 = vpow2.f32 %v2818_v7  ;;  %4168 = vmatpush.msra.mxu0 %v585_v36  ;;  %v565_v36 = vld [vmem:[%s6463_s24 + $0x2a0] sm:$0xff] }
 0x218   : > { %v7699_v23 = vpop.eup %5406  ;;  %5412 = vpow2.f32 %v2804_v44  ;;  %2506 = vmax.xlane.f32.xlu1 %v2505_v17  ;;  %2446 = vmax.xlane.f32.xlu2 %v2445_v56  ;;  %v570_v44 = vld [vmem:[%s6463_s24 + $0x2c8] sm:$0xff]  ;;  %v3362_v52 = vpop.f32.mrf.mxu2 }
 0x219   : > { %8843 = vst [vmem:[#allocation4_spill] sm:$0xff] %v7699_v23  ;;  %5176 = vmatmul.msk.f32.gmra.mxu1 %vm2177_vm2, %v7699_v23  ;;  %4051 = vmatpush.msrb.mxu2 %v570_v44 }
 0x21a   : > { %2485 = vmax.xlane.f32.xlu0 %v2484_v51  ;;  %v2987_v3 = vpop.xlane.xlu2 %2986  ;;  %v8845_v51 = vld [vmem:[#allocation9_spill] sm:$0xff] }
 0x21b   : > { %5414 = vrcp.f32 %v2987_v3  ;;  %v2966_v28 = vpop.xlane.xlu1 %2965  ;;  %v3027_v3 = vsel %vm2177_vm2, %v8845_v51, 0.0 }
 0x21c   : > { %v5409_v58 = vpop.eup %5408  ;;  %5416 = vrcp.f32 %v2966_v28  ;;  %v2466_v28 = vsel %vm2177_vm2, %v7711_v24, -inf }
 0x21d   : > { %v7714_v62 = vpop.eup %5410  ;;  %v4503_v7 = vmul.f32 %v5409_v58, %v3359_v30  ;;  %v2405_v39 = vpop.xlane.xlu0 %2404 }
 0x21e   : > { %v7718_v17 = vpop.eup %5412  ;;  %v2631_v56 = vsub.f32 %v7226_v5, %v2405_v39  ;;  %5163 = vmatmul.msk.f32.gmra.mxu3 %vm2177_vm2, %v7714_v62  ;;  %v569_v5 = vld [vmem:[%s6463_s24 + $0x2c0] sm:$0xff]  ;;  %v3418_v39 = vpop.f32.mrf.mxu3 }
 0x21f   : > { %4629 = vst.msk [vmem:[%s7492_s27 + $0x18] sm:$0xff] %vm607_vm0, %v4503_v7  ;;  %5156 = vmatmul.msk.f32.gmra.mxu2 %vm2177_vm2, %v7718_v17 }
 0x220   : > { %v2832_v58 = vmul.f32 1.442695, %v2631_v56  ;;  %3028 = vadd.xlane.f32.xlu1 %v3027_v3  ;;  %2509 = vmax.xlane.f32.xlu2 %v2508_v53 }
 0x221   : > { %v5415_v30 = vpop.eup %5414  ;;  %4052 = vmatpush.msrb.mxu2 %v569_v5 }
 0x222   : > { %v5417_v7 = vpop.eup %5416  ;;  %v4517_v51 = vmul.f32 %v5415_v30, %v3477_v37  ;;  %5418 = vpow2.f32 %v2832_v58  ;;  %2467 = vmax.xlane.f32.xlu0 %v2466_v28  ;;  %v2366_v53 = vpop.xlane.xlu2 %2365  ;;  %v2487_v58 = vsel %vm2177_vm2, %v7736_v15, -inf  ;;  %v8846_v28 = vld [vmem:[#allocation38_spill] sm:$0xff]  ;;  %v567_v37 = vld [vmem:[%s6463_s24 + $0x2b0] sm:$0xff] }
 0x223   : > { %v4510_v56 = vmul.f32 %v5417_v7, %v3418_v39  ;;  %v2426_v3 = vpop.xlane.xlu1 %2425  ;;  %v2618_v23 = vsub.f32 %v7262_v61, %v2366_v53  ;;  %v7750_v30 = vsel %vm2050_vm1, %v8846_v28, -1e+30  ;;  %4053 = vmatpush.msrb.mxu2 %v568_v42  ;;  %v577_v7 = vld [vmem:[%s6463_s24 + $0x300] sm:$0xff]  ;;  %v576_v42 = vld [vmem:[%s6463_s24 + $0x2f8] sm:$0xff] }
 0x224   : > { %4643 = vst.msk [vmem:[%s7492_s27 + $0x88] sm:$0xff] %vm607_vm0, %v4517_v51  ;;  %v2638_v44 = vsub.f32 %v7269_v12, %v2426_v3  ;;  %v584_v12 = vld [vmem:[%s6463_s24 + $0x338] sm:$0xff]  ;;  %4110 = vmatpush.msrb.mxu3 %v577_v7  ;;  %v3030_v51 = vsel %vm2177_vm2, %v8847_v48, 0.0  ;;  %v2448_v53 = vsel %vm2177_vm2, %v7750_v30, -inf  ;;  %v583_v3 = vld [vmem:[%s6463_s24 + $0x330] sm:$0xff]  ;;  %v3536_v48 = vpop.f32.mrf.mxu1 }
 0x225   : > { %4636 = vst.msk [vmem:[%s7492_s27 + $0x50] sm:$0xff] %vm607_vm0, %v4510_v56  ;;  %v2806_v61 = vmul.f32 1.442695, %v2618_v23  ;;  %v3008_v5 = vpop.xlane.xlu0 %3007  ;;  %4169 = vmatpush.msra.mxu0 %v584_v12  ;;  %4054 = vmatpush.msrb.mxu2 %v567_v37  ;;  %v566_v23 = vld [vmem:[%s6463_s24 + $0x2a8] sm:$0xff] }
 0x226   : > { %v2846_v39 = vmul.f32 1.442695, %v2638_v44  ;;  %5420 = vrcp.f32 %v3008_v5  ;;  %v575_v44 = vld [vmem:[%s6463_s24 + $0x2f0] sm:$0xff]  ;;  %4111 = vmatpush.msrb.mxu3 %v576_v42  ;;  %v582_v37 = vld [vmem:[%s6463_s24 + $0x328] sm:$0xff] }
 0x227   : > { %5422 = vpow2.f32 %v2806_v61  ;;  %4055 = vmatpush.msrb.mxu2 %v566_v23  ;;  %v8849_v61 = vld [vmem:[#allocation7_spill] sm:$0xff]  ;;  %4170 = vmatpush.msra.mxu0 %v583_v3 }
 0x228   : > { %v7763_v56 = vpop.eup %5418  ;;  %5424 = vpow2.f32 %v2846_v39  ;;  %2488 = vmax.xlane.f32.xlu1 %v2487_v58  ;;  %3031 = vadd.xlane.f32.xlu2 %v3030_v51  ;;  %v7773_v5 = vsel %vm2050_vm1, %v8849_v61, -1e+30  ;;  %v7778_v58 = vsel %vm2050_vm1, %v7445_v59, -1e+30  ;;  %v574_v12 = vld [vmem:[%s6463_s24 + $0x2e8] sm:$0xff]  ;;  %v581_v59 = vld [vmem:[%s6463_s24 + $0x320] sm:$0xff] }
 0x229   : > { %8848 = vst [vmem:[#allocation36_spill] sm:$0xff] %v7763_v56  ;;  %5170 = vmatmul.msk.f32.gmra.mxu0 %vm2177_vm2, %v7763_v56  ;;  %4056 = vmatpush.msrb.mxu2 %v565_v36  ;;  %v7785_v51 = vsel %vm2050_vm1, %v7458_v63, -1e+30  ;;  %v2469_v3 = vsel %vm2177_vm2, %v7773_v5, -inf  ;;  %v2490_v36 = vsel %vm2177_vm2, %v7778_v58, -inf  ;;  %v580_v61 = vld [vmem:[%s6463_s24 + $0x318] sm:$0xff] }
 0x22a   : > { %2449 = vmax.xlane.f32.xlu0 %v2448_v53  ;;  %v2969_v28 = vpop.xlane.xlu2 %2968  ;;  %4112 = vmatpush.msrb.mxu3 %v575_v44  ;;  %v573_v44 = vld [vmem:[%s6463_s24 + $0x2e0] sm:$0xff]  ;;  %v591_v56 = vld [vmem:[%s6463_s24 + $0x370] sm:$0xff] }
 0x22b   : > { %v2948_v7 = vpop.xlane.xlu1 %2947  ;;  %5426 = vrcp.f32 %v2969_v28  ;;  %4171 = vmatpush.msra.mxu0 %v582_v37  ;;  %v2511_v37 = vsel %vm2177_vm2, %v7785_v51, -inf }
 0x22c   : > { %v5421_v39 = vpop.eup %5420  ;;  %5428 = vrcp.f32 %v2948_v7  ;;  %4113 = vmatpush.msrb.mxu3 %v574_v12  ;;  %v592_v7 = vld [vmem:[%s6463_s24 + $0x378] sm:$0xff]  ;;  %v3421_v12 = vpop.f32.mrf.mxu3 }
 0x22d   : > { %v7788_v53 = vpop.eup %5422  ;;  %v4524_v23 = vmul.f32 %v5421_v39, %v3536_v48  ;;  %v2387_v42 = vpop.xlane.xlu0 %2386  ;;  %4172 = vmatpush.msra.mxu0 %v581_v59  ;;  %v579_v48 = vld [vmem:[%s6463_s24 + $0x310] sm:$0xff]  ;;  %4227 = vmatpush.msra.mxu1 %v592_v7 }
 0x22e   : > { %v7794_v28 = vpop.eup %5424  ;;  %v2625_v63 = vsub.f32 %v7314_v14, %v2387_v42  ;;  %5157 = vmatmul.msk.f32.gmra.mxu2 %vm2177_vm2, %v7788_v53  ;;  %v572_v14 = vld [vmem:[%s6463_s24 + $0x2d8] sm:$0xff]  ;;  %4114 = vmatpush.msrb.mxu3 %v573_v44 }
 0x22f   : > { %8850 = vst [vmem:[#allocation35_spill] sm:$0xff] %v7794_v28  ;;  %5177 = vmatmul.msk.f32.gmra.mxu1 %vm2177_vm2, %v7794_v28  ;;  %4173 = vmatpush.msra.mxu0 %v580_v61 }
 0x230   : > { %4650 = vst.msk [vmem:[%s7492_s27 + $0xc0] sm:$0xff] %vm607_vm0, %v4524_v23  ;;  %v2820_v39 = vmul.f32 1.442695, %v2625_v63  ;;  %2470 = vmax.xlane.f32.xlu1 %v2469_v3  ;;  %2491 = vmax.xlane.f32.xlu2 %v2490_v36  ;;  %v7814_v3 = vsel %vm2050_vm1, %v8851_v1, -1e+30  ;;  %v8852_v36 = vld [vmem:[#allocation40_spill] sm:$0xff] }
 0x231   : > { %v5427_v42 = vpop.eup %5426  ;;  %v7819_v63 = vsel %vm2050_vm1, %v8852_v36, -1e+30  ;;  %4115 = vmatpush.msrb.mxu3 %v572_v14  ;;  %4174 = vmatpush.msra.mxu0 %v579_v48 }
 0x232   : > { %v5429_v23 = vpop.eup %5428  ;;  %v4511_v28 = vmul.f32 %v5427_v42, %v3421_v12  ;;  %5430 = vpow2.f32 %v2820_v39  ;;  %2512 = vmax.xlane.f32.xlu0 %v2511_v37  ;;  %v2429_v59 = vpop.xlane.xlu2 %2428  ;;  %v590_v37 = vld [vmem:[%s6463_s24 + $0x368] sm:$0xff]  ;;  %v7826_v39 = vsel %vm2050_vm1, %v7297_v22, -1e+30  ;;  %4228 = vmatpush.msra.mxu1 %v591_v56  ;;  %v2514_v14 = vsel %vm2177_vm2, %v7819_v63, -inf  ;;  %v589_v22 = vld [vmem:[%s6463_s24 + $0x360] sm:$0xff]  ;;  %v587_v12 = vld [vmem:[%s6463_s24 + $0x350] sm:$0xff] }
 0x233   : > { %v4504_v44 = vmul.f32 %v5429_v23, %v3362_v52  ;;  %v2408_v61 = vpop.xlane.xlu1 %2407  ;;  %v2639_v9 = vsub.f32 %v7342_v0, %v2429_v59  ;;  %v2535_v0 = vsel %vm2177_vm2, %v7814_v3, -inf }
 0x234   : > { %4637 = vst.msk [vmem:[%s7492_s27 + $0x58] sm:$0xff] %vm607_vm0, %v4511_v28  ;;  %v2632_v1 = vsub.f32 %v7349_v27, %v2408_v61  ;;  %4229 = vmatpush.msra.mxu1 %v590_v37  ;;  %v2538_v27 = vsel %vm2177_vm2, %v7826_v39, -inf  ;;  %v8853_v28 = vld [vmem:[#allocation11_spill] sm:$0xff]  ;;  %v3480_v61 = vpop.f32.mrf.mxu0 }
 0x235   : > { %4630 = vst.msk [vmem:[%s7492_s27 + $0x20] sm:$0xff] %vm607_vm0, %v4504_v44  ;;  %v2848_v52 = vmul.f32 1.442695, %v2639_v9  ;;  %v2990_v7 = vpop.xlane.xlu0 %2989  ;;  %v588_v9 = vld [vmem:[%s6463_s24 + $0x358] sm:$0xff]  ;;  %v7848_v42 = vsel %vm2050_vm1, %v8853_v28, -1e+30 }
 0x236   : > { %v2834_v48 = vmul.f32 1.442695, %v2632_v1  ;;  %5432 = vrcp.f32 %v2990_v7  ;;  %4230 = vmatpush.msra.mxu1 %v589_v22  ;;  %v7854_v44 = vsel %vm2050_vm1, %v7290_v8, -1e+30  ;;  %v586_v37 = vld [vmem:[%s6463_s24 + $0x348] sm:$0xff]  ;;  %v8854_v8 = vld [vmem:[#allocation18_spill] sm:$0xff] }
 0x237   : > { %5434 = vpow2.f32 %v2848_v52  ;;  %v3036_v22 = vsel %vm2177_vm2, %v8854_v8, 0.0  ;;  %v8855_v28 = vld [vmem:[#allocation47_spill] sm:$0xff] }
 0x238   : > { %v7840_v56 = vpop.eup %5430  ;;  %5436 = vpow2.f32 %v2834_v48  ;;  %2536 = vmax.xlane.f32.xlu2 %v2535_v0  ;;  %2515 = vmax.xlane.f32.xlu1 %v2514_v14  ;;  %v2517_v0 = vsel %vm2177_vm2, %v7848_v42, -inf }
 0x239   : > { %5164 = vmatmul.msk.f32.gmra.mxu3 %vm2177_vm2, %v7840_v56  ;;  %4231 = vmatpush.msra.mxu1 %v588_v9 }
 0x23a   : > { %2539 = vmax.xlane.f32.xlu0 %v2538_v27  ;;  %v2520_v27 = vsel %vm2177_vm2, %v7854_v44, -inf }
 0x23b   : > { %v3011_v23 = vpop.xlane.xlu1 %3010  ;;  %v2951_v59 = vpop.xlane.xlu2 %2950  ;;  %4232 = vmatpush.msra.mxu1 %v587_v12  ;;  %v7877_v12 = vsel %vm2050_vm1, %v8855_v28, -1e+30 }
 0x23c   : > { %v5433_v36 = vpop.eup %5432  ;;  %5438 = vrcp.f32 %v3011_v23  ;;  %v3539_v23 = vpop.f32.mrf.mxu1 }
 0x23d   : > { %v7857_v1 = vpop.eup %5434  ;;  %v4518_v52 = vmul.f32 %v5433_v36, %v3480_v61  ;;  %5440 = vrcp.f32 %v2951_v59  ;;  %v2432_v7 = vpop.xlane.xlu0 %2431  ;;  %4233 = vmatpush.msra.mxu1 %v586_v37 }
 0x23e   : > { %v7861_v14 = vpop.eup %5436  ;;  %v2640_v48 = vsub.f32 %v7385_v46, %v2432_v7  ;;  %5178 = vmatmul.msk.f32.gmra.mxu1 %vm2177_vm2, %v7857_v1  ;;  %v3365_v59 = vpop.f32.mrf.mxu2 }
 0x23f   : > { %4644 = vst.msk [vmem:[%s7492_s27 + $0x90] sm:$0xff] %vm607_vm0, %v4518_v52  ;;  %5171 = vmatmul.msk.f32.gmra.mxu0 %vm2177_vm2, %v7861_v14 }
 0x240   : > { %v2850_v9 = vmul.f32 1.442695, %v2640_v48  ;;  %3037 = vadd.xlane.f32.xlu1 %v3036_v22  ;;  %2518 = vmax.xlane.f32.xlu2 %v2517_v0  ;;  %v2541_v22 = vsel %vm2177_vm2, %v7877_v12, -inf }
 0x242   : > { %v5439_v46 = vpop.eup %5438  ;;  %5442 = vpow2.f32 %v2850_v9  ;;  %2521 = vmax.xlane.f32.xlu0 %v2520_v27  ;;  %v8856_v27 = vld [vmem:[#allocation30_spill] sm:$0xff] }
 0x243   : > { %v5441_v36 = vpop.eup %5440  ;;  %v4525_v61 = vmul.f32 %v5439_v46, %v3539_v23  ;;  %v2453_v52 = vpop.xlane.xlu1 %2452  ;;  %v3039_v46 = vsel %vm2177_vm2, %v8856_v27, 0.0 }
 0x244   : > { %v2474_v7 = vpop.xlane.xlu2 %2473  ;;  %v4505_v37 = vmul.f32 %v5441_v36, %v3365_v59  ;;  %v2647_v48 = vsub.f32 %v7411_v57, %v2453_v52  ;;  %v8857_v57 = vld [vmem:[#allocation44_spill] sm:$0xff] }
 0x245   : > { %v2654_v0 = vsub.f32 %v7416_v38, %v2474_v7  ;;  %4651 = vst.msk [vmem:[%s7492_s27 + $0xc8] sm:$0xff] %vm607_vm0, %v4525_v61  ;;  %v2972_v8 = vpop.xlane.xlu0 %2971  ;;  %v3033_v38 = vsel %vm2177_vm2, %v8857_v57, 0.0  ;;  %v8858_v59 = vld [vmem:[#allocation20_spill] sm:$0xff]  ;;  %v8859_v61 = vld [vmem:[#allocation46_spill] sm:$0xff] }
 0x246   : > { %4631 = vst.msk [vmem:[%s7492_s27 + $0x28] sm:$0xff] %vm607_vm0, %v4505_v37  ;;  %v2864_v28 = vmul.f32 1.442695, %v2647_v48  ;;  %5444 = vrcp.f32 %v2972_v8  ;;  %v7898_v36 = vsel %vm2050_vm1, %v8858_v59, -1e+30  ;;  %v3424_v8 = vpop.f32.mrf.mxu3 }
 0x247   : > { %v2878_v9 = vmul.f32 1.442695, %v2654_v0  ;;  %v7903_v52 = vsel %vm2050_vm1, %v8859_v61, -1e+30  ;;  %v7908_v0 = vsel %vm2050_vm1, %v7432_v11, -1e+30 }
 0x248   : > { %v7889_v23 = vpop.eup %5442  ;;  %5446 = vpow2.f32 %v2864_v28  ;;  %2542 = vmax.xlane.f32.xlu1 %v2541_v22  ;;  %3040 = vadd.xlane.f32.xlu2 %v3039_v46  ;;  %v2523_v57 = vsel %vm2177_vm2, %v7903_v52, -inf  ;;  %v2547_v11 = vsel %vm2177_vm2, %v7908_v0, -inf  ;;  %v8862_v61 = vld [vmem:[#allocation48_spill] sm:$0xff] }
 0x249   : > { %5448 = vpow2.f32 %v2878_v9  ;;  %5179 = vmatmul.msk.f32.vlgmr.msrb.gmra.mxu2 %vm2177_vm2, %v7889_v23  ;;  %v2544_v9 = vsel %vm2177_vm2, %v7898_v36, -inf }
 0x24a   : > { %3034 = vadd.xlane.f32.xlu0 %v3033_v38 }
 0x24b   : > { %v2993_v7 = vpop.xlane.xlu1 %2992 }
 0x24c   : > { %v3014_v37 = vpop.xlane.xlu2 %3013  ;;  %v5445_v48 = vpop.eup %5444  ;;  %5450 = vrcp.f32 %v2993_v7  ;;  %v7930_v7 = vsel %vm2050_vm1, %v8862_v61, -1e+30 }
 0x24d   : > { %v4512_v22 = vmul.f32 %v5445_v48, %v3424_v8  ;;  %5452 = vrcp.f32 %v3014_v37  ;;  %v2495_v28 = vpop.xlane.xlu0 %2494  ;;  %v3483_v37 = vpop.f32.mrf.mxu0 }
 0x24e   : > { %v7912_v27 = vpop.eup %5446  ;;  %v2661_v46 = vsub.f32 %v7452_v21, %v2495_v28  ;;  %v3542_v48 = vpop.f32.mrf.mxu1 }
 0x24f   : > { %8860 = vst [vmem:[#allocation37_spill] sm:$0xff] %v7912_v27  ;;  %v7917_v38 = vpop.eup %5448  ;;  %5186 = vmatmul.msk.f32.vlgmr.msrb.gmra.mxu3 %vm2177_vm2, %v7912_v27 }
 0x250   : > { %8861 = vst [vmem:[#allocation9_spill] sm:$0xff] %v7917_v38  ;;  %v2892_v59 = vmul.f32 1.442695, %v2661_v46  ;;  %5193 = vmatmul.msk.f32.vlgmr.msra.gmra.mxu0 %vm2177_vm2, %v7917_v38  ;;  %2545 = vmax.xlane.f32.xlu2 %v2544_v9  ;;  %v7935_v9 = vsel %vm2050_vm1, %v7424_v45, -1e+30 }
 0x251   : > { %4638 = vst.msk [vmem:[%s7492_s27 + $0x60] sm:$0xff] %vm607_vm0, %v4512_v22  ;;  %2524 = vmax.xlane.f32.xlu1 %v2523_v57  ;;  %v2529_v45 = vsel %vm2177_vm2, %v7935_v9, -inf }
 0x252   : > { %v5451_v21 = vpop.eup %5450  ;;  %5454 = vpow2.f32 %v2892_v59  ;;  %2548 = vmax.xlane.f32.xlu0 %v2547_v11  ;;  %v2526_v11 = vsel %vm2177_vm2, %v7930_v7, -inf }
 0x253   : > { %v5453_v8 = vpop.eup %5452  ;;  %v4519_v22 = vmul.f32 %v5451_v21, %v3483_v37  ;;  %v2435_v46 = vpop.xlane.xlu1 %2434 }
 0x254   : > { %v2456_v28 = vpop.xlane.xlu2 %2455  ;;  %v4526_v57 = vmul.f32 %v5453_v8, %v3542_v48  ;;  %v2641_v61 = vsub.f32 %v7486_v2, %v2435_v46 }
 0x255   : > { %v2648_v38 = vsub.f32 %v7481_v43, %v2456_v28  ;;  %4645 = vst.msk [vmem:[%s7492_s27 + $0x98] sm:$0xff] %vm607_vm0, %v4519_v22  ;;  %v2954_v27 = vpop.xlane.xlu0 %2953  ;;  %v8863_v43 = vld [vmem:[#allocation5_spill] sm:$0xff]  ;;  %v3368_v22 = vpop.f32.mrf.mxu2 }
 0x256   : > { %4652 = vst.msk [vmem:[%s7492_s27 + $0xd0] sm:$0xff] %vm607_vm0, %v4526_v57  ;;  %v2852_v21 = vmul.f32 1.442695, %v2641_v61  ;;  %5456 = vrcp.f32 %v2954_v27  ;;  %v3045_v2 = vsel %vm2177_vm2, %v8863_v43, 0.0  ;;  %v7956_v27 = vsel %vm2050_vm1, %v7474_v55, -1e+30 }
 0x257   : > { %v2866_v59 = vmul.f32 1.442695, %v2648_v38  ;;  %v8864_v55 = vld [vmem:[#allocation8_spill] sm:$0xff] }
 0x258   : > { %v7947_v37 = vpop.eup %5454  ;;  %2527 = vmax.xlane.f32.xlu2 %v2526_v11  ;;  %v2550_v11 = vsel %vm2177_vm2, %v7956_v27, -inf }
 0x259   : > { %5458 = vpow2.f32 %v2866_v59  ;;  %3046 = vadd.xlane.f32.xlu1 %v3045_v2  ;;  %5200 = vmatmul.msk.f32.vlgmr.msra.gmra.mxu1 %vm2177_vm2, %v7947_v37 }
 0x25a   : > { %5460 = vpow2.f32 %v2852_v21  ;;  %2530 = vmax.xlane.f32.xlu0 %v2529_v45  ;;  %v3048_v21 = vsel %vm2177_vm2, %v8864_v55, 0.0 }
 0x25b   : > { %v2975_v48 = vpop.xlane.xlu1 %2974 }
 0x25c   : > { %v2996_v38 = vpop.xlane.xlu2 %2995  ;;  %v5457_v8 = vpop.eup %5456 }
 0x25d   : > { %5462 = vrcp.f32 %v2996_v38  ;;  %v4506_v28 = vmul.f32 %v5457_v8, %v3368_v22  ;;  %v2477_v46 = vpop.xlane.xlu0 %2476  ;;  %v7978_v38 = vsel %vm2050_vm1, %v7511_v13, -1e+30  ;;  %v3427_v8 = vpop.f32.mrf.mxu3 }
 0x25e   : > { %5464 = vrcp.f32 %v2975_v48  ;;  %v2655_v61 = vsub.f32 %v7520_v40, %v2477_v46  ;;  %v8865_v40 = vld [vmem:[#allocation34_spill] sm:$0xff]  ;;  %v3486_v48 = vpop.f32.mrf.mxu0 }
 0x25f   : > { %v7958_v57 = vpop.eup %5458  ;;  %4632 = vst.msk [vmem:[%s7492_s27 + $0x30] sm:$0xff] %vm607_vm0, %v4506_v28  ;;  %v3042_v43 = vsel %vm2177_vm2, %v8865_v40, 0.0  ;;  %v7983_v28 = vsel %vm2050_vm1, %v7460_v32, -1e+30 }
 0x260   : > { %v7963_v59 = vpop.eup %5460  ;;  %5187 = vmatmul.msk.f32.gmra.mxu3 %vm2177_vm2, %v7958_v57  ;;  %v2880_v45 = vmul.f32 1.442695, %v2655_v61  ;;  %3049 = vadd.xlane.f32.xlu2 %v3048_v21  ;;  %v2532_v32 = vsel %vm2177_vm2, %v7983_v28, -inf }
 0x261   : > { %5180 = vmatmul.msk.f32.gmra.mxu2 %vm2177_vm2, %v7963_v59  ;;  %2551 = vmax.xlane.f32.xlu1 %v2550_v11 }
 0x262   : > { %5466 = vpow2.f32 %v2880_v45  ;;  %3043 = vadd.xlane.f32.xlu0 %v3042_v43  ;;  %v2553_v45 = vsel %vm2177_vm2, %v7978_v38, -inf }
 0x263   : > { %v5463_v2 = vpop.eup %5462  ;;  %v2498_v61 = vpop.xlane.xlu1 %2497 }
 0x264   : > { %v5465_v22 = vpop.eup %5464  ;;  %v4520_v46 = vmul.f32 %v5463_v2, %v3486_v48  ;;  %v2438_v11 = vpop.xlane.xlu2 %2437  ;;  %v2662_v21 = vsub.f32 %v7537_v47, %v2498_v61  ;;  %v8866_v47 = vld [vmem:[#allocation12_spill] sm:$0xff] }
 0x265   : > { %v4513_v55 = vmul.f32 %v5465_v22, %v3427_v8  ;;  %v2642_v13 = vsub.f32 %v7542_v29, %v2438_v11  ;;  %v3017_v40 = vpop.xlane.xlu0 %3016  ;;  %v3051_v29 = vsel %vm2177_vm2, %v8866_v47, 0.0  ;;  %v8868_v47 = vld [vmem:[#allocation15_spill] sm:$0xff] }
 0x266   : > { %4646 = vst.msk [vmem:[%s7492_s27 + $0xa0] sm:$0xff] %vm607_vm0, %v4520_v46  ;;  %v2894_v43 = vmul.f32 1.442695, %v2662_v21  ;;  %5468 = vrcp.f32 %v3017_v40  ;;  %v3545_v46 = vpop.f32.mrf.mxu1 }
 0x267   : > { %4639 = vst.msk [vmem:[%s7492_s27 + $0x68] sm:$0xff] %vm607_vm0, %v4513_v55  ;;  %v2854_v25 = vmul.f32 1.442695, %v2642_v13 }
 0x268   : > { %v7995_v2 = vpop.eup %5466  ;;  %5470 = vpow2.f32 %v2894_v43  ;;  %2554 = vmax.xlane.f32.xlu2 %v2553_v45  ;;  %v8867_v43 = vld [vmem:[#allocation17_spill] sm:$0xff] }
 0x269   : > { %5472 = vpow2.f32 %v2854_v25  ;;  %2533 = vmax.xlane.f32.xlu1 %v2532_v32  ;;  %5194 = vmatmul.msk.f32.gmra.mxu0 %vm2177_vm2, %v7995_v2  ;;  %v3057_v25 = vsel %vm2177_vm2, %v8867_v43, 0.0  ;;  %v3586_v32 = vpop.f32.mrf.mxu2 }
 0x26a   : > { %3052 = vadd.xlane.f32.xlu0 %v3051_v29  ;;  %v8869_v29 = vld [vmem:[#allocation32_spill] sm:$0xff] }
 0x26b   : > { %v3020_v48 = vpop.xlane.xlu1 %3019 }
 0x26c   : > { %v2501_v8 = vpop.xlane.xlu2 %2500  ;;  %v5469_v22 = vpop.eup %5468  ;;  %5474 = vrcp.f32 %v3020_v48  ;;  %v3060_v48 = vsel %vm2177_vm2, %v8869_v29, 0.0 }
 0x26d   : > { %v2663_v61 = vsub.f32 %v7564_v50, %v2501_v8  ;;  %v4527_v11 = vmul.f32 %v5469_v22, %v3545_v46  ;;  %v2459_v55 = vpop.xlane.xlu0 %2458 }
 0x26e   : > { %v8002_v21 = vpop.eup %5470  ;;  %v2649_v40 = vsub.f32 %v7573_v54, %v2459_v55  ;;  %v3054_v54 = vsel %vm2177_vm2, %v8868_v47, 0.0  ;;  %v8871_v47 = vld [vmem:[#allocation2_spill] sm:$0xff] }
 0x26f   : > { %v2896_v13 = vmul.f32 1.442695, %v2663_v61  ;;  %v8005_v45 = vpop.eup %5472  ;;  %4653 = vst.msk [vmem:[%s7492_s27 + $0xd8] sm:$0xff] %vm607_vm0, %v4527_v11  ;;  %5201 = vmatmul.msk.f32.gmra.mxu1 %vm2177_vm2, %v8002_v21 }
 0x270   : > { %v2868_v50 = vmul.f32 1.442695, %v2649_v40  ;;  %5181 = vmatmul.msk.f32.gmra.mxu2 %vm2177_vm2, %v8005_v45  ;;  %3058 = vadd.xlane.f32.xlu2 %v3057_v25  ;;  %v8870_v25 = vld [vmem:[#allocation6_spill] sm:$0xff] }
 0x271   : > { %5476 = vpow2.f32 %v2896_v13  ;;  %3055 = vadd.xlane.f32.xlu1 %v3054_v54  ;;  %v3063_v54 = vsel %vm2177_vm2, %v8871_v47, 0.0 }
 0x272   : > { %v5475_v8 = vpop.eup %5474  ;;  %5478 = vpow2.f32 %v2868_v50  ;;  %3061 = vadd.xlane.f32.xlu0 %v3060_v48  ;;  %v3066_v50 = vsel %vm2177_vm2, %v8870_v25, 0.0 }
 0x273   : > { %v4528_v22 = vmul.f32 %v5475_v8, %v3586_v32  ;;  %v2480_v46 = vpop.xlane.xlu1 %2479  ;;  %v3589_v8 = vpop.f32.mrf.mxu2 }
 0x274   : > { %v3023_v61 = vpop.xlane.xlu2 %3022  ;;  %v2656_v11 = vsub.f32 %v7590_v60, %v2480_v46 }
 0x275   : > { %5480 = vrcp.f32 %v3023_v61  ;;  %4654 = vst.msk [vmem:[%s7492_s27 + $0xe0] sm:$0xff] %vm607_vm0, %v4528_v22  ;;  %v2441_v55 = vpop.xlane.xlu0 %2440 }
 0x276   : > { %v2882_v40 = vmul.f32 1.442695, %v2656_v11  ;;  %v2643_v43 = vsub.f32 %v7595_v10, %v2441_v55  ;;  %v8872_v10 = vld [vmem:[#allocation41_spill] sm:$0xff] }
 0x277   : > { %v8022_v13 = vpop.eup %5476  ;;  %v3069_v29 = vsel %vm2177_vm2, %v8872_v10, 0.0 }
 0x278   : > { %5202 = vmatmul.msk.f32.gmra.mxu1 %vm2177_vm2, %v8022_v13  ;;  %v8029_v32 = vpop.eup %5478  ;;  %5482 = vpow2.f32 %v2882_v40  ;;  %v2856_v60 = vmul.f32 1.442695, %v2643_v43  ;;  %3067 = vadd.xlane.f32.xlu2 %v3066_v50 }
 0x279   : > { %3064 = vadd.xlane.f32.xlu1 %v3063_v54  ;;  %5188 = vmatmul.msk.f32.gmra.mxu3 %vm2177_vm2, %v8029_v32 }
 0x27a   : > { %5484 = vpow2.f32 %v2856_v60  ;;  %3070 = vadd.xlane.f32.xlu0 %v3069_v29  ;;  %v8873_v60 = vld [vmem:[#allocation45_spill] sm:$0xff] }
 0x27b   : > { %v5481_v48 = vpop.eup %5480  ;;  %v2462_v46 = vpop.xlane.xlu1 %2461  ;;  %v3075_v54 = vsel %vm2177_vm2, %v8873_v60, 0.0 }
 0x27c   : > { %v4529_v22 = vmul.f32 %v5481_v48, %v3589_v8  ;;  %v2483_v61 = vpop.xlane.xlu2 %2482  ;;  %v2650_v11 = vsub.f32 %v7617_v6, %v2462_v46 }
 0x27d   : > { %v2657_v55 = vsub.f32 %v7622_v35, %v2483_v61  ;;  %v2504_v40 = vpop.xlane.xlu0 %2503  ;;  %v8874_v35 = vld [vmem:[#allocation13_spill] sm:$0xff] }
 0x27e   : > { %4655 = vst.msk [vmem:[%s7492_s27 + $0xe8] sm:$0xff] %vm607_vm0, %v4529_v22  ;;  %v8041_v43 = vpop.eup %5482  ;;  %v2870_v25 = vmul.f32 1.442695, %v2650_v11  ;;  %v2664_v47 = vsub.f32 %v7631_v19, %v2504_v40  ;;  %v3072_v29 = vsel %vm2177_vm2, %v8874_v35, 0.0  ;;  %v8875_v19 = vld [vmem:[#allocation19_spill] sm:$0xff] }
 0x27f   : > { %v2884_v50 = vmul.f32 1.442695, %v2657_v55  ;;  %5195 = vmatmul.msk.f32.gmra.mxu0 %vm2177_vm2, %v8041_v43  ;;  %v3078_v48 = vsel %vm2177_vm2, %v8875_v19, 0.0  ;;  %v606_v19 = vld [vmem:[%s6463_s24 + $0x3e8] sm:$0xff] }
 0x280   : > { %v8048_v10 = vpop.eup %5484  ;;  %5486 = vpow2.f32 %v2870_v25  ;;  %v2898_v6 = vmul.f32 1.442695, %v2664_v47  ;;  %3076 = vadd.xlane.f32.xlu2 %v3075_v54  ;;  %v8876_v47 = vld [vmem:[#allocation3_spill] sm:$0xff]  ;;  %4345 = vmatpush.msra.mxu3 %v606_v19  ;;  %v597_v19 = vld [vmem:[%s6463_s24 + $0x3a0] sm:$0xff] }
 0x281   : > { %5488 = vpow2.f32 %v2884_v50  ;;  %3073 = vadd.xlane.f32.xlu1 %v3072_v29  ;;  %5182 = vmatmul.msk.f32.gmra.mxu2 %vm2177_vm2, %v8048_v10  ;;  %v3084_v60 = vsel %vm2177_vm2, %v8876_v47, 0.0  ;;  %v599_v29 = vld [vmem:[%s6463_s24 + $0x3b0] sm:$0xff]  ;;  %v598_v47 = vld [vmem:[%s6463_s24 + $0x3a8] sm:$0xff] }
 0x282   : > { %5490 = vpow2.f32 %v2898_v6  ;;  %3079 = vadd.xlane.f32.xlu0 %v3078_v48  ;;  %v8878_v6 = vld [vmem:[#allocation39_spill] sm:$0xff]  ;;  %4286 = vmatpush.msra.mxu2 %v599_v29 }
 0x283   : > { %v2444_v22 = vpop.xlane.xlu1 %2443  ;;  %v3087_v35 = vsel %vm2177_vm2, %v8878_v6, 0.0 }
 0x284   : > { %v2465_v8 = vpop.xlane.xlu2 %2464  ;;  %v2644_v61 = vsub.f32 %v7653_v34, %v2444_v22  ;;  %4287 = vmatpush.msra.mxu2 %v598_v47 }
 0x285   : > { %v2651_v46 = vsub.f32 %v7648_v20, %v2465_v8  ;;  %v3026_v11 = vpop.xlane.xlu0 %3025  ;;  %v8877_v20 = vld [vmem:[#allocation33_spill] sm:$0xff] }
 0x286   : > { %v8058_v55 = vpop.eup %5486  ;;  %v2858_v25 = vmul.f32 1.442695, %v2644_v61  ;;  %5492 = vrcp.f32 %v3026_v11  ;;  %v3081_v34 = vsel %vm2177_vm2, %v8877_v20, 0.0  ;;  %4288 = vmatpush.msra.mxu2 %v597_v19 }
 0x287   : > { %v2872_v40 = vmul.f32 1.442695, %v2651_v46  ;;  %v8060_v50 = vpop.eup %5488  ;;  %5189 = vmatmul.msk.f32.gmra.mxu3 %vm2177_vm2, %v8058_v55  ;;  %v3592_v46 = vpop.f32.mrf.mxu2 }
 0x288   : > { %v8066_v54 = vpop.eup %5490  ;;  %5196 = vmatmul.msk.f32.gmra.mxu0 %vm2177_vm2, %v8060_v50  ;;  %3085 = vadd.xlane.f32.xlu2 %v3084_v60  ;;  %v605_v60 = vld [vmem:[%s6463_s24 + $0x3e0] sm:$0xff] }
 0x289   : > { %5494 = vpow2.f32 %v2872_v40  ;;  %3082 = vadd.xlane.f32.xlu1 %v3081_v34  ;;  %5203 = vmatmul.msk.f32.gmra.mxu1 %vm2177_vm2, %v8066_v54 }
 0x28a   : > { %5496 = vpow2.f32 %v2858_v25  ;;  %3088 = vadd.xlane.f32.xlu0 %v3087_v35  ;;  %4346 = vmatpush.msra.mxu3 %v605_v60 }
 0x28b   : > { %v2507_v48 = vpop.xlane.xlu1 %2506 }
 0x28c   : > { %v2447_v8 = vpop.xlane.xlu2 %2446  ;;  %v5493_v22 = vpop.eup %5492  ;;  %v2665_v61 = vsub.f32 %v7675_v33, %v2507_v48  ;;  %v8879_v33 = vld [vmem:[#allocation14_spill] sm:$0xff]  ;;  %v604_v48 = vld [vmem:[%s6463_s24 + $0x3d8] sm:$0xff] }
 0x28d   : > { %v2645_v11 = vsub.f32 %v7680_v4, %v2447_v8  ;;  %v4530_v40 = vmul.f32 %v5493_v22, %v3592_v46  ;;  %v2486_v25 = vpop.xlane.xlu0 %2485  ;;  %v3093_v4 = vsel %vm2177_vm2, %v8879_v33, 0.0  ;;  %v8881_v46 = vld [vmem:[#allocation16_spill] sm:$0xff]  ;;  %4347 = vmatpush.msra.mxu3 %v604_v48  ;;  %v594_v33 = vld [vmem:[%s6463_s24 + $0x388] sm:$0xff] }
 0x28e   : > { %v2900_v34 = vmul.f32 1.442695, %v2665_v61  ;;  %v2658_v35 = vsub.f32 %v7689_v31, %v2486_v25  ;;  %v8880_v31 = vld [vmem:[#allocation10_spill] sm:$0xff]  ;;  %v3096_v61 = vsel %vm2177_vm2, %v8881_v46, 0.0  ;;  %v595_v25 = vld [vmem:[%s6463_s24 + $0x390] sm:$0xff] }
 0x28f   : > { %v8082_v20 = vpop.eup %5494  ;;  %v2860_v6 = vmul.f32 1.442695, %v2645_v11  ;;  %4656 = vst.msk [vmem:[%s7492_s27 + $0xf0] sm:$0xff] %vm607_vm0, %v4530_v40  ;;  %v3090_v22 = vsel %vm2177_vm2, %v8880_v31, 0.0  ;;  %v596_v11 = vld [vmem:[%s6463_s24 + $0x398] sm:$0xff]  ;;  %v603_v40 = vld [vmem:[%s6463_s24 + $0x3d0] sm:$0xff] }
 0x290   : > { %v8085_v29 = vpop.eup %5496  ;;  %5190 = vmatmul.msk.f32.gmra.mxu3 %vm2177_vm2, %v8082_v20  ;;  %5498 = vpow2.f32 %v2900_v34  ;;  %v2886_v8 = vmul.f32 1.442695, %v2658_v35  ;;  %3094 = vadd.xlane.f32.xlu2 %v3093_v4  ;;  %v602_v34 = vld [vmem:[%s6463_s24 + $0x3c8] sm:$0xff]  ;;  %v8882_v31 = vld [vmem:[#allocation21_spill] sm:$0xff] }
 0x291   : > { %5183 = vmatmul.msk.f32.gmra.mxu2 %vm2177_vm2, %v8085_v29  ;;  %5500 = vpow2.f32 %v2860_v6  ;;  %3091 = vadd.xlane.f32.xlu1 %v3090_v22  ;;  %v601_v22 = vld [vmem:[%s6463_s24 + $0x3c0] sm:$0xff] }
 0x292   : > { %5502 = vpow2.f32 %v2886_v8  ;;  %3097 = vadd.xlane.f32.xlu0 %v3096_v61  ;;  %4289 = vmatpush.msra.mxu2 %v596_v11  ;;  %v3595_v61 = vpop.f32.mrf.mxu2 }
 0x293   : > { %v3029_v47 = vpop.xlane.xlu1 %3028  ;;  %4348 = vmatpush.msra.mxu3 %v603_v40 }
 0x294   : > { %v2510_v60 = vpop.xlane.xlu2 %2509  ;;  %5504 = vrcp.f32 %v3029_v47  ;;  %4290 = vmatpush.msra.mxu2 %v595_v25  ;;  %v593_v25 = vld [vmem:[%s6463_s24 + $0x380] sm:$0xff]  ;;  %v8884_v47 = vld [vmem:[#allocation25_spill] sm:$0xff] }
 0x295   : > { %v2666_v6 = vsub.f32 %v7706_v16, %v2510_v60  ;;  %v2468_v35 = vpop.xlane.xlu0 %2467  ;;  %4349 = vmatpush.msra.mxu3 %v602_v34  ;;  %v3102_v16 = vsel %vm2177_vm2, %v8882_v31, 0.0  ;;  %v3105_v60 = vsel %vm2177_vm2, %v8884_v47, 0.0  ;;  %v600_v34 = vld [vmem:[%s6463_s24 + $0x3b8] sm:$0xff] }
 0x296   : > { %v8107_v4 = vpop.eup %5498  ;;  %v2652_v8 = vsub.f32 %v7711_v24, %v2468_v35  ;;  %4291 = vmatpush.msra.mxu2 %v594_v33  ;;  %v8883_v24 = vld [vmem:[#allocation26_spill] sm:$0xff] }
 0x297   : > { %v2902_v19 = vmul.f32 1.442695, %v2666_v6  ;;  %v8110_v48 = vpop.eup %5500  ;;  %5204 = vmatmul.msk.f32.gmra.mxu1 %vm2177_vm2, %v8107_v4  ;;  %v3099_v40 = vsel %vm2177_vm2, %v8883_v24, 0.0  ;;  %4350 = vmatpush.msra.mxu3 %v601_v22  ;;  %v3111_v22 = vsel %vm2177_vm2, %v7544_v41, 0.0 }
 0x298   : > { %v8117_v46 = vpop.eup %5502  ;;  %v2874_v11 = vmul.f32 1.442695, %v2652_v8  ;;  %3103 = vadd.xlane.f32.xlu2 %v3102_v16  ;;  %4292 = vmatpush.msra.mxu2 %v593_v25 }
 0x299   : > { %5506 = vpow2.f32 %v2902_v19  ;;  %5184 = vmatmul.msk.f32.gmra.mxu2 %vm2177_vm2, %v8110_v48  ;;  %3100 = vadd.xlane.f32.xlu1 %v3099_v40 }
 0x29a   : > { %5197 = vmatmul.msk.f32.gmra.mxu0 %vm2177_vm2, %v8117_v46  ;;  %v5505_v6 = vpop.eup %5504  ;;  %5508 = vpow2.f32 %v2874_v11  ;;  %3106 = vadd.xlane.f32.xlu0 %v3105_v60  ;;  %v8885_v11 = vld [vmem:[#allocation52_spill] sm:$0xff]  ;;  %v3598_v60 = vpop.f32.mrf.mxu2 }
 0x29b   : > { %v4531_v35 = vmul.f32 %v5505_v6, %v3595_v61  ;;  %v2489_v33 = vpop.xlane.xlu1 %2488  ;;  %4351 = vmatpush.msra.mxu3 %v600_v34  ;;  %v3108_v25 = vsel %vm2177_vm2, %v8885_v11, 0.0 }
 0x29c   : > { %v3032_v19 = vpop.xlane.xlu2 %3031  ;;  %v2659_v8 = vsub.f32 %v7736_v15, %v2489_v33 }
 0x29d   : > { %5510 = vrcp.f32 %v3032_v19  ;;  %4657 = vst.msk [vmem:[%s7492_s27 + $0xf8] sm:$0xff] %vm607_vm0, %v4531_v35  ;;  %v2450_v31 = vpop.xlane.xlu0 %2449 }
 0x29e   : > { %v2888_v24 = vmul.f32 1.442695, %v2659_v8  ;;  %v2646_v40 = vsub.f32 %v7750_v30, %v2450_v31  ;;  %v3114_v30 = vsel %vm2177_vm2, %v7641_v26, 0.0 }
 0x29f   : > { %v8132_v16 = vpop.eup %5506 }
 0x2a0   : > { %5205 = vmatmul.msk.f32.gmra.mxu1 %vm2177_vm2, %v8132_v16  ;;  %v8139_v61 = vpop.eup %5508  ;;  %5512 = vpow2.f32 %v2888_v24  ;;  %v2862_v15 = vmul.f32 1.442695, %v2646_v40  ;;  %3112 = vadd.xlane.f32.xlu2 %v3111_v22  ;;  %v3120_v40 = vsel %vm2177_vm2, %v7788_v53, 0.0 }
 0x2a1   : > { %3109 = vadd.xlane.f32.xlu1 %v3108_v25  ;;  %5191 = vmatmul.msk.f32.gmra.mxu3 %vm2177_vm2, %v8139_v61 }
 0x2a2   : > { %5514 = vpow2.f32 %v2862_v15  ;;  %3115 = vadd.xlane.f32.xlu0 %v3114_v30 }
 0x2a3   : > { %v5511_v47 = vpop.eup %5510  ;;  %v2471_v34 = vpop.xlane.xlu1 %2470 }
 0x2a4   : > { %v4532_v41 = vmul.f32 %v5511_v47, %v3598_v60  ;;  %v2492_v6 = vpop.xlane.xlu2 %2491  ;;  %v2653_v35 = vsub.f32 %v7773_v5, %v2471_v34 }
 0x2a5   : > { %v2660_v33 = vsub.f32 %v7778_v58, %v2492_v6  ;;  %v2513_v19 = vpop.xlane.xlu0 %2512  ;;  %v3117_v58 = vsel %vm2177_vm2, %v7718_v17, 0.0 }
 0x2a6   : > { %4658 = vst.msk [vmem:[%s7492_s27 + $0x100] sm:$0xff] %vm607_vm0, %v4532_v41  ;;  %v8151_v8 = vpop.eup %5512  ;;  %v2876_v31 = vmul.f32 1.442695, %v2653_v35  ;;  %v2667_v26 = vsub.f32 %v7785_v51, %v2513_v19  ;;  %v8886_v51 = vld [vmem:[#allocation22_spill] sm:$0xff]  ;;  %v8887_v35 = vld [vmem:[#allocation27_spill] sm:$0xff] }
 0x2a7   : > { %v2890_v24 = vmul.f32 1.442695, %v2660_v33  ;;  %5198 = vmatmul.msk.f32.gmra.mxu0 %vm2177_vm2, %v8151_v8  ;;  %v3123_v15 = vsel %vm2177_vm2, %v8886_v51, 0.0  ;;  %v3129_v33 = vsel %vm2177_vm2, %v8887_v35, 0.0 }
 0x2a8   : > { %v8158_v22 = vpop.eup %5514  ;;  %5516 = vpow2.f32 %v2876_v31  ;;  %v2904_v5 = vmul.f32 1.442695, %v2667_v26  ;;  %3121 = vadd.xlane.f32.xlu2 %v3120_v40  ;;  %v3601_v31 = vpop.f32.mrf.mxu2 }
 0x2a9   : > { %5518 = vpow2.f32 %v2890_v24  ;;  %3118 = vadd.xlane.f32.xlu1 %v3117_v58  ;;  %5185 = vmatmul.msk.f32.gmra.mxu2 %vm2177_vm2, %v8158_v22 }
 0x2aa   : > { %5520 = vpow2.f32 %v2904_v5  ;;  %3124 = vadd.xlane.f32.xlu0 %v3123_v15  ;;  %v3645_v15 = vpop.f32.mrf.mxu3 }
 0x2ab   : > { %v2516_v53 = vpop.xlane.xlu1 %2515 }
 0x2ac   : > { %v2537_v11 = vpop.xlane.xlu2 %2536  ;;  %v2668_v30 = vsub.f32 %v7819_v63, %v2516_v53 }
 0x2ad   : > { %v2675_v25 = vsub.f32 %v7814_v3, %v2537_v11  ;;  %v2540_v47 = vpop.xlane.xlu0 %2539  ;;  %v8888_v3 = vld [vmem:[#allocation50_spill] sm:$0xff] }
 0x2ae   : > { %v8168_v60 = vpop.eup %5516  ;;  %v2906_v41 = vmul.f32 1.442695, %v2668_v30  ;;  %v2676_v6 = vsub.f32 %v7826_v39, %v2540_v47  ;;  %v3126_v63 = vsel %vm2177_vm2, %v8888_v3, 0.0  ;;  %v3132_v39 = vsel %vm2177_vm2, %v7583_v18, 0.0 }
 0x2af   : > { %v2920_v17 = vmul.f32 1.442695, %v2675_v25  ;;  %v8170_v34 = vpop.eup %5518  ;;  %5192 = vmatmul.msk.f32.gmra.mxu3 %vm2177_vm2, %v8168_v60  ;;  %v3138_v18 = vsel %vm2177_vm2, %v7714_v62, 0.0  ;;  %v3141_v30 = vsel %vm2177_vm2, %v7840_v56, 0.0 }
 0x2b0   : > { %v8177_v19 = vpop.eup %5520  ;;  %5199 = vmatmul.msk.f32.gmra.mxu0 %vm2177_vm2, %v8170_v34  ;;  %3130 = vadd.xlane.f32.xlu2 %v3129_v33  ;;  %v2922_v24 = vmul.f32 1.442695, %v2676_v6 }
 0x2b1   : > { %5522 = vpow2.f32 %v2920_v17  ;;  %3127 = vadd.xlane.f32.xlu1 %v3126_v63  ;;  %5206 = vmatmul.msk.f32.gmra.mxu1 %vm2177_vm2, %v8177_v19  ;;  %v3604_v17 = vpop.f32.mrf.mxu2 }
 0x2b2   : > { %5524 = vpow2.f32 %v2906_v41  ;;  %3133 = vadd.xlane.f32.xlu0 %v3132_v39  ;;  %v8210_v63 = vpop.f32.mrf.mxu3  ;;  %v8889_v39 = vld [vmem:[#allocation49_spill] sm:$0xff] }
 0x2b3   : > { %v3038_v26 = vpop.xlane.xlu1 %3037 }
 0x2b4   : > { %v2519_v40 = vpop.xlane.xlu2 %2518  ;;  %5526 = vrcp.f32 %v3038_v26 }
 0x2b5   : > { %v2669_v5 = vsub.f32 %v7848_v42, %v2519_v40  ;;  %v2522_v58 = vpop.xlane.xlu0 %2521  ;;  %5528 = vpow2.f32 %v2922_v24  ;;  %v3135_v42 = vsel %vm2177_vm2, %v7661_v49, 0.0  ;;  %v8890_v24 = vld [vmem:[#allocation23_spill] sm:$0xff]  ;;  %v8891_v40 = vld [vmem:[#allocation53_spill] sm:$0xff] }
 0x2b6   : > { %v2670_v25 = vsub.f32 %v7854_v44, %v2522_v58  ;;  %v3144_v26 = vsel %vm2177_vm2, %v8890_v24, 0.0 }
 0x2b7   : > { %v8188_v51 = vpop.eup %5522  ;;  %v2908_v11 = vmul.f32 1.442695, %v2669_v5  ;;  %v3150_v5 = vsel %vm2177_vm2, %v8891_v40, 0.0 }
 0x2b8   : > { %v8190_v53 = vpop.eup %5524  ;;  %5214 = vmatmul.msk.f32.vlgmr.msra.gmra.mxu3 %vm2177_vm2, %v8188_v51  ;;  %3139 = vadd.xlane.f32.xlu2 %v3138_v18  ;;  %v2910_v49 = vmul.f32 1.442695, %v2670_v25 }
 0x2b9   : > { %5530 = vpow2.f32 %v2908_v11  ;;  %5207 = vmatmul.msk.f32.vlgmr.msra.gmra.mxu2 %vm2177_vm2, %v8190_v53  ;;  %3136 = vadd.xlane.f32.xlu1 %v3135_v42 }
 0x2ba   : > { %v5527_v47 = vpop.eup %5526  ;;  %3142 = vadd.xlane.f32.xlu0 %v3141_v30 }
 0x2bb   : > { %v4534_v41 = vmul.f32 %v5527_v47, %v3604_v17  ;;  %v2543_v62 = vpop.xlane.xlu1 %2542  ;;  %v8204_v33 = vpop.eup %5528 }
 0x2bc   : > { %v3041_v6 = vpop.xlane.xlu2 %3040  ;;  %v2677_v35 = vsub.f32 %v7877_v12, %v2543_v62  ;;  %v3147_v12 = vsel %vm2177_vm2, %v8889_v39, 0.0 }
 0x2bd   : > { %5532 = vrcp.f32 %v3041_v6  ;;  %4660 = vst.msk [vmem:[%s7492_s27 + $0x110] sm:$0xff] %vm607_vm0, %v4534_v41  ;;  %v3035_v3 = vpop.xlane.xlu0 %3034  ;;  %v3651_v6 = vpop.f32.mrf.mxu3 }
 0x2be   : > { %v2924_v56 = vmul.f32 1.442695, %v2677_v35  ;;  %5534 = vrcp.f32 %v3035_v3 }
 0x2bf   : > { %v8208_v44 = vpop.eup %5530 }
 0x2c0   : > { %5215 = vmatmul.msk.f32.gmra.mxu3 %vm2177_vm2, %v8204_v33  ;;  %5536 = vpow2.f32 %v2924_v56  ;;  %3148 = vadd.xlane.f32.xlu2 %v3147_v12  ;;  %v8237_v56 = vpop.f32.mrf.mxu0  ;;  %v8894_v12 = vld [vmem:[#allocation36_spill] sm:$0xff] }
 0x2c1   : > { %5208 = vmatmul.msk.f32.gmra.mxu2 %vm2177_vm2, %v8208_v44  ;;  %5538 = vpow2.f32 %v2910_v49  ;;  %3145 = vadd.xlane.f32.xlu1 %v3144_v26 }
 0x2c2   : > { %3151 = vadd.xlane.f32.xlu0 %v3150_v5 }
 0x2c3   : > { %v5533_v58 = vpop.eup %5532 }
 0x2c4   : > { %v4535_v11 = vmul.f32 %v5533_v58, %v3645_v15  ;;  %v2546_v18 = vpop.xlane.xlu2 %2545  ;;  %v5535_v42 = vpop.eup %5534 }
 0x2c5   : > { %v2678_v25 = vsub.f32 %v7898_v36, %v2546_v18  ;;  %v2525_v30 = vpop.xlane.xlu1 %2524  ;;  %v4533_v47 = vmul.f32 %v5535_v42, %v3601_v31  ;;  %v2549_v41 = vpop.xlane.xlu0 %2548  ;;  %v8892_v36 = vld [vmem:[#allocation31_spill] sm:$0xff] }
 0x2c6   : > { %4661 = vst.msk [vmem:[%s7492_s27 + $0x118] sm:$0xff] %vm607_vm0, %v4535_v11  ;;  %v2671_v17 = vsub.f32 %v7903_v52, %v2525_v30  ;;  %v8226_v62 = vpop.eup %5536  ;;  %v2679_v3 = vsub.f32 %v7908_v0, %v2549_v41  ;;  %v3156_v31 = vsel %vm2177_vm2, %v8892_v36, 0.0  ;;  %v8893_v52 = vld [vmem:[#allocation29_spill] sm:$0xff]  ;;  %v3159_v0 = vsel %vm2177_vm2, %v8894_v12, 0.0 }
 0x2c7   : > { %v2926_v35 = vmul.f32 1.442695, %v2678_v25  ;;  %v8228_v49 = vpop.eup %5538  ;;  %4659 = vst.msk [vmem:[%s7492_s27 + $0x108] sm:$0xff] %vm607_vm0, %v4533_v47  ;;  %v3153_v39 = vsel %vm2177_vm2, %v8893_v52, 0.0  ;;  %v8895_v25 = vld [vmem:[#allocation24_spill] sm:$0xff]  ;;  %v3162_v41 = vsel %vm2177_vm2, %v7861_v14, 0.0 }
 0x2c8   : > { %v2912_v15 = vmul.f32 1.442695, %v2671_v17  ;;  %5216 = vmatmul.msk.f32.gmra.mxu3 %vm2177_vm2, %v8226_v62  ;;  %3157 = vadd.xlane.f32.xlu2 %v3156_v31  ;;  %v2928_v24 = vmul.f32 1.442695, %v2679_v3  ;;  %v3165_v30 = vsel %vm2177_vm2, %v8895_v25, 0.0  ;;  %v8254_v47 = vpop.f32.mrf.mxu0  ;;  %v3654_v17 = vpop.f32.mrf.mxu3 }
 0x2c9   : > { %5540 = vpow2.f32 %v2926_v35  ;;  %5209 = vmatmul.msk.f32.gmra.mxu2 %vm2177_vm2, %v8228_v49  ;;  %3154 = vadd.xlane.f32.xlu1 %v3153_v39  ;;  %v8896_v35 = vld [vmem:[#allocation51_spill] sm:$0xff] }
 0x2ca   : > { %5542 = vpow2.f32 %v2912_v15  ;;  %3160 = vadd.xlane.f32.xlu0 %v3159_v0  ;;  %v3168_v15 = vsel %vm2177_vm2, %v8896_v35, 0.0 }
 0x2cc   : > { %v2528_v26 = vpop.xlane.xlu2 %2527 }
 0x2cd   : > { %v3047_v40 = vpop.xlane.xlu1 %3046  ;;  %v2672_v5 = vsub.f32 %v7930_v7, %v2528_v26  ;;  %v2531_v58 = vpop.xlane.xlu0 %2530  ;;  %v8897_v26 = vld [vmem:[#allocation28_spill] sm:$0xff] }
 0x2ce   : > { %5544 = vrcp.f32 %v3047_v40  ;;  %v2673_v7 = vsub.f32 %v7935_v9, %v2531_v58  ;;  %v8899_v58 = vld [vmem:[#allocation4_spill] sm:$0xff] }
 0x2cf   : > { %v8246_v11 = vpop.eup %5540  ;;  %v2914_v18 = vmul.f32 1.442695, %v2672_v5  ;;  %5546 = vpow2.f32 %v2928_v24 }
 0x2d0   : > { %v8248_v42 = vpop.eup %5542  ;;  %5217 = vmatmul.msk.f32.gmra.mxu3 %vm2177_vm2, %v8246_v11  ;;  %3166 = vadd.xlane.f32.xlu2 %v3165_v30  ;;  %v2916_v52 = vmul.f32 1.442695, %v2673_v7  ;;  %v3657_v40 = vpop.f32.mrf.mxu3 }
 0x2d1   : > { %5548 = vpow2.f32 %v2914_v18  ;;  %5210 = vmatmul.msk.f32.gmra.mxu2 %vm2177_vm2, %v8248_v42  ;;  %3163 = vadd.xlane.f32.xlu1 %v3162_v41  ;;  %v3177_v18 = vsel %vm2177_vm2, %v8899_v58, 0.0  ;;  %v8280_v30 = vpop.f32.mrf.mxu0 }
 0x2d2   : > { %3169 = vadd.xlane.f32.xlu0 %v3168_v15 }
 0x2d4   : > { %v5545_v3 = vpop.eup %5544  ;;  %v3050_v36 = vpop.xlane.xlu2 %3049 }
 0x2d5   : > { %v4537_v31 = vmul.f32 %v5545_v3, %v3651_v6  ;;  %v2552_v39 = vpop.xlane.xlu1 %2551  ;;  %5550 = vrcp.f32 %v3050_v36  ;;  %v8263_v9 = vpop.eup %5546  ;;  %v3174_v6 = vsel %vm2177_vm2, %v8897_v26, 0.0 }
 0x2d6   : > { %v2680_v12 = vsub.f32 %v7956_v27, %v2552_v39  ;;  %v3044_v0 = vpop.xlane.xlu0 %3043  ;;  %v8898_v27 = vld [vmem:[#allocation54_spill] sm:$0xff] }
 0x2d7   : > { %v8266_v24 = vpop.eup %5548  ;;  %4663 = vst.msk [vmem:[%s7492_s27 + $0x128] sm:$0xff] %vm607_vm0, %v4537_v31  ;;  %5552 = vrcp.f32 %v3044_v0  ;;  %v3171_v5 = vsel %vm2177_vm2, %v8898_v27, 0.0 }
 0x2d8   : > { %v2930_v14 = vmul.f32 1.442695, %v2680_v12  ;;  %5218 = vmatmul.msk.f32.gmra.mxu3 %vm2177_vm2, %v8263_v9  ;;  %5554 = vpow2.f32 %v2916_v52  ;;  %3175 = vadd.xlane.f32.xlu2 %v3174_v6  ;;  %v3186_v6 = vsel %vm2177_vm2, %v7889_v23, 0.0  ;;  %v3192_v23 = vsel %vm2177_vm2, %v8005_v45, 0.0 }
 0x2d9   : > { %5211 = vmatmul.msk.f32.gmra.mxu2 %vm2177_vm2, %v8266_v24  ;;  %3172 = vadd.xlane.f32.xlu1 %v3171_v5  ;;  %v3713_v27 = vpop.f32.mrf.mxu0 }
 0x2da   : > { %5556 = vpow2.f32 %v2930_v14  ;;  %3178 = vadd.xlane.f32.xlu0 %v3177_v18  ;;  %v8291_v14 = vpop.f32.mrf.mxu1 }
 0x2db   : > { %v5551_v25 = vpop.eup %5550 }
 0x2dc   : > { %v4538_v7 = vmul.f32 %v5551_v25, %v3654_v17  ;;  %v2555_v41 = vpop.xlane.xlu2 %2554 }
 0x2dd   : > { %v5553_v35 = vpop.eup %5552  ;;  %v2681_v15 = vsub.f32 %v7978_v38, %v2555_v41  ;;  %v2534_v3 = vpop.xlane.xlu1 %2533 }
 0x2de   : > { %4664 = vst.msk [vmem:[%s7492_s27 + $0x130] sm:$0xff] %vm607_vm0, %v4538_v7  ;;  %v4536_v36 = vmul.f32 %v5553_v35, %v8210_v63  ;;  %v2674_v31 = vsub.f32 %v7983_v28, %v2534_v3  ;;  %v3053_v52 = vpop.xlane.xlu0 %3052  ;;  %v8287_v39 = vpop.eup %5554  ;;  %v3183_v28 = vsel %vm2177_vm2, %v7857_v1, 0.0  ;;  %v8900_v63 = vld [vmem:[#allocation35_spill] sm:$0xff] }
 0x2df   : > { %v2932_v12 = vmul.f32 1.442695, %v2681_v15  ;;  %5558 = vrcp.f32 %v3053_v52  ;;  %v3660_v38 = vpop.f32.mrf.mxu3  ;;  %v3180_v26 = vsel %vm2177_vm2, %v8900_v63, 0.0  ;;  %v3195_v15 = vsel %vm2177_vm2, %v8048_v10, 0.0 }
 0x2e0   : > { %v8289_v0 = vpop.eup %5556  ;;  %4662 = vst.msk [vmem:[%s7492_s27 + $0x120] sm:$0xff] %vm607_vm0, %v4536_v36  ;;  %v2918_v17 = vmul.f32 1.442695, %v2674_v31  ;;  %3184 = vadd.xlane.f32.xlu2 %v3183_v28  ;;  %v3201_v10 = vsel %vm2177_vm2, %v8110_v48, 0.0 }
 0x2e1   : > { %5560 = vpow2.f32 %v2932_v12  ;;  %5212 = vmatmul.msk.f32.gmra.mxu2 %vm2177_vm2, %v8287_v39  ;;  %5219 = vmatmul.msk.f32.gmra.mxu3 %vm2177_vm2, %v8289_v0  ;;  %v3716_v36 = vpop.f32.mrf.mxu0 }
 0x2e2   : > { %5562 = vpow2.f32 %v2918_v17  ;;  %3181 = vadd.xlane.f32.xlu1 %v3180_v26  ;;  %3187 = vadd.xlane.f32.xlu0 %v3186_v6  ;;  %v8319_v35 = vpop.f32.mrf.mxu1  ;;  %v3198_v6 = vsel %vm2177_vm2, %v8085_v29, 0.0 }
 0x2e4   : > { %v3059_v5 = vpop.xlane.xlu2 %3058 }
 0x2e5   : > { %v5559_v58 = vpop.eup %5558  ;;  %5564 = vrcp.f32 %v3059_v5  ;;  %v3056_v18 = vpop.xlane.xlu1 %3055 }
 0x2e6   : > { %v4539_v25 = vmul.f32 %v5559_v58, %v3657_v40  ;;  %5566 = vrcp.f32 %v3056_v18  ;;  %v3062_v7 = vpop.xlane.xlu0 %3061  ;;  %v3189_v40 = vsel %vm2177_vm2, %v7963_v59, 0.0  ;;  %v8338_v58 = vpop.f32.mrf.mxu2 }
 0x2e7   : > { %v8305_v1 = vpop.eup %5560  ;;  %5568 = vrcp.f32 %v3062_v7  ;;  %v3663_v31 = vpop.f32.mrf.mxu3 }
 0x2e8   : > { %v8307_v41 = vpop.eup %5562  ;;  %4665 = vst.msk [vmem:[%s7492_s27 + $0x138] sm:$0xff] %vm607_vm0, %v4539_v25  ;;  %3193 = vadd.xlane.f32.xlu2 %v3192_v23 }
 0x2e9   : > { %5213 = vmatmul.msk.f32.gmra.mxu2 %vm2177_vm2, %v8307_v41  ;;  %5220 = vmatmul.msk.f32.gmra.mxu3 %vm2177_vm2, %v8305_v1  ;;  %v3719_v29 = vpop.f32.mrf.mxu0 }
 0x2ea   : > { %3190 = vadd.xlane.f32.xlu1 %v3189_v40  ;;  %3196 = vadd.xlane.f32.xlu0 %v3195_v15 }
 0x2eb   : > { %v5565_v3 = vpop.eup %5564 }
 0x2ec   : > { %v5567_v52 = vpop.eup %5566  ;;  %v4541_v12 = vmul.f32 %v5565_v3, %v3663_v31  ;;  %v3068_v45 = vpop.xlane.xlu2 %3067  ;;  %v8901_v3 = vld [vmem:[#allocation37_spill] sm:$0xff] }
 0x2ed   : > { %v5569_v17 = vpop.eup %5568  ;;  %v4540_v28 = vmul.f32 %v5567_v52, %v3660_v38  ;;  %5570 = vrcp.f32 %v3068_v45  ;;  %v3065_v59 = vpop.xlane.xlu1 %3064  ;;  %v3207_v31 = vsel %vm2177_vm2, %v8901_v3, 0.0 }
 0x2ee   : > { %4667 = vst.msk [vmem:[%s7492_s27 + $0x148] sm:$0xff] %vm607_vm0, %v4541_v12  ;;  %v4542_v63 = vmul.f32 %v5569_v17, %v8237_v56  ;;  %5572 = vrcp.f32 %v3065_v59  ;;  %v3071_v26 = vpop.xlane.xlu0 %3070  ;;  %v8334_v38 = vpop.f32.mrf.mxu1  ;;  %v3204_v56 = vsel %vm2177_vm2, %v8158_v22, 0.0 }
 0x2ef   : > { %4666 = vst.msk [vmem:[%s7492_s27 + $0x140] sm:$0xff] %vm607_vm0, %v4540_v28  ;;  %5574 = vrcp.f32 %v3071_v26  ;;  %v8354_v12 = vpop.f32.mrf.mxu2 }
 0x2f0   : > { %4668 = vst.msk [vmem:[%s7492_s27 + $0x150] sm:$0xff] %vm607_vm0, %v4542_v63  ;;  %3202 = vadd.xlane.f32.xlu2 %v3201_v10 }
 0x2f1   : > { %v3722_v59 = vpop.f32.mrf.mxu0 }
 0x2f2   : > { %3199 = vadd.xlane.f32.xlu1 %v3198_v6  ;;  %3205 = vadd.xlane.f32.xlu0 %v3204_v56  ;;  %v3216_v56 = vsel %vm2177_vm2, %v8058_v55, 0.0 }
 0x2f3   : > { %v5571_v5 = vpop.eup %5570 }
 0x2f4   : > { %v5573_v18 = vpop.eup %5572  ;;  %v4544_v48 = vmul.f32 %v5571_v5, %v8280_v30  ;;  %v3077_v25 = vpop.xlane.xlu2 %3076  ;;  %v3210_v30 = vsel %vm2177_vm2, %v7958_v57, 0.0 }
 0x2f5   : > { %v5575_v7 = vpop.eup %5574  ;;  %v4543_v23 = vmul.f32 %v5573_v18, %v8254_v47  ;;  %5576 = vrcp.f32 %v3077_v25  ;;  %v3074_v40 = vpop.xlane.xlu1 %3073 }
 0x2f6   : > { %4670 = vst.msk [vmem:[%s7492_s27 + $0x160] sm:$0xff] %vm607_vm0, %v4544_v48  ;;  %v4545_v15 = vmul.f32 %v5575_v7, %v3713_v27  ;;  %5578 = vrcp.f32 %v3074_v40  ;;  %v3080_v22 = vpop.xlane.xlu0 %3079  ;;  %v3772_v47 = vpop.f32.mrf.mxu1  ;;  %v3213_v27 = vsel %vm2177_vm2, %v8029_v32, 0.0  ;;  %v3219_v32 = vsel %vm2177_vm2, %v8082_v20, 0.0 }
 0x2f7   : > { %4669 = vst.msk [vmem:[%s7492_s27 + $0x158] sm:$0xff] %vm607_vm0, %v4543_v23  ;;  %5580 = vrcp.f32 %v3080_v22  ;;  %v8368_v18 = vpop.f32.mrf.mxu3  ;;  %v8370_v48 = vpop.f32.mrf.mxu2  ;;  %v8902_v22 = vld [vmem:[#allocation9_spill] sm:$0xff] }
 0x2f8   : > { %4671 = vst.msk [vmem:[%s7492_s27 + $0x168] sm:$0xff] %vm607_vm0, %v4545_v15  ;;  %3211 = vadd.xlane.f32.xlu2 %v3210_v30  ;;  %v3225_v30 = vsel %vm2177_vm2, %v8168_v60, 0.0 }
 0x2fa   : > { %3208 = vadd.xlane.f32.xlu1 %v3207_v31  ;;  %3214 = vadd.xlane.f32.xlu0 %v3213_v27 }
 0x2fb   : > { %v5577_v52 = vpop.eup %5576 }
 0x2fc   : > { %v5579_v45 = vpop.eup %5578  ;;  %v4547_v17 = vmul.f32 %v5577_v52, %v3719_v29  ;;  %v3086_v28 = vpop.xlane.xlu2 %3085 }
 0x2fd   : > { %v5581_v57 = vpop.eup %5580  ;;  %v4546_v63 = vmul.f32 %v5579_v45, %v3716_v36  ;;  %5582 = vrcp.f32 %v3086_v28  ;;  %v3083_v26 = vpop.xlane.xlu1 %3082  ;;  %v3222_v36 = vsel %vm2177_vm2, %v8139_v61, 0.0 }
 0x2fe   : > { %4673 = vst.msk [vmem:[%s7492_s27 + $0x178] sm:$0xff] %vm607_vm0, %v4547_v17  ;;  %v4548_v10 = vmul.f32 %v5581_v57, %v3722_v59  ;;  %5584 = vrcp.f32 %v3083_v26  ;;  %v3089_v6 = vpop.xlane.xlu0 %3088  ;;  %v3775_v7 = vpop.f32.mrf.mxu1  ;;  %v3234_v26 = vsel %vm2177_vm2, %v8041_v43, 0.0 }
 0x2ff   : > { %4672 = vst.msk [vmem:[%s7492_s27 + $0x170] sm:$0xff] %vm607_vm0, %v4546_v63  ;;  %5586 = vrcp.f32 %v3089_v6  ;;  %v8387_v3 = vpop.f32.mrf.mxu3  ;;  %v3831_v31 = vpop.f32.mrf.mxu2  ;;  %v3237_v63 = vsel %vm2177_vm2, %v8060_v50, 0.0 }
 0x300   : > { %4674 = vst.msk [vmem:[%s7492_s27 + $0x180] sm:$0xff] %vm607_vm0, %v4548_v10  ;;  %3220 = vadd.xlane.f32.xlu2 %v3219_v32 }
 0x302   : > { %3217 = vadd.xlane.f32.xlu1 %v3216_v56  ;;  %3223 = vadd.xlane.f32.xlu0 %v3222_v36 }
 0x303   : > { %v5583_v5 = vpop.eup %5582 }
 0x304   : > { %v5585_v25 = vpop.eup %5584  ;;  %v4550_v20 = vmul.f32 %v5583_v5, %v8319_v35  ;;  %v3095_v29 = vpop.xlane.xlu2 %3094  ;;  %v3228_v35 = vsel %vm2177_vm2, %v8902_v22, 0.0 }
 0x305   : > { %v5587_v55 = vpop.eup %5586  ;;  %v4549_v23 = vmul.f32 %v5585_v25, %v8291_v14  ;;  %5588 = vrcp.f32 %v3095_v29  ;;  %v3092_v40 = vpop.xlane.xlu1 %3091  ;;  %v3231_v14 = vsel %vm2177_vm2, %v7995_v2, 0.0 }
 0x306   : > { %4676 = vst.msk [vmem:[%s7492_s27 + $0x190] sm:$0xff] %vm607_vm0, %v4550_v20  ;;  %v4551_v61 = vmul.f32 %v5587_v55, %v8334_v38  ;;  %5590 = vrcp.f32 %v3092_v40  ;;  %v3098_v15 = vpop.xlane.xlu0 %3097  ;;  %v3778_v52 = vpop.f32.mrf.mxu1  ;;  %v3243_v55 = vsel %vm2177_vm2, %v8151_v8, 0.0 }
 0x307   : > { %4675 = vst.msk [vmem:[%s7492_s27 + $0x188] sm:$0xff] %vm607_vm0, %v4549_v23  ;;  %5592 = vrcp.f32 %v3098_v15  ;;  %v3834_v6 = vpop.f32.mrf.mxu2  ;;  %v8402_v25 = vpop.f32.mrf.mxu3 }
 0x308   : > { %4677 = vst.msk [vmem:[%s7492_s27 + $0x198] sm:$0xff] %vm607_vm0, %v4551_v61  ;;  %3229 = vadd.xlane.f32.xlu2 %v3228_v35  ;;  %v8411_v29 = vpop.f32.mrf.mxu0 }
 0x30a   : > { %3226 = vadd.xlane.f32.xlu1 %v3225_v30  ;;  %3232 = vadd.xlane.f32.xlu0 %v3231_v14 }
 0x30b   : > { %v5589_v38 = vpop.eup %5588 }
 0x30c   : > { %v5591_v27 = vpop.eup %5590  ;;  %v4553_v45 = vmul.f32 %v5589_v38, %v3775_v7  ;;  %v3104_v17 = vpop.xlane.xlu2 %3103 }
 0x30d   : > { %v5593_v28 = vpop.eup %5592  ;;  %v4552_v57 = vmul.f32 %v5591_v27, %v3772_v47  ;;  %5594 = vrcp.f32 %v3104_v17  ;;  %v3101_v60 = vpop.xlane.xlu1 %3100  ;;  %v3240_v47 = vsel %vm2177_vm2, %v8117_v46, 0.0 }
 0x30e   : > { %4679 = vst.msk [vmem:[%s7492_s27 + $0x1a8] sm:$0xff] %vm607_vm0, %v4553_v45  ;;  %v4554_v59 = vmul.f32 %v5593_v28, %v3778_v52  ;;  %5596 = vrcp.f32 %v3101_v60  ;;  %v3107_v2 = vpop.xlane.xlu0 %3106  ;;  %v3781_v56 = vpop.f32.mrf.mxu1 }
 0x30f   : > { %4678 = vst.msk [vmem:[%s7492_s27 + $0x1a0] sm:$0xff] %vm607_vm0, %v4552_v57  ;;  %5598 = vrcp.f32 %v3107_v2  ;;  %v3837_v40 = vpop.f32.mrf.mxu2  ;;  %v3890_v30 = vpop.f32.mrf.mxu3 }
 0x310   : > { %4680 = vst.msk [vmem:[%s7492_s27 + $0x1b0] sm:$0xff] %vm607_vm0, %v4554_v59  ;;  %3238 = vadd.xlane.f32.xlu2 %v3237_v63  ;;  %v8432_v52 = vpop.f32.mrf.mxu0  ;;  %v3264_v63 = vsel %vm2177_vm2, %v8132_v16, 0.0 }
 0x312   : > { %3235 = vadd.xlane.f32.xlu1 %v3234_v26  ;;  %3241 = vadd.xlane.f32.xlu0 %v3240_v47  ;;  %v3261_v26 = vsel %vm2177_vm2, %v8107_v4, 0.0  ;;  %v3267_v47 = vsel %vm2177_vm2, %v8177_v19, 0.0 }
 0x313   : > { %v5595_v10 = vpop.eup %5594 }
 0x314   : > { %v5597_v32 = vpop.eup %5596  ;;  %v4556_v36 = vmul.f32 %v5595_v10, %v8338_v58  ;;  %v3113_v5 = vpop.xlane.xlu2 %3112  ;;  %v3246_v58 = vsel %vm2177_vm2, %v8170_v34, 0.0 }
 0x315   : > { %v5599_v50 = vpop.eup %5598  ;;  %v4555_v43 = vmul.f32 %v5597_v32, %v3781_v56  ;;  %5600 = vrcp.f32 %v3113_v5  ;;  %v3110_v7 = vpop.xlane.xlu1 %3109 }
 0x316   : > { %4682 = vst.msk [vmem:[%s7492_s27 + $0x1c0] sm:$0xff] %vm607_vm0, %v4556_v36  ;;  %v4557_v46 = vmul.f32 %v5599_v50, %v8354_v12  ;;  %5602 = vrcp.f32 %v3110_v7  ;;  %v3116_v20 = vpop.xlane.xlu0 %3115  ;;  %v3249_v12 = vsel %vm2177_vm2, %v7947_v37, 0.0  ;;  %v3255_v37 = vsel %vm2177_vm2, %v8022_v13, 0.0  ;;  %v8447_v10 = vpop.f32.mrf.mxu1 }
 0x317   : > { %4681 = vst.msk [vmem:[%s7492_s27 + $0x1b8] sm:$0xff] %vm607_vm0, %v4555_v43  ;;  %5604 = vrcp.f32 %v3116_v20  ;;  %v3840_v45 = vpop.f32.mrf.mxu2  ;;  %v3893_v60 = vpop.f32.mrf.mxu3  ;;  %v3270_v7 = vsel %vm2177_vm2, %v8190_v53, 0.0 }
 0x318   : > { %4683 = vst.msk [vmem:[%s7492_s27 + $0x1c8] sm:$0xff] %vm607_vm0, %v4557_v46  ;;  %3247 = vadd.xlane.f32.xlu2 %v3246_v58 }
 0x31a   : > { %3244 = vadd.xlane.f32.xlu1 %v3243_v55  ;;  %3250 = vadd.xlane.f32.xlu0 %v3249_v12 }
 0x31b   : > { %v5601_v23 = vpop.eup %5600 }
 0x31c   : > { %v5603_v61 = vpop.eup %5602  ;;  %v4559_v15 = vmul.f32 %v5601_v23, %v3831_v31  ;;  %v3122_v22 = vpop.xlane.xlu2 %3121  ;;  %v3252_v31 = vsel %vm2177_vm2, %v8002_v21, 0.0 }
 0x31d   : > { %v5605_v35 = vpop.eup %5604  ;;  %v4558_v34 = vmul.f32 %v5603_v61, %v8370_v48  ;;  %5606 = vrcp.f32 %v3122_v22  ;;  %v3119_v14 = vpop.xlane.xlu1 %3118  ;;  %v3258_v48 = vsel %vm2177_vm2, %v8066_v54, 0.0  ;;  %v3282_v22 = vsel %vm2177_vm2, %v8266_v24, 0.0 }
 0x31e   : > { %4685 = vst.msk [vmem:[%s7492_s27 + $0x1d8] sm:$0xff] %vm607_vm0, %v4559_v15  ;;  %v4560_v8 = vmul.f32 %v5605_v35, %v3834_v6  ;;  %5608 = vrcp.f32 %v3119_v14  ;;  %v3125_v38 = vpop.xlane.xlu0 %3124  ;;  %v3946_v6 = vpop.f32.mrf.mxu0  ;;  %v3279_v35 = vsel %vm2177_vm2, %v8248_v42, 0.0 }
 0x31f   : > { %4684 = vst.msk [vmem:[%s7492_s27 + $0x1d0] sm:$0xff] %vm607_vm0, %v4558_v34  ;;  %5610 = vrcp.f32 %v3125_v38  ;;  %v3896_v5 = vpop.f32.mrf.mxu3  ;;  %v8463_v20 = vpop.f32.mrf.mxu1 }
 0x320   : > { %4686 = vst.msk [vmem:[%s7492_s27 + $0x1e0] sm:$0xff] %vm607_vm0, %v4560_v8  ;;  %3256 = vadd.xlane.f32.xlu2 %v3255_v37  ;;  %v8479_v37 = vpop.f32.mrf.mxu2 }
 0x322   : > { %3253 = vadd.xlane.f32.xlu1 %v3252_v31  ;;  %3259 = vadd.xlane.f32.xlu0 %v3258_v48 }
 0x323   : > { %v5607_v27 = vpop.eup %5606 }
 0x324   : > { %v5609_v17 = vpop.eup %5608  ;;  %v4562_v28 = vmul.f32 %v5607_v27, %v3840_v45  ;;  %v3131_v57 = vpop.xlane.xlu2 %3130 }
 0x325   : > { %v5611_v13 = vpop.eup %5610  ;;  %v4561_v59 = vmul.f32 %v5609_v17, %v3837_v40  ;;  %5612 = vrcp.f32 %v3131_v57  ;;  %v3128_v21 = vpop.xlane.xlu1 %3127  ;;  %v3291_v17 = vsel %vm2177_vm2, %v8188_v51, 0.0 }
 0x326   : > { %4688 = vst.msk [vmem:[%s7492_s27 + $0x1f0] sm:$0xff] %vm607_vm0, %v4562_v28  ;;  %v4563_v2 = vmul.f32 %v5611_v13, %v8368_v18  ;;  %5614 = vrcp.f32 %v3128_v21  ;;  %v3134_v54 = vpop.xlane.xlu0 %3133  ;;  %v3949_v58 = vpop.f32.mrf.mxu0 }
 0x327   : > { %4687 = vst.msk [vmem:[%s7492_s27 + $0x1e8] sm:$0xff] %vm607_vm0, %v4561_v59  ;;  %5616 = vrcp.f32 %v3134_v54  ;;  %v3899_v40 = vpop.f32.mrf.mxu3  ;;  %v8477_v14 = vpop.f32.mrf.mxu1 }
 0x328   : > { %4689 = vst.msk [vmem:[%s7492_s27 + $0x1f8] sm:$0xff] %vm607_vm0, %v4563_v2  ;;  %3265 = vadd.xlane.f32.xlu2 %v3264_v63  ;;  %v8495_v59 = vpop.f32.mrf.mxu2 }
 0x32a   : > { %3262 = vadd.xlane.f32.xlu1 %v3261_v26  ;;  %3268 = vadd.xlane.f32.xlu0 %v3267_v47  ;;  %v3300_v26 = vsel %vm2177_vm2, %v8246_v11, 0.0  ;;  %v3297_v47 = vsel %vm2177_vm2, %v8226_v62, 0.0 }
 0x32b   : > { %v5613_v18 = vpop.eup %5612 }
 0x32c   : > { %v5615_v32 = vpop.eup %5614  ;;  %v4565_v56 = vmul.f32 %v5613_v18, %v8402_v25  ;;  %v3140_v16 = vpop.xlane.xlu2 %3139  ;;  %v3273_v25 = vsel %vm2177_vm2, %v8208_v44, 0.0  ;;  %v3303_v18 = vsel %vm2177_vm2, %v8263_v9, 0.0 }
 0x32d   : > { %v5617_v36 = vpop.eup %5616  ;;  %v4564_v4 = vmul.f32 %v5615_v32, %v8387_v3  ;;  %5618 = vrcp.f32 %v3140_v16  ;;  %v3137_v50 = vpop.xlane.xlu1 %3136  ;;  %v3276_v3 = vsel %vm2177_vm2, %v8228_v49, 0.0 }
 0x32e   : > { %4691 = vst.msk [vmem:[%s7492_s27 + $0x208] sm:$0xff] %vm607_vm0, %v4565_v56  ;;  %v4566_v19 = vmul.f32 %v5617_v36, %v3890_v30  ;;  %5620 = vrcp.f32 %v3137_v50  ;;  %v3143_v43 = vpop.xlane.xlu0 %3142  ;;  %v3285_v30 = vsel %vm2177_vm2, %v8287_v39, 0.0  ;;  %v3952_v8 = vpop.f32.mrf.mxu0 }
 0x32f   : > { %4690 = vst.msk [vmem:[%s7492_s27 + $0x200] sm:$0xff] %vm607_vm0, %v4564_v4  ;;  %5622 = vrcp.f32 %v3143_v43  ;;  %v4008_v57 = vpop.f32.mrf.mxu1  ;;  %v3306_v43 = vsel %vm2177_vm2, %v8289_v0, 0.0 }
 0x330   : > { %4692 = vst.msk [vmem:[%s7492_s27 + $0x210] sm:$0xff] %vm607_vm0, %v4566_v19  ;;  %3274 = vadd.xlane.f32.xlu2 %v3273_v25  ;;  %v4064_v36 = vpop.f32.mrf.mxu2  ;;  %v8521_v25 = vpop.f32.mrf.mxu3 }
 0x332   : > { %3271 = vadd.xlane.f32.xlu1 %v3270_v7  ;;  %3277 = vadd.xlane.f32.xlu0 %v3276_v3 }
 0x333   : > { %v5619_v46 = vpop.eup %5618 }
 0x334   : > { %v5621_v55 = vpop.eup %5620  ;;  %v4568_v12 = vmul.f32 %v5619_v46, %v3896_v5  ;;  %v3149_v23 = vpop.xlane.xlu2 %3148 }
 0x335   : > { %v5623_v44 = vpop.eup %5622  ;;  %v4567_v61 = vmul.f32 %v5621_v55, %v3893_v60  ;;  %5624 = vrcp.f32 %v3149_v23  ;;  %v3146_v53 = vpop.xlane.xlu1 %3145 }
 0x336   : > { %4694 = vst.msk [vmem:[%s7492_s27 + $0x220] sm:$0xff] %vm607_vm0, %v4568_v12  ;;  %v4569_v15 = vmul.f32 %v5623_v44, %v3899_v40  ;;  %5626 = vrcp.f32 %v3146_v53  ;;  %v3152_v49 = vpop.xlane.xlu0 %3151  ;;  %v3955_v13 = vpop.f32.mrf.mxu0 }
 0x337   : > { %4693 = vst.msk [vmem:[%s7492_s27 + $0x218] sm:$0xff] %vm607_vm0, %v4567_v61  ;;  %5628 = vrcp.f32 %v3152_v49  ;;  %v4011_v32 = vpop.f32.mrf.mxu1 }
 0x338   : > { %4695 = vst.msk [vmem:[%s7492_s27 + $0x228] sm:$0xff] %vm607_vm0, %v4569_v15  ;;  %3283 = vadd.xlane.f32.xlu2 %v3282_v22  ;;  %v4120_v40 = vpop.f32.mrf.mxu3 }
 0x33a   : > { %3280 = vadd.xlane.f32.xlu1 %v3279_v35  ;;  %3286 = vadd.xlane.f32.xlu0 %v3285_v30 }
 0x33b   : > { %v5625_v34 = vpop.eup %5624 }
 0x33c   : > { %v5627_v38 = vpop.eup %5626  ;;  %v4571_v24 = vmul.f32 %v5625_v34, %v8432_v52  ;;  %v3158_v31 = vpop.xlane.xlu2 %3157  ;;  %v3288_v52 = vsel %vm2177_vm2, %v8307_v41, 0.0 }
 0x33d   : > { %v5629_v42 = vpop.eup %5628  ;;  %v4570_v48 = vmul.f32 %v5627_v38, %v8411_v29  ;;  %5630 = vrcp.f32 %v3158_v31  ;;  %v3155_v27 = vpop.xlane.xlu1 %3154  ;;  %v3294_v29 = vsel %vm2177_vm2, %v8204_v33, 0.0 }
 0x33e   : > { %4697 = vst.msk [vmem:[%s7492_s27 + $0x238] sm:$0xff] %vm607_vm0, %v4571_v24  ;;  %v4572_v39 = vmul.f32 %v5629_v42, %v3946_v6  ;;  %5632 = vrcp.f32 %v3155_v27  ;;  %v3161_v45 = vpop.xlane.xlu0 %3160  ;;  %v3958_v56 = vpop.f32.mrf.mxu0 }
 0x33f   : > { %4696 = vst.msk [vmem:[%s7492_s27 + $0x230] sm:$0xff] %vm607_vm0, %v4570_v48  ;;  %5634 = vrcp.f32 %v3161_v45  ;;  %v4014_v46 = vpop.f32.mrf.mxu1 }
 0x340   : > { %4698 = vst.msk [vmem:[%s7492_s27 + $0x240] sm:$0xff] %vm607_vm0, %v4572_v39  ;;  %3292 = vadd.xlane.f32.xlu2 %v3291_v17  ;;  %v4123_v31 = vpop.f32.mrf.mxu3 }
 0x342   : > { %3289 = vadd.xlane.f32.xlu1 %v3288_v52  ;;  %3295 = vadd.xlane.f32.xlu0 %v3294_v29 }
 0x343   : > { %v5631_v28 = vpop.eup %5630 }
 0x344   : > { %v5633_v60 = vpop.eup %5632  ;;  %v4574_v21 = vmul.f32 %v5631_v28, %v3952_v8  ;;  %v3167_v51 = vpop.xlane.xlu2 %3166 }
 0x345   : > { %v5635_v2 = vpop.eup %5634  ;;  %v4573_v54 = vmul.f32 %v5633_v60, %v3949_v58  ;;  %5636 = vrcp.f32 %v3167_v51  ;;  %v3164_v41 = vpop.xlane.xlu1 %3163 }
 0x346   : > { %4700 = vst.msk [vmem:[%s7492_s27 + $0x250] sm:$0xff] %vm607_vm0, %v4574_v21  ;;  %v4575_v63 = vmul.f32 %v5635_v2, %v3955_v13  ;;  %5638 = vrcp.f32 %v3164_v41  ;;  %v3170_v33 = vpop.xlane.xlu0 %3169  ;;  %v8533_v24 = vpop.f32.mrf.mxu0 }
 0x347   : > { %4699 = vst.msk [vmem:[%s7492_s27 + $0x248] sm:$0xff] %vm607_vm0, %v4573_v54  ;;  %5640 = vrcp.f32 %v3170_v33  ;;  %v4017_v53 = vpop.f32.mrf.mxu1 }
 0x348   : > { %4701 = vst.msk [vmem:[%s7492_s27 + $0x258] sm:$0xff] %vm607_vm0, %v4575_v63  ;;  %3301 = vadd.xlane.f32.xlu2 %v3300_v26  ;;  %v4126_v13 = vpop.f32.mrf.mxu3 }
 0x34a   : > { %3298 = vadd.xlane.f32.xlu1 %v3297_v47  ;;  %3304 = vadd.xlane.f32.xlu0 %v3303_v18 }
 0x34b   : > { %v5637_v6 = vpop.eup %5636 }
 0x34c   : > { %v5639_v16 = vpop.eup %5638  ;;  %v4577_v5 = vmul.f32 %v5637_v6, %v8447_v10  ;;  %v3176_v11 = vpop.xlane.xlu2 %3175  ;;  %v3309_v10 = vsel %vm2177_vm2, %v8305_v1, 0.0 }
 0x34d   : > { %v5641_v4 = vpop.eup %5640  ;;  %v4576_v50 = vmul.f32 %v5639_v16, %v3958_v56  ;;  %5642 = vrcp.f32 %v3176_v11  ;;  %v3173_v62 = vpop.xlane.xlu1 %3172 }
 0x34e   : > { %4703 = vst.msk [vmem:[%s7492_s27 + $0x268] sm:$0xff] %vm607_vm0, %v4577_v5  ;;  %v4578_v19 = vmul.f32 %v5641_v4, %v8463_v20  ;;  %5644 = vrcp.f32 %v3173_v62  ;;  %v3179_v9 = vpop.xlane.xlu0 %3178  ;;  %v4067_v20 = vpop.f32.mrf.mxu2 }
 0x34f   : > { %4702 = vst.msk [vmem:[%s7492_s27 + $0x260] sm:$0xff] %vm607_vm0, %v4576_v50  ;;  %5646 = vrcp.f32 %v3179_v9  ;;  %v8548_v26 = vpop.f32.mrf.mxu1 }
 0x350   : > { %4704 = vst.msk [vmem:[%s7492_s27 + $0x270] sm:$0xff] %vm607_vm0, %v4578_v19  ;;  %3310 = vadd.xlane.f32.xlu2 %v3309_v10 }
 0x352   : > { %3307 = vadd.xlane.f32.xlu1 %v3306_v43 }
 0x353   : > { %v5643_v7 = vpop.eup %5642 }
 0x354   : > { %v5645_v3 = vpop.eup %5644  ;;  %v4580_v58 = vmul.f32 %v5643_v7, %v4008_v57  ;;  %v3185_v23 = vpop.xlane.xlu2 %3184 }
 0x355   : > { %v5647_v55 = vpop.eup %5646  ;;  %v4579_v12 = vmul.f32 %v5645_v3, %v8477_v14  ;;  %v3182_v44 = vpop.xlane.xlu1 %3181  ;;  %5648 = vrcp.f32 %v3185_v23 }
 0x356   : > { %4706 = vst.msk [vmem:[%s7492_s27 + $0x280] sm:$0xff] %vm607_vm0, %v4580_v58  ;;  %v4581_v1 = vmul.f32 %v5647_v55, %v4011_v32  ;;  %v3188_v0 = vpop.xlane.xlu0 %3187  ;;  %5650 = vrcp.f32 %v3182_v44  ;;  %v4070_v15 = vpop.f32.mrf.mxu2 }
 0x357   : > { %4705 = vst.msk [vmem:[%s7492_s27 + $0x278] sm:$0xff] %vm607_vm0, %v4579_v12  ;;  %5652 = vrcp.f32 %v3188_v0  ;;  %v8542_v57 = vpop.f32.mrf.mxu0  ;;  %v4129_v32 = vpop.f32.mrf.mxu3 }
 0x358   : > { %4707 = vst.msk [vmem:[%s7492_s27 + $0x288] sm:$0xff] %vm607_vm0, %v4581_v1  ;;  %v8559_v62 = vpop.f32.mrf.mxu1 }
 0x35b   : > { %v5649_v61 = vpop.eup %5648 }
 0x35c   : > { %v5651_v49 = vpop.eup %5650  ;;  %v4583_v22 = vmul.f32 %v5649_v61, %v4017_v53  ;;  %v3194_v35 = vpop.xlane.xlu2 %3193 }
 0x35d   : > { %v3191_v30 = vpop.xlane.xlu1 %3190  ;;  %v5653_v34 = vpop.eup %5652  ;;  %v4582_v14 = vmul.f32 %v5651_v49, %v4014_v46  ;;  %5654 = vrcp.f32 %v3194_v35 }
 0x35e   : > { %v3197_v8 = vpop.xlane.xlu0 %3196  ;;  %4709 = vst.msk [vmem:[%s7492_s27 + $0x298] sm:$0xff] %vm607_vm0, %v4583_v22  ;;  %v4584_v38 = vmul.f32 %v5653_v34, %v8479_v37  ;;  %5656 = vrcp.f32 %v3191_v30  ;;  %v4073_v52 = vpop.f32.mrf.mxu2 }
 0x35f   : > { %4708 = vst.msk [vmem:[%s7492_s27 + $0x290] sm:$0xff] %vm607_vm0, %v4582_v14  ;;  %5658 = vrcp.f32 %v3197_v8  ;;  %v8552_v18 = vpop.f32.mrf.mxu0  ;;  %v4132_v43 = vpop.f32.mrf.mxu3 }
 0x360   : > { %4710 = vst.msk [vmem:[%s7492_s27 + $0x2a0] sm:$0xff] %vm607_vm0, %v4584_v38  ;;  %v4241_v44 = vpop.f32.mrf.mxu1 }
 0x363   : > { %v5655_v42 = vpop.eup %5654 }
 0x364   : > { %v5657_v48 = vpop.eup %5656  ;;  %v4586_v27 = vmul.f32 %v5655_v42, %v4064_v36  ;;  %v3203_v39 = vpop.xlane.xlu2 %3202 }
 0x365   : > { %v3200_v45 = vpop.xlane.xlu1 %3199  ;;  %v5659_v17 = vpop.eup %5658  ;;  %v4585_v37 = vmul.f32 %v5657_v48, %v8495_v59  ;;  %5660 = vrcp.f32 %v3203_v39 }
 0x366   : > { %v3206_v29 = vpop.xlane.xlu0 %3205  ;;  %4712 = vst.msk [vmem:[%s7492_s27 + $0x2b0] sm:$0xff] %vm607_vm0, %v4586_v27  ;;  %v4587_v28 = vmul.f32 %v5659_v17, %v4067_v20  ;;  %5662 = vrcp.f32 %v3200_v45  ;;  %v4076_v41 = vpop.f32.mrf.mxu2 }
 0x367   : > { %4711 = vst.msk [vmem:[%s7492_s27 + $0x2a8] sm:$0xff] %vm607_vm0, %v4585_v37  ;;  %5664 = vrcp.f32 %v3206_v29  ;;  %v4185_v9 = vpop.f32.mrf.mxu0 }
 0x368   : > { %4713 = vst.msk [vmem:[%s7492_s27 + $0x2b8] sm:$0xff] %vm607_vm0, %v4587_v28  ;;  %v4244_v14 = vpop.f32.mrf.mxu1 }
 0x36b   : > { %v5661_v60 = vpop.eup %5660 }
 0x36c   : > { %v5663_v21 = vpop.eup %5662  ;;  %v4589_v59 = vmul.f32 %v5661_v60, %v4073_v52  ;;  %v3212_v51 = vpop.xlane.xlu2 %3211 }
 0x36d   : > { %v3209_v2 = vpop.xlane.xlu1 %3208  ;;  %v5665_v54 = vpop.eup %5664  ;;  %v4588_v63 = vmul.f32 %v5663_v21, %v4070_v15  ;;  %5666 = vrcp.f32 %v3212_v51 }
 0x36e   : > { %v3215_v33 = vpop.xlane.xlu0 %3214  ;;  %4715 = vst.msk [vmem:[%s7492_s27 + $0x2c8] sm:$0xff] %vm607_vm0, %v4589_v59  ;;  %v4590_v47 = vmul.f32 %v5665_v54, %v4076_v41  ;;  %5668 = vrcp.f32 %v3209_v2  ;;  %v8569_v23 = vpop.f32.mrf.mxu2 }
 0x36f   : > { %4714 = vst.msk [vmem:[%s7492_s27 + $0x2c0] sm:$0xff] %vm607_vm0, %v4588_v63  ;;  %5670 = vrcp.f32 %v3215_v33  ;;  %v4188_v1 = vpop.f32.mrf.mxu0 }
 0x370   : > { %4716 = vst.msk [vmem:[%s7492_s27 + $0x2d0] sm:$0xff] %vm607_vm0, %v4590_v47  ;;  %v4247_v29 = vpop.f32.mrf.mxu1 }
 0x373   : > { %v5667_v6 = vpop.eup %5666 }
 0x374   : > { %v5669_v56 = vpop.eup %5668  ;;  %v4592_v16 = vmul.f32 %v5667_v6, %v4120_v40  ;;  %v3221_v36 = vpop.xlane.xlu2 %3220 }
 0x375   : > { %v3218_v5 = vpop.xlane.xlu1 %3217  ;;  %v5671_v11 = vpop.eup %5670  ;;  %v4591_v4 = vmul.f32 %v5669_v56, %v8521_v25  ;;  %5672 = vrcp.f32 %v3221_v36 }
 0x376   : > { %v3224_v50 = vpop.xlane.xlu0 %3223  ;;  %4718 = vst.msk [vmem:[%s7492_s27 + $0x2e0] sm:$0xff] %vm607_vm0, %v4592_v16  ;;  %v4593_v19 = vmul.f32 %v5671_v11, %v4123_v31  ;;  %5674 = vrcp.f32 %v3218_v5  ;;  %v4135_v40 = vpop.f32.mrf.mxu3 }
 0x377   : > { %4717 = vst.msk [vmem:[%s7492_s27 + $0x2d8] sm:$0xff] %vm607_vm0, %v4591_v4  ;;  %5676 = vrcp.f32 %v3224_v50  ;;  %v4191_v8 = vpop.f32.mrf.mxu0  ;;  %v8583_v38 = vpop.f32.mrf.mxu2 }
 0x378   : > { %4719 = vst.msk [vmem:[%s7492_s27 + $0x2e8] sm:$0xff] %vm607_vm0, %v4593_v19 }
 0x37b   : > { %v5673_v10 = vpop.eup %5672 }
 0x37c   : > { %v5675_v25 = vpop.eup %5674  ;;  %v4595_v7 = vmul.f32 %v5673_v10, %v4129_v32  ;;  %v3230_v3 = vpop.xlane.xlu2 %3229 }
 0x37d   : > { %v3227_v46 = vpop.xlane.xlu1 %3226  ;;  %v5677_v20 = vpop.eup %5676  ;;  %v4594_v58 = vmul.f32 %v5675_v25, %v4126_v13  ;;  %5678 = vrcp.f32 %v3230_v3 }
 0x37e   : > { %v3233_v55 = vpop.xlane.xlu0 %3232  ;;  %4721 = vst.msk [vmem:[%s7492_s27 + $0x2f8] sm:$0xff] %vm607_vm0, %v4595_v7  ;;  %v4596_v12 = vmul.f32 %v5677_v20, %v4132_v43  ;;  %5680 = vrcp.f32 %v3227_v46  ;;  %v8588_v37 = vpop.f32.mrf.mxu3 }
 0x37f   : > { %4720 = vst.msk [vmem:[%s7492_s27 + $0x2f0] sm:$0xff] %vm607_vm0, %v4594_v58  ;;  %5682 = vrcp.f32 %v3233_v55  ;;  %v4300_v13 = vpop.f32.mrf.mxu2 }
 0x380   : > { %4722 = vst.msk [vmem:[%s7492_s27 + $0x300] sm:$0xff] %vm607_vm0, %v4596_v12 }
 0x383   : > { %v5679_v0 = vpop.eup %5678 }
 0x384   : > { %v5681_v61 = vpop.eup %5680  ;;  %v4598_v53 = vmul.f32 %v5679_v0, %v8533_v24  ;;  %v3239_v15 = vpop.xlane.xlu2 %3238 }
 0x385   : > { %v3236_v49 = vpop.xlane.xlu1 %3235  ;;  %v5683_v22 = vpop.eup %5682  ;;  %v4597_v35 = vmul.f32 %v5681_v61, %v4135_v40  ;;  %5684 = vrcp.f32 %v3239_v15 }
 0x386   : > { %v3242_v30 = vpop.xlane.xlu0 %3241  ;;  %4724 = vst.msk [vmem:[%s7492_s27 + $0x310] sm:$0xff] %vm607_vm0, %v4598_v53  ;;  %v4599_v34 = vmul.f32 %v5683_v22, %v8542_v57  ;;  %5686 = vrcp.f32 %v3236_v49  ;;  %v4194_v57 = vpop.f32.mrf.mxu0 }
 0x387   : > { %4723 = vst.msk [vmem:[%s7492_s27 + $0x308] sm:$0xff] %vm607_vm0, %v4597_v35  ;;  %5688 = vrcp.f32 %v3242_v30  ;;  %v8601_v33 = vpop.f32.mrf.mxu3  ;;  %v4303_v5 = vpop.f32.mrf.mxu2 }
 0x388   : > { %4725 = vst.msk [vmem:[%s7492_s27 + $0x318] sm:$0xff] %vm607_vm0, %v4599_v34 }
 0x38b   : > { %v5685_v24 = vpop.eup %5684 }
 0x38c   : > { %v5687_v31 = vpop.eup %5686  ;;  %v4601_v42 = vmul.f32 %v5685_v24, %v4185_v9  ;;  %v3248_v48 = vpop.xlane.xlu2 %3247 }
 0x38d   : > { %v3245_v27 = vpop.xlane.xlu1 %3244  ;;  %v5689_v39 = vpop.eup %5688  ;;  %v4600_v45 = vmul.f32 %v5687_v31, %v8552_v18  ;;  %5690 = vrcp.f32 %v3248_v48 }
 0x38e   : > { %v3251_v17 = vpop.xlane.xlu0 %3250  ;;  %4727 = vst.msk [vmem:[%s7492_s27 + $0x328] sm:$0xff] %vm607_vm0, %v4601_v42  ;;  %v4602_v52 = vmul.f32 %v5689_v39, %v4188_v1  ;;  %5692 = vrcp.f32 %v3245_v27  ;;  %v4250_v18 = vpop.f32.mrf.mxu1 }
 0x38f   : > { %4726 = vst.msk [vmem:[%s7492_s27 + $0x320] sm:$0xff] %vm607_vm0, %v4600_v45  ;;  %5694 = vrcp.f32 %v3251_v17  ;;  %v8610_v19 = vpop.f32.mrf.mxu3  ;;  %v4306_v58 = vpop.f32.mrf.mxu2 }
 0x390   : > { %4728 = vst.msk [vmem:[%s7492_s27 + $0x330] sm:$0xff] %vm607_vm0, %v4602_v52 }
 0x393   : > { %v5691_v28 = vpop.eup %5690 }
 0x394   : > { %v5693_v60 = vpop.eup %5692  ;;  %v4604_v21 = vmul.f32 %v5691_v28, %v4194_v57  ;;  %v3257_v59 = vpop.xlane.xlu2 %3256 }
 0x395   : > { %v3254_v51 = vpop.xlane.xlu1 %3253  ;;  %v5695_v2 = vpop.eup %5694  ;;  %v4603_v54 = vmul.f32 %v5693_v60, %v4191_v8  ;;  %5696 = vrcp.f32 %v3257_v59 }
 0x396   : > { %v3260_v41 = vpop.xlane.xlu0 %3259  ;;  %4730 = vst.msk [vmem:[%s7492_s27 + $0x340] sm:$0xff] %vm607_vm0, %v4604_v21  ;;  %v4605_v63 = vmul.f32 %v5695_v2, %v8548_v26  ;;  %5698 = vrcp.f32 %v3254_v51  ;;  %v4253_v7 = vpop.f32.mrf.mxu1 }
 0x397   : > { %4729 = vst.msk [vmem:[%s7492_s27 + $0x338] sm:$0xff] %vm607_vm0, %v4603_v54  ;;  %5700 = vrcp.f32 %v3260_v41  ;;  %v4362_v61 = vpop.f32.mrf.mxu3  ;;  %v4309_v22 = vpop.f32.mrf.mxu2 }
 0x398   : > { %4731 = vst.msk [vmem:[%s7492_s27 + $0x348] sm:$0xff] %vm607_vm0, %v4605_v63 }
 0x39b   : > { %v5697_v47 = vpop.eup %5696 }
 0x39c   : > { %v5699_v6 = vpop.eup %5698  ;;  %v4607_v32 = vmul.f32 %v5697_v47, %v4241_v44  ;;  %v3266_v56 = vpop.xlane.xlu2 %3265 }
 0x39d   : > { %v3263_v16 = vpop.xlane.xlu1 %3262  ;;  %v5701_v36 = vpop.eup %5700  ;;  %v4606_v26 = vmul.f32 %v5699_v6, %v8559_v62  ;;  %5702 = vrcp.f32 %v3266_v56 }
 0x39e   : > { %v3269_v11 = vpop.xlane.xlu0 %3268  ;;  %4733 = vst.msk [vmem:[%s7492_s27 + $0x358] sm:$0xff] %vm607_vm0, %v4607_v32  ;;  %v4608_v4 = vmul.f32 %v5701_v36, %v4244_v14  ;;  %5704 = vrcp.f32 %v3263_v16 }
 0x39f   : > { %4732 = vst.msk [vmem:[%s7492_s27 + $0x350] sm:$0xff] %vm607_vm0, %v4606_v26  ;;  %5706 = vrcp.f32 %v3269_v11  ;;  %v4365_v42 = vpop.f32.mrf.mxu3  ;;  %v4312_v27 = vpop.f32.mrf.mxu2 }
 0x3a0   : > { %4734 = vst.msk [vmem:[%s7492_s27 + $0x360] sm:$0xff] %vm607_vm0, %v4608_v4 }
 0x3a3   : > { %v5703_v50 = vpop.eup %5702 }
 0x3a4   : > { %v5705_v9 = vpop.eup %5704  ;;  %v4610_v10 = vmul.f32 %v5703_v50, %v4250_v18  ;;  %v3275_v62 = vpop.xlane.xlu2 %3274 }
 0x3a5   : > { %v3272_v43 = vpop.xlane.xlu1 %3271  ;;  %v5707_v25 = vpop.eup %5706  ;;  %v4609_v3 = vmul.f32 %v5705_v9, %v4247_v29  ;;  %5708 = vrcp.f32 %v3275_v62 }
 0x3a6   : > { %v3278_v46 = vpop.xlane.xlu0 %3277  ;;  %4736 = vst.msk [vmem:[%s7492_s27 + $0x370] sm:$0xff] %vm607_vm0, %v4610_v10  ;;  %v4611_v20 = vmul.f32 %v5707_v25, %v4253_v7  ;;  %5710 = vrcp.f32 %v3272_v43 }
 0x3a7   : > { %4735 = vst.msk [vmem:[%s7492_s27 + $0x368] sm:$0xff] %vm607_vm0, %v4609_v3  ;;  %5712 = vrcp.f32 %v3278_v46 }
 0x3a8   : > { %4737 = vst.msk [vmem:[%s7492_s27 + $0x378] sm:$0xff] %vm607_vm0, %v4611_v20 }
 0x3ab   : > { %v5709_v55 = vpop.eup %5708 }
 0x3ac   : > { %v5711_v12 = vpop.eup %5710  ;;  %v4613_v44 = vmul.f32 %v5709_v55, %v8583_v38  ;;  %v3284_v1 = vpop.xlane.xlu2 %3283 }
 0x3ad   : > { %v3281_v0 = vpop.xlane.xlu1 %3280  ;;  %v5713_v40 = vpop.eup %5712  ;;  %v4612_v53 = vmul.f32 %v5711_v12, %v8569_v23  ;;  %5714 = vrcp.f32 %v3284_v1 }
 0x3ae   : > { %v3287_v15 = vpop.xlane.xlu0 %3286  ;;  %4739 = vst.msk [vmem:[%s7492_s27 + $0x388] sm:$0xff] %vm607_vm0, %v4613_v44  ;;  %v4614_v49 = vmul.f32 %v5713_v40, %v4300_v13  ;;  %5716 = vrcp.f32 %v3281_v0 }
 0x3af   : > { %4738 = vst.msk [vmem:[%s7492_s27 + $0x380] sm:$0xff] %vm607_vm0, %v4612_v53  ;;  %5718 = vrcp.f32 %v3287_v15 }
 0x3b0   : > { %4740 = vst.msk [vmem:[%s7492_s27 + $0x390] sm:$0xff] %vm607_vm0, %v4614_v49 }
 0x3b3   : > { %v5715_v35 = vpop.eup %5714 }
 0x3b4   : > { %v5717_v30 = vpop.eup %5716  ;;  %v4616_v34 = vmul.f32 %v5715_v35, %v4306_v58  ;;  %v3293_v14 = vpop.xlane.xlu2 %3292 }
 0x3b5   : > { %v3290_v23 = vpop.xlane.xlu1 %3289  ;;  %v5719_v8 = vpop.eup %5718  ;;  %v4615_v38 = vmul.f32 %v5717_v30, %v4303_v5  ;;  %5720 = vrcp.f32 %v3293_v14 }
 0x3b6   : > { %v3296_v24 = vpop.xlane.xlu0 %3295  ;;  %4742 = vst.msk [vmem:[%s7492_s27 + $0x3a0] sm:$0xff] %vm607_vm0, %v4616_v34  ;;  %v4617_v31 = vmul.f32 %v5719_v8, %v4309_v22  ;;  %5722 = vrcp.f32 %v3290_v23 }
 0x3b7   : > { %4741 = vst.msk [vmem:[%s7492_s27 + $0x398] sm:$0xff] %vm607_vm0, %v4615_v38  ;;  %5724 = vrcp.f32 %v3296_v24 }
 0x3b8   : > { %4743 = vst.msk [vmem:[%s7492_s27 + $0x3a8] sm:$0xff] %vm607_vm0, %v4617_v31 }
 0x3bb   : > { %v5721_v48 = vpop.eup %5720 }
 0x3bc   : > { %v5723_v39 = vpop.eup %5722  ;;  %v4619_v45 = vmul.f32 %v5721_v48, %v8588_v37  ;;  %v3302_v17 = vpop.xlane.xlu2 %3301 }
 0x3bd   : > { %v3299_v52 = vpop.xlane.xlu1 %3298  ;;  %v5725_v29 = vpop.eup %5724  ;;  %v4618_v28 = vmul.f32 %v5723_v39, %v4312_v27  ;;  %5726 = vrcp.f32 %v3302_v17 }
 0x3be   : > { %v3305_v57 = vpop.xlane.xlu0 %3304  ;;  %4745 = vst.msk [vmem:[%s7492_s27 + $0x3b8] sm:$0xff] %vm607_vm0, %v4619_v45  ;;  %v4620_v13 = vmul.f32 %v5725_v29, %v8601_v33  ;;  %5728 = vrcp.f32 %v3299_v52  ;;  %v4368_v37 = vpop.f32.mrf.mxu3 }
 0x3bf   : > { %4744 = vst.msk [vmem:[%s7492_s27 + $0x3b0] sm:$0xff] %vm607_vm0, %v4618_v28  ;;  %5730 = vrcp.f32 %v3305_v57 }
 0x3c0   : > { %4746 = vst.msk [vmem:[%s7492_s27 + $0x3c0] sm:$0xff] %vm607_vm0, %v4620_v13 }
 0x3c3   : > { %v5727_v60 = vpop.eup %5726 }
 0x3c4   : > { %v5729_v21 = vpop.eup %5728  ;;  %v4622_v59 = vmul.f32 %v5727_v60, %v4362_v61  ;;  %v3311_v51 = vpop.xlane.xlu2 %3310 }
 0x3c5   : > { %v3308_v2 = vpop.xlane.xlu1 %3307  ;;  %v5731_v54 = vpop.eup %5730  ;;  %v4621_v41 = vmul.f32 %v5729_v21, %v8610_v19  ;;  %5732 = vrcp.f32 %v3311_v51 }
 0x3c6   : > { %4748 = vst.msk [vmem:[%s7492_s27 + $0x3d0] sm:$0xff] %vm607_vm0, %v4622_v59  ;;  %v4623_v63 = vmul.f32 %v5731_v54, %v4365_v42  ;;  %5734 = vrcp.f32 %v3308_v2  ;;  %v4371_v47 = vpop.f32.mrf.mxu3 }
 0x3c7   : > { %4747 = vst.msk [vmem:[%s7492_s27 + $0x3c8] sm:$0xff] %vm607_vm0, %v4621_v41 }
 0x3c8   : > { %4749 = vst.msk [vmem:[%s7492_s27 + $0x3d8] sm:$0xff] %vm607_vm0, %v4623_v63 }
 0x3cb   : > { %v5733_v33 = vpop.eup %5732 }
 0x3cc   : > { %v5735_v18 = vpop.eup %5734  ;;  %v4625_v6 = vmul.f32 %v5733_v33, %v4371_v47 }
 0x3cd   : > { %v4624_v32 = vmul.f32 %v5735_v18, %v4368_v37 }
 0x3ce   : > { %4751 = vst.msk [vmem:[%s7492_s27 + $0x3e8] sm:$0xff] %vm607_vm0, %v4625_v6 }
 0x3cf   : > { %4750 = vst.msk [vmem:[%s7492_s27 + $0x3e0] sm:$0xff] %vm607_vm0, %v4624_v32 }
 0x3d0 PF: > { %s13_s12 = sadd.s32 1, %s5742_s12  }
 0x3d1   : > { %p10_p4 = scmp.ge.s32.totalorder %s13_s12, 4  }
 0x3d3   :  { %12 = sbr.rel (!%p10_p4) target bundleno = 1 (0x1), region = 68 }

</bundles_post_ra>
